<compile_context>
chip_gen: v7x
topology: tpu7x:2x2x1
jax: 0.10.0
libtpu: 0.0.40
codegen_flags: <defaults>
</compile_context>

<pallas_src>
import numpy as np
import jax
import jax.numpy as jnp
from jax.experimental import pallas as pl
from jax.experimental.pallas import tpu as pltpu

NUM_ANCHORS = 896
NUM_COORDS = 16
NUM_CLASSES = 1
IOU_ROW_TILE = 128  # 896 / 128 = 7 row tiles; keeps per-step VMEM temporaries tiny


# ----------------------------------------------------------------------------
# Pallas kernel 1: image preprocessing  (x / 127.5 - 1.0), elementwise
# ----------------------------------------------------------------------------
def _preprocess_kernel(x_ref, o_ref):
    # multiply by precomputed reciprocal instead of divide (VALU-only)
    o_ref[...] = x_ref[...].astype(jnp.float32) * jnp.float32(1.0 / 127.5) - 1.0


def preprocess_pallas(x):
    # Whole batch as one block (~393 KiB at B=2).  If B grows, cap per-buffer
    # block at ~8 MiB so 2 bufs x 2 inputs stay inside the default scoped-VMEM
    # limit on all generations (incl. v7x's 64 MiB physical VMEM).
    blk = x.shape
    return pl.pallas_call(
        _preprocess_kernel,
        out_shape=jax.ShapeDtypeStruct(x.shape, jnp.float32),
        grid=(1,),
        in_specs=[pl.BlockSpec(blk, lambda i: (0, 0, 0, 0))],
        out_specs=pl.BlockSpec(blk, lambda i: (0, 0, 0, 0)),
    )(x)


# ----------------------------------------------------------------------------
# Pallas kernel 2: box decoding + score clamp/sigmoid (_decode_boxes +
# score part of _tensors_to_detections), whole batch in one invocation.
# ----------------------------------------------------------------------------
def _make_decode_kernel(x_scale, y_scale, w_scale, h_scale, clip_thresh):
    inv_x = float(1.0 / x_scale)
    inv_y = float(1.0 / y_scale)
    inv_w = float(1.0 / w_scale)
    inv_h = float(1.0 / h_scale)

    def kernel(raw_ref, score_ref, anc_ref, boxes_ref, scores_ref):
        raw = raw_ref[...]                        # (B, 16, A) coord-major
        anc = anc_ref[...]                        # (1, 4, A)  [x_c, y_c, w, h]
        ax, ay = anc[:, 0:1, :], anc[:, 1:2, :]
        aw, ah = anc[:, 2:3, :], anc[:, 3:4, :]

        x_c = raw[:, 0:1, :] * inv_x * aw + ax
        y_c = raw[:, 1:2, :] * inv_y * ah + ay
        w = raw[:, 2:3, :] * inv_w * aw
        h = raw[:, 3:4, :] * inv_h * ah

        # direct row stores (no concatenate staging)
        boxes_ref[:, 0:1, :] = y_c - 0.5 * h      # ymin
        boxes_ref[:, 1:2, :] = x_c - 0.5 * w      # xmin
        boxes_ref[:, 2:3, :] = y_c + 0.5 * h      # ymax
        boxes_ref[:, 3:4, :] = x_c + 0.5 * w      # xmax

        # keypoints: select per-row scale/offset first (single mul/add pass)
        kp = raw[:, 4:16, :]                      # (B, 12, A)
        row = jax.lax.broadcasted_iota(jnp.int32, (1, 12, NUM_ANCHORS), 1)
        is_x = (row % 2) == 0                     # even local rows: x keypoints
        kp_scale = jnp.where(is_x, inv_x * aw, inv_y * ah)   # (1, 12, A)
        kp_off = jnp.where(is_x, ax, ay)                      # (1, 12, A)
        boxes_ref[:, 4:16, :] = kp * kp_scale + kp_off

        s = jnp.clip(score_ref[...], -clip_thresh, clip_thresh)
        scores_ref[...] = jax.nn.sigmoid(s)

    return kernel


def decode_pallas(raw_boxes, raw_scores, anchors, scales, clip_thresh):
    # raw_boxes: (B, 896, 16); raw_scores: (B, 896, 1); anchors: (896, 4)
    B = raw_boxes.shape[0]
    raw_t = jnp.transpose(raw_boxes.astype(jnp.float32), (0, 2, 1))      # (B, 16, 896)
    score_t = jnp.transpose(raw_scores.astype(jnp.float32), (0, 2, 1))   # (B, 1, 896)
    anc_t = jnp.transpose(anchors.astype(jnp.float32), (1, 0))[None]     # (1, 4, 896)
    x_s, y_s, w_s, h_s = scales

    boxes_t, scores_t = pl.pallas_call(
        _make_decode_kernel(x_s, y_s, w_s, h_s, clip_thresh),
        out_shape=(
            jax.ShapeDtypeStruct((B, NUM_COORDS, NUM_ANCHORS), jnp.float32),
            jax.ShapeDtypeStruct((B, NUM_CLASSES, NUM_ANCHORS), jnp.float32),
        ),
        grid=(1,),  # batch collapsed: whole problem is ~114 KiB, one invocation
        in_specs=[
            pl.BlockSpec((B, NUM_COORDS, NUM_ANCHORS), lambda i: (0, 0, 0)),
            pl.BlockSpec((B, NUM_CLASSES, NUM_ANCHORS), lambda i: (0, 0, 0)),
            pl.BlockSpec((1, 4, NUM_ANCHORS), lambda i: (0, 0, 0)),
        ],
        out_specs=(
            pl.BlockSpec((B, NUM_COORDS, NUM_ANCHORS), lambda i: (0, 0, 0)),
            pl.BlockSpec((B, NUM_CLASSES, NUM_ANCHORS), lambda i: (0, 0, 0)),
        ),
    )(raw_t, score_t, anc_t)

    # keep boxes coord-major; the (cheap) back-transpose happens on the host.
    return boxes_t, scores_t


# ----------------------------------------------------------------------------
# Pallas kernel 3: batched pairwise IoU over ALL anchors (shape-static).
# Full (896, 896) matrix per image; the host NMS indexes sub-matrices, so there
# are no data-dependent shapes / recompiles and no per-image launches.
# ----------------------------------------------------------------------------
def _iou_kernel(a_ref, bt_ref, o_ref):
    a = a_ref[0]          # (rows, 4)  [min0, min1, max0, max1], rows on sublanes
    bt = bt_ref[0]        # (4, A)     columns on lanes
    a0, a1, a2, a3 = a[:, 0:1], a[:, 1:2], a[:, 2:3], a[:, 3:4]       # (rows, 1)
    b0, b1, b2, b3 = bt[0:1, :], bt[1:2, :], bt[2:3, :], bt[3:4, :]   # (1, A)
    iw = jnp.maximum(jnp.minimum(a2, b2) - jnp.maximum(a0, b0), 0.0)
    ih = jnp.maximum(jnp.minimum(a3, b3) - jnp.maximum(a1, b1), 0.0)
    inter = iw * ih
    area_a = (a2 - a0) * (a3 - a1)
    area_b = (b2 - b0) * (b3 - b1)
    union = area_a + area_b - inter
    # guard degenerate boxes (union <= 0) against NaN/Inf; identical for valid boxes
    o_ref[0] = jnp.where(union > 0.0, inter / union, 0.0)


def batched_iou_pallas(corners_t):
    # corners_t: (B, 4, 896) coord-major [ymin, xmin, ymax, xmax]
    B, _, A = corners_t.shape
    corners = jnp.transpose(corners_t, (0, 2, 1))   # (B, 896, 4) rows-on-sublanes
    n_row_tiles = A // IOU_ROW_TILE
    return pl.pallas_call(
        _iou_kernel,
        out_shape=jax.ShapeDtypeStruct((B, A, A), jnp.float32),
        grid=(B, n_row_tiles),
        in_specs=[
            pl.BlockSpec((1, IOU_ROW_TILE, 4), lambda b, r: (b, r, 0)),
            pl.BlockSpec((1, 4, A), lambda b, r: (b, 0, 0)),
        ],
        out_specs=pl.BlockSpec((1, IOU_ROW_TILE, A), lambda b, r: (b, r, 0)),
        compiler_params=pltpu.CompilerParams(
            dimension_semantics=("parallel", "parallel")),  # batch axis shards across v7x's 2 TCs
    )(corners, corners_t)


# ----------------------------------------------------------------------------
# One jitted device pipeline: preprocess + decode + batched IoU.
# Single compile, single host round trip.
# ----------------------------------------------------------------------------
def build_device_pipeline(scales, clip_thresh):
    @jax.jit
    def pipeline(x, raw_boxes, raw_scores, anchors):
        xp = preprocess_pallas(x)  # would feed the ONNX detector (see TODO above)
        boxes_t, scores_t = decode_pallas(raw_boxes, raw_scores, anchors,
                                          scales, clip_thresh)
        iou = batched_iou_pallas(boxes_t[:, 0:4, :])
        return xp, boxes_t, scores_t[:, 0, :], iou

    return pipeline


# ----------------------------------------------------------------------------
# Host-side glue: weighted NMS (data-dependent while loop -> plain numpy;
# IoU values come pre-computed from the batched Pallas kernel above).
# ----------------------------------------------------------------------------
def weighted_nms_np(dets, iou_mat, min_suppression_threshold):
    if dets.shape[0] == 0:
        return []
    output = []
    remaining = np.argsort(-dets[:, 16], kind="stable")
    while remaining.size > 0:
        idx = remaining[0]
        detection = dets[idx].copy()
        ious = iou_mat[idx, remaining]
        mask = ious > min_suppression_threshold
        # The seed detection always merges with itself (self-IoU == 1 for valid
        # boxes, so this is a no-op there); guarantees loop progress for
        # degenerate boxes instead of spinning forever.
        mask[0] = True
        overlapping = remaining[mask]
        remaining = remaining[~mask]
        weighted = detection.copy()
        if overlapping.size > 1:
            coords = dets[overlapping, :16]
            scores = dets[overlapping, 16:17]
            total = scores.sum()
            weighted[:16] = (coords * scores).sum(axis=0) / total
            weighted[16] = total / overlapping.size
        output.append(weighted)
    return output


# ----------------------------------------------------------------------------
# Pure-numpy references (correctness checks; no extra device compiles)
# ----------------------------------------------------------------------------
def decode_ref_np(raw, raw_scores, anchors, scales, clip):
    x_s, y_s, w_s, h_s = scales
    ax, ay, aw, ah = anchors[:, 0], anchors[:, 1], anchors[:, 2], anchors[:, 3]
    boxes = np.zeros_like(raw, dtype=np.float32)
    x_c = raw[..., 0] / x_s * aw + ax
    y_c = raw[..., 1] / y_s * ah + ay
    w = raw[..., 2] / w_s * aw
    h = raw[..., 3] / h_s * ah
    boxes[..., 0] = y_c - h / 2.0
    boxes[..., 1] = x_c - w / 2.0
    boxes[..., 2] = y_c + h / 2.0
    boxes[..., 3] = x_c + w / 2.0
    for k in range(6):
        off = 4 + 2 * k
        boxes[..., off] = raw[..., off] / x_s * aw + ax
        boxes[..., off + 1] = raw[..., off + 1] / y_s * ah + ay
    scores = 1.0 / (1.0 + np.exp(-np.clip(raw_scores, -clip, clip)))
    return boxes, scores[..., 0]


def iou_ref_np(boxes):  # boxes: (N, 4) f32 [min0, min1, max0, max1]
    a = boxes[:, None, :]
    b = boxes[None, :, :]
    iw = np.maximum(np.minimum(a[..., 2], b[..., 2]) - np.maximum(a[..., 0], b[..., 0]), 0.0)
    ih = np.maximum(np.minimum(a[..., 3], b[..., 3]) - np.maximum(a[..., 1], b[..., 1]), 0.0)
    inter = iw * ih
    area_a = (a[..., 2] - a[..., 0]) * (a[..., 3] - a[..., 1])
    area_b = (b[..., 2] - b[..., 0]) * (b[..., 3] - b[..., 1])
    union = area_a + area_b - inter
    with np.errstate(divide="ignore", invalid="ignore"):
        out = np.where(union > 0.0, inter / union, 0.0)
    return out.astype(np.float32)


class BlazeFacePallas:
    def __init__(self, back_model=False):
        self.num_classes = NUM_CLASSES
        self.num_anchors = NUM_ANCHORS
        self.num_coords = NUM_COORDS
        self.score_clipping_thresh = 100.0
        if back_model:
            self.x_scale = self.y_scale = self.h_scale = self.w_scale = 256.0
            self.min_score_thresh = 0.65
        else:
            self.x_scale = self.y_scale = self.h_scale = self.w_scale = 128.0
            self.min_score_thresh = 0.75
        self.min_suppression_threshold = 0.3
        self.anchors = None
        scales = (self.x_scale, self.y_scale, self.w_scale, self.h_scale)
        self._pipeline = build_device_pipeline(scales, self.score_clipping_thresh)

    def predict_on_batch(self, x, raw_boxes, raw_scores):
        # x: (B, 3, 128, 128). raw_boxes / raw_scores stand in for the ONNX detector output.
        xp, boxes_t, scores_dev, iou_dev = self._pipeline(
            x.astype(jnp.float32), raw_boxes, raw_scores, self.anchors)

        # single device->host transfer; host-side transpose to (B, 896, 16)
        boxes_np = np.transpose(np.asarray(boxes_t), (0, 2, 1))
        scores_np = np.asarray(scores_dev)          # (B, 896)
        iou_np = np.asarray(iou_dev)                # (B, 896, 896)

        filtered = []
        for i in range(boxes_np.shape[0]):
            det_idx = np.where(scores_np[i] >= self.min_score_thresh)[0]
            if det_idx.size == 0:
                filtered.append(np.zeros((0, 17), np.float32))
                continue
            dets = np.concatenate(
                [boxes_np[i, det_idx], scores_np[i, det_idx, None]], axis=1
            ).astype(np.float32)
            iou_sub = iou_np[i][np.ix_(det_idx, det_idx)]
            faces = weighted_nms_np(dets, iou_sub, self.min_suppression_threshold)
            filtered.append(np.stack(faces).astype(np.float32)
                            if len(faces) > 0 else np.zeros((0, 17), np.float32))
        return xp, boxes_np, scores_np, iou_np, filtered


if __name__ == "__main__":
    key = jax.random.PRNGKey(0)
    k1, k2, k3, k4 = jax.random.split(key, 4)
    B = 2

    # Image batch (values in [0, 255], as expected by _preprocess)
    x = jax.random.uniform(k1, (B, 3, 128, 128), minval=0.0, maxval=255.0)

    # Deterministic anchors: (896, 4) = [x_center, y_center, w, h]
    anc_xy = jax.random.uniform(k2, (NUM_ANCHORS, 2), minval=0.05, maxval=0.95)
    anc_wh = jnp.full((NUM_ANCHORS, 2), 0.2, jnp.float32)
    anchors = jnp.concatenate([anc_xy, anc_wh], axis=1).astype(jnp.float32)

    # Stand-in raw detector outputs (see TODO(synk) above). Real detectors emit
    # positive w/h offsets, so force those channels positive -> valid boxes.
    raw_boxes = jax.random.normal(k3, (B, NUM_ANCHORS, NUM_COORDS)) * 5.0
    raw_boxes = raw_boxes.at[..., 2:4].set(jnp.abs(raw_boxes[..., 2:4]) + 5.0)
    raw_boxes = raw_boxes.astype(jnp.float32)
    raw_scores = (jax.random.normal(k4, (B, NUM_ANCHORS, NUM_CLASSES)) * 2.0).astype(jnp.float32)

    model = BlazeFacePallas(back_model=False)
    model.anchors = anchors

    xp, boxes, scores, iou, detections = model.predict_on_batch(x, raw_boxes, raw_scores)
    jax.block_until_ready(xp)

    # Check Pallas preprocess against reference
    x_np = np.asarray(x, dtype=np.float32)
    np.testing.assert_allclose(np.asarray(xp), x_np / 127.5 - 1.0, rtol=1e-6, atol=1e-6)

    # Check Pallas decode kernel against a pure-numpy reference
    ref_b, ref_s = decode_ref_np(np.asarray(raw_boxes), np.asarray(raw_scores),
                                 np.asarray(anchors), (128.0, 128.0, 128.0, 128.0), 100.0)
    np.testing.assert_allclose(boxes, ref_b, rtol=1e-5, atol=1e-5)
    np.testing.assert_allclose(scores, ref_s, rtol=1e-5, atol=1e-5)

    # Check Pallas IoU kernel against a numpy reference (same decoded corners)
    iou_ref0 = iou_ref_np(boxes[0, :, 0:4].astype(np.float32))
    np.testing.assert_allclose(iou[0], iou_ref0, rtol=1e-5, atol=1e-6)

    # Sanity on NMS outputs
    for faces in detections:
        assert faces.ndim == 2 and faces.shape[1] == 17

    print("KERNEL_OK")
</pallas_src>

<mosaic_0001>
module attributes {stable_mosaic.version = 11 : i64} {
  func.func @kernel(%arg0: i32, %arg1: memref<2x16x896xf32, #tpu.memory_space<vmem>>, %arg2: memref<2x1x896xf32, #tpu.memory_space<vmem>>, %arg3: memref<1x4x896xf32, #tpu.memory_space<vmem>>, %arg4: memref<2x16x896xf32, #tpu.memory_space<vmem>>, %arg5: memref<2x1x896xf32, #tpu.memory_space<vmem>>) attributes {dimension_semantics = [#tpu.dimension_semantics<arbitrary>], iteration_bounds = array<i64: 1>, scalar_prefetch = 0 : i64, scratch_operands = 0 : i64, tpu.core_type = #tpu.core_type<tc>, window_params = [{pipeline_mode = #tpu.pipeline_mode<synchronous>, transform_indices = @transform_0, window_bounds = array<i64: 2, 16, 896>}, {pipeline_mode = #tpu.pipeline_mode<synchronous>, transform_indices = @transform_1, window_bounds = array<i64: 2, 1, 896>}, {pipeline_mode = #tpu.pipeline_mode<synchronous>, transform_indices = @transform_2, window_bounds = array<i64: 1, 4, 896>}, {pipeline_mode = #tpu.pipeline_mode<synchronous>, transform_indices = @transform_3, window_bounds = array<i64: 2, 16, 896>}, {pipeline_mode = #tpu.pipeline_mode<synchronous>, transform_indices = @transform_4, window_bounds = array<i64: 2, 1, 896>}]} {
    %c0 = arith.constant 0 : index
    %c0_0 = arith.constant 0 : index
    %c0_1 = arith.constant 0 : index
    %0 = vector.load %arg1[%c0, %c0_0, %c0_1] : memref<2x16x896xf32, #tpu.memory_space<vmem>>, vector<2x16x896xf32>
    %c0_2 = arith.constant 0 : index
    %c0_3 = arith.constant 0 : index
    %c0_4 = arith.constant 0 : index
    %1 = vector.load %arg3[%c0_2, %c0_3, %c0_4] : memref<1x4x896xf32, #tpu.memory_space<vmem>>, vector<1x4x896xf32>
    %2 = vector.extract_strided_slice %1 {offsets = [0, 0, 0], sizes = [1, 1, 896], strides = [1, 1, 1]} : vector<1x4x896xf32> to vector<1x1x896xf32>
    %3 = vector.extract_strided_slice %1 {offsets = [0, 1, 0], sizes = [1, 1, 896], strides = [1, 1, 1]} : vector<1x4x896xf32> to vector<1x1x896xf32>
    %4 = vector.extract_strided_slice %1 {offsets = [0, 2, 0], sizes = [1, 1, 896], strides = [1, 1, 1]} : vector<1x4x896xf32> to vector<1x1x896xf32>
    %5 = vector.extract_strided_slice %1 {offsets = [0, 3, 0], sizes = [1, 1, 896], strides = [1, 1, 1]} : vector<1x4x896xf32> to vector<1x1x896xf32>
    %6 = vector.extract_strided_slice %0 {offsets = [0, 0, 0], sizes = [2, 1, 896], strides = [1, 1, 1]} : vector<2x16x896xf32> to vector<2x1x896xf32>
    %cst = arith.constant 7.812500e-03 : f32
    %7 = vector.broadcast %cst : f32 to vector<2x1x896xf32>
    %8 = arith.mulf %6, %7 : vector<2x1x896xf32>
    %9 = vector.broadcast %4 : vector<1x1x896xf32> to vector<2x1x896xf32>
    %10 = arith.mulf %8, %9 : vector<2x1x896xf32>
    %11 = vector.broadcast %2 : vector<1x1x896xf32> to vector<2x1x896xf32>
    %12 = arith.addf %10, %11 : vector<2x1x896xf32>
    %13 = vector.extract_strided_slice %0 {offsets = [0, 1, 0], sizes = [2, 1, 896], strides = [1, 1, 1]} : vector<2x16x896xf32> to vector<2x1x896xf32>
    %cst_5 = arith.constant 7.812500e-03 : f32
    %14 = vector.broadcast %cst_5 : f32 to vector<2x1x896xf32>
    %15 = arith.mulf %13, %14 : vector<2x1x896xf32>
    %16 = vector.broadcast %5 : vector<1x1x896xf32> to vector<2x1x896xf32>
    %17 = arith.mulf %15, %16 : vector<2x1x896xf32>
    %18 = vector.broadcast %3 : vector<1x1x896xf32> to vector<2x1x896xf32>
    %19 = arith.addf %17, %18 : vector<2x1x896xf32>
    %20 = vector.extract_strided_slice %0 {offsets = [0, 2, 0], sizes = [2, 1, 896], strides = [1, 1, 1]} : vector<2x16x896xf32> to vector<2x1x896xf32>
    %cst_6 = arith.constant 7.812500e-03 : f32
    %21 = vector.broadcast %cst_6 : f32 to vector<2x1x896xf32>
    %22 = arith.mulf %20, %21 : vector<2x1x896xf32>
    %23 = vector.broadcast %4 : vector<1x1x896xf32> to vector<2x1x896xf32>
    %24 = arith.mulf %22, %23 : vector<2x1x896xf32>
    %25 = vector.extract_strided_slice %0 {offsets = [0, 3, 0], sizes = [2, 1, 896], strides = [1, 1, 1]} : vector<2x16x896xf32> to vector<2x1x896xf32>
    %cst_7 = arith.constant 7.812500e-03 : f32
    %26 = vector.broadcast %cst_7 : f32 to vector<2x1x896xf32>
    %27 = arith.mulf %25, %26 : vector<2x1x896xf32>
    %28 = vector.broadcast %5 : vector<1x1x896xf32> to vector<2x1x896xf32>
    %29 = arith.mulf %27, %28 : vector<2x1x896xf32>
    %cst_8 = arith.constant 5.000000e-01 : f32
    %30 = vector.broadcast %cst_8 : f32 to vector<2x1x896xf32>
    %31 = arith.mulf %30, %29 : vector<2x1x896xf32>
    %32 = arith.subf %19, %31 : vector<2x1x896xf32>
    %c0_9 = arith.constant 0 : index
    %c0_10 = arith.constant 0 : index
    %c0_11 = arith.constant 0 : index
    %33 = vector.load %arg4[%c0_9, %c0_10, %c0_11] : memref<2x16x896xf32, #tpu.memory_space<vmem>>, vector<2x1x896xf32>
    tpu.vector_store %arg4[%c0_9, %c0_10, %c0_11], %32 {strides = array<i32>} : memref<2x16x896xf32, #tpu.memory_space<vmem>>, vector<2x1x896xf32>,
    %cst_12 = arith.constant 5.000000e-01 : f32
    %34 = vector.broadcast %cst_12 : f32 to vector<2x1x896xf32>
    %35 = arith.mulf %34, %24 : vector<2x1x896xf32>
    %36 = arith.subf %12, %35 : vector<2x1x896xf32>
    %c0_13 = arith.constant 0 : index
    %c1 = arith.constant 1 : index
    %c0_14 = arith.constant 0 : index
    %37 = vector.load %arg4[%c0_13, %c1, %c0_14] : memref<2x16x896xf32, #tpu.memory_space<vmem>>, vector<2x1x896xf32>
    tpu.vector_store %arg4[%c0_13, %c1, %c0_14], %36 {strides = array<i32>} : memref<2x16x896xf32, #tpu.memory_space<vmem>>, vector<2x1x896xf32>,
    %cst_15 = arith.constant 5.000000e-01 : f32
    %38 = vector.broadcast %cst_15 : f32 to vector<2x1x896xf32>
    %39 = arith.mulf %38, %29 : vector<2x1x896xf32>
    %40 = arith.addf %19, %39 : vector<2x1x896xf32>
    %c0_16 = arith.constant 0 : index
    %c2 = arith.constant 2 : index
    %c0_17 = arith.constant 0 : index
    %41 = vector.load %arg4[%c0_16, %c2, %c0_17] : memref<2x16x896xf32, #tpu.memory_space<vmem>>, vector<2x1x896xf32>
    tpu.vector_store %arg4[%c0_16, %c2, %c0_17], %40 {strides = array<i32>} : memref<2x16x896xf32, #tpu.memory_space<vmem>>, vector<2x1x896xf32>,
    %cst_18 = arith.constant 5.000000e-01 : f32
    %42 = vector.broadcast %cst_18 : f32 to vector<2x1x896xf32>
    %43 = arith.mulf %42, %24 : vector<2x1x896xf32>
    %44 = arith.addf %12, %43 : vector<2x1x896xf32>
    %c0_19 = arith.constant 0 : index
    %c3 = arith.constant 3 : index
    %c0_20 = arith.constant 0 : index
    %45 = vector.load %arg4[%c0_19, %c3, %c0_20] : memref<2x16x896xf32, #tpu.memory_space<vmem>>, vector<2x1x896xf32>
    tpu.vector_store %arg4[%c0_19, %c3, %c0_20], %44 {strides = array<i32>} : memref<2x16x896xf32, #tpu.memory_space<vmem>>, vector<2x1x896xf32>,
    %46 = vector.extract_strided_slice %0 {offsets = [0, 4, 0], sizes = [2, 12, 896], strides = [1, 1, 1]} : vector<2x16x896xf32> to vector<2x12x896xf32>
    %47 = tpu.iota {dimensions = array<i32: 1>} : vector<1x12x896xi32>
    %c2_i32 = arith.constant 2 : i32
    %c0_i32 = arith.constant 0 : i32
    %48 = arith.cmpi eq, %c2_i32, %c0_i32 : i32
    %c1_i32 = arith.constant 1 : i32
    %49 = arith.select %48, %c1_i32, %c2_i32 : i32
    %50 = vector.broadcast %49 : i32 to vector<1x12x896xi32>
    %51 = arith.remsi %47, %50 : vector<1x12x896xi32>
    %c0_i32_21 = arith.constant 0 : i32
    %52 = vector.broadcast %c0_i32_21 : i32 to vector<1x12x896xi32>
    %53 = arith.cmpi ne, %51, %52 : vector<1x12x896xi32>
    %c0_i32_22 = arith.constant 0 : i32
    %54 = vector.broadcast %c0_i32_22 : i32 to vector<1x12x896xi32>
    %55 = arith.cmpi slt, %51, %54 : vector<1x12x896xi32>
    %c0_i32_23 = arith.constant 0 : i32
    %56 = arith.cmpi slt, %49, %c0_i32_23 : i32
    %57 = vector.broadcast %56 : i1 to vector<1x12x896xi1>
    %58 = vector.broadcast %57 : vector<1x12x896xi1> to vector<1x12x896xi1>
    %59 = arith.xori %55, %58 : vector<1x12x896xi1>
    %60 = arith.andi %59, %53 : vector<1x12x896xi1>
    %61 = vector.broadcast %49 : i32 to vector<1x12x896xi32>
    %62 = arith.addi %51, %61 : vector<1x12x896xi32>
    %63 = arith.select %60, %62, %51 : vector<1x12x896xi1>, vector<1x12x896xi32>
    %c0_i32_24 = arith.constant 0 : i32
    %64 = vector.broadcast %c0_i32_24 : i32 to vector<1x12x896xi32>
    %65 = arith.cmpi eq, %63, %64 : vector<1x12x896xi32>
    %cst_25 = arith.constant 7.812500e-03 : f32
    %66 = vector.broadcast %cst_25 : f32 to vector<1x1x896xf32>
    %67 = arith.mulf %66, %4 : vector<1x1x896xf32>
    %cst_26 = arith.constant 7.812500e-03 : f32
    %68 = vector.broadcast %cst_26 : f32 to vector<1x1x896xf32>
    %69 = arith.mulf %68, %5 : vector<1x1x896xf32>
    %70 = vector.shape_cast %67 : vector<1x1x896xf32> to vector<1x1x896xf32>
    %71 = vector.broadcast %70 : vector<1x1x896xf32> to vector<1x12x896xf32>
    %72 = vector.shape_cast %69 : vector<1x1x896xf32> to vector<1x1x896xf32>
    %73 = vector.broadcast %72 : vector<1x1x896xf32> to vector<1x12x896xf32>
    %74 = arith.select %65, %71, %73 : vector<1x12x896xi1>, vector<1x12x896xf32>
    %75 = vector.shape_cast %2 : vector<1x1x896xf32> to vector<1x1x896xf32>
    %76 = vector.broadcast %75 : vector<1x1x896xf32> to vector<1x12x896xf32>
    %77 = vector.shape_cast %3 : vector<1x1x896xf32> to vector<1x1x896xf32>
    %78 = vector.broadcast %77 : vector<1x1x896xf32> to vector<1x12x896xf32>
    %79 = arith.select %65, %76, %78 : vector<1x12x896xi1>, vector<1x12x896xf32>
    %80 = vector.broadcast %74 : vector<1x12x896xf32> to vector<2x12x896xf32>
    %81 = arith.mulf %46, %80 : vector<2x12x896xf32>
    %82 = vector.broadcast %79 : vector<1x12x896xf32> to vector<2x12x896xf32>
    %83 = arith.addf %81, %82 : vector<2x12x896xf32>
    %c0_27 = arith.constant 0 : index
    %c4 = arith.constant 4 : index
    %c0_28 = arith.constant 0 : index
    %84 = vector.load %arg4[%c0_27, %c4, %c0_28] : memref<2x16x896xf32, #tpu.memory_space<vmem>>, vector<2x12x896xf32>
    tpu.vector_store %arg4[%c0_27, %c4, %c0_28], %83 {strides = array<i32>} : memref<2x16x896xf32, #tpu.memory_space<vmem>>, vector<2x12x896xf32>,
    %c0_29 = arith.constant 0 : index
    %c0_30 = arith.constant 0 : index
    %c0_31 = arith.constant 0 : index
    %85 = vector.load %arg2[%c0_29, %c0_30, %c0_31] : memref<2x1x896xf32, #tpu.memory_space<vmem>>, vector<2x1x896xf32>
    %cst_32 = arith.constant -1.000000e+02 : f32
    %cst_33 = arith.constant 1.000000e+02 : f32
    %86 = vector.broadcast %cst_32 : f32 to vector<2x1x896xf32>
    %87 = arith.maximumf %86, %85 : vector<2x1x896xf32>
    %88 = vector.broadcast %cst_33 : f32 to vector<2x1x896xf32>
    %89 = arith.minimumf %88, %87 : vector<2x1x896xf32>
    %90 = arith.negf %89 : vector<2x1x896xf32>
    %91 = math.exp %90 : vector<2x1x896xf32>
    %cst_34 = arith.constant 1.000000e+00 : f32
    %92 = vector.broadcast %cst_34 : f32 to vector<2x1x896xf32>
    %93 = arith.addf %92, %91 : vector<2x1x896xf32>
    %94 = arith.divf %92, %93 : vector<2x1x896xf32>
    %c0_35 = arith.constant 0 : index
    %c0_36 = arith.constant 0 : index
    %c0_37 = arith.constant 0 : index
    %95 = vector.load %arg5[%c0_35, %c0_36, %c0_37] : memref<2x1x896xf32, #tpu.memory_space<vmem>>, vector<2x1x896xf32>
    tpu.vector_store %arg5[%c0_35, %c0_36, %c0_37], %94 {strides = array<i32>} : memref<2x1x896xf32, #tpu.memory_space<vmem>>, vector<2x1x896xf32>,
    return
  }
  func.func @transform_0(%arg0: i32) -> (i32, i32, i32) {
    %c0_i32 = arith.constant 0 : i32
    %c0_i32_0 = arith.constant 0 : i32
    %c0_i32_1 = arith.constant 0 : i32
    %c0_i32_2 = arith.constant 0 : i32
    return %c0_i32, %c0_i32_0, %c0_i32_1 : i32, i32, i32
  }
  func.func @transform_1(%arg0: i32) -> (i32, i32, i32) {
    %c0_i32 = arith.constant 0 : i32
    %c0_i32_0 = arith.constant 0 : i32
    %c0_i32_1 = arith.constant 0 : i32
    %c0_i32_2 = arith.constant 0 : i32
    return %c0_i32, %c0_i32_0, %c0_i32_1 : i32, i32, i32
  }
  func.func @transform_2(%arg0: i32) -> (i32, i32, i32) {
    %c0_i32 = arith.constant 0 : i32
    %c0_i32_0 = arith.constant 0 : i32
    %c0_i32_1 = arith.constant 0 : i32
    %c0_i32_2 = arith.constant 0 : i32
    return %c0_i32, %c0_i32_0, %c0_i32_1 : i32, i32, i32
  }
  func.func @transform_3(%arg0: i32) -> (i32, i32, i32) {
    %c0_i32 = arith.constant 0 : i32
    %c0_i32_0 = arith.constant 0 : i32
    %c0_i32_1 = arith.constant 0 : i32
    %c0_i32_2 = arith.constant 0 : i32
    return %c0_i32, %c0_i32_0, %c0_i32_1 : i32, i32, i32
  }
  func.func @transform_4(%arg0: i32) -> (i32, i32, i32) {
    %c0_i32 = arith.constant 0 : i32
    %c0_i32_0 = arith.constant 0 : i32
    %c0_i32_1 = arith.constant 0 : i32
    %c0_i32_2 = arith.constant 0 : i32
    return %c0_i32, %c0_i32_0, %c0_i32_1 : i32, i32, i32
  }
}

module attributes {stable_mosaic.version = 11 : i64} {
  func.func @_iou_kernel(%arg0: i32, %arg1: i32, %arg2: memref<1x128x4xf32, #tpu.memory_space<vmem>>, %arg3: memref<1x4x896xf32, #tpu.memory_space<vmem>>, %arg4: memref<1x128x896xf32, #tpu.memory_space<vmem>>) attributes {dimension_semantics = [#tpu.dimension_semantics<parallel>, #tpu.dimension_semantics<parallel>], iteration_bounds = array<i64: 2, 7>, scalar_prefetch = 0 : i64, scratch_operands = 0 : i64, tpu.core_type = #tpu.core_type<tc>, window_params = [{transform_indices = @transform_0, window_bounds = array<i64: 1, 128, 4>}, {transform_indices = @transform_1, window_bounds = array<i64: 1, 4, 896>}, {transform_indices = @transform_2, window_bounds = array<i64: 1, 128, 896>}]} {
    %c0 = arith.constant 0 : index
    %c0_0 = arith.constant 0 : index
    %c0_1 = arith.constant 0 : index
    %0 = vector.load %arg2[%c0, %c0_0, %c0_1] : memref<1x128x4xf32, #tpu.memory_space<vmem>>, vector<1x128x4xf32>
    %1 = vector.shape_cast %0 : vector<1x128x4xf32> to vector<128x4xf32>
    %c0_2 = arith.constant 0 : index
    %c0_3 = arith.constant 0 : index
    %c0_4 = arith.constant 0 : index
    %2 = vector.load %arg3[%c0_2, %c0_3, %c0_4] : memref<1x4x896xf32, #tpu.memory_space<vmem>>, vector<1x4x896xf32>
    %3 = vector.shape_cast %2 : vector<1x4x896xf32> to vector<4x896xf32>
    %4 = vector.extract_strided_slice %1 {offsets = [0, 0], sizes = [128, 1], strides = [1, 1]} : vector<128x4xf32> to vector<128x1xf32>
    %5 = vector.extract_strided_slice %1 {offsets = [0, 1], sizes = [128, 1], strides = [1, 1]} : vector<128x4xf32> to vector<128x1xf32>
    %6 = vector.extract_strided_slice %1 {offsets = [0, 2], sizes = [128, 1], strides = [1, 1]} : vector<128x4xf32> to vector<128x1xf32>
    %7 = vector.extract_strided_slice %1 {offsets = [0, 3], sizes = [128, 1], strides = [1, 1]} : vector<128x4xf32> to vector<128x1xf32>
    %8 = vector.extract_strided_slice %3 {offsets = [0, 0], sizes = [1, 896], strides = [1, 1]} : vector<4x896xf32> to vector<1x896xf32>
    %9 = vector.extract_strided_slice %3 {offsets = [1, 0], sizes = [1, 896], strides = [1, 1]} : vector<4x896xf32> to vector<1x896xf32>
    %10 = vector.extract_strided_slice %3 {offsets = [2, 0], sizes = [1, 896], strides = [1, 1]} : vector<4x896xf32> to vector<1x896xf32>
    %11 = vector.extract_strided_slice %3 {offsets = [3, 0], sizes = [1, 896], strides = [1, 1]} : vector<4x896xf32> to vector<1x896xf32>
    %12 = vector.broadcast %6 : vector<128x1xf32> to vector<128x896xf32>
    %13 = vector.broadcast %10 : vector<1x896xf32> to vector<128x896xf32>
    %14 = arith.minimumf %12, %13 : vector<128x896xf32>
    %15 = vector.broadcast %4 : vector<128x1xf32> to vector<128x896xf32>
    %16 = vector.broadcast %8 : vector<1x896xf32> to vector<128x896xf32>
    %17 = arith.maximumf %15, %16 : vector<128x896xf32>
    %18 = arith.subf %14, %17 : vector<128x896xf32>
    %cst = arith.constant 0.000000e+00 : f32
    %19 = vector.broadcast %cst : f32 to vector<128x896xf32>
    %20 = arith.maximumf %18, %19 : vector<128x896xf32>
    %21 = vector.broadcast %7 : vector<128x1xf32> to vector<128x896xf32>
    %22 = vector.broadcast %11 : vector<1x896xf32> to vector<128x896xf32>
    %23 = arith.minimumf %21, %22 : vector<128x896xf32>
    %24 = vector.broadcast %5 : vector<128x1xf32> to vector<128x896xf32>
    %25 = vector.broadcast %9 : vector<1x896xf32> to vector<128x896xf32>
    %26 = arith.maximumf %24, %25 : vector<128x896xf32>
    %27 = arith.subf %23, %26 : vector<128x896xf32>
    %cst_5 = arith.constant 0.000000e+00 : f32
    %28 = vector.broadcast %cst_5 : f32 to vector<128x896xf32>
    %29 = arith.maximumf %27, %28 : vector<128x896xf32>
    %30 = arith.mulf %20, %29 : vector<128x896xf32>
    %31 = arith.subf %6, %4 : vector<128x1xf32>
    %32 = arith.subf %7, %5 : vector<128x1xf32>
    %33 = arith.mulf %31, %32 : vector<128x1xf32>
    %34 = arith.subf %10, %8 : vector<1x896xf32>
    %35 = arith.subf %11, %9 : vector<1x896xf32>
    %36 = arith.mulf %34, %35 : vector<1x896xf32>
    %37 = vector.broadcast %33 : vector<128x1xf32> to vector<128x896xf32>
    %38 = vector.broadcast %36 : vector<1x896xf32> to vector<128x896xf32>
    %39 = arith.addf %37, %38 : vector<128x896xf32>
    %40 = arith.subf %39, %30 : vector<128x896xf32>
    %cst_6 = arith.constant 0.000000e+00 : f32
    %41 = vector.broadcast %cst_6 : f32 to vector<128x896xf32>
    %42 = arith.cmpf ogt, %40, %41 : vector<128x896xf32>
    %43 = arith.divf %30, %40 : vector<128x896xf32>
    %cst_7 = arith.constant 0.000000e+00 : f32
    %44 = vector.broadcast %cst_7 : f32 to vector<128x896xf32>
    %45 = arith.select %42, %43, %44 : vector<128x896xi1>, vector<128x896xf32>
    %c0_8 = arith.constant 0 : index
    %c0_9 = arith.constant 0 : index
    %c0_10 = arith.constant 0 : index
    %46 = vector.load %arg4[%c0_8, %c0_9, %c0_10] : memref<1x128x896xf32, #tpu.memory_space<vmem>>, vector<1x128x896xf32>
    %47 = vector.shape_cast %46 : vector<1x128x896xf32> to vector<128x896xf32>
    %48 = vector.shape_cast %45 : vector<128x896xf32> to vector<1x128x896xf32>
    tpu.vector_store %arg4[%c0_8, %c0_9, %c0_10], %48 {strides = array<i32>} : memref<1x128x896xf32, #tpu.memory_space<vmem>>, vector<1x128x896xf32>,
    return
  }
  func.func @transform_0(%arg0: i32, %arg1: i32) -> (i32, i32, i32) {
    %c0_i32 = arith.constant 0 : i32
    %c0_i32_0 = arith.constant 0 : i32
    return %arg0, %arg1, %c0_i32 : i32, i32, i32
  }
  func.func @transform_1(%arg0: i32, %arg1: i32) -> (i32, i32, i32) {
    %c0_i32 = arith.constant 0 : i32
    %c0_i32_0 = arith.constant 0 : i32
    %c0_i32_1 = arith.constant 0 : i32
    return %arg0, %c0_i32, %c0_i32_0 : i32, i32, i32
  }
  func.func @transform_2(%arg0: i32, %arg1: i32) -> (i32, i32, i32) {
    %c0_i32 = arith.constant 0 : i32
    %c0_i32_0 = arith.constant 0 : i32
    return %arg0, %arg1, %c0_i32 : i32, i32, i32
  }
}

module attributes {stable_mosaic.version = 11 : i64} {
  func.func @_preprocess_kernel(%arg0: i32, %arg1: memref<2x3x128x128xf32, #tpu.memory_space<vmem>>, %arg2: memref<2x3x128x128xf32, #tpu.memory_space<vmem>>) attributes {dimension_semantics = [#tpu.dimension_semantics<arbitrary>], iteration_bounds = array<i64: 1>, scalar_prefetch = 0 : i64, scratch_operands = 0 : i64, tpu.core_type = #tpu.core_type<tc>, window_params = [{pipeline_mode = #tpu.pipeline_mode<synchronous>, transform_indices = @transform_0, window_bounds = array<i64: 2, 3, 128, 128>}, {pipeline_mode = #tpu.pipeline_mode<synchronous>, transform_indices = @transform_1, window_bounds = array<i64: 2, 3, 128, 128>}]} {
    %c0 = arith.constant 0 : index
    %c0_0 = arith.constant 0 : index
    %c0_1 = arith.constant 0 : index
    %c0_2 = arith.constant 0 : index
    %0 = vector.load %arg1[%c0, %c0_0, %c0_1, %c0_2] : memref<2x3x128x128xf32, #tpu.memory_space<vmem>>, vector<2x3x128x128xf32>
    %cst = arith.constant 0.00784313772 : f32
    %1 = vector.broadcast %cst : f32 to vector<2x3x128x128xf32>
    %2 = arith.mulf %0, %1 : vector<2x3x128x128xf32>
    %cst_3 = arith.constant 1.000000e+00 : f32
    %3 = vector.broadcast %cst_3 : f32 to vector<2x3x128x128xf32>
    %4 = arith.subf %2, %3 : vector<2x3x128x128xf32>
    %c0_4 = arith.constant 0 : index
    %c0_5 = arith.constant 0 : index
    %c0_6 = arith.constant 0 : index
    %c0_7 = arith.constant 0 : index
    %5 = vector.load %arg2[%c0_4, %c0_5, %c0_6, %c0_7] : memref<2x3x128x128xf32, #tpu.memory_space<vmem>>, vector<2x3x128x128xf32>
    tpu.vector_store %arg2[%c0_4, %c0_5, %c0_6, %c0_7], %4 {strides = array<i32>} : memref<2x3x128x128xf32, #tpu.memory_space<vmem>>, vector<2x3x128x128xf32>,
    return
  }
  func.func @transform_0(%arg0: i32) -> (i32, i32, i32, i32) {
    %c0_i32 = arith.constant 0 : i32
    %c0_i32_0 = arith.constant 0 : i32
    %c0_i32_1 = arith.constant 0 : i32
    %c0_i32_2 = arith.constant 0 : i32
    %c0_i32_3 = arith.constant 0 : i32
    return %c0_i32, %c0_i32_0, %c0_i32_1, %c0_i32_2 : i32, i32, i32, i32
  }
  func.func @transform_1(%arg0: i32) -> (i32, i32, i32, i32) {
    %c0_i32 = arith.constant 0 : i32
    %c0_i32_0 = arith.constant 0 : i32
    %c0_i32_1 = arith.constant 0 : i32
    %c0_i32_2 = arith.constant 0 : i32
    %c0_i32_3 = arith.constant 0 : i32
    return %c0_i32, %c0_i32_0, %c0_i32_1, %c0_i32_2 : i32, i32, i32, i32
  }
}

</mosaic_0001>

<bundles_post_ra>
// kernel: pipeline.3
= control target key start
LH: loop header
LB: loop body
LE: loop exit
PB: predicated region body
PF: predicated region fallthrough
CT: control target
= control target key end

     0   :  { %s845_s0 = inlined_call_operand.vmem [shape: f32[2,3,128,128], index: 0, kind: input, shape index: {}]   ;;  %s846_s1 = inlined_call_operand.hbm [shape: f32[2,3,128,128], index: 1, kind: output, shape index: {}]  }
   0x1   :  { %v9_v0 = vld [vmem:[%s845_s0] sm:$0xff]  ;;  %v10_v1 = vld [vmem:[%s845_s0 + $0x8] sm:$0xff]  ;;  %v11_v2 = vld [vmem:[%s845_s0 + $0x10] sm:$0xff] }
   0x2   :  { %v105_v3 = vmul.f32 0.007843138, %v9_v0  ;;  %v106_v4 = vmul.f32 0.007843138, %v10_v1  ;;  %v107_v5 = vmul.f32 0.007843138, %v11_v2 }
   0x3   :  { %v12_v6 = vld [vmem:[%s845_s0 + $0x18] sm:$0xff]  ;;  %v13_v7 = vld [vmem:[%s845_s0 + $0x20] sm:$0xff]  ;;  %v14_v8 = vld [vmem:[%s845_s0 + $0x28] sm:$0xff] }
   0x4   :  { %v409_v9 = vadd.f32 -1.0, %v105_v3  ;;  %v410_v10 = vadd.f32 -1.0, %v106_v4  ;;  %v411_v11 = vadd.f32 -1.0, %v107_v5  ;;  %v108_v12 = vmul.f32 0.007843138, %v12_v6  ;;  %v15_v13 = vld [vmem:[%s845_s0 + $0x30] sm:$0xff] }
   0x5   :  { %v109_v14 = vmul.f32 0.007843138, %v13_v7  ;;  %v110_v15 = vmul.f32 0.007843138, %v14_v8  ;;  %v111_v16 = vmul.f32 0.007843138, %v15_v13 }
   0x6   :  { %297 = vst [vmem:[#allocation2] sm:$0xff] %v409_v9  ;;  %298 = vst [vmem:[#allocation2 + $0x8] sm:$0xff] %v410_v10  ;;  %v412_v17 = vadd.f32 -1.0, %v108_v12  ;;  %v16_v18 = vld [vmem:[%s845_s0 + $0x38] sm:$0xff]  ;;  %v17_v19 = vld [vmem:[%s845_s0 + $0x40] sm:$0xff] }
   0x7   :  { %299 = vst [vmem:[#allocation2 + $0x10] sm:$0xff] %v411_v11  ;;  %v18_v20 = vld [vmem:[%s845_s0 + $0x48] sm:$0xff]  ;;  %v413_v21 = vadd.f32 -1.0, %v109_v14  ;;  %v414_v22 = vadd.f32 -1.0, %v110_v15  ;;  %v415_v23 = vadd.f32 -1.0, %v111_v16  ;;  %v19_v25 = vld [vmem:[%s845_s0 + $0x50] sm:$0xff] }
   0x8   :  { %v112_v24 = vmul.f32 0.007843138, %v16_v18  ;;  %300 = vst [vmem:[#allocation2 + $0x18] sm:$0xff] %v412_v17  ;;  %v113_v26 = vmul.f32 0.007843138, %v17_v19  ;;  %v20_v30 = vld [vmem:[%s845_s0 + $0x58] sm:$0xff] }
   0x9   :  { %v114_v27 = vmul.f32 0.007843138, %v18_v20  ;;  %v115_v28 = vmul.f32 0.007843138, %v19_v25  ;;  %301 = vst [vmem:[#allocation2 + $0x20] sm:$0xff] %v413_v21  ;;  %302 = vst [vmem:[#allocation2 + $0x28] sm:$0xff] %v414_v22 }
   0xa   :  { %303 = vst [vmem:[#allocation2 + $0x30] sm:$0xff] %v415_v23  ;;  %v416_v29 = vadd.f32 -1.0, %v112_v24  ;;  %v21_v31 = vld [vmem:[%s845_s0 + $0x60] sm:$0xff]  ;;  %v22_v32 = vld [vmem:[%s845_s0 + $0x68] sm:$0xff]  ;;  %v417_v33 = vadd.f32 -1.0, %v113_v26  ;;  %v23_v37 = vld [vmem:[%s845_s0 + $0x70] sm:$0xff] }
   0xb   :  { %v418_v34 = vadd.f32 -1.0, %v114_v27  ;;  %v419_v35 = vadd.f32 -1.0, %v115_v28  ;;  %v116_v36 = vmul.f32 0.007843138, %v20_v30  ;;  %v117_v38 = vmul.f32 0.007843138, %v21_v31 }
   0xc   :  { %304 = vst [vmem:[#allocation2 + $0x38] sm:$0xff] %v416_v29  ;;  %v118_v39 = vmul.f32 0.007843138, %v22_v32  ;;  %v119_v40 = vmul.f32 0.007843138, %v23_v37  ;;  %305 = vst [vmem:[#allocation2 + $0x40] sm:$0xff] %v417_v33 }
   0xd   :  { %306 = vst [vmem:[#allocation2 + $0x48] sm:$0xff] %v418_v34  ;;  %307 = vst [vmem:[#allocation2 + $0x50] sm:$0xff] %v419_v35  ;;  %v420_v41 = vadd.f32 -1.0, %v116_v36  ;;  %v24_v42 = vld [vmem:[%s845_s0 + $0x78] sm:$0xff]  ;;  %v25_v43 = vld [vmem:[%s845_s0 + $0x80] sm:$0xff]  ;;  %v421_v45 = vadd.f32 -1.0, %v117_v38 }
   0xe   :  { %v26_v44 = vld [vmem:[%s845_s0 + $0x88] sm:$0xff]  ;;  %v422_v46 = vadd.f32 -1.0, %v118_v39  ;;  %v423_v47 = vadd.f32 -1.0, %v119_v40  ;;  %v120_v48 = vmul.f32 0.007843138, %v24_v42  ;;  %v27_v49 = vld [vmem:[%s845_s0 + $0x90] sm:$0xff] }
   0xf   :  { %308 = vst [vmem:[#allocation2 + $0x58] sm:$0xff] %v420_v41  ;;  %v121_v50 = vmul.f32 0.007843138, %v25_v43  ;;  %v122_v51 = vmul.f32 0.007843138, %v26_v44  ;;  %309 = vst [vmem:[#allocation2 + $0x60] sm:$0xff] %v421_v45 }
  0x10   :  { %v123_v52 = vmul.f32 0.007843138, %v27_v49  ;;  %310 = vst [vmem:[#allocation2 + $0x68] sm:$0xff] %v422_v46  ;;  %311 = vst [vmem:[#allocation2 + $0x70] sm:$0xff] %v423_v47  ;;  %v424_v53 = vadd.f32 -1.0, %v120_v48  ;;  %v28_v54 = vld [vmem:[%s845_s0 + $0x98] sm:$0xff] }
  0x11   :  { %v29_v55 = vld [vmem:[%s845_s0 + $0xa0] sm:$0xff]  ;;  %v30_v56 = vld [vmem:[%s845_s0 + $0xa8] sm:$0xff]  ;;  %v425_v57 = vadd.f32 -1.0, %v121_v50  ;;  %v426_v58 = vadd.f32 -1.0, %v122_v51  ;;  %v124_v60 = vmul.f32 0.007843138, %v28_v54 }
  0x12   :  { %v427_v59 = vadd.f32 -1.0, %v123_v52  ;;  %v31_v61 = vld [vmem:[%s845_s0 + $0xb0] sm:$0xff]  ;;  %312 = vst [vmem:[#allocation2 + $0x78] sm:$0xff] %v424_v53  ;;  %v125_v62 = vmul.f32 0.007843138, %v29_v55  ;;  %v32_v2 = vld [vmem:[%s845_s0 + $0xb8] sm:$0xff] }
  0x13   :  { %v126_v63 = vmul.f32 0.007843138, %v30_v56  ;;  %v127_v0 = vmul.f32 0.007843138, %v31_v61  ;;  %313 = vst [vmem:[#allocation2 + $0x80] sm:$0xff] %v425_v57  ;;  %314 = vst [vmem:[#allocation2 + $0x88] sm:$0xff] %v426_v58 }
  0x14   :  { %315 = vst [vmem:[#allocation2 + $0x90] sm:$0xff] %v427_v59  ;;  %v428_v1 = vadd.f32 -1.0, %v124_v60  ;;  %v33_v3 = vld [vmem:[%s845_s0 + $0xc0] sm:$0xff]  ;;  %v34_v4 = vld [vmem:[%s845_s0 + $0xc8] sm:$0xff]  ;;  %v429_v5 = vadd.f32 -1.0, %v125_v62  ;;  %v35_v9 = vld [vmem:[%s845_s0 + $0xd0] sm:$0xff] }
  0x15   :  { %v430_v6 = vadd.f32 -1.0, %v126_v63  ;;  %v431_v7 = vadd.f32 -1.0, %v127_v0  ;;  %v128_v8 = vmul.f32 0.007843138, %v32_v2  ;;  %v129_v10 = vmul.f32 0.007843138, %v33_v3 }
  0x16   :  { %316 = vst [vmem:[#allocation2 + $0x98] sm:$0xff] %v428_v1  ;;  %v130_v11 = vmul.f32 0.007843138, %v34_v4  ;;  %v131_v12 = vmul.f32 0.007843138, %v35_v9  ;;  %317 = vst [vmem:[#allocation2 + $0xa0] sm:$0xff] %v429_v5 }
  0x17   :  { %318 = vst [vmem:[#allocation2 + $0xa8] sm:$0xff] %v430_v6  ;;  %319 = vst [vmem:[#allocation2 + $0xb0] sm:$0xff] %v431_v7  ;;  %v432_v13 = vadd.f32 -1.0, %v128_v8  ;;  %v36_v14 = vld [vmem:[%s845_s0 + $0xd8] sm:$0xff]  ;;  %v37_v15 = vld [vmem:[%s845_s0 + $0xe0] sm:$0xff]  ;;  %v433_v17 = vadd.f32 -1.0, %v129_v10 }
  0x18   :  { %v38_v16 = vld [vmem:[%s845_s0 + $0xe8] sm:$0xff]  ;;  %v434_v18 = vadd.f32 -1.0, %v130_v11  ;;  %v435_v19 = vadd.f32 -1.0, %v131_v12  ;;  %v132_v20 = vmul.f32 0.007843138, %v36_v14  ;;  %v39_v21 = vld [vmem:[%s845_s0 + $0xf0] sm:$0xff] }
  0x19   :  { %320 = vst [vmem:[#allocation2 + $0xb8] sm:$0xff] %v432_v13  ;;  %v133_v22 = vmul.f32 0.007843138, %v37_v15  ;;  %v134_v23 = vmul.f32 0.007843138, %v38_v16  ;;  %321 = vst [vmem:[#allocation2 + $0xc0] sm:$0xff] %v433_v17 }
  0x1a   :  { %v135_v24 = vmul.f32 0.007843138, %v39_v21  ;;  %322 = vst [vmem:[#allocation2 + $0xc8] sm:$0xff] %v434_v18  ;;  %323 = vst [vmem:[#allocation2 + $0xd0] sm:$0xff] %v435_v19  ;;  %v436_v25 = vadd.f32 -1.0, %v132_v20  ;;  %v40_v26 = vld [vmem:[%s845_s0 + $0xf8] sm:$0xff] }
  0x1b   :  { %v41_v27 = vld [vmem:[%s845_s0 + $0x100] sm:$0xff]  ;;  %v42_v28 = vld [vmem:[%s845_s0 + $0x108] sm:$0xff]  ;;  %v437_v29 = vadd.f32 -1.0, %v133_v22  ;;  %v438_v30 = vadd.f32 -1.0, %v134_v23  ;;  %v136_v32 = vmul.f32 0.007843138, %v40_v26 }
  0x1c   :  { %v439_v31 = vadd.f32 -1.0, %v135_v24  ;;  %v43_v33 = vld [vmem:[%s845_s0 + $0x110] sm:$0xff]  ;;  %324 = vst [vmem:[#allocation2 + $0xd8] sm:$0xff] %v436_v25  ;;  %v137_v34 = vmul.f32 0.007843138, %v41_v27  ;;  %v44_v38 = vld [vmem:[%s845_s0 + $0x118] sm:$0xff] }
  0x1d   :  { %v138_v35 = vmul.f32 0.007843138, %v42_v28  ;;  %v139_v36 = vmul.f32 0.007843138, %v43_v33  ;;  %325 = vst [vmem:[#allocation2 + $0xe0] sm:$0xff] %v437_v29  ;;  %326 = vst [vmem:[#allocation2 + $0xe8] sm:$0xff] %v438_v30 }
  0x1e   :  { %327 = vst [vmem:[#allocation2 + $0xf0] sm:$0xff] %v439_v31  ;;  %v440_v37 = vadd.f32 -1.0, %v136_v32  ;;  %v45_v39 = vld [vmem:[%s845_s0 + $0x120] sm:$0xff]  ;;  %v46_v40 = vld [vmem:[%s845_s0 + $0x128] sm:$0xff]  ;;  %v441_v41 = vadd.f32 -1.0, %v137_v34  ;;  %v47_v45 = vld [vmem:[%s845_s0 + $0x130] sm:$0xff] }
  0x1f   :  { %v442_v42 = vadd.f32 -1.0, %v138_v35  ;;  %v443_v43 = vadd.f32 -1.0, %v139_v36  ;;  %v140_v44 = vmul.f32 0.007843138, %v44_v38  ;;  %v141_v46 = vmul.f32 0.007843138, %v45_v39 }
  0x20   :  { %328 = vst [vmem:[#allocation2 + $0xf8] sm:$0xff] %v440_v37  ;;  %v142_v47 = vmul.f32 0.007843138, %v46_v40  ;;  %v143_v48 = vmul.f32 0.007843138, %v47_v45  ;;  %329 = vst [vmem:[#allocation2 + $0x100] sm:$0xff] %v441_v41 }
  0x21   :  { %330 = vst [vmem:[#allocation2 + $0x108] sm:$0xff] %v442_v42  ;;  %331 = vst [vmem:[#allocation2 + $0x110] sm:$0xff] %v443_v43  ;;  %v444_v49 = vadd.f32 -1.0, %v140_v44  ;;  %v48_v50 = vld [vmem:[%s845_s0 + $0x138] sm:$0xff]  ;;  %v49_v51 = vld [vmem:[%s845_s0 + $0x140] sm:$0xff]  ;;  %v445_v53 = vadd.f32 -1.0, %v141_v46 }
  0x22   :  { %v50_v52 = vld [vmem:[%s845_s0 + $0x148] sm:$0xff]  ;;  %v446_v54 = vadd.f32 -1.0, %v142_v47  ;;  %v447_v55 = vadd.f32 -1.0, %v143_v48  ;;  %v144_v56 = vmul.f32 0.007843138, %v48_v50  ;;  %v51_v57 = vld [vmem:[%s845_s0 + $0x150] sm:$0xff] }
  0x23   :  { %332 = vst [vmem:[#allocation2 + $0x118] sm:$0xff] %v444_v49  ;;  %v145_v58 = vmul.f32 0.007843138, %v49_v51  ;;  %v146_v59 = vmul.f32 0.007843138, %v50_v52  ;;  %333 = vst [vmem:[#allocation2 + $0x120] sm:$0xff] %v445_v53 }
  0x24   :  { %v147_v60 = vmul.f32 0.007843138, %v51_v57  ;;  %334 = vst [vmem:[#allocation2 + $0x128] sm:$0xff] %v446_v54  ;;  %335 = vst [vmem:[#allocation2 + $0x130] sm:$0xff] %v447_v55  ;;  %v448_v61 = vadd.f32 -1.0, %v144_v56  ;;  %v52_v62 = vld [vmem:[%s845_s0 + $0x158] sm:$0xff] }
  0x25   :  { %v53_v63 = vld [vmem:[%s845_s0 + $0x160] sm:$0xff]  ;;  %v54_v0 = vld [vmem:[%s845_s0 + $0x168] sm:$0xff]  ;;  %v449_v1 = vadd.f32 -1.0, %v145_v58  ;;  %v450_v2 = vadd.f32 -1.0, %v146_v59  ;;  %v148_v4 = vmul.f32 0.007843138, %v52_v62 }
  0x26   :  { %v451_v3 = vadd.f32 -1.0, %v147_v60  ;;  %v55_v5 = vld [vmem:[%s845_s0 + $0x170] sm:$0xff]  ;;  %336 = vst [vmem:[#allocation2 + $0x138] sm:$0xff] %v448_v61  ;;  %v149_v6 = vmul.f32 0.007843138, %v53_v63  ;;  %v56_v10 = vld [vmem:[%s845_s0 + $0x178] sm:$0xff] }
  0x27   :  { %v150_v7 = vmul.f32 0.007843138, %v54_v0  ;;  %v151_v8 = vmul.f32 0.007843138, %v55_v5  ;;  %337 = vst [vmem:[#allocation2 + $0x140] sm:$0xff] %v449_v1  ;;  %338 = vst [vmem:[#allocation2 + $0x148] sm:$0xff] %v450_v2 }
  0x28   :  { %339 = vst [vmem:[#allocation2 + $0x150] sm:$0xff] %v451_v3  ;;  %v452_v9 = vadd.f32 -1.0, %v148_v4  ;;  %v57_v11 = vld [vmem:[%s845_s0 + $0x180] sm:$0xff]  ;;  %v58_v12 = vld [vmem:[%s845_s0 + $0x188] sm:$0xff]  ;;  %v453_v13 = vadd.f32 -1.0, %v149_v6  ;;  %v59_v17 = vld [vmem:[%s845_s0 + $0x190] sm:$0xff] }
  0x29   :  { %v454_v14 = vadd.f32 -1.0, %v150_v7  ;;  %v455_v15 = vadd.f32 -1.0, %v151_v8  ;;  %v152_v16 = vmul.f32 0.007843138, %v56_v10  ;;  %v153_v18 = vmul.f32 0.007843138, %v57_v11 }
  0x2a   :  { %340 = vst [vmem:[#allocation2 + $0x158] sm:$0xff] %v452_v9  ;;  %v154_v19 = vmul.f32 0.007843138, %v58_v12  ;;  %v155_v20 = vmul.f32 0.007843138, %v59_v17  ;;  %341 = vst [vmem:[#allocation2 + $0x160] sm:$0xff] %v453_v13 }
  0x2b   :  { %342 = vst [vmem:[#allocation2 + $0x168] sm:$0xff] %v454_v14  ;;  %343 = vst [vmem:[#allocation2 + $0x170] sm:$0xff] %v455_v15  ;;  %v456_v21 = vadd.f32 -1.0, %v152_v16  ;;  %v60_v22 = vld [vmem:[%s845_s0 + $0x198] sm:$0xff]  ;;  %v61_v23 = vld [vmem:[%s845_s0 + $0x1a0] sm:$0xff]  ;;  %v457_v25 = vadd.f32 -1.0, %v153_v18 }
  0x2c   :  { %v62_v24 = vld [vmem:[%s845_s0 + $0x1a8] sm:$0xff]  ;;  %v458_v26 = vadd.f32 -1.0, %v154_v19  ;;  %v459_v27 = vadd.f32 -1.0, %v155_v20  ;;  %v156_v28 = vmul.f32 0.007843138, %v60_v22  ;;  %v63_v29 = vld [vmem:[%s845_s0 + $0x1b0] sm:$0xff] }
  0x2d   :  { %344 = vst [vmem:[#allocation2 + $0x178] sm:$0xff] %v456_v21  ;;  %v157_v30 = vmul.f32 0.007843138, %v61_v23  ;;  %v158_v31 = vmul.f32 0.007843138, %v62_v24  ;;  %345 = vst [vmem:[#allocation2 + $0x180] sm:$0xff] %v457_v25 }
  0x2e   :  { %v159_v32 = vmul.f32 0.007843138, %v63_v29  ;;  %346 = vst [vmem:[#allocation2 + $0x188] sm:$0xff] %v458_v26  ;;  %347 = vst [vmem:[#allocation2 + $0x190] sm:$0xff] %v459_v27  ;;  %v460_v33 = vadd.f32 -1.0, %v156_v28  ;;  %v64_v34 = vld [vmem:[%s845_s0 + $0x1b8] sm:$0xff] }
  0x2f   :  { %v65_v35 = vld [vmem:[%s845_s0 + $0x1c0] sm:$0xff]  ;;  %v66_v36 = vld [vmem:[%s845_s0 + $0x1c8] sm:$0xff]  ;;  %v461_v37 = vadd.f32 -1.0, %v157_v30  ;;  %v462_v38 = vadd.f32 -1.0, %v158_v31  ;;  %v160_v40 = vmul.f32 0.007843138, %v64_v34 }
  0x30   :  { %v463_v39 = vadd.f32 -1.0, %v159_v32  ;;  %v67_v41 = vld [vmem:[%s845_s0 + $0x1d0] sm:$0xff]  ;;  %348 = vst [vmem:[#allocation2 + $0x198] sm:$0xff] %v460_v33  ;;  %v161_v42 = vmul.f32 0.007843138, %v65_v35  ;;  %v68_v46 = vld [vmem:[%s845_s0 + $0x1d8] sm:$0xff] }
  0x31   :  { %v162_v43 = vmul.f32 0.007843138, %v66_v36  ;;  %v163_v44 = vmul.f32 0.007843138, %v67_v41  ;;  %349 = vst [vmem:[#allocation2 + $0x1a0] sm:$0xff] %v461_v37  ;;  %350 = vst [vmem:[#allocation2 + $0x1a8] sm:$0xff] %v462_v38 }
  0x32   :  { %351 = vst [vmem:[#allocation2 + $0x1b0] sm:$0xff] %v463_v39  ;;  %v464_v45 = vadd.f32 -1.0, %v160_v40  ;;  %v69_v47 = vld [vmem:[%s845_s0 + $0x1e0] sm:$0xff]  ;;  %v70_v48 = vld [vmem:[%s845_s0 + $0x1e8] sm:$0xff]  ;;  %v465_v49 = vadd.f32 -1.0, %v161_v42  ;;  %v71_v53 = vld [vmem:[%s845_s0 + $0x1f0] sm:$0xff] }
  0x33   :  { %v466_v50 = vadd.f32 -1.0, %v162_v43  ;;  %v467_v51 = vadd.f32 -1.0, %v163_v44  ;;  %v164_v52 = vmul.f32 0.007843138, %v68_v46  ;;  %v165_v54 = vmul.f32 0.007843138, %v69_v47 }
  0x34   :  { %352 = vst [vmem:[#allocation2 + $0x1b8] sm:$0xff] %v464_v45  ;;  %v166_v55 = vmul.f32 0.007843138, %v70_v48  ;;  %v167_v56 = vmul.f32 0.007843138, %v71_v53  ;;  %353 = vst [vmem:[#allocation2 + $0x1c0] sm:$0xff] %v465_v49 }
  0x35   :  { %354 = vst [vmem:[#allocation2 + $0x1c8] sm:$0xff] %v466_v50  ;;  %355 = vst [vmem:[#allocation2 + $0x1d0] sm:$0xff] %v467_v51  ;;  %v468_v57 = vadd.f32 -1.0, %v164_v52  ;;  %v72_v58 = vld [vmem:[%s845_s0 + $0x1f8] sm:$0xff]  ;;  %v73_v59 = vld [vmem:[%s845_s0 + $0x200] sm:$0xff]  ;;  %v469_v61 = vadd.f32 -1.0, %v165_v54 }
  0x36   :  { %v74_v60 = vld [vmem:[%s845_s0 + $0x208] sm:$0xff]  ;;  %v470_v62 = vadd.f32 -1.0, %v166_v55  ;;  %v471_v63 = vadd.f32 -1.0, %v167_v56  ;;  %v168_v0 = vmul.f32 0.007843138, %v72_v58  ;;  %v75_v1 = vld [vmem:[%s845_s0 + $0x210] sm:$0xff] }
  0x37   :  { %356 = vst [vmem:[#allocation2 + $0x1d8] sm:$0xff] %v468_v57  ;;  %v169_v2 = vmul.f32 0.007843138, %v73_v59  ;;  %v170_v3 = vmul.f32 0.007843138, %v74_v60  ;;  %357 = vst [vmem:[#allocation2 + $0x1e0] sm:$0xff] %v469_v61 }
  0x38   :  { %v171_v4 = vmul.f32 0.007843138, %v75_v1  ;;  %358 = vst [vmem:[#allocation2 + $0x1e8] sm:$0xff] %v470_v62  ;;  %359 = vst [vmem:[#allocation2 + $0x1f0] sm:$0xff] %v471_v63  ;;  %v472_v5 = vadd.f32 -1.0, %v168_v0  ;;  %v76_v6 = vld [vmem:[%s845_s0 + $0x218] sm:$0xff] }
  0x39   :  { %v77_v7 = vld [vmem:[%s845_s0 + $0x220] sm:$0xff]  ;;  %v78_v8 = vld [vmem:[%s845_s0 + $0x228] sm:$0xff]  ;;  %v473_v9 = vadd.f32 -1.0, %v169_v2  ;;  %v474_v10 = vadd.f32 -1.0, %v170_v3  ;;  %v172_v12 = vmul.f32 0.007843138, %v76_v6 }
  0x3a   :  { %v475_v11 = vadd.f32 -1.0, %v171_v4  ;;  %v79_v13 = vld [vmem:[%s845_s0 + $0x230] sm:$0xff]  ;;  %360 = vst [vmem:[#allocation2 + $0x1f8] sm:$0xff] %v472_v5  ;;  %v173_v14 = vmul.f32 0.007843138, %v77_v7  ;;  %v80_v18 = vld [vmem:[%s845_s0 + $0x238] sm:$0xff] }
  0x3b   :  { %v174_v15 = vmul.f32 0.007843138, %v78_v8  ;;  %v175_v16 = vmul.f32 0.007843138, %v79_v13  ;;  %361 = vst [vmem:[#allocation2 + $0x200] sm:$0xff] %v473_v9  ;;  %362 = vst [vmem:[#allocation2 + $0x208] sm:$0xff] %v474_v10 }
  0x3c   :  { %363 = vst [vmem:[#allocation2 + $0x210] sm:$0xff] %v475_v11  ;;  %v476_v17 = vadd.f32 -1.0, %v172_v12  ;;  %v81_v19 = vld [vmem:[%s845_s0 + $0x240] sm:$0xff]  ;;  %v82_v20 = vld [vmem:[%s845_s0 + $0x248] sm:$0xff]  ;;  %v477_v21 = vadd.f32 -1.0, %v173_v14  ;;  %v83_v25 = vld [vmem:[%s845_s0 + $0x250] sm:$0xff] }
  0x3d   :  { %v478_v22 = vadd.f32 -1.0, %v174_v15  ;;  %v479_v23 = vadd.f32 -1.0, %v175_v16  ;;  %v176_v24 = vmul.f32 0.007843138, %v80_v18  ;;  %v177_v26 = vmul.f32 0.007843138, %v81_v19 }
  0x3e   :  { %364 = vst [vmem:[#allocation2 + $0x218] sm:$0xff] %v476_v17  ;;  %v178_v27 = vmul.f32 0.007843138, %v82_v20  ;;  %v179_v28 = vmul.f32 0.007843138, %v83_v25  ;;  %365 = vst [vmem:[#allocation2 + $0x220] sm:$0xff] %v477_v21 }
  0x3f   :  { %366 = vst [vmem:[#allocation2 + $0x228] sm:$0xff] %v478_v22  ;;  %367 = vst [vmem:[#allocation2 + $0x230] sm:$0xff] %v479_v23  ;;  %v480_v29 = vadd.f32 -1.0, %v176_v24  ;;  %v84_v30 = vld [vmem:[%s845_s0 + $0x258] sm:$0xff]  ;;  %v85_v31 = vld [vmem:[%s845_s0 + $0x260] sm:$0xff]  ;;  %v481_v33 = vadd.f32 -1.0, %v177_v26 }
  0x40   :  { %v86_v32 = vld [vmem:[%s845_s0 + $0x268] sm:$0xff]  ;;  %v482_v34 = vadd.f32 -1.0, %v178_v27  ;;  %v483_v35 = vadd.f32 -1.0, %v179_v28  ;;  %v180_v36 = vmul.f32 0.007843138, %v84_v30  ;;  %v87_v37 = vld [vmem:[%s845_s0 + $0x270] sm:$0xff] }
  0x41   :  { %368 = vst [vmem:[#allocation2 + $0x238] sm:$0xff] %v480_v29  ;;  %v181_v38 = vmul.f32 0.007843138, %v85_v31  ;;  %v182_v39 = vmul.f32 0.007843138, %v86_v32  ;;  %369 = vst [vmem:[#allocation2 + $0x240] sm:$0xff] %v481_v33 }
  0x42   :  { %v183_v40 = vmul.f32 0.007843138, %v87_v37  ;;  %370 = vst [vmem:[#allocation2 + $0x248] sm:$0xff] %v482_v34  ;;  %371 = vst [vmem:[#allocation2 + $0x250] sm:$0xff] %v483_v35  ;;  %v484_v41 = vadd.f32 -1.0, %v180_v36  ;;  %v88_v42 = vld [vmem:[%s845_s0 + $0x278] sm:$0xff] }
  0x43   :  { %v89_v43 = vld [vmem:[%s845_s0 + $0x280] sm:$0xff]  ;;  %v90_v44 = vld [vmem:[%s845_s0 + $0x288] sm:$0xff]  ;;  %v485_v45 = vadd.f32 -1.0, %v181_v38  ;;  %v486_v46 = vadd.f32 -1.0, %v182_v39  ;;  %v184_v48 = vmul.f32 0.007843138, %v88_v42 }
  0x44   :  { %v487_v47 = vadd.f32 -1.0, %v183_v40  ;;  %v91_v49 = vld [vmem:[%s845_s0 + $0x290] sm:$0xff]  ;;  %372 = vst [vmem:[#allocation2 + $0x258] sm:$0xff] %v484_v41  ;;  %v185_v50 = vmul.f32 0.007843138, %v89_v43  ;;  %v92_v54 = vld [vmem:[%s845_s0 + $0x298] sm:$0xff] }
  0x45   :  { %v186_v51 = vmul.f32 0.007843138, %v90_v44  ;;  %v187_v52 = vmul.f32 0.007843138, %v91_v49  ;;  %373 = vst [vmem:[#allocation2 + $0x260] sm:$0xff] %v485_v45  ;;  %374 = vst [vmem:[#allocation2 + $0x268] sm:$0xff] %v486_v46 }
  0x46   :  { %375 = vst [vmem:[#allocation2 + $0x270] sm:$0xff] %v487_v47  ;;  %v488_v53 = vadd.f32 -1.0, %v184_v48  ;;  %v93_v55 = vld [vmem:[%s845_s0 + $0x2a0] sm:$0xff]  ;;  %v94_v56 = vld [vmem:[%s845_s0 + $0x2a8] sm:$0xff]  ;;  %v489_v57 = vadd.f32 -1.0, %v185_v50  ;;  %v95_v61 = vld [vmem:[%s845_s0 + $0x2b0] sm:$0xff] }
  0x47   :  { %v490_v58 = vadd.f32 -1.0, %v186_v51  ;;  %v491_v59 = vadd.f32 -1.0, %v187_v52  ;;  %v188_v60 = vmul.f32 0.007843138, %v92_v54  ;;  %v189_v62 = vmul.f32 0.007843138, %v93_v55 }
  0x48   :  { %376 = vst [vmem:[#allocation2 + $0x278] sm:$0xff] %v488_v53  ;;  %v190_v63 = vmul.f32 0.007843138, %v94_v56  ;;  %v191_v0 = vmul.f32 0.007843138, %v95_v61  ;;  %377 = vst [vmem:[#allocation2 + $0x280] sm:$0xff] %v489_v57 }
  0x49   :  { %378 = vst [vmem:[#allocation2 + $0x288] sm:$0xff] %v490_v58  ;;  %379 = vst [vmem:[#allocation2 + $0x290] sm:$0xff] %v491_v59  ;;  %v492_v1 = vadd.f32 -1.0, %v188_v60  ;;  %v96_v2 = vld [vmem:[%s845_s0 + $0x2b8] sm:$0xff]  ;;  %v97_v3 = vld [vmem:[%s845_s0 + $0x2c0] sm:$0xff]  ;;  %v493_v5 = vadd.f32 -1.0, %v189_v62 }
  0x4a   :  { %v98_v4 = vld [vmem:[%s845_s0 + $0x2c8] sm:$0xff]  ;;  %v494_v6 = vadd.f32 -1.0, %v190_v63  ;;  %v495_v7 = vadd.f32 -1.0, %v191_v0  ;;  %v192_v8 = vmul.f32 0.007843138, %v96_v2  ;;  %v99_v9 = vld [vmem:[%s845_s0 + $0x2d0] sm:$0xff] }
  0x4b   :  { %380 = vst [vmem:[#allocation2 + $0x298] sm:$0xff] %v492_v1  ;;  %v193_v10 = vmul.f32 0.007843138, %v97_v3  ;;  %v194_v11 = vmul.f32 0.007843138, %v98_v4  ;;  %381 = vst [vmem:[#allocation2 + $0x2a0] sm:$0xff] %v493_v5 }
  0x4c   :  { %v195_v12 = vmul.f32 0.007843138, %v99_v9  ;;  %382 = vst [vmem:[#allocation2 + $0x2a8] sm:$0xff] %v494_v6  ;;  %383 = vst [vmem:[#allocation2 + $0x2b0] sm:$0xff] %v495_v7  ;;  %v496_v13 = vadd.f32 -1.0, %v192_v8  ;;  %v100_v14 = vld [vmem:[%s845_s0 + $0x2d8] sm:$0xff] }
  0x4d   :  { %v101_v15 = vld [vmem:[%s845_s0 + $0x2e0] sm:$0xff]  ;;  %v102_v16 = vld [vmem:[%s845_s0 + $0x2e8] sm:$0xff]  ;;  %v497_v17 = vadd.f32 -1.0, %v193_v10  ;;  %v498_v18 = vadd.f32 -1.0, %v194_v11  ;;  %v196_v20 = vmul.f32 0.007843138, %v100_v14 }
  0x4e   :  { %v499_v19 = vadd.f32 -1.0, %v195_v12  ;;  %v103_v21 = vld [vmem:[%s845_s0 + $0x2f0] sm:$0xff]  ;;  %384 = vst [vmem:[#allocation2 + $0x2b8] sm:$0xff] %v496_v13  ;;  %v197_v22 = vmul.f32 0.007843138, %v101_v15  ;;  %v104_v26 = vld [vmem:[%s845_s0 + $0x2f8] sm:$0xff] }
  0x4f   :  { %v198_v23 = vmul.f32 0.007843138, %v102_v16  ;;  %v199_v24 = vmul.f32 0.007843138, %v103_v21  ;;  %385 = vst [vmem:[#allocation2 + $0x2c0] sm:$0xff] %v497_v17  ;;  %386 = vst [vmem:[#allocation2 + $0x2c8] sm:$0xff] %v498_v18 }
  0x50   :  { %387 = vst [vmem:[#allocation2 + $0x2d0] sm:$0xff] %v499_v19  ;;  %v500_v25 = vadd.f32 -1.0, %v196_v20 }
  0x51   :  { %6 = vsyncpa [#allocation3], 0  ;;  %s532_s24 = smov [#allocation2]   ;;  %v501_v27 = vadd.f32 -1.0, %v197_v22  ;;  %v502_v28 = vadd.f32 -1.0, %v198_v23  ;;  %v503_v29 = vadd.f32 -1.0, %v199_v24 }
  0x52   :  { %s398_s25 = sshll.u32 %s532_s24, 4  ;;  %v200_v30 = vmul.f32 0.007843138, %v104_v26  ;;  %388 = vst [vmem:[#allocation2 + $0x2d8] sm:$0xff] %v500_v25  ;;  %s399_s25 = int_to_ptr.vmem [resolvable:$true] %s398_s25 }
  0x53   :  { %389 = vst [vmem:[#allocation2 + $0x2e0] sm:$0xff] %v501_v27  ;;  %390 = vst [vmem:[#allocation2 + $0x2e8] sm:$0xff] %v502_v28  ;;  %s508_s26 = scalar_lea.vmem %s399_s25, 12288  ;;  %p513_p1 = scmp.lt.s32.totalorder %s399_s25, %s399_s25 }
  0x54   :  { %391 = vst [vmem:[#allocation2 + $0x2f0] sm:$0xff] %v503_v29  ;;  %v504_v31 = vadd.f32 -1.0, %v200_v30  ;;  %p509_p0 = scmp.ne.s32.totalorder %s399_s25, %s508_s26  ;;  %p514_p2 = scmp.lt.s32.totalorder %s508_s26, %s508_s26 }
  0x56   :  { %392 = vst [vmem:[#allocation2 + $0x2f8] sm:$0xff] %v504_v31  ;;  %p515_p3 = por %p514_p2, %p513_p1 }
  0x58   :  { %p516_p4 = pnand %p515_p3, %p509_p0 }
  0x5a   :  { %519 = shalt.err (!%p516_p4)
}
  0x5b   :  { %s520_s28 = scalar_lea.hbm %s846_s1, 12288 }
  0x5c   :  { %p521_p5 = scmp.ne.s32.totalorder %s846_s1, %s520_s28  ;;  %p524_p6 = scmp.lt.u32.totalorder %s520_s28, %s846_s1 }
  0x5e   :  { %p526_p7 = pnand %p524_p6, %p521_p5 }
  0x60   :  { %529 = shalt.err (!%p526_p7)
}
  0x61   :  { %s533_s4 = smov 128   ;;  %s534_s5 = smov 8  }
  0x62   :  { %404 = dma.vmem_to_hbm [thread:$0]  %s399_s25, 12288, %s846_s1, [#allocation3], %s533_s4, %s533_s4, %s534_s5  }
  0x63   :  { %530 = dma.done.wait [#allocation3], 12288  }
  0x64   :  { %531 = vsyncadd [#allocation3], 4294955008 }
  0x65   :  { %408 = vsyncpa [#allocation3], 1 }

// kernel: pipeline.4
= control target key start
LH: loop header
LB: loop body
LE: loop exit
PB: predicated region body
PF: predicated region fallthrough
CT: control target
= control target key end

     0   :  { %10 = vsyncpa [#allocation3], 0  ;;  %s2751_s0 = inlined_call_operand.hbm [shape: f32[2,16,896], index: 0, kind: input, shape index: {}]   ;;  %s2752_s1 = inlined_call_operand.hbm [shape: f32[2,1,896], index: 1, kind: input, shape index: {}]   ;;  %s2753_s2 = inlined_call_operand.hbm [shape: f32[1,4,896], index: 2, kind: input, shape index: {}]   ;;  %s2754_s3 = inlined_call_operand.vmem [shape: f32[2,16,896], index: 3, kind: output, shape index: {0}]   ;;  %s2755_s4 = inlined_call_operand.vmem [shape: f32[2,1,896], index: 4, kind: output, shape index: {1}]  }
   0x1   :  { %11 = vsyncpa [#allocation5], 0  ;;  %s1508_s15 = smov [#allocation4]   ;;  %s1438_s19 = scalar_lea.hbm %s2752_s1, 224 }
   0x2   :  { %s29_s16 = sshll.u32 %s1508_s15, 4  ;;  %p1439_p0 = scmp.ne.s32.totalorder %s2752_s1, %s1438_s19  ;;  %s30_s16 = int_to_ptr.vmem [resolvable:$true] %s29_s16 }
   0x3   :  { %p1442_p1 = scmp.lt.u32.totalorder %s1438_s19, %s2752_s1 }
   0x5   :  { %p1444_p2 = pnand %p1442_p1, %p1439_p0 }
   0x7   :  { %1447 = shalt.err (!%p1444_p2)
}
   0x8   :  { %s1448_s24 = scalar_lea.vmem %s30_s16, 224  ;;  %p1453_p4 = scmp.lt.s32.totalorder %s30_s16, %s30_s16 }
   0x9   :  { %p1449_p3 = scmp.ne.s32.totalorder %s30_s16, %s1448_s24  ;;  %p1454_p5 = scmp.lt.s32.totalorder %s1448_s24, %s1448_s24 }
   0xb   :  { %p1455_p6 = por %p1454_p5, %p1453_p4 }
   0xd   :  { %p1456_p7 = pnand %p1455_p6, %p1449_p3 }
   0xf   :  { %1459 = shalt.err (!%p1456_p7)
}
  0x10   :  { %s1509_s25 = smov 112   ;;  %s1510_s26 = smov 7  }
  0x11   :  { %35 = dma.hbm_to_vmem [thread:$0]  %s2752_s1, 224, %s30_s16, [#allocation5], %s1509_s25, %s1509_s25, %s1510_s26  }
  0x12   :  { %s1511_s29 = smov [#allocation2]   ;;  %s1460_s7 = scalar_lea.hbm %s2751_s0, 3584 }
  0x13   :  { %s17_s30 = sshll.u32 %s1511_s29, 4  ;;  %p1461_p8 = scmp.ne.s32.totalorder %s2751_s0, %s1460_s7  ;;  %s18_s30 = int_to_ptr.vmem [resolvable:$true] %s17_s30 }
  0x14   :  { %p1464_p9 = scmp.lt.u32.totalorder %s1460_s7, %s2751_s0 }
  0x16   :  { %p1466_p10 = pnand %p1464_p9, %p1461_p8 }
  0x18   :  { %1469 = shalt.err (!%p1466_p10)
}
  0x19   :  { %s1470_s12 = scalar_lea.vmem %s18_s30, 3584  ;;  %p1475_p12 = scmp.lt.s32.totalorder %s18_s30, %s18_s30 }
  0x1a   :  { %p1471_p11 = scmp.ne.s32.totalorder %s18_s30, %s1470_s12  ;;  %p1476_p13 = scmp.lt.s32.totalorder %s1470_s12, %s1470_s12 }
  0x1c   :  { %p1477_p0 = por %p1476_p13, %p1475_p12 }
  0x1e   :  { %p1478_p1 = pnand %p1477_p0, %p1471_p11 }
  0x20   :  { %1481 = shalt.err (!%p1478_p1)
}
  0x21   :  { %s1512_s1 = smov 896   ;;  %s1513_s13 = smov 56  }
  0x22   :  { %23 = dma.hbm_to_vmem [thread:$0]  %s2751_s0, 3584, %s18_s30, [#allocation3], %s1512_s1, %s1512_s1, %s1513_s13  }
  0x23   :  { %s1514_s16 = smov [#allocation6]   ;;  %s1482_s20 = scalar_lea.hbm %s2753_s2, 448 }
  0x24   :  { %s42_s17 = sshll.u32 %s1514_s16, 4  ;;  %p1483_p2 = scmp.ne.s32.totalorder %s2753_s2, %s1482_s20  ;;  %s43_s17 = int_to_ptr.vmem [resolvable:$true] %s42_s17 }
  0x25   :  { %p1486_p3 = scmp.lt.u32.totalorder %s1482_s20, %s2753_s2 }
  0x27   :  { %p1488_p4 = pnand %p1486_p3, %p1483_p2 }
  0x29   :  { %1491 = shalt.err (!%p1488_p4)
}
  0x2a   :  { %s1492_s25 = scalar_lea.vmem %s43_s17, 448  ;;  %p1497_p6 = scmp.lt.s32.totalorder %s43_s17, %s43_s17 }
  0x2b   :  { %p1493_p5 = scmp.ne.s32.totalorder %s43_s17, %s1492_s25  ;;  %p1498_p7 = scmp.lt.s32.totalorder %s1492_s25, %s1492_s25 }
  0x2d   :  { %p1499_p8 = por %p1498_p7, %p1497_p6 }
  0x2f   :  { %p1500_p9 = pnand %p1499_p8, %p1493_p5 }
  0x31   :  { %1503 = shalt.err (!%p1500_p9)
}
  0x32   :  { %45 = dma.hbm_to_vmem [thread:$0]  %s2753_s2, 448, %s43_s17, [#allocation5]  }
  0x33   :  { %1504 = dma.done.wait [#allocation3], 3584  }
  0x34   :  { %1505 = vsyncadd [#allocation3], 4294963712 }
  0x35   :  { %1506 = dma.done.wait [#allocation5], 672  }
  0x36   :  { %1507 = vsyncadd [#allocation5], 4294966624  ;;  %v2756_v0 = vlaneseq  ;;  %v1515_v1 = vmov 1966171168   ;;  %v1599_v12 = vld [vmem:[#allocation2] sm:$0xff]  ;;  %v1601_v13 = vld [vmem:[#allocation2 + $0x8] sm:$0xff] }
  0x37   :  { %v389_v2 = vunpack.c.l.s4 %v1515_v1  ;;  %2842 = vst [vmem:[#allocation16_spill] sm:$0xff] %v1599_v12  ;;  %2843 = vst [vmem:[#allocation17_spill] sm:$0xff] %v1601_v13  ;;  %v1603_v14 = vld [vmem:[#allocation2 + $0x10] sm:$0xff]  ;;  %v1612_v18 = vld [vmem:[#allocation2 + $0x18] sm:$0xff]  ;;  %v1619_v21 = vmul.f32 0.0078125, %v1599_v12  ;;  %v1622_v22 = vmul.f32 0.0078125, %v1601_v13 }
  0x38   :  { %v1578_v3 = vshrl.u32 %v2756_v0, 7  ;;  %2844 = vst [vmem:[#allocation18_spill] sm:$0xff] %v1603_v14  ;;  %2846 = vst [vmem:[#allocation20_spill] sm:$0xff] %v1612_v18  ;;  %v1614_v19 = vld [vmem:[#allocation2 + $0x20] sm:$0xff]  ;;  %v1616_v20 = vld [vmem:[#allocation2 + $0x28] sm:$0xff]  ;;  %v1625_v23 = vmul.f32 0.0078125, %v1603_v14 }
  0x39   :  { %v390_v7 = vunpack.c.0.s8 %v389_v2  ;;  %2847 = vst [vmem:[#allocation21_spill] sm:$0xff] %v1614_v19  ;;  %2848 = vst [vmem:[#allocation22_spill] sm:$0xff] %v1616_v20  ;;  %v1627_v24 = vld [vmem:[#allocation2 + $0x30] sm:$0xff]  ;;  %v1634_v27 = vmul.f32 0.0078125, %v1612_v18  ;;  %v1637_v28 = vmul.f32 0.0078125, %v1614_v19  ;;  %v1640_v29 = vmul.f32 0.0078125, %v1616_v20 }
  0x3a   :  { %2835 = vst [vmem:[#allocation9_spill] sm:$0xff] %v1578_v3  ;;  %v1581_v4 = vsub.s32 3, %v1578_v3  ;;  %v1584_v5 = vsub.s32 7, %v1578_v3  ;;  %v1587_v6 = vsub.s32 1, %v1578_v3  ;;  %v258_v8 = vsub.s32 5, %v1578_v3  ;;  %2849 = vst [vmem:[#allocation23_spill] sm:$0xff] %v1627_v24 }
  0x3b   :  { %v1591_v9 = vsub.s32 2, %v1578_v3  ;;  %v1594_v10 = vsub.s32 6, %v1578_v3  ;;  %v1597_v11 = vsub.s32 0, %v1578_v3  ;;  %v1606_v15 = vsub.s32 4, %v1578_v3  ;;  %v1629_v25 = vld [vmem:[#allocation6] sm:$0xff]  ;;  %v1631_v26 = vld [vmem:[#allocation6 + $0x8] sm:$0xff] }
  0x3c   :  { %2836 = vst [vmem:[#allocation10_spill] sm:$0xff] %v1581_v4  ;;  %2837 = vst [vmem:[#allocation11_spill] sm:$0xff] %v1584_v5  ;;  %v1610_v17 = vadd.s32 8, %v1578_v3  ;;  %v1643_v30 = vsub.s32 %v390_v7, %v1578_v3  ;;  %v1645_v31 = vld [vmem:[#allocation6 + $0x10] sm:$0xff]  ;;  %v1647_v32 = vld [vmem:[#allocation6 + $0x18] sm:$0xf]  ;;  %v1654_v34 = vrot.slane %v1629_v25, %v1581_v4  ;;  %v1658_v35 = vrot.slane %v1629_v25, %v1584_v5 }
  0x3d   :  { %2838 = vst [vmem:[#allocation12_spill] sm:$0xff] %v1587_v6  ;;  %2839 = vst [vmem:[#allocation13_spill] sm:$0xff] %v1591_v9  ;;  %v1650_v33 = vmul.f32 0.0078125, %v1627_v24  ;;  %v1662_v36 = vrot.slane %v1631_v26, %v1581_v4  ;;  %v1666_v37 = vrot.slane %v1631_v26, %v1584_v5  ;;  %v1670_v38 = vrot.slane %v1645_v31, %v1581_v4  ;;  %v1736_v61 = vld [vmem:[#allocation2 + $0x70] sm:$0xff]  ;;  %v1756_v0 = vld [vmem:[#allocation2 + $0x78] sm:$0xff] }
  0x3e   :  { %2840 = vst [vmem:[#allocation14_spill] sm:$0xff] %v1594_v10  ;;  %2841 = vst [vmem:[#allocation15_spill] sm:$0xff] %v1597_v11  ;;  %v1674_v39 = vrot.slane %v1645_v31, %v1584_v5  ;;  %v1678_v40 = vrot.slane %v1647_v32, %v1581_v4  ;;  %v238_v41 = vmul.f32 %v1654_v34, %v1619_v21  ;;  %v1772_v24 = vld [vmem:[#allocation2 + $0x90] sm:$0xff]  ;;  %v1783_v14 = vld [vmem:[#allocation2 + $0x98] sm:$0xff]  ;;  %v2878_v3 = vlaneseq }
  0x3f   :  { %2845 = vst [vmem:[#allocation19_spill] sm:$0xff] %v1610_v17  ;;  %2850 = vst [vmem:[#allocation24_spill] sm:$0xff] %v1629_v25  ;;  %v239_v42 = vmul.f32 %v1658_v35, %v1622_v22  ;;  %v240_v43 = vmul.f32 %v1662_v36, %v1625_v23  ;;  %v1688_v44 = vrot.slane %v1629_v25, %v1587_v6  ;;  %v1770_v17 = vld [vmem:[#allocation2 + $0x88] sm:$0xff]  ;;  %v1800_v4 = vld [vmem:[#allocation2 + $0xa0] sm:$0xff]  ;;  %vm1205_vm2 = vcmask 1043456  }
  0x40   :  { %2851 = vst [vmem:[#allocation25_spill] sm:$0xff] %v1631_v26  ;;  %2852 = vst [vmem:[#allocation26_spill] sm:$0xff] %v1645_v31  ;;  %v241_v45 = vmul.f32 %v1666_v37, %v1634_v27  ;;  %v242_v46 = vmul.f32 %v1670_v38, %v1637_v28  ;;  %v243_v47 = vmul.f32 %v1674_v39, %v1640_v29  ;;  %v1722_v56 = vmul.f32 0.5, %v238_v41 }
  0x41   :  { %2853 = vst [vmem:[#allocation27_spill] sm:$0xff] %v1647_v32  ;;  %2854 = vst [vmem:[#allocation28_spill] sm:$0xff] %v1688_v44  ;;  %v244_v48 = vmul.f32 %v1678_v40, %v1650_v33  ;;  %v1699_v49 = vrot.slane %v1629_v25, %v258_v8  ;;  %v1703_v50 = vrot.slane %v1631_v26, %v1587_v6  ;;  %v1744_v1 = vmul.f32 0.5, %v239_v42 }
  0x42   :  { %v1706_v51 = vrot.slane %v1631_v26, %v258_v8  ;;  %v1710_v52 = vrot.slane %v1645_v31, %v1587_v6  ;;  %v1713_v53 = vrot.slane %v1645_v31, %v258_v8  ;;  %v1717_v54 = vrot.slane %v1647_v32, %v1587_v6  ;;  %2861 = vst [vmem:[#allocation35_spill] sm:$0xff] %v1736_v61 }
  0x43   :  { %2855 = vst [vmem:[#allocation29_spill] sm:$0xff] %v1699_v49  ;;  %2856 = vst [vmem:[#allocation30_spill] sm:$0xff] %v1703_v50  ;;  %v1720_v55 = vadd.f32 %v1688_v44, %v238_v41  ;;  %v1725_v57 = vadd.f32 %v1699_v49, %v239_v42  ;;  %v1728_v58 = vadd.f32 %v1703_v50, %v240_v43  ;;  %v1746_v2 = vmul.f32 0.5, %v240_v43  ;;  %v1761_v42 = vld [vmem:[#allocation2 + $0x80] sm:$0xff] }
  0x44   :  { %2857 = vst [vmem:[#allocation31_spill] sm:$0xff] %v1706_v51  ;;  %2858 = vst [vmem:[#allocation32_spill] sm:$0xff] %v1710_v52  ;;  %v1731_v59 = vadd.f32 %v1706_v51, %v241_v45  ;;  %v1734_v60 = vadd.f32 %v1710_v52, %v242_v46  ;;  %v1739_v62 = vadd.f32 %v1713_v53, %v243_v47  ;;  %v1748_v7 = vmul.f32 0.5, %v241_v45 }
  0x45   :  { %2859 = vst [vmem:[#allocation33_spill] sm:$0xff] %v1713_v53  ;;  %2860 = vst [vmem:[#allocation34_spill] sm:$0xff] %v1717_v54  ;;  %v1742_v63 = vadd.f32 %v1717_v54, %v244_v48  ;;  %v1750_v8 = vmul.f32 0.5, %v242_v46  ;;  %v1752_v41 = vmul.f32 0.5, %v243_v47  ;;  %v1754_v16 = vmul.f32 0.5, %v244_v48 }
  0x46   :  { %2862 = vst [vmem:[#allocation36_spill] sm:$0xff] %v1748_v7  ;;  %2865 = vst [vmem:[#allocation39_spill] sm:$0xff] %v1756_v0  ;;  %v1764_v43 = vmul.f32 0.0078125, %v1736_v61  ;;  %v2869_v20 = vrot.slane %v1722_v56, 2  ;;  %v2870_v18 = vrot.slane %v1744_v1, 2  ;;  %v2871_v45 = vrot.slane %v1746_v2, 2 }
  0x47   :  { %2863 = vst [vmem:[#allocation37_spill] sm:$0xff] %v1752_v41  ;;  %2864 = vst [vmem:[#allocation38_spill] sm:$0xff] %v1754_v16  ;;  %v1786_v48 = vmul.f32 0.0078125, %v1756_v0  ;;  %v2873_v47 = vrot.slane %v1748_v7, 2  ;;  %v2874_v12 = vrot.slane %v1750_v8, 2  ;;  %v2875_v5 = vrot.slane %v1752_v41, 2 }
  0x48   :  { %2866 = vst [vmem:[#allocation40_spill] sm:$0xff] %v1761_v42  ;;  %2867 = vst [vmem:[#allocation41_spill] sm:$0xff] %v1770_v17  ;;  %v357_v19 = vsub.f32 %v1720_v55, %v2869_v20  ;;  %v358_v61 = vsub.f32 %v1725_v57, %v2870_v18  ;;  %v359_v46 = vsub.f32 %v1728_v58, %v2871_v45  ;;  %v2876_v6 = vrot.slane %v1754_v16, 2 }
  0x49   :  { %2868 = vst [vmem:[#allocation42_spill] sm:$0xff] %v1772_v24  ;;  %2872 = vst [vmem:[#allocation43_spill] sm:$0xff] %v1783_v14  ;;  %v360_v13 = vsub.f32 %v1731_v59, %v2873_v47  ;;  %v361_v20 = vsub.f32 %v1734_v60, %v2874_v12  ;;  %v362_v18 = vsub.f32 %v1739_v62, %v2875_v5  ;;  %vm1803_vm0 = vcmp.lt.s32.totalorder %v2878_v3, 896 }
  0x4a   :  { %v363_v45 = vsub.f32 %v1742_v63, %v2876_v6  ;;  %2877 = vst [vmem:[#allocation44_spill] sm:$0xff] %v1800_v4  ;;  %v385_v0 = vcombine.low %v357_v19, %v358_v61  ;;  %v1808_v47 = vmul.f32 0.0078125, %v1761_v42  ;;  %v1811_v12 = vmul.f32 0.0078125, %v1770_v17 }
  0x4b   :  { %v1814_v5 = vmul.f32 0.0078125, %v1772_v24  ;;  %v386_v16 = vcombine.low %v359_v46, %v360_v13  ;;  %v387_v41 = vcombine.low %v361_v20, %v362_v18  ;;  %v1818_v19 = vmul.f32 0.0078125, %v1783_v14 }
  0x4c   :  { %v415_v6 = vrot.slane %v363_v45, %v1643_v30  ;;  %v394_v3 = vrot.slane %v385_v0, %v1643_v30  ;;  %v1822_v61 = vmul.f32 0.0078125, %v1800_v4  ;;  %v245_v42 = vmul.f32 %v1654_v34, %v1764_v43 }
  0x4d   :  { %v246_v17 = vmul.f32 %v1658_v35, %v1786_v48  ;;  %v401_v24 = vrot.slane %v386_v16, %v1643_v30  ;;  %v408_v13 = vrot.slane %v387_v41, %v1643_v30  ;;  %v247_v46 = vmul.f32 %v1662_v36, %v1808_v47 }
  0x4e   :  { %v248_v20 = vmul.f32 %v1666_v37, %v1811_v12  ;;  %v249_v0 = vmul.f32 %v1670_v38, %v1814_v5  ;;  %v250_v18 = vmul.f32 %v1674_v39, %v1818_v19  ;;  %v251_v34 = vmul.f32 %v1678_v40, %v1822_v61 }
  0x4f   :  { %v1841_v35 = vadd.f32 %v1688_v44, %v245_v42  ;;  %v416_v16 = vcombine.high %v394_v3, %v401_v24  ;;  %v417_v41 = vcombine.high %v408_v13, %v415_v6  ;;  %v1844_v45 = vadd.f32 %v1699_v49, %v246_v17 }
  0x50   :  { %v1847_v36 = vadd.f32 %v1703_v50, %v247_v46  ;;  %v1850_v37 = vadd.f32 %v1706_v51, %v248_v20  ;;  %v1853_v38 = vadd.f32 %v1710_v52, %v249_v0  ;;  %v1856_v39 = vadd.f32 %v1713_v53, %v250_v18 }
  0x51   :  { %v1859_v40 = vadd.f32 %v1717_v54, %v251_v34  ;;  %v424_v24 = vrot.slane %v416_v16, %v1643_v30  ;;  %v431_v6 = vrot.slane %v417_v41, %v1643_v30  ;;  %v1863_v3 = vmul.f32 0.5, %v245_v42 }
  0x52   :  { %2881 = vst [vmem:[#allocation45_spill] sm:$0xff] %v1850_v37  ;;  %2882 = vst [vmem:[#allocation46_spill] sm:$0xff] %v1853_v38  ;;  %v1865_v13 = vmul.f32 0.5, %v246_v17  ;;  %v1867_v4 = vmul.f32 0.5, %v247_v46  ;;  %v1869_v14 = vmul.f32 0.5, %v248_v20  ;;  %v1871_v52 = vmul.f32 0.5, %v249_v0 }
  0x53   :  { %2883 = vst [vmem:[#allocation47_spill] sm:$0xff] %v1856_v39  ;;  %2884 = vst [vmem:[#allocation48_spill] sm:$0xff] %v1859_v40  ;;  %v1873_v51 = vmul.f32 0.5, %v250_v18  ;;  %v432_v53 = vcombine.low %v424_v24, %v431_v6  ;;  %v1875_v50 = vmul.f32 0.5, %v251_v34  ;;  %v2786_v54 = vrot.slane %v1863_v3, 2 }
  0x54   :  { %2885 = vst [vmem:[#allocation49_spill] sm:$0xff] %v1869_v14  ;;  %2886 = vst [vmem:[#allocation50_spill] sm:$0xff] %v1871_v52  ;;  %v2787_v16 = vrot.slane %v1865_v13, 2  ;;  %v2789_v42 = vrot.slane %v1867_v4, 2  ;;  %v2791_v17 = vrot.slane %v1869_v14, 2  ;;  %v2793_v46 = vrot.slane %v1871_v52, 2 }
  0x55   :  { %2887 = vst [vmem:[#allocation51_spill] sm:$0xff] %v1873_v51  ;;  %2888 = vst [vmem:[#allocation52_spill] sm:$0xff] %v1875_v50  ;;  %v2795_v20 = vrot.slane %v1873_v51, 2  ;;  %v2797_v0 = vrot.slane %v1875_v50, 2  ;;  %v364_v18 = vsub.f32 %v1841_v35, %v2786_v54  ;;  %v108_v41 = vrot.slane %v1629_v25, %v1591_v9 }
  0x56   :  { %487 = vst.msk [vmem:[%s2754_s3] ss:$8 sm:$0xf] %vm1803_vm0, %v432_v53  ;;  %488 = vst.msk [vmem:[%s2754_s3] ss:$8 sm:$0x70] %vm1803_vm0, %v432_v53  ;;  %v365_v34 = vsub.f32 %v1844_v45, %v2787_v16  ;;  %v366_v24 = vsub.f32 %v1847_v36, %v2789_v42  ;;  %v367_v53 = vsub.f32 %v1850_v37, %v2791_v17 }
  0x57   :  { %v368_v6 = vsub.f32 %v1853_v38, %v2793_v46  ;;  %v369_v54 = vsub.f32 %v1856_v39, %v2795_v20  ;;  %v370_v16 = vsub.f32 %v1859_v40, %v2797_v0  ;;  %v112_v42 = vrot.slane %v1629_v25, %v1594_v10 }
  0x58   :  { %v433_v49 = vcombine.low %v364_v18, %v365_v34  ;;  %v116_v44 = vrot.slane %v1631_v26, %v1591_v9  ;;  %v434_v17 = vcombine.low %v366_v24, %v367_v53  ;;  %v120_v46 = vrot.slane %v1631_v26, %v1594_v10 }
  0x59   :  { %v435_v14 = vcombine.low %v368_v6, %v369_v54  ;;  %v124_v51 = vrot.slane %v1645_v31, %v1591_v9  ;;  %v463_v50 = vrot.slane %v370_v16, %v1643_v30  ;;  %v128_v18 = vrot.slane %v1645_v31, %v1594_v10 }
  0x5a   :  { %v442_v20 = vrot.slane %v433_v49, %v1643_v30  ;;  %v132_v34 = vrot.slane %v1647_v32, %v1591_v9  ;;  %v449_v0 = vrot.slane %v434_v17, %v1643_v30  ;;  %v140_v24 = vmul.f32 %v108_v41, %v1619_v21 }
  0x5b   :  { %v456_v54 = vrot.slane %v435_v14, %v1643_v30  ;;  %v141_v53 = vmul.f32 %v112_v42, %v1622_v22  ;;  %v142_v6 = vmul.f32 %v116_v44, %v1625_v23  ;;  %v143_v49 = vmul.f32 %v120_v46, %v1634_v27 }
  0x5c   :  { %v144_v16 = vmul.f32 %v124_v51, %v1637_v28  ;;  %v145_v40 = vmul.f32 %v128_v18, %v1640_v29  ;;  %v464_v10 = vcombine.high %v442_v20, %v449_v0  ;;  %v146_v9 = vmul.f32 %v132_v34, %v1650_v33 }
  0x5d   :  { %v465_v39 = vcombine.high %v456_v54, %v463_v50  ;;  %v1942_v17 = vrot.slane %v1629_v25, %v1597_v11  ;;  %v1946_v14 = vrot.slane %v1629_v25, %v1606_v15  ;;  %v1950_v21 = vrot.slane %v1631_v26, %v1597_v11 }
  0x5e   :  { %v1954_v22 = vrot.slane %v1631_v26, %v1606_v15  ;;  %v1958_v23 = vrot.slane %v1645_v31, %v1597_v11  ;;  %v472_v27 = vrot.slane %v464_v10, %v1643_v30  ;;  %v1964_v29 = vrot.slane %v1645_v31, %v1606_v15 }
  0x5f   :  { %v479_v28 = vrot.slane %v465_v39, %v1643_v30  ;;  %v1968_v33 = vrot.slane %v1647_v32, %v1597_v11  ;;  %v1971_v50 = vadd.f32 %v1942_v17, %v140_v24  ;;  %v1974_v20 = vadd.f32 %v1946_v14, %v141_v53 }
  0x60   :  { %2889 = vst [vmem:[#allocation53_spill] sm:$0xff] %v1964_v29  ;;  %v1977_v0 = vadd.f32 %v1950_v21, %v142_v6  ;;  %v1980_v10 = vadd.f32 %v1954_v22, %v143_v49  ;;  %v1983_v15 = vadd.f32 %v1958_v23, %v144_v16  ;;  %v1986_v54 = vadd.f32 %v1964_v29, %v145_v40 }
  0x61   :  { %2890 = vst [vmem:[#allocation54_spill] sm:$0xff] %v1968_v33  ;;  %v480_v39 = vcombine.low %v472_v27, %v479_v28  ;;  %v1989_v32 = vadd.f32 %v1968_v33, %v146_v9  ;;  %v1991_v31 = vmul.f32 0.5, %v140_v24  ;;  %v1993_v26 = vmul.f32 0.5, %v141_v53 }
  0x62   :  { %2891 = vst [vmem:[#allocation55_spill] sm:$0xff] %v1980_v10  ;;  %v1995_v11 = vmul.f32 0.5, %v142_v6  ;;  %v1997_v25 = vmul.f32 0.5, %v143_v49  ;;  %v2009_v24 = vmul.f32 0.5, %v144_v16  ;;  %v2011_v53 = vmul.f32 0.5, %v145_v40 }
  0x63   :  { %2892 = vst [vmem:[#allocation56_spill] sm:$0xff] %v1993_v26  ;;  %1404 = vst.msk [vmem:[%s2754_s3 + $0x70] ss:$8 sm:$0xf] %vm1803_vm0, %v480_v39  ;;  %v2013_v6 = vmul.f32 0.5, %v146_v9  ;;  %v147_v49 = vmul.f32 %v108_v41, %v1764_v43  ;;  %v2813_v27 = vrot.slane %v1991_v31, 2  ;;  %v148_v40 = vmul.f32 %v112_v42, %v1786_v48 }
  0x64   :  { %2893 = vst [vmem:[#allocation57_spill] sm:$0xff] %v1995_v11  ;;  %2894 = vst [vmem:[#allocation58_spill] sm:$0xff] %v1997_v25  ;;  %v2814_v28 = vrot.slane %v1993_v26, 2  ;;  %v2817_v52 = vrot.slane %v1995_v11, 2  ;;  %v2819_v38 = vrot.slane %v1997_v25, 2  ;;  %v2822_v37 = vrot.slane %v2009_v24, 2 }
  0x65   :  { %1405 = vst.msk [vmem:[%s2754_s3 + $0x70] ss:$8 sm:$0x70] %vm1803_vm0, %v480_v39  ;;  %2895 = vst [vmem:[#allocation59_spill] sm:$0xff] %v2009_v24  ;;  %v2825_v16 = vrot.slane %v2013_v6, 2  ;;  %v548_v9 = vsub.f32 %v1971_v50, %v2813_v27  ;;  %v2898_v42 = vrot.slane %v2011_v53, 2  ;;  %v149_v11 = vmul.f32 %v116_v44, %v1808_v47 }
  0x66   :  { %2896 = vst [vmem:[#allocation60_spill] sm:$0xff] %v2011_v53  ;;  %2897 = vst [vmem:[#allocation61_spill] sm:$0xff] %v2013_v6  ;;  %v549_v43 = vsub.f32 %v1974_v20, %v2814_v28  ;;  %v550_v41 = vsub.f32 %v1977_v0, %v2817_v52  ;;  %v551_v39 = vsub.f32 %v1980_v10, %v2819_v38 }
  0x67   :  { %v552_v48 = vsub.f32 %v1983_v15, %v2822_v37  ;;  %v553_v27 = vsub.f32 %v1986_v54, %v2898_v42  ;;  %v554_v28 = vsub.f32 %v1989_v32, %v2825_v16  ;;  %v150_v25 = vmul.f32 %v120_v46, %v1811_v12 }
  0x68   :  { %v576_v26 = vcombine.low %v548_v9, %v549_v43  ;;  %v577_v52 = vcombine.low %v550_v41, %v551_v39  ;;  %v151_v38 = vmul.f32 %v124_v51, %v1814_v5  ;;  %v152_v37 = vmul.f32 %v128_v18, %v1818_v19 }
  0x69   :  { %v578_v10 = vcombine.low %v552_v48, %v553_v27  ;;  %v606_v24 = vrot.slane %v554_v28, %v1643_v30  ;;  %v153_v53 = vmul.f32 %v132_v34, %v1822_v61  ;;  %v2054_v16 = vadd.f32 %v1942_v17, %v147_v49 }
  0x6a   :  { %v585_v42 = vrot.slane %v576_v26, %v1643_v30  ;;  %v592_v6 = vrot.slane %v577_v52, %v1643_v30  ;;  %v2057_v44 = vadd.f32 %v1946_v14, %v148_v40  ;;  %v2061_v51 = vadd.f32 %v1950_v21, %v149_v11 }
  0x6b   :  { %v599_v47 = vrot.slane %v578_v10, %v1643_v30  ;;  %v2064_v12 = vadd.f32 %v1954_v22, %v150_v25  ;;  %v2067_v5 = vadd.f32 %v1958_v23, %v151_v38  ;;  %v2070_v52 = vadd.f32 %v1964_v29, %v152_v37  ;;  %v2902_v29 = vld [vmem:[#allocation36_spill] sm:$0xff] }
  0x6c   :  { %v607_v26 = vcombine.low %v585_v42, %v592_v6  ;;  %v2073_v19 = vadd.f32 %v1968_v33, %v153_v53  ;;  %v2075_v61 = vmul.f32 0.5, %v147_v49  ;;  %v2077_v18 = vmul.f32 0.5, %v148_v40 }
  0x6d   :  { %v608_v46 = vcombine.low %v599_v47, %v606_v24  ;;  %v2079_v34 = vmul.f32 0.5, %v149_v11  ;;  %v2081_v10 = vmul.f32 0.5, %v150_v25  ;;  %v2084_v28 = vmul.f32 0.5, %v151_v38 }
  0x6e   :  { %v615_v27 = vrot.slane %v607_v26, %v1643_v30  ;;  %v2086_v6 = vmul.f32 0.5, %v152_v37  ;;  %v2088_v39 = vmul.f32 0.5, %v153_v53  ;;  %v2832_v49 = vrot.slane %v2075_v61, 2 }
  0x6f   :  { %v622_v9 = vrot.slane %v608_v46, %v1643_v30  ;;  %v2831_v24 = vrot.slane %v2077_v18, 2  ;;  %v2830_v40 = vrot.slane %v2079_v34, 2  ;;  %v2829_v11 = vrot.slane %v2081_v10, 2 }
  0x70   :  { %v2828_v25 = vrot.slane %v2084_v28, 2  ;;  %v2826_v43 = vrot.slane %v2086_v6, 2  ;;  %v2827_v38 = vrot.slane %v2088_v39, 2  ;;  %v555_v53 = vsub.f32 %v2054_v16, %v2832_v49 }
  0x71   :  { %v623_v37 = vcombine.low %v615_v27, %v622_v9  ;;  %v556_v41 = vsub.f32 %v2057_v44, %v2831_v24  ;;  %v557_v48 = vsub.f32 %v2061_v51, %v2830_v40  ;;  %v558_v42 = vsub.f32 %v2064_v12, %v2829_v11 }
  0x72   :  { %v559_v47 = vsub.f32 %v2067_v5, %v2828_v25  ;;  %v560_v26 = vsub.f32 %v2070_v52, %v2826_v43  ;;  %v561_v46 = vsub.f32 %v2073_v19, %v2827_v38  ;;  %v2899_v9 = vrot.slane %v1722_v56, 2 }
  0x73   :  { %1406 = vst.msk [vmem:[%s2754_s3 + $0x1] ss:$8 sm:$0xf] %vm1803_vm0, %v623_v37  ;;  %1407 = vst.msk [vmem:[%s2754_s3 + $0x1] ss:$8 sm:$0x70] %vm1803_vm0, %v623_v37  ;;  %v624_v27 = vcombine.low %v555_v53, %v556_v41  ;;  %v625_v24 = vcombine.low %v557_v48, %v558_v42 }
  0x74   :  { %v680_v43 = vadd.f32 %v2899_v9, %v1720_v55  ;;  %v2900_v38 = vrot.slane %v1744_v1, 2  ;;  %v2901_v11 = vrot.slane %v1746_v2, 2  ;;  %v626_v49 = vcombine.low %v559_v47, %v560_v26 }
  0x75   :  { %v654_v33 = vrot.slane %v561_v46, %v1643_v30  ;;  %v2903_v37 = vrot.slane %v2902_v29, 2  ;;  %v633_v41 = vrot.slane %v624_v27, %v1643_v30  ;;  %v2904_v55 = vrot.slane %v1750_v8, 2 }
  0x76   :  { %v681_v25 = vadd.f32 %v2900_v38, %v1725_v57  ;;  %v682_v40 = vadd.f32 %v2901_v11, %v1728_v58  ;;  %v2905_v57 = vld [vmem:[#allocation37_spill] sm:$0xff]  ;;  %v2907_v58 = vld [vmem:[#allocation38_spill] sm:$0xff]  ;;  %v640_v48 = vrot.slane %v625_v24, %v1643_v30  ;;  %v647_v42 = vrot.slane %v626_v49, %v1643_v30 }
  0x77   :  { %v683_v53 = vadd.f32 %v2903_v37, %v1731_v59  ;;  %v684_v56 = vadd.f32 %v2904_v55, %v1734_v60  ;;  %v2906_v1 = vrot.slane %v2905_v57, 2  ;;  %v2908_v2 = vrot.slane %v2907_v58, 2  ;;  %v2913_v37 = vld [vmem:[#allocation49_spill] sm:$0xff]  ;;  %v2916_v55 = vld [vmem:[#allocation50_spill] sm:$0xff]  ;;  %v2918_v57 = vld [vmem:[#allocation47_spill] sm:$0xff] }
  0x78   :  { %v708_v29 = vcombine.low %v680_v43, %v681_v25  ;;  %v2909_v60 = vrot.slane %v1863_v3, 2  ;;  %v655_v27 = vcombine.low %v633_v41, %v640_v48  ;;  %v656_v9 = vcombine.low %v647_v42, %v654_v33  ;;  %v2912_v43 = vld [vmem:[#allocation45_spill] sm:$0xff] }
  0x79   :  { %v685_v38 = vadd.f32 %v2906_v1, %v1739_v62  ;;  %v686_v11 = vadd.f32 %v2908_v2, %v1742_v63  ;;  %v709_v59 = vcombine.low %v682_v40, %v683_v53  ;;  %v2910_v62 = vrot.slane %v1865_v13, 2  ;;  %v2915_v53 = vld [vmem:[#allocation46_spill] sm:$0xff]  ;;  %v2919_v1 = vld [vmem:[#allocation51_spill] sm:$0xff] }
  0x7a   :  { %v687_v8 = vadd.f32 %v2909_v60, %v1841_v35  ;;  %v717_v63 = vrot.slane %v708_v29, %v1643_v30  ;;  %v2911_v40 = vrot.slane %v1867_v4, 2  ;;  %v2914_v3 = vrot.slane %v2913_v37, 2  ;;  %v2921_v4 = vld [vmem:[#allocation48_spill] sm:$0xff]  ;;  %v2930_v37 = vld [vmem:[#allocation58_spill] sm:$0xff] }
  0x7b   :  { %v710_v47 = vcombine.low %v684_v56, %v685_v38  ;;  %v738_v26 = vrot.slane %v686_v11, %v1643_v30  ;;  %v688_v46 = vadd.f32 %v2910_v62, %v1844_v45  ;;  %v724_v24 = vrot.slane %v709_v59, %v1643_v30 }
  0x7c   :  { %v689_v25 = vadd.f32 %v2911_v40, %v1847_v36  ;;  %v690_v35 = vadd.f32 %v2914_v3, %v2912_v43  ;;  %v2917_v13 = vrot.slane %v2916_v55, 2  ;;  %v663_v33 = vrot.slane %v655_v27, %v1643_v30  ;;  %v2922_v36 = vld [vmem:[#allocation52_spill] sm:$0xff]  ;;  %v2929_v43 = vld [vmem:[#allocation55_spill] sm:$0xff] }
  0x7d   :  { %v731_v49 = vrot.slane %v710_v47, %v1643_v30  ;;  %v670_v41 = vrot.slane %v656_v9, %v1643_v30  ;;  %v739_v56 = vcombine.high %v717_v63, %v724_v24  ;;  %v2920_v38 = vrot.slane %v2919_v1, 2 }
  0x7e   :  { %v691_v45 = vadd.f32 %v2917_v13, %v2915_v53  ;;  %v2923_v11 = vrot.slane %v2922_v36, 2  ;;  %v756_v42 = vcombine.low %v687_v8, %v688_v46  ;;  %v757_v29 = vcombine.low %v689_v25, %v690_v35  ;;  %v2932_v13 = vld [vmem:[#allocation59_spill] sm:$0xff] }
  0x7f   :  { %v692_v58 = vadd.f32 %v2920_v38, %v2918_v57  ;;  %v740_v2 = vcombine.high %v731_v49, %v738_v26  ;;  %v671_v59 = vcombine.low %v663_v33, %v670_v41  ;;  %v747_v47 = vrot.slane %v739_v56, %v1643_v30  ;;  %v2927_v49 = vld [vmem:[#allocation57_spill] sm:$0xff]  ;;  %v2934_v41 = vld [vmem:[#allocation60_spill] sm:$0xff] }
  0x80   :  { %v693_v48 = vadd.f32 %v2923_v11, %v2921_v4  ;;  %v2924_v62 = vrot.slane %v1991_v31, 2  ;;  %v765_v63 = vrot.slane %v756_v42, %v1643_v30  ;;  %v772_v26 = vrot.slane %v757_v29, %v1643_v30 }
  0x81   :  { %v758_v60 = vcombine.low %v691_v45, %v692_v58  ;;  %v754_v9 = vrot.slane %v740_v2, %v1643_v30  ;;  %1408 = vst.msk [vmem:[%s2754_s3 + $0x71] ss:$8 sm:$0xf] %vm1803_vm0, %v671_v59  ;;  %1409 = vst.msk [vmem:[%s2754_s3 + $0x71] ss:$8 sm:$0x70] %vm1803_vm0, %v671_v59 }
  0x82   :  { %v812_v27 = vadd.f32 %v2924_v62, %v1971_v50  ;;  %v786_v24 = vrot.slane %v693_v48, %v1643_v30  ;;  %v2925_v50 = vld [vmem:[#allocation56_spill] sm:$0xff]  ;;  %v2928_v40 = vrot.slane %v2927_v49, 2  ;;  %v2931_v3 = vrot.slane %v2930_v37, 2  ;;  %v2951_v37 = vld [vmem:[#allocation13_spill] sm:$0xff] }
  0x83   :  { %v779_v31 = vrot.slane %v758_v60, %v1643_v30  ;;  %v2926_v8 = vrot.slane %v2925_v50, 2  ;;  %v755_v53 = vcombine.low %v747_v47, %v754_v9  ;;  %v787_v55 = vcombine.high %v765_v63, %v772_v26 }
  0x84   :  { %v814_v25 = vadd.f32 %v2928_v40, %v1977_v0  ;;  %v815_v35 = vadd.f32 %v2931_v3, %v2929_v43  ;;  %v2933_v45 = vrot.slane %v2932_v13, 2  ;;  %v2935_v56 = vrot.slane %v2934_v41, 2  ;;  %v2950_v40 = vld [vmem:[#allocation15_spill] sm:$0xff]  ;;  %v2954_v13 = vld [vmem:[#allocation28_spill] sm:$0xff] }
  0x85   :  { %v813_v46 = vadd.f32 %v2926_v8, %v1974_v20  ;;  %v788_v1 = vcombine.high %v779_v31, %v786_v24  ;;  %v2936_v20 = vld [vmem:[#allocation61_spill] sm:$0xff]  ;;  %1410 = vst.msk [vmem:[%s2754_s3 + $0x2] ss:$8 sm:$0xf] %vm1803_vm0, %v755_v53  ;;  %v2939_v36 = vrot.slane %v2077_v18, 2  ;;  %v2940_v60 = vrot.slane %v2079_v34, 2 }
  0x86   :  { %v816_v33 = vadd.f32 %v2933_v45, %v1983_v15  ;;  %v817_v57 = vadd.f32 %v2935_v56, %v1986_v54  ;;  %v2937_v38 = vrot.slane %v2936_v20, 2  ;;  %v841_v2 = vcombine.low %v814_v25, %v815_v35  ;;  %1411 = vst.msk [vmem:[%s2754_s3 + $0x2] ss:$8 sm:$0x70] %vm1803_vm0, %v755_v53  ;;  %v2945_v8 = vld [vmem:[#allocation9_spill] sm:$0xff]  ;;  %v2952_v35 = vld [vmem:[#allocation10_spill] sm:$0xff] }
  0x87   :  { %v840_v0 = vcombine.low %v812_v27, %v813_v46  ;;  %v795_v15 = vrot.slane %v787_v55, %v1643_v30  ;;  %v820_v11 = vadd.f32 %v2939_v36, %v2057_v44  ;;  %v802_v48 = vrot.slane %v788_v1, %v1643_v30  ;;  %v2953_v55 = vld [vmem:[#allocation12_spill] sm:$0xff]  ;;  %v2955_v56 = vld [vmem:[#allocation14_spill] sm:$0xff]  ;;  %v2956_v1 = vld [vmem:[#allocation11_spill] sm:$0xff] }
  0x88   :  { %v818_v58 = vadd.f32 %v2937_v38, %v1989_v32  ;;  %v842_v54 = vcombine.low %v816_v33, %v817_v57  ;;  %v2938_v32 = vrot.slane %v2075_v61, 2  ;;  %v856_v29 = vrot.slane %v841_v2, %v1643_v30 }
  0x89   :  { %v849_v42 = vrot.slane %v840_v0, %v1643_v30  ;;  %v821_v62 = vadd.f32 %v2940_v60, %v2061_v51  ;;  %v2942_v44 = vrot.slane %v2084_v28, 2  ;;  %v803_v27 = vcombine.low %v795_v15, %v802_v48  ;;  %v2949_v28 = vld [vmem:[#allocation24_spill] sm:$0xff]  ;;  %v2957_v48 = vld [vmem:[#allocation29_spill] sm:$0xff] }
  0x8a   :  { %v819_v4 = vadd.f32 %v2938_v32, %v2054_v16  ;;  %v870_v59 = vrot.slane %v818_v58, %v1643_v30  ;;  %v863_v47 = vrot.slane %v842_v54, %v1643_v30  ;;  %v2941_v16 = vrot.slane %v2081_v10, 2 }
  0x8b   :  { %v823_v18 = vadd.f32 %v2942_v44, %v2067_v5  ;;  %v871_v9 = vcombine.low %v849_v42, %v856_v29  ;;  %v2943_v63 = vrot.slane %v2086_v6, 2  ;;  %v2944_v24 = vrot.slane %v2088_v39, 2  ;;  %1412 = vst.msk [vmem:[%s2754_s3 + $0x72] ss:$8 sm:$0xf] %vm1803_vm0, %v803_v27 }
  0x8c   :  { %v822_v61 = vadd.f32 %v2941_v16, %v2064_v12  ;;  %v872_v34 = vcombine.low %v863_v47, %v870_v59  ;;  %v888_v51 = vcombine.low %v819_v4, %v820_v11  ;;  %v2946_v10 = vand.u32 1, %v2945_v8  ;;  %1413 = vst.msk [vmem:[%s2754_s3 + $0x72] ss:$8 sm:$0x70] %vm1803_vm0, %v803_v27  ;;  %v2958_v59 = vld [vmem:[#allocation25_spill] sm:$0xff] }
  0x8d   :  { %v824_v26 = vadd.f32 %v2943_v63, %v2070_v52  ;;  %v825_v31 = vadd.f32 %v2944_v24, %v2073_v19  ;;  %v879_v5 = vrot.slane %v871_v9, %v1643_v30  ;;  %v973_v6 = vmul.f32 0.0078125, %v2949_v28 }
  0x8e   :  { %v889_v50 = vcombine.low %v821_v62, %v822_v61  ;;  %vm2257_vm1 = vcmp.eq.s32.totalorder %v2946_v10, 0  ;;  %v886_v39 = vrot.slane %v872_v34, %v1643_v30  ;;  %v897_v46 = vrot.slane %v888_v51, %v1643_v30  ;;  %v2959_v61 = vld [vmem:[#allocation30_spill] sm:$0xff] }
  0x8f   :  { %v890_v52 = vcombine.low %v823_v18, %v824_v26  ;;  %v918_v19 = vrot.slane %v825_v31, %v1643_v30  ;;  %v2279_v25 = vrot.slane %v1942_v17, %v2950_v40  ;;  %v984_v3 = vrot.slane %v973_v6, %v2951_v37  ;;  %v2960_v18 = vld [vmem:[#allocation16_spill] sm:$0xff]  ;;  %v2961_v26 = vld [vmem:[#allocation17_spill] sm:$0xff] }
  0x90   :  { %v904_v49 = vrot.slane %v889_v50, %v1643_v30  ;;  %v1047_v53 = vrot.slane %v973_v6, %v2952_v35  ;;  %v2286_v45 = vrot.slane %v2954_v13, %v2953_v55  ;;  %v887_v33 = vcombine.low %v879_v5, %v886_v39 }
  0x91   :  { %v911_v43 = vrot.slane %v890_v52, %v1643_v30  ;;  %v988_v57 = vrot.slane %v973_v6, %v2955_v56  ;;  %v1051_v20 = vrot.slane %v973_v6, %v2956_v1  ;;  %v2291_v17 = vrot.slane %v984_v3, %v2951_v37 }
  0x92   :  { %v919_v41 = vcombine.low %v897_v46, %v904_v49  ;;  %v2294_v58 = vrot.slane %v1047_v53, %v2952_v35  ;;  %v1177_v0 = vsel %vm2257_vm1, %v2279_v25, %v2286_v45  ;;  %1414 = vst.msk [vmem:[%s2754_s3 + $0x3] ss:$8 sm:$0xf] %vm1803_vm0, %v887_v33  ;;  %1415 = vst.msk [vmem:[%s2754_s3 + $0x3] ss:$8 sm:$0x70] %vm1803_vm0, %v887_v33 }
  0x93   :  { %v920_v38 = vcombine.low %v911_v43, %v918_v19  ;;  %v2311_v15 = vrot.slane %v1177_v0, 4  ;;  %v2314_v54 = vrot.slane %v988_v57, %v2951_v37  ;;  %v2317_v32 = vrot.slane %v1051_v20, %v2952_v35  ;;  %v2962_v46 = vld [vmem:[#allocation31_spill] sm:$0xff]  ;;  %v2963_v43 = vld [vmem:[#allocation26_spill] sm:$0xff]  ;;  %v2964_v33 = vld [vmem:[#allocation32_spill] sm:$0xff] }
  0x94   :  { %v927_v2 = vrot.slane %v919_v41, %v1643_v30  ;;  %v1107_v36 = vsel %vm2257_vm1, %v2291_v17, %v2294_v58  ;;  %v2326_v11 = vrot.slane %v1946_v14, %v2950_v40  ;;  %v2330_v42 = vrot.slane %v2957_v48, %v2953_v55  ;;  %v2965_v57 = vld [vmem:[#allocation53_spill] sm:$0xff] }
  0x95   :  { %v934_v4 = vrot.slane %v920_v38, %v1643_v30  ;;  %v2332_v29 = vrot.slane %v1107_v36, 4  ;;  %v1108_v30 = vsel %vm2257_vm1, %v2314_v54, %v2317_v32  ;;  %v974_v47 = vmul.f32 0.0078125, %v2958_v59 }
  0x96   :  { %v2341_v60 = vrot.slane %v1950_v21, %v2950_v40  ;;  %v1178_v14 = vsel %vm2257_vm1, %v2326_v11, %v2330_v42  ;;  %v2347_v16 = vrot.slane %v1108_v30, 4  ;;  %v2351_v44 = vrot.slane %v2959_v61, %v2953_v55 }
  0x97   :  { %v935_v62 = vcombine.low %v927_v2, %v934_v4  ;;  %v1241_v27 = vmul.f32 %v2332_v29, %v2960_v18  ;;  %v2355_v9 = vrot.slane %v1178_v14, 4  ;;  %v992_v21 = vrot.slane %v974_v47, %v2951_v37  ;;  %v2966_v4 = vld [vmem:[#allocation18_spill] sm:$0xff] }
  0x98   :  { %v1055_v63 = vrot.slane %v974_v47, %v2952_v35  ;;  %v1242_v24 = vmul.f32 %v2347_v16, %v2961_v26  ;;  %v1179_v31 = vsel %vm2257_vm1, %v2341_v60, %v2351_v44  ;;  %v996_v34 = vrot.slane %v974_v47, %v2955_v56 }
  0x99   :  { %1416 = vst.msk [vmem:[%s2754_s3 + $0x73] ss:$8 sm:$0xf] %vm1803_vm0, %v935_v62  ;;  %1417 = vst.msk [vmem:[%s2754_s3 + $0x73] ss:$8 sm:$0x70] %vm1803_vm0, %v935_v62  ;;  %v1059_v51 = vrot.slane %v974_v47, %v2956_v1  ;;  %v1318_v50 = vadd.f32 %v2311_v15, %v1241_v27  ;;  %v2379_v8 = vrot.slane %v992_v21, %v2951_v37 }
  0x9a   :  { %v2382_v10 = vrot.slane %v1055_v63, %v2952_v35  ;;  %v2384_v5 = vrot.slane %v1179_v31, 4  ;;  %v1319_v52 = vadd.f32 %v2355_v9, %v1242_v24  ;;  %v2388_v19 = vrot.slane %v996_v34, %v2951_v37  ;;  %v2967_v47 = vld [vmem:[#allocation20_spill] sm:$0xff]  ;;  %v2969_v34 = vld [vmem:[#allocation27_spill] sm:$0xff] }
  0x9b   :  { %v2391_v28 = vrot.slane %v1059_v51, %v2952_v35  ;;  %v2395_v6 = vrot.slane %v1954_v22, %v2950_v40  ;;  %1346 = vst [vmem:[%s2754_s3] sm:$0xf0] %v1318_v50  ;;  %v2406_v49 = vrot.slane %v2962_v46, %v2953_v55  ;;  %v975_v3 = vmul.f32 0.0078125, %v2963_v43  ;;  %v2970_v50 = vld [vmem:[#allocation54_spill] sm:$0xff] }
  0x9c   :  { %v1109_v39 = vsel %vm2257_vm1, %v2379_v8, %v2382_v10  ;;  %v2411_v53 = vrot.slane %v1958_v23, %v2950_v40  ;;  %1347 = vst [vmem:[%s2754_s3 + $0x8] sm:$0xf0] %v1319_v52  ;;  %v2424_v41 = vrot.slane %v2964_v33, %v2953_v55  ;;  %v2428_v20 = vrot.slane %v2965_v57, %v2950_v40  ;;  %v2971_v43 = vld [vmem:[#allocation34_spill] sm:$0xff]  ;;  %v2972_v57 = vld [vmem:[#allocation19_spill] sm:$0xff] }
  0x9d   :  { %v2416_v22 = vrot.slane %v1109_v39, 4  ;;  %v1110_v13 = vsel %vm2257_vm1, %v2388_v19, %v2391_v28  ;;  %v1180_v23 = vsel %vm2257_vm1, %v2395_v6, %v2406_v49  ;;  %v1000_v0 = vrot.slane %v975_v3, %v2951_v37 }
  0x9e   :  { %v2434_v38 = vrot.slane %v1110_v13, 4  ;;  %v1063_v2 = vrot.slane %v975_v3, %v2952_v35  ;;  %v2440_v48 = vrot.slane %v1180_v23, 4  ;;  %v1181_v30 = vsel %vm2257_vm1, %v2411_v53, %v2424_v41 }
  0x9f   :  { %v1243_v36 = vmul.f32 %v2416_v22, %v2966_v4  ;;  %v1004_v59 = vrot.slane %v975_v3, %v2955_v56  ;;  %v2450_v14 = vrot.slane %v1000_v0, %v2951_v37  ;;  %v2455_v18 = vrot.slane %v1181_v30, 4  ;;  %v2968_v56 = vld [vmem:[#allocation33_spill] sm:$0xff] }
  0xa0   :  { %v1244_v62 = vmul.f32 %v2434_v38, %v2967_v47  ;;  %v2453_v61 = vrot.slane %v1063_v2, %v2952_v35  ;;  %v1067_v63 = vrot.slane %v975_v3, %v2956_v1  ;;  %v2464_v26 = vrot.slane %v2968_v56, %v2953_v55  ;;  %v2973_v0 = vld [vmem:[#allocation21_spill] sm:$0xff] }
  0xa1   :  { %v1320_v27 = vadd.f32 %v2384_v5, %v1243_v36  ;;  %v2459_v21 = vrot.slane %v1004_v59, %v2951_v37  ;;  %v976_v51 = vmul.f32 0.0078125, %v2969_v34  ;;  %v2474_v52 = vrot.slane %v2970_v50, %v2950_v40  ;;  %v2974_v36 = vld [vmem:[#allocation35_spill] sm:$0xff]  ;;  %v2981_v56 = vld [vmem:[#allocation41_spill] sm:$0xff] }
  0xa2   :  { %v1321_v24 = vadd.f32 %v2440_v48, %v1244_v62  ;;  %v1111_v31 = vsel %vm2257_vm1, %v2450_v14, %v2453_v61  ;;  %v2482_v39 = vrot.slane %v1067_v63, %v2952_v35  ;;  %v1182_v46 = vsel %vm2257_vm1, %v2428_v20, %v2464_v26 }
  0xa3   :  { %1348 = vst [vmem:[%s2754_s3 + $0x10] sm:$0xf0] %v1320_v27  ;;  %v2479_v1 = vrot.slane %v1111_v31, 4  ;;  %v2490_v3 = vrot.slane %v2971_v43, %v2953_v55  ;;  %v2495_v40 = vrot.slane %v1182_v46, 4  ;;  %v1008_v13 = vrot.slane %v976_v51, %v2951_v37  ;;  %v2977_v31 = vld [vmem:[#allocation39_spill] sm:$0xff] }
  0xa4   :  { %1349 = vst [vmem:[%s2754_s3 + $0x18] sm:$0xf0] %v1321_v24  ;;  %v1071_v33 = vrot.slane %v976_v51, %v2952_v35  ;;  %v958_v23 = vand.u32 1, %v2972_v57  ;;  %v1112_v55 = vsel %vm2257_vm1, %v2459_v21, %v2482_v39  ;;  %v1255_v30 = vmul.f32 %v2332_v29, %v2974_v36  ;;  %v2978_v51 = vld [vmem:[#allocation22_spill] sm:$0xff] }
  0xa5   :  { %v1245_v2 = vmul.f32 %v2479_v1, %v2973_v0  ;;  %v1183_v4 = vsel %vm2257_vm1, %v2474_v52, %v2490_v3  ;;  %v2512_v59 = vrot.slane %v1112_v55, 4  ;;  %v2515_v47 = vrot.slane %v1008_v13, %v2951_v37  ;;  %v62_v13 = vld [vmem:[#allocation2 + $0x38] sm:$0xff] }
  0xa6   :  { %v2518_v62 = vrot.slane %v1071_v33, %v2952_v35  ;;  %v2520_v27 = vrot.slane %v1183_v4, 4  ;;  %vm2523_vm3 = vcmp.eq.s32.totalorder %v958_v23, 0  ;;  %v1332_v24 = vadd.f32 %v2311_v15, %v1255_v30  ;;  %v2979_v0 = vld [vmem:[#allocation23_spill] sm:$0xff] }
  0xa7   :  { %v1322_v63 = vadd.f32 %v2455_v18, %v1245_v2  ;;  %v2530_v34 = vmul.f32 %v2347_v16, %v2977_v31  ;;  %v1246_v37 = vmul.f32 %v2512_v59, %v2978_v51  ;;  %v1114_v50 = vsel %vm2523_vm3, %v2291_v17, %v2294_v58 }
  0xa8   :  { %v1113_v35 = vsel %vm2257_vm1, %v2515_v47, %v2518_v62  ;;  %v1184_v46 = vsel %vm2523_vm3, %v2279_v25, %v2286_v45  ;;  %v1213_v33 = vrot.slane %v1114_v50, 4  ;;  %v1115_v57 = vsel %vm2523_vm3, %v2314_v54, %v2317_v32  ;;  %1360 = vst [vmem:[%s2754_s3 + $0x70] sm:$0xf0] %v1332_v24  ;;  %v63_v45 = vld [vmem:[#allocation2 + $0x40] sm:$0xff] }
  0xa9   :  { %1350 = vst [vmem:[%s2754_s3 + $0x20] sm:$0xf0] %v1322_v63  ;;  %v2549_v43 = vrot.slane %v1113_v35, 4  ;;  %v1290_v12 = vrot.slane %v1184_v46, 4  ;;  %v1323_v25 = vadd.f32 %v2495_v40, %v1246_v37  ;;  %v1185_v17 = vsel %vm2523_vm3, %v2326_v11, %v2330_v42  ;;  %v65_v37 = vld [vmem:[#allocation2 + $0x50] sm:$0xff] }
  0xaa   :  { %v1215_v58 = vrot.slane %v1115_v57, 4  ;;  %v1116_v23 = vsel %vm2523_vm3, %v2379_v8, %v2382_v10  ;;  %v2571_v32 = vsel %vm1205_vm2, %v2332_v29, %v1213_v33  ;;  %v1292_v55 = vrot.slane %v1185_v17, 4  ;;  %v64_v8 = vld [vmem:[#allocation2 + $0x48] sm:$0xff] }
  0xab   :  { %v1247_v54 = vmul.f32 %v2549_v43, %v2979_v0  ;;  %v2575_v2 = vsel %vm1205_vm2, %v2311_v15, %v1290_v12  ;;  %1351 = vst [vmem:[%s2754_s3 + $0x28] sm:$0xf0] %v1323_v25  ;;  %v1248_v11 = vmul.f32 %v2571_v32, %v62_v13  ;;  %v1186_v29 = vsel %vm2523_vm3, %v2341_v60, %v2351_v44 }
  0xac   :  { %v2583_v42 = vsel %vm1205_vm2, %v2347_v16, %v1215_v58  ;;  %v1217_v10 = vrot.slane %v1116_v23, 4  ;;  %v2593_v36 = vsel %vm1205_vm2, %v2355_v9, %v1292_v55  ;;  %v1294_v30 = vrot.slane %v1186_v29, 4 }
  0xad   :  { %v1324_v15 = vadd.f32 %v2520_v27, %v1247_v54  ;;  %v1249_v4 = vmul.f32 %v2583_v42, %v63_v45  ;;  %v1325_v63 = vadd.f32 %v2575_v2, %v1248_v11  ;;  %v1117_v60 = vsel %vm2523_vm3, %v2388_v19, %v2391_v28  ;;  %v68_v54 = vld [vmem:[#allocation2 + $0x68] sm:$0xff] }
  0xae   :  { %v2598_v16 = vsel %vm1205_vm2, %v2416_v22, %v1217_v10  ;;  %v1187_v44 = vsel %vm2523_vm3, %v2395_v6, %v2406_v49  ;;  %v2615_v51 = vsel %vm1205_vm2, %v2384_v5, %v1294_v30  ;;  %v1219_v35 = vrot.slane %v1117_v60, 4  ;;  %v77_v10 = vld [vmem:[#allocation2 + $0xb0] sm:$0xff] }
  0xaf   :  { %1352 = vst [vmem:[%s2754_s3 + $0x30] sm:$0xf0] %v1324_v15  ;;  %v1326_v24 = vadd.f32 %v2593_v36, %v1249_v4  ;;  %v1250_v31 = vmul.f32 %v2598_v16, %v64_v8  ;;  %1353 = vst [vmem:[%s2754_s3 + $0x38] sm:$0xff] %v1325_v63  ;;  %v1296_v19 = vrot.slane %v1187_v44, 4  ;;  %v1118_v28 = vsel %vm2523_vm3, %v2450_v14, %v2453_v61  ;;  %v66_v14 = vld [vmem:[#allocation2 + $0x58] sm:$0xff]  ;;  %v2980_v8 = vld [vmem:[#allocation40_spill] sm:$0xff] }
  0xb0   :  { %v1188_v6 = vsel %vm2523_vm3, %v2411_v53, %v2424_v41  ;;  %v1119_v49 = vsel %vm2523_vm3, %v2459_v21, %v2482_v39  ;;  %v1220_v46 = vsel %vm1205_vm2, %v2434_v38, %v1219_v35  ;;  %v1221_v61 = vrot.slane %v1118_v28, 4  ;;  %v67_v41 = vld [vmem:[#allocation2 + $0x60] sm:$0xff]  ;;  %v2982_v63 = vld [vmem:[#allocation42_spill] sm:$0xff] }
  0xb1   :  { %1354 = vst [vmem:[%s2754_s3 + $0x40] sm:$0xff] %v1326_v24  ;;  %v1327_v50 = vadd.f32 %v2615_v51, %v1250_v31  ;;  %v1298_v13 = vrot.slane %v1188_v6, 4  ;;  %v1251_v33 = vmul.f32 %v1220_v46, %v65_v37  ;;  %v1297_v53 = vsel %vm1205_vm2, %v2440_v48, %v1296_v19  ;;  %v78_v44 = vld [vmem:[#allocation2 + $0xb8] sm:$0xff]  ;;  %v80_v37 = vld [vmem:[#allocation2 + $0xc8] sm:$0xff] }
  0xb2   :  { %v1189_v21 = vsel %vm2523_vm3, %v2428_v20, %v2464_v26  ;;  %v1223_v39 = vrot.slane %v1119_v49, 4  ;;  %v1222_v12 = vsel %vm1205_vm2, %v2479_v1, %v1221_v61  ;;  %v1120_v45 = vsel %vm2523_vm3, %v2515_v47, %v2518_v62  ;;  %v2983_v24 = vld [vmem:[#allocation43_spill] sm:$0xff]  ;;  %v2984_v35 = vld [vmem:[#allocation44_spill] sm:$0xff] }
  0xb3   :  { %1355 = vst [vmem:[%s2754_s3 + $0x48] sm:$0xff] %v1327_v50  ;;  %v1299_v57 = vsel %vm1205_vm2, %v2455_v18, %v1298_v13  ;;  %v1300_v25 = vrot.slane %v1189_v21, 4  ;;  %v1328_v17 = vadd.f32 %v1297_v53, %v1251_v33  ;;  %v1252_v58 = vmul.f32 %v1222_v12, %v66_v14  ;;  %v82_v49 = vld [vmem:[#allocation2 + $0xd8] sm:$0xff]  ;;  %v1374_v50 = vld [vmem:[#allocation4] sm:$0xff] }
  0xb4   :  { %v1224_v20 = vsel %vm1205_vm2, %v2512_v59, %v1223_v39  ;;  %v1190_v26 = vsel %vm2523_vm3, %v2474_v52, %v2490_v3  ;;  %v1225_v55 = vrot.slane %v1120_v45, 4  ;;  %v1333_v62 = vadd.f32 %v2355_v9, %v2530_v34  ;;  %v76_v3 = vld [vmem:[#allocation2 + $0xa8] sm:$0xff]  ;;  %v79_v9 = vld [vmem:[#allocation2 + $0xc0] sm:$0xff] }
  0xb5   :  { %v1253_v23 = vmul.f32 %v1224_v20, %v67_v41  ;;  %v1301_v0 = vsel %vm1205_vm2, %v2495_v40, %v1300_v25  ;;  %v1302_v11 = vrot.slane %v1190_v26, 4  ;;  %1356 = vst [vmem:[%s2754_s3 + $0x50] sm:$0xff] %v1328_v17  ;;  %v1329_v47 = vadd.f32 %v1299_v57, %v1252_v58 }
  0xb6   :  { %v1257_v29 = vmul.f32 %v2416_v22, %v2980_v8  ;;  %v1258_v52 = vmul.f32 %v2434_v38, %v2981_v56  ;;  %v1226_v4 = vsel %vm1205_vm2, %v2549_v43, %v1225_v55  ;;  %v1259_v60 = vmul.f32 %v2479_v1, %v2982_v63  ;;  %1361 = vst [vmem:[%s2754_s3 + $0x78] sm:$0xf0] %v1333_v62 }
  0xb7   :  { %v1330_v15 = vadd.f32 %v1301_v0, %v1253_v23  ;;  %v1303_v30 = vsel %vm1205_vm2, %v2520_v27, %v1302_v11  ;;  %1357 = vst [vmem:[%s2754_s3 + $0x58] sm:$0xff] %v1329_v47  ;;  %v1254_v22 = vmul.f32 %v1226_v4, %v68_v54  ;;  %v1260_v31 = vmul.f32 %v2512_v59, %v2983_v24 }
  0xb8   :  { %v1334_v38 = vadd.f32 %v2384_v5, %v1257_v29  ;;  %v1335_v34 = vadd.f32 %v2440_v48, %v1258_v52  ;;  %v1336_v1 = vadd.f32 %v2455_v18, %v1259_v60  ;;  %v1261_v19 = vmul.f32 %v2549_v43, %v2984_v35  ;;  %v81_v5 = vld [vmem:[#allocation2 + $0xd0] sm:$0xff] }
  0xb9   :  { %1358 = vst [vmem:[%s2754_s3 + $0x60] sm:$0xff] %v1330_v15  ;;  %v1262_v28 = vmul.f32 %v2571_v32, %v76_v3  ;;  %v1263_v6 = vmul.f32 %v2583_v42, %v77_v10  ;;  %v1331_v48 = vadd.f32 %v1303_v30, %v1254_v22  ;;  %v1337_v18 = vadd.f32 %v2495_v40, %v1260_v31  ;;  %v1375_v32 = vld [vmem:[#allocation4 + $0x7] sm:$0xff] }
  0xba   :  { %1362 = vst [vmem:[%s2754_s3 + $0x80] sm:$0xf0] %v1334_v38  ;;  %1363 = vst [vmem:[%s2754_s3 + $0x88] sm:$0xf0] %v1335_v34  ;;  %v1264_v59 = vmul.f32 %v2598_v16, %v78_v44  ;;  %v1265_v43 = vmul.f32 %v1220_v46, %v79_v9  ;;  %v1338_v42 = vadd.f32 %v2520_v27, %v1261_v19 }
  0xbb   :  { %1364 = vst [vmem:[%s2754_s3 + $0x90] sm:$0xf0] %v1336_v1  ;;  %v1339_v14 = vadd.f32 %v2575_v2, %v1262_v28  ;;  %v1340_v61 = vadd.f32 %v2593_v36, %v1263_v6  ;;  %v1266_v13 = vmul.f32 %v1222_v12, %v80_v37  ;;  %1359 = vst [vmem:[%s2754_s3 + $0x68] sm:$0xff] %v1331_v48  ;;  %v1418_v2 = vclamps-f32 %v1374_v50, 100.0 }
  0xbc   :  { %1365 = vst [vmem:[%s2754_s3 + $0x98] sm:$0xf0] %v1337_v18  ;;  %v1341_v40 = vadd.f32 %v2615_v51, %v1264_v59  ;;  %v1342_v16 = vadd.f32 %v1297_v53, %v1265_v43  ;;  %v1267_v46 = vmul.f32 %v1224_v20, %v81_v5  ;;  %v1268_v33 = vmul.f32 %v1226_v4, %v82_v49 }
  0xbd   :  { %1366 = vst [vmem:[%s2754_s3 + $0xa0] sm:$0xf0] %v1338_v42  ;;  %1367 = vst [vmem:[%s2754_s3 + $0xa8] sm:$0xff] %v1339_v14  ;;  %v1343_v27 = vadd.f32 %v1299_v57, %v1266_v13  ;;  %v1419_v36 = vclamps-f32 %v1375_v32, 100.0  ;;  %v1420_v41 = vmul.f32 -1.442695, %v1418_v2 }
  0xbe   :  { %1368 = vst [vmem:[%s2754_s3 + $0xb0] sm:$0xff] %v1340_v61  ;;  %1369 = vst [vmem:[%s2754_s3 + $0xb8] sm:$0xff] %v1341_v40  ;;  %v1344_v51 = vadd.f32 %v1301_v0, %v1267_v46  ;;  %v1345_v53 = vadd.f32 %v1303_v30, %v1268_v33 }
  0xbf   :  { %1370 = vst [vmem:[%s2754_s3 + $0xc0] sm:$0xff] %v1342_v16  ;;  %1371 = vst [vmem:[%s2754_s3 + $0xc8] sm:$0xff] %v1343_v27  ;;  %v1421_v21 = vmul.f32 -1.442695, %v1419_v36  ;;  %1430 = vpow2.f32 %v1420_v41 }
  0xc0   :  { %1372 = vst [vmem:[%s2754_s3 + $0xd0] sm:$0xff] %v1344_v51  ;;  %1373 = vst [vmem:[%s2754_s3 + $0xd8] sm:$0xff] %v1345_v53 }
  0xc1   :  { %1432 = vpow2.f32 %v1421_v21 }
  0xc9   :  { %v1431_v39 = vpop.eup %1430 }
  0xca   :  { %v1386_v57 = vadd.f32 1.0, %v1431_v39 }
  0xcb   :  { %v1433_v12 = vpop.eup %1432 }
  0xcc   :  { %v1387_v25 = vadd.f32 1.0, %v1433_v12  ;;  %1434 = vrcp.f32 %v1386_v57 }
  0xce   :  { %1436 = vrcp.f32 %v1387_v25 }
  0xd6   :  { %v1435_v45 = vpop.eup %1434 }
  0xd7   :  { %1392 = vst.msk [vmem:[%s2755_s4] sm:$0x7f] %vm1803_vm0, %v1435_v45 }
  0xd8   :  { %v1437_v17 = vpop.eup %1436 }
  0xd9   :  { %1393 = vst.msk [vmem:[%s2755_s4 + $0x7] sm:$0x7f] %vm1803_vm0, %v1437_v17 }
  0xda   :  { %1402 = vsyncpa [#allocation3], 1 }
  0xdb   :  { %1403 = vsyncpa [#allocation5], 1 }

// kernel: pipeline.5
= control target key start
LH: loop header
LB: loop body
LE: loop exit
PB: predicated region body
PF: predicated region fallthrough
CT: control target
= control target key end

     0   :  { %7 = vsyncpa [#allocation3], 0  ;;  %s7611_s0 = inlined_call_operand.vmem [shape: f32[2,896,4], index: 0, kind: input, shape index: {}]   ;;  %s7612_s1 = inlined_call_operand.vmem [shape: f32[2,4,896], index: 1, kind: input, shape index: {}]   ;;  %s7613_s2 = inlined_call_operand.hbm [shape: f32[2,896,896], index: 2, kind: output, shape index: {}]  }
   0x1   :  { %9 = vsyncpa [#allocation3 + $0x1], 0  ;;  %s3425_s9 = smov 0   ;;  %s3427_s10 = smov 0  }
   0x2   :  { %s3429_s11 = smov 0   ;;  %s3431_s12 = smov 0  }
   0x3   :  { %s3433_s13 = smov 0   ;;  %s3435_s14 = smov 0  }
   0x4   :  { %s3437_s15 = smov 0   ;;  %s3439_s16 = smov 0  }
   0x5 LB: > { %s2967_s17 = sadd.s32 4294967295, %s3399_s16   ;;  %s2968_s18 = sadd.s32 4294967294, %s3399_s16   ;;  %s3399_s16 = sphi %s3439_s16, %s15_s16   ;;  %s3395_s15 = sphi %s3437_s15, %s8911_s15   ;;  %s3391_s14 = sphi %s3435_s14, %s8910_s14   ;;  %s3387_s13 = sphi %s3433_s13, %s8909_s13   ;;  %s3383_s12 = sphi %s3431_s12, %s8908_s12   ;;  %s3379_s11 = sphi %s3429_s11, %s8907_s11   ;;  %s3375_s10 = sphi %s3427_s10, %s8906_s10   ;;  %s3371_s9 = sphi %s3425_s9, %s8905_s9  }
   0x6   : > { %s24_s19 = sadd.s32 1, %s3391_s14  ;;  %s27_s20 = sadd.s32 1, %s3395_s15 }
   0x7   : > { %p25_p0 = scmp.ge.s32.totalorder %s24_s19, 7  ;;  %p100_p1 = scmp.ne.s32.totalorder %s3379_s11, %s3375_s10 }
   0x8   : > { %p101_p2 = scmp.eq.s32.totalorder %s2967_s17, 13  ;;  %p106_p5 = scmp.ne.s32.totalorder %s3375_s10, %s3371_s9 }
   0x9   : > { %s8913_s19 = smov (%p25_p0, %s24_s19), 0  ;;  %s8915_s20 = smov (!%p25_p0, %s27_s20), %s3395_s15 }
   0xa   : > { %s86_s21 = ssub.s32 %s3391_s14, %s8913_s19  ;;  %p3476_p3 = por %p101_p2, %p100_p1 }
   0xb   : > { %p29_p4 = scmp.ge.s32.totalorder %s8915_s20, 2  ;;  %p107_p6 = scmp.eq.s32.totalorder %s2968_s18, 13 }
   0xc   : > { %p2971_p7 = scmp.ge.s32.totalorder %s3399_s16, 1  ;;  %p146_p9 = scmp.lt.s32.totalorder %s3399_s16, 15 }
   0xd   : > { %s8917_s20 = smov (%p29_p4, %s8915_s20), 0  ;;  %p3485_p8 = por %p107_p6, %p106_p5 }
   0xe   : > { %s85_s24 = ssub.s32 %s3395_s15, %s8917_s20  ;;  %s90_s25 = sadd.s32 1, %s3379_s11 }
   0xf   : > { %s87_s26 = sor.u32 %s86_s21, %s85_s24  ;;  %p147_p10 = pnand %p2971_p7, %p146_p9 }
  0x10   : > { %p88_p11 = scmp.eq.s32.totalorder %s87_s26, 0 }
  0x11   : > { %150 = sbr.rel (%p147_p10) target bundleno = 776 (0x308), region = 28 }
  0x12   : > { %s3494_s27 = scalar_select %p88_p11, %s3379_s11, %s90_s25  }
  0x18   : > { %s2972_s28 = sshll.u32 %s3383_s12, 4  ;;  %p178_p12 = scmp.lt.s32.totalorder %s3387_s13, 1  ;;  %v3401_v0 = vmov 0   ;;  %v7614_v1 = vmov 2   ;;  %v3403_v12 = vmov 3   ;;  %v3405_v19 = vmov 1  }
  0x19   : > { %3069 = vset.pattern.permute.xlu0 %v3401_v0  ;;  %3068 = vset.pattern.permute.xlu1 %v7614_v1  ;;  %p180_p13 = scmp.lt.s32.totalorder %s2972_s28, 111  ;;  %s3404_s8 = smov 2   ;;  %v297_v60 = vlaneseq }
  0x1a   : > { %s3500_s29 = scalar_select %p178_p12, %s3387_s13, 1 }
  0x1b   : > { %s8919_s28 = smov (!%p180_p13, %s2972_s28), 111  ;;  %s3406_s17 = smov 127  }
  0x1c   : > { %s2985_s30 = smul.u32 112, %s3500_s29  ;;  %s174_s26 = sand.u32 1, %s3375_s10  }
  0x1d   : > { %s2986_s18 = smul.u32 28, %s3500_s29 }
  0x1e   : > { %s183_s3 = sadd.s32 %s2985_s30, %s8919_s28  ;;  %s6005_s28 = smul.u32 896, %s174_s26 }
  0x1f   : > { %s2973_s4 = sshll.u32 %s183_s3, 3  ;;  %s3724_s25 = scalar_lea.vmem %s7612_s1, %s2986_s18 }
  0x20   : > { %s3506_s7 = scalar_lea.vmem %s7611_s0, %s2973_s4  ;;  %v3736_v1 = vld [vmem:[%s3724_s25 + $0x8] sm:$0xff]  ;;  %s6061_s29 = scalar_lea.vmem [#allocation2], %s6005_s28 }
  0x21   : > { %v3509_v2 = vld [vmem:[%s3506_s7 + $0x10] sm:$0xff]  ;;  %v3512_v3 = vld [vmem:[%s3506_s7] sm:$0xff]  ;;  %v3517_v4 = vld [vmem:[%s3506_s7 + $0x18] sm:$0xff]  ;;  %s2987_s30 = smul.u32 112, %s3383_s12  ;;  %s3407_s18 = smov [#allocation2]  }
  0x22   : > { %225 = vperm.xlu1 %3068, %v3509_v2   ;;  %473 = vperm.xlu0 %3069, %v3512_v3   ;;  %v3522_v5 = vld [vmem:[%s3506_s7 + $0x28] sm:$0xff]  ;;  %v3527_v6 = vld [vmem:[%s3506_s7 + $0x38] sm:$0xff]  ;;  %v3557_v13 = vld [vmem:[%s3506_s7 + $0x20] sm:$0xff]  ;;  %s2988_s3 = smul.u32 784, %s3387_s13  ;;  %s2873_s13 = sshll.u32 %s6061_s29, 4  ;;  %s7546_s13 = int_to_ptr.vmem [resolvable:$true] %s2873_s13 }
  0x23   : > { %v3532_v7 = vld [vmem:[%s3506_s7 + $0x48] sm:$0xff]  ;;  %v3537_v8 = vld [vmem:[%s3506_s7 + $0x58] sm:$0xff]  ;;  %v3562_v14 = vld [vmem:[%s3506_s7 + $0x30] sm:$0xff]  ;;  %s3309_s21 = sshll.u32 %s3407_s18, 4  ;;  %s3310_s21 = int_to_ptr.vmem [resolvable:$false] %s3309_s21 }
  0x24   : > { %v3542_v9 = vld [vmem:[%s3506_s7 + $0x68] sm:$0xff]  ;;  %v3547_v10 = vld [vmem:[%s3506_s7 + $0x78] sm:$0xff]  ;;  %v3567_v15 = vld [vmem:[%s3506_s7 + $0x40] sm:$0xff]  ;;  %s7528_s12 = sadd.s32 %s2988_s3, %s2987_s30  ;;  %s3311_s24 = scalar_lea.vmem %s3310_s21, 28672 }
  0x25   : > { %v3552_v11 = vld [vmem:[%s3506_s7 + $0x8] sm:$0xff]  ;;  %v3572_v16 = vld [vmem:[%s3506_s7 + $0x50] sm:$0xff]  ;;  %v3577_v17 = vld [vmem:[%s3506_s7 + $0x60] sm:$0xff]  ;;  %s2981_s4 = sshll.u32 %s7528_s12, 7  ;;  %p3312_p4 = scmp.lt.s32.totalorder %s7546_s13, %s3310_s21 }
  0x26   : > { %230 = vperm.xlu1 %3068, %v3517_v4   ;;  %485 = vperm.xlu0 %3069, %v3517_v4   ;;  %7933 = vst [vmem:[#allocation5_spill] sm:$0xff] %v3552_v11  ;;  %7934 = vst [vmem:[#allocation6_spill] sm:$0xff] %v3577_v17  ;;  %v3585_v18 = vld [vmem:[%s3506_s7 + $0x70] sm:$0xff]  ;;  %s7553_s7 = scalar_lea.hbm %s7613_s2, %s2981_s4 }
  0x27   : > { %7935 = vst [vmem:[#allocation7_spill] sm:$0xff] %v3585_v18 }
  0x2a   : > { %240 = vperm.xlu1 %3068, %v3522_v5   ;;  %493 = vperm.xlu0 %3069, %v3522_v5  }
  0x2e   : > { %250 = vperm.xlu1 %3068, %v3527_v6   ;;  %501 = vperm.xlu0 %3069, %v3527_v6  }
  0x32   : > { %260 = vperm.xlu1 %3068, %v3532_v7   ;;  %509 = vperm.xlu0 %3069, %v3532_v7  }
  0x36   : > { %270 = vperm.xlu1 %3068, %v3537_v8   ;;  %517 = vperm.xlu0 %3069, %v3537_v8  }
  0x3a   : > { %280 = vperm.xlu1 %3068, %v3542_v9   ;;  %525 = vperm.xlu0 %3069, %v3542_v9  }
  0x3e   : > { %290 = vperm.xlu1 %3068, %v3547_v10   ;;  %533 = vperm.xlu0 %3069, %v3547_v10  }
  0x42   : > { %3070 = vset.pattern.permute.xlu1 %v3401_v0  ;;  %3072 = vset.pattern.permute.xlu0 %v3403_v12  ;;  %v3714_v0 = vshrl.u32 %v297_v60, 7  ;;  %v3733_v60 = vld [vmem:[%s3724_s25] sm:$0xff] }
  0x43   : > { %477 = vperm.xlu1 %3070, %v3552_v11   ;;  %940 = vperm.xlu0 %3072, %v3552_v11  }
  0x47   : > { %481 = vperm.xlu1 %3070, %v3509_v2   ;;  %952 = vperm.xlu0 %3072, %v3557_v13  }
  0x4b   : > { %489 = vperm.xlu1 %3070, %v3557_v13   ;;  %960 = vperm.xlu0 %3072, %v3562_v14  }
  0x4f   : > { %497 = vperm.xlu1 %3070, %v3562_v14   ;;  %968 = vperm.xlu0 %3072, %v3567_v15  }
  0x53   : > { %505 = vperm.xlu1 %3070, %v3567_v15   ;;  %976 = vperm.xlu0 %3072, %v3572_v16  }
  0x57   : > { %513 = vperm.xlu1 %3070, %v3572_v16   ;;  %984 = vperm.xlu0 %3072, %v3577_v17  }
  0x5b   : > { %521 = vperm.xlu1 %3070, %v3577_v17   ;;  %1751 = vrot.lane.b32.xlu0 %v3552_v11, %s3404_s8 }
  0x5f   : > { %529 = vperm.xlu1 %3070, %v3585_v18   ;;  %1755 = vrot.lane.b32.xlu0 %v3517_v4, %s3404_s8 }
  0x63   : > { %3071 = vset.pattern.permute.xlu1 %v3403_v12  ;;  %1759 = vrot.lane.b32.xlu0 %v3522_v5, %s3404_s8  ;;  %v1001_v12 = vsub.s32 3, %v3714_v0 }
  0x64   : > { %936 = vperm.xlu1 %3071, %v3512_v3  }
  0x67   : > { %1763 = vrot.lane.b32.xlu0 %v3527_v6, %s3404_s8 }
  0x68   : > { %944 = vperm.xlu1 %3071, %v3509_v2  }
  0x6b   : > { %1767 = vrot.lane.b32.xlu0 %v3532_v7, %s3404_s8 }
  0x6c   : > { %948 = vperm.xlu1 %3071, %v3517_v4  }
  0x6f   : > { %1771 = vrot.lane.b32.xlu0 %v3537_v8, %s3404_s8 }
  0x70   : > { %956 = vperm.xlu1 %3071, %v3522_v5  }
  0x73   : > { %1775 = vrot.lane.b32.xlu0 %v3542_v9, %s3404_s8 }
  0x74   : > { %964 = vperm.xlu1 %3071, %v3527_v6  }
  0x77   : > { %1779 = vrot.lane.b32.xlu0 %v3547_v10, %s3404_s8 }
  0x78   : > { %972 = vperm.xlu1 %3071, %v3532_v7  }
  0x7b   : > { %992 = vperm.xlu0 %3072, %v3585_v18  }
  0x7c   : > { %980 = vperm.xlu1 %3071, %v3537_v8  }
  0x7f   : > { %3073 = vset.pattern.permute.xlu0 %v3405_v19 }
  0x80   : > { %1749 = vrot.lane.b32.xlu1 %v3512_v3, %s3404_s8  ;;  %1175 = vperm.xlu0 %3073, %v3512_v3  }
  0x84   : > { %1753 = vrot.lane.b32.xlu1 %v3509_v2, %s3404_s8  ;;  %1187 = vperm.xlu0 %3073, %v3517_v4  }
  0x88   : > { %1757 = vrot.lane.b32.xlu1 %v3557_v13, %s3404_s8 }
  0x8c   : > { %1761 = vrot.lane.b32.xlu1 %v3562_v14, %s3404_s8 }
  0x90   : > { %1765 = vrot.lane.b32.xlu1 %v3567_v15, %s3404_s8 }
  0x94   : > { %1769 = vrot.lane.b32.xlu1 %v3572_v16, %s3404_s8 }
  0x98   : > { %1773 = vrot.lane.b32.xlu1 %v3577_v17, %s3404_s8 }
  0x9c   : > { %1777 = vrot.lane.b32.xlu1 %v3585_v18, %s3404_s8  ;;  %s7559_s8 = scalar_lea.sflag [#allocation3], %s174_s26 }
  0xa0   : > { %988 = vperm.xlu1 %3071, %v3542_v9  }
  0xa1   : > { %v3629_v20 = vpop.permute.xlu1 %225  ;;  %v3631_v21 = vpop.permute.xlu0 %473 }
  0xa2   : > { %7936 = vst [vmem:[#allocation8_spill] sm:$0xff] %v3631_v21 }
  0xa4   : > { %996 = vperm.xlu1 %3071, %v3547_v10  }
  0xa5   : > { %v3634_v22 = vpop.permute.xlu1 %230  ;;  %v3636_v23 = vpop.permute.xlu0 %485 }
  0xa8   : > { %3074 = vset.pattern.permute.xlu1 %v3405_v19  ;;  %v1005_v19 = vsub.s32 7, %v3714_v0 }
  0xa9   : > { %v3638_v24 = vpop.permute.xlu1 %240  ;;  %1179 = vperm.xlu1 %3074, %v3552_v11   ;;  %v3641_v25 = vpop.permute.xlu0 %493 }
  0xad   : > { %v3643_v26 = vpop.permute.xlu1 %250  ;;  %1183 = vperm.xlu1 %3074, %v3509_v2   ;;  %v3646_v27 = vpop.permute.xlu0 %501 }
  0xb1   : > { %v3648_v28 = vpop.permute.xlu1 %260  ;;  %v3650_v29 = vpop.permute.xlu0 %509 }
  0xb5   : > { %v3652_v30 = vpop.permute.xlu1 %270  ;;  %v3654_v31 = vpop.permute.xlu0 %517 }
  0xb6   : > { %7937 = vst [vmem:[#allocation9_spill] sm:$0xff] %v3652_v30  ;;  %7938 = vst [vmem:[#allocation10_spill] sm:$0xff] %v3654_v31 }
  0xb9   : > { %v3656_v32 = vpop.permute.xlu1 %280  ;;  %v3658_v33 = vpop.permute.xlu0 %525 }
  0xba   : > { %7939 = vst [vmem:[#allocation11_spill] sm:$0xff] %v3656_v32  ;;  %7940 = vst [vmem:[#allocation12_spill] sm:$0xff] %v3658_v33 }
  0xbd   : > { %v3660_v34 = vpop.permute.xlu1 %290  ;;  %v3662_v35 = vpop.permute.xlu0 %533 }
  0xbe   : > { %7941 = vst [vmem:[#allocation13_spill] sm:$0xff] %v3660_v34  ;;  %7942 = vst [vmem:[#allocation14_spill] sm:$0xff] %v3662_v35 }
  0xc2   : > { %v3664_v36 = vpop.permute.xlu1 %477  ;;  %v3666_v37 = vpop.permute.xlu0 %940 }
  0xc3   : > { %7943 = vst [vmem:[#allocation15_spill] sm:$0xff] %v3664_v36  ;;  %v1006_v36 = vrot.slane %v3733_v60, %v1005_v19 }
  0xc5   : > { %v3775_v35 = vrot.slane %v1006_v36, %v1001_v12 }
  0xc6   : > { %v3668_v38 = vpop.permute.xlu1 %481  ;;  %v3670_v39 = vpop.permute.xlu0 %952 }
  0xc7   : > { %7944 = vst [vmem:[#allocation16_spill] sm:$0xff] %v3670_v39 }
  0xca   : > { %v3672_v40 = vpop.permute.xlu1 %489  ;;  %v3674_v41 = vpop.permute.xlu0 %960 }
  0xcb   : > { %7945 = vst [vmem:[#allocation17_spill] sm:$0xff] %v3672_v40  ;;  %7946 = vst [vmem:[#allocation18_spill] sm:$0xff] %v3674_v41 }
  0xce   : > { %v3676_v42 = vpop.permute.xlu1 %497  ;;  %v3678_v43 = vpop.permute.xlu0 %968 }
  0xcf   : > { %7947 = vst [vmem:[#allocation19_spill] sm:$0xff] %v3676_v42  ;;  %7948 = vst [vmem:[#allocation20_spill] sm:$0xff] %v3678_v43 }
  0xd2   : > { %v3680_v44 = vpop.permute.xlu1 %505  ;;  %v3682_v45 = vpop.permute.xlu0 %976 }
  0xd3   : > { %7949 = vst [vmem:[#allocation21_spill] sm:$0xff] %v3680_v44  ;;  %7950 = vst [vmem:[#allocation22_spill] sm:$0xff] %v3682_v45 }
  0xd6   : > { %v3684_v46 = vpop.permute.xlu1 %513  ;;  %v3686_v47 = vpop.permute.xlu0 %984 }
  0xd7   : > { %7951 = vst [vmem:[#allocation23_spill] sm:$0xff] %v3684_v46  ;;  %7952 = vst [vmem:[#allocation24_spill] sm:$0xff] %v3686_v47 }
  0xda   : > { %v3688_v48 = vpop.permute.xlu1 %521  ;;  %v1752_v49 = vpop.permute.xlu0 %1751 }
  0xdb   : > { %7953 = vst [vmem:[#allocation25_spill] sm:$0xff] %v3688_v48  ;;  %v3695_v55 = vsub.f32 %v3552_v11, %v1752_v49 }
  0xdd   : > { %7955 = vst [vmem:[#allocation27_spill] sm:$0xff] %v3695_v55  ;;  %1831 = vrot.lane.b32.xlu0 %v3695_v55, %s3406_s17  ;;  %v3754_v55 = vsub.s32 2, %v3714_v0 }
  0xde   : > { %v3690_v50 = vpop.permute.xlu1 %529  ;;  %v1756_v51 = vpop.permute.xlu0 %1755 }
  0xdf   : > { %7954 = vst [vmem:[#allocation26_spill] sm:$0xff] %v3690_v50  ;;  %v3702_v57 = vsub.f32 %v3517_v4, %v1756_v51  ;;  %v1014_v50 = vrot.slane %v3736_v1, %v1005_v19  ;;  %7964 = vst [vmem:[#allocation36_spill] sm:$0xff] %v3754_v55 }
  0xe1   : > { %7957 = vst [vmem:[#allocation29_spill] sm:$0xff] %v3702_v57  ;;  %1835 = vrot.lane.b32.xlu0 %v3702_v57, %s3406_s17  ;;  %v3744_v57 = vld [vmem:[%s3724_s25 + $0x10] sm:$0xff]  ;;  %v3779_v33 = vrot.slane %v1014_v50, %v1001_v12 }
  0xe2   : > { %v1760_v52 = vpop.permute.xlu0 %1759 }
  0xe3   : > { %v3692_v53 = vpop.permute.xlu1 %936  ;;  %v3709_v61 = vsub.f32 %v3522_v5, %v1760_v52  ;;  %v1240_v52 = vsub.s32 1, %v3714_v0 }
  0xe5   : > { %7959 = vst [vmem:[#allocation31_spill] sm:$0xff] %v3709_v61  ;;  %1839 = vrot.lane.b32.xlu0 %v3709_v61, %s3406_s17  ;;  %v1241_v45 = vrot.slane %v3733_v60, %v1240_v52  ;;  %v1249_v43 = vrot.slane %v3736_v1, %v1240_v52 }
  0xe6   : > { %v1764_v54 = vpop.permute.xlu0 %1763 }
  0xe7   : > { %v3697_v56 = vpop.permute.xlu1 %944  ;;  %v3719_v4 = vsub.f32 %v3527_v6, %v1764_v54  ;;  %v1244_v54 = vsub.s32 5, %v3714_v0 }
  0xe8   : > { %7956 = vst [vmem:[#allocation28_spill] sm:$0xff] %v3697_v56 }
  0xe9   : > { %7961 = vst [vmem:[#allocation33_spill] sm:$0xff] %v3719_v4  ;;  %1843 = vrot.lane.b32.xlu0 %v3719_v4, %s3406_s17  ;;  %v1018_v4 = vrot.slane %v3744_v57, %v1001_v12  ;;  %v1245_v44 = vrot.slane %v3733_v60, %v1244_v54  ;;  %v1253_v42 = vrot.slane %v3736_v1, %v1244_v54 }
  0xea   : > { %v1768_v58 = vpop.permute.xlu0 %1767  ;;  %v1261_v40 = vrot.slane %v3744_v57, %v1244_v54 }
  0xeb   : > { %v3704_v59 = vpop.permute.xlu1 %948  ;;  %v3741_v61 = vsub.f32 %v3532_v7, %v1768_v58  ;;  %v1022_v58 = vrot.slane %v3744_v57, %v1005_v19  ;;  %v1257_v19 = vrot.slane %v3744_v57, %v1240_v52  ;;  %v3796_v36 = vrot.slane %v1245_v44, %v1240_v52 }
  0xec   : > { %7958 = vst [vmem:[#allocation30_spill] sm:$0xff] %v3704_v59  ;;  %v1010_v59 = vrot.slane %v3736_v1, %v1001_v12  ;;  %v3800_v50 = vrot.slane %v1253_v42, %v1240_v52 }
  0xed   : > { %7963 = vst [vmem:[#allocation35_spill] sm:$0xff] %v3741_v61  ;;  %1847 = vrot.lane.b32.xlu0 %v3741_v61, %s3406_s17  ;;  %v3784_v61 = vsub.s32 6, %v3714_v0  ;;  %v3788_v31 = vrot.slane %v1022_v58, %v1001_v12  ;;  %7974 = vst [vmem:[#allocation46_spill] sm:$0xff] %v3796_v36  ;;  %v3807_v58 = vrot.slane %v1257_v19, %v1240_v52 }
  0xee   : > { %v1772_v62 = vpop.permute.xlu0 %1771  ;;  %v3777_v34 = vrot.slane %v1010_v59, %v1001_v12  ;;  %v3798_v59 = vrot.slane %v1249_v43, %v1240_v52  ;;  %7976 = vst [vmem:[#allocation48_spill] sm:$0xff] %v3800_v50  ;;  %v1063_v43 = vmin.f32 %v3692_v53, %v3775_v35 }
  0xef   : > { %v3712_v63 = vpop.permute.xlu1 %956  ;;  %v3768_v41 = vsub.f32 %v3537_v8, %v1772_v62  ;;  %7968 = vst [vmem:[#allocation40_spill] sm:$0xff] %v3784_v61  ;;  %v3786_v62 = vrot.slane %v1018_v4, %v1001_v12  ;;  %7970 = vst [vmem:[#allocation42_spill] sm:$0xff] %v3788_v31 }
  0xf0   : > { %7960 = vst [vmem:[#allocation32_spill] sm:$0xff] %v3712_v63  ;;  %v3747_v63 = vld [vmem:[%s3724_s25 + $0x18] sm:$0xf]  ;;  %7975 = vst [vmem:[#allocation47_spill] sm:$0xff] %v3798_v59  ;;  %v1064_v42 = vmin.f32 %v3692_v53, %v3777_v34 }
  0xf1   : > { %v1026_v47 = vrot.slane %v3747_v63, %v1001_v12  ;;  %7966 = vst [vmem:[#allocation38_spill] sm:$0xff] %v3768_v41  ;;  %7969 = vst [vmem:[#allocation41_spill] sm:$0xff] %v3786_v62  ;;  %1851 = vrot.lane.b32.xlu0 %v3768_v41, %s3406_s17 }
  0xf2   : > { %v1776_v49 = vpop.permute.xlu0 %1775  ;;  %7978 = vst [vmem:[#allocation50_spill] sm:$0xff] %v3807_v58 }
  0xf3   : > { %v3728_v51 = vpop.permute.xlu1 %964  ;;  %v3790_v54 = vrot.slane %v1026_v47, %v1001_v12  ;;  %v3805_v4 = vsub.f32 %v3542_v9, %v1776_v49  ;;  %v3809_v47 = vrot.slane %v1261_v40, %v1240_v52  ;;  %v1066_v49 = vmin.f32 %v3692_v53, %v3786_v62 }
  0xf4   : > { %7962 = vst [vmem:[#allocation34_spill] sm:$0xff] %v3728_v51  ;;  %v1002_v51 = vrot.slane %v3733_v60, %v1001_v12  ;;  %v1067_v40 = vmin.f32 %v3692_v53, %v3788_v31 }
  0xf5   : > { %7971 = vst [vmem:[#allocation43_spill] sm:$0xff] %v3790_v54  ;;  %7977 = vst [vmem:[#allocation49_spill] sm:$0xff] %v3805_v4  ;;  %1855 = vrot.lane.b32.xlu0 %v3805_v4, %s3406_s17 }
  0xf6   : > { %v1780_v48 = vpop.permute.xlu0 %1779  ;;  %v3773_v39 = vrot.slane %v1002_v51, %v1001_v12  ;;  %v3794_v51 = vrot.slane %v1241_v45, %v1240_v52  ;;  %7979 = vst [vmem:[#allocation51_spill] sm:$0xff] %v3809_v47  ;;  %v1065_v45 = vmin.f32 %v3692_v53, %v3779_v33 }
  0xf7   : > { %v3759_v46 = vpop.permute.xlu1 %972 }
  0xf8   : > { %7965 = vst [vmem:[#allocation37_spill] sm:$0xff] %v3759_v46  ;;  %v1265_v46 = vrot.slane %v3747_v63, %v1240_v52  ;;  %7973 = vst [vmem:[#allocation45_spill] sm:$0xff] %v3794_v51  ;;  %v1062_v44 = vmin.f32 %v3692_v53, %v3773_v39 }
  0xfa   : > { %v3781_v32 = vpop.permute.xlu0 %992  ;;  %v3811_v12 = vrot.slane %v1265_v46, %v1240_v52  ;;  %v1068_v46 = vmin.f32 %v3692_v53, %v3790_v54  ;;  %v3828_v52 = vsub.f32 %v3547_v10, %v1780_v48 }
  0xfb   : > { %7967 = vst [vmem:[#allocation39_spill] sm:$0xff] %v3781_v32  ;;  %v3792_v30 = vpop.permute.xlu1 %980 }
  0xfc   : > { %7972 = vst [vmem:[#allocation44_spill] sm:$0xff] %v3792_v30  ;;  %7980 = vst [vmem:[#allocation52_spill] sm:$0xff] %v3811_v12  ;;  %1859 = vrot.lane.b32.xlu0 %v3828_v52, %s3406_s17 }
  0xfd   : > { %7981 = vst [vmem:[#allocation53_spill] sm:$0xff] %v3828_v52 }
  0xff   : > { %v1750_v19 = vpop.permute.xlu1 %1749  ;;  %v1176_v41 = vpop.permute.xlu0 %1175 }
 0x100   : > { %v3831_v30 = vsub.f32 %v3512_v3, %v1750_v19  ;;  %v1301_v32 = vmax.f32 %v1176_v41, %v3794_v51  ;;  %v1302_v56 = vmax.f32 %v1176_v41, %v3796_v36  ;;  %v1303_v11 = vmax.f32 %v1176_v41, %v3798_v59  ;;  %1195 = vperm.xlu0 %3073, %v3522_v5  }
 0x101   : > { %v1304_v31 = vmax.f32 %v1176_v41, %v3800_v50  ;;  %v1305_v53 = vmax.f32 %v1176_v41, %v3807_v58  ;;  %v1306_v48 = vmax.f32 %v1176_v41, %v3809_v47  ;;  %v1307_v54 = vmax.f32 %v1176_v41, %v3811_v12 }
 0x102   : > { %7982 = vst [vmem:[#allocation54_spill] sm:$0xff] %v3831_v30  ;;  %v538_v19 = vsub.s32 0, %v3714_v0  ;;  %v3843_v62 = vsub.f32 %v1062_v44, %v1301_v32  ;;  %v3845_v51 = vsub.f32 %v1063_v43, %v1302_v56  ;;  %v3847_v36 = vsub.f32 %v1064_v42, %v1303_v11  ;;  %1829 = vrot.lane.b32.xlu1 %v3831_v30, %s3406_s17 }
 0x103   : > { %v3851_v4 = vsub.f32 %v1065_v45, %v1304_v31  ;;  %v3853_v50 = vsub.f32 %v1066_v49, %v1305_v53  ;;  %v3855_v58 = vsub.f32 %v1067_v40, %v1306_v48  ;;  %v3857_v47 = vsub.f32 %v1068_v46, %v1307_v54  ;;  %v1754_v41 = vpop.permute.xlu1 %1753 }
 0x104   : > { %7983 = vst [vmem:[#allocation55_spill] sm:$0xff] %v3843_v62  ;;  %7984 = vst [vmem:[#allocation56_spill] sm:$0xff] %v3845_v51  ;;  %v300_v32 = vrot.slane %v3733_v60, %v3754_v55  ;;  %v542_v56 = vsub.s32 4, %v3714_v0  ;;  %v3863_v11 = vsub.f32 %v3509_v2, %v1754_v41  ;;  %v304_v44 = vrot.slane %v3733_v60, %v3784_v61 }
 0x105   : > { %7985 = vst [vmem:[#allocation57_spill] sm:$0xff] %v3847_v36  ;;  %7986 = vst [vmem:[#allocation58_spill] sm:$0xff] %v3851_v4  ;;  %v308_v31 = vrot.slane %v3736_v1, %v3754_v55  ;;  %v312_v54 = vrot.slane %v3736_v1, %v3784_v61  ;;  %v316_v43 = vrot.slane %v3744_v57, %v3754_v55  ;;  %1203 = vperm.xlu0 %3073, %v3527_v6  }
 0x106   : > { %7987 = vst [vmem:[#allocation59_spill] sm:$0xff] %v3853_v50  ;;  %7988 = vst [vmem:[#allocation60_spill] sm:$0xff] %v3855_v58  ;;  %v320_v0 = vrot.slane %v3744_v57, %v3784_v61  ;;  %v324_v2 = vrot.slane %v3747_v63, %v3754_v55  ;;  %1833 = vrot.lane.b32.xlu1 %v3863_v11, %s3406_s17  ;;  %v539_v42 = vrot.slane %v3733_v60, %v538_v19 }
 0x107   : > { %7989 = vst [vmem:[#allocation61_spill] sm:$0xff] %v3857_v47  ;;  %7990 = vst [vmem:[#allocation62_spill] sm:$0xff] %v3863_v11  ;;  %v547_v45 = vrot.slane %v3736_v1, %v538_v19  ;;  %v555_v49 = vrot.slane %v3744_v57, %v538_v19  ;;  %v1758_v40 = vpop.permute.xlu1 %1757  ;;  %v3885_v46 = vrot.slane %v300_v32, %v3754_v55 }
 0x108   : > { %v543_v53 = vrot.slane %v3733_v60, %v542_v56  ;;  %v551_v48 = vrot.slane %v3736_v1, %v542_v56  ;;  %v563_v41 = vrot.slane %v3747_v63, %v538_v19  ;;  %v3891_v52 = vrot.slane %v304_v44, %v3754_v55 }
 0x109   : > { %7991 = vst [vmem:[#allocation63_spill] sm:$0xff] %v3885_v46  ;;  %v3894_v61 = vrot.slane %v308_v31, %v3754_v55  ;;  %v559_v47 = vrot.slane %v3744_v57, %v542_v56  ;;  %v3899_v11 = vsub.f32 %v3557_v13, %v1758_v40  ;;  %v3902_v32 = vrot.slane %v312_v54, %v3754_v55 }
 0x10a   : > { %7992 = vst [vmem:[#allocation64_spill] sm:$0xff] %v3891_v52  ;;  %v3905_v1 = vrot.slane %v316_v43, %v3754_v55  ;;  %v3908_v63 = vrot.slane %v320_v0, %v3754_v55  ;;  %v3911_v60 = vrot.slane %v324_v2, %v3754_v55  ;;  %v3913_v44 = vrot.slane %v539_v42, %v538_v19 }
 0x10b   : > { %7993 = vst [vmem:[#allocation65_spill] sm:$0xff] %v3894_v61  ;;  %7994 = vst [vmem:[#allocation66_spill] sm:$0xff] %v3899_v11  ;;  %v3915_v57 = vrot.slane %v547_v45, %v538_v19  ;;  %v3917_v5 = vrot.slane %v555_v49, %v538_v19  ;;  %1837 = vrot.lane.b32.xlu1 %v3899_v11, %s3406_s17  ;;  %v1762_v56 = vpop.permute.xlu1 %1761  ;;  %v3921_v31 = vrot.slane %v543_v53, %v538_v19 }
 0x10c   : > { %7995 = vst [vmem:[#allocation67_spill] sm:$0xff] %v3902_v32  ;;  %7996 = vst [vmem:[#allocation68_spill] sm:$0xff] %v3905_v1  ;;  %v3923_v54 = vrot.slane %v551_v48, %v538_v19  ;;  %v3925_v43 = vrot.slane %v563_v41, %v538_v19  ;;  %v3928_v0 = vsub.f32 %v3562_v14, %v1762_v56  ;;  %1211 = vperm.xlu0 %3073, %v3532_v7  }
 0x10d   : > { %7997 = vst [vmem:[#allocation69_spill] sm:$0xff] %v3908_v63  ;;  %7998 = vst [vmem:[#allocation70_spill] sm:$0xff] %v3911_v60  ;;  %v3930_v2 = vrot.slane %v559_v47, %v538_v19  ;;  %v381_v48 = vmin.f32 %v3634_v22, %v3885_v46  ;;  %v382_v41 = vmin.f32 %v3634_v22, %v3891_v52 }
 0x10e   : > { %7999 = vst [vmem:[#allocation71_spill] sm:$0xff] %v3913_v44  ;;  %8000 = vst [vmem:[#allocation72_spill] sm:$0xff] %v3915_v57  ;;  %v383_v6 = vmin.f32 %v3634_v22, %v3894_v61  ;;  %v384_v47 = vmin.f32 %v3634_v22, %v3902_v32  ;;  %v385_v19 = vmin.f32 %v3634_v22, %v3905_v1 }
 0x10f   : > { %8001 = vst [vmem:[#allocation73_spill] sm:$0xff] %v3917_v5  ;;  %8002 = vst [vmem:[#allocation74_spill] sm:$0xff] %v3921_v31  ;;  %1841 = vrot.lane.b32.xlu1 %v3928_v0, %s3406_s17  ;;  %v1766_v56 = vpop.permute.xlu1 %1765  ;;  %v620_v40 = vmax.f32 %v3636_v23, %v3913_v44  ;;  %v621_v45 = vmax.f32 %v3636_v23, %v3921_v31  ;;  %v622_v42 = vmax.f32 %v3636_v23, %v3915_v57 }
 0x110   : > { %8003 = vst [vmem:[#allocation75_spill] sm:$0xff] %v3923_v54  ;;  %8004 = vst [vmem:[#allocation76_spill] sm:$0xff] %v3925_v43  ;;  %v3964_v49 = vsub.f32 %v3567_v15, %v1766_v56  ;;  %v623_v53 = vmax.f32 %v3636_v23, %v3923_v54  ;;  %v624_v55 = vmax.f32 %v3636_v23, %v3917_v5  ;;  %1219 = vperm.xlu0 %3073, %v3537_v8  }
 0x111   : > { %8005 = vst [vmem:[#allocation77_spill] sm:$0xff] %v3928_v0  ;;  %8006 = vst [vmem:[#allocation78_spill] sm:$0xff] %v3930_v2  ;;  %v386_v50 = vmin.f32 %v3634_v22, %v3908_v63  ;;  %v387_v4 = vmin.f32 %v3634_v22, %v3911_v60  ;;  %v625_v7 = vmax.f32 %v3636_v23, %v3930_v2 }
 0x112   : > { %8007 = vst [vmem:[#allocation79_spill] sm:$0xff] %v3964_v49  ;;  %v626_v0 = vmax.f32 %v3636_v23, %v3925_v43  ;;  %v3993_v11 = vsub.f32 %v381_v48, %v620_v40  ;;  %v4002_v51 = vsub.f32 %v382_v41, %v621_v45  ;;  %v4004_v62 = vsub.f32 %v383_v6, %v622_v42 }
 0x113   : > { %1845 = vrot.lane.b32.xlu1 %v3964_v49, %s3406_s17  ;;  %v1770_v56 = vpop.permute.xlu1 %1769  ;;  %v4006_v23 = vsub.f32 %v384_v47, %v623_v53  ;;  %v4008_v30 = vsub.f32 %v385_v19, %v624_v55  ;;  %v395_v40 = vmin.f32 %v3638_v24, %v3885_v46  ;;  %v396_v48 = vmin.f32 %v3638_v24, %v3891_v52 }
 0x114   : > { %8008 = vst [vmem:[#allocation80_spill] sm:$0xff] %v3993_v11  ;;  %v3996_v58 = vsub.f32 %v3572_v16, %v1770_v56  ;;  %8010 = vst [vmem:[#allocation82_spill] sm:$0xff] %v4002_v51  ;;  %v634_v56 = vmax.f32 %v3641_v25, %v3913_v44  ;;  %v635_v45 = vmax.f32 %v3641_v25, %v3921_v31  ;;  %1227 = vperm.xlu0 %3073, %v3542_v9  }
 0x115   : > { %8011 = vst [vmem:[#allocation83_spill] sm:$0xff] %v4004_v62  ;;  %8012 = vst [vmem:[#allocation84_spill] sm:$0xff] %v4006_v23  ;;  %v4019_v42 = vsub.f32 %v386_v50, %v625_v7  ;;  %v4021_v53 = vsub.f32 %v387_v4, %v626_v0  ;;  %v397_v55 = vmin.f32 %v3638_v24, %v3894_v61 }
 0x116   : > { %8009 = vst [vmem:[#allocation81_spill] sm:$0xff] %v3996_v58  ;;  %8013 = vst [vmem:[#allocation85_spill] sm:$0xff] %v4008_v30  ;;  %v398_v8 = vmin.f32 %v3638_v24, %v3902_v32  ;;  %v399_v19 = vmin.f32 %v3638_v24, %v3905_v1  ;;  %v400_v41 = vmin.f32 %v3638_v24, %v3908_v63 }
 0x117   : > { %8014 = vst [vmem:[#allocation86_spill] sm:$0xff] %v4019_v42  ;;  %8015 = vst [vmem:[#allocation87_spill] sm:$0xff] %v4021_v53  ;;  %1849 = vrot.lane.b32.xlu1 %v3996_v58, %s3406_s17  ;;  %v1774_v47 = vpop.permute.xlu1 %1773  ;;  %v401_v50 = vmin.f32 %v3638_v24, %v3911_v60  ;;  %v636_v0 = vmax.f32 %v3641_v25, %v3915_v57  ;;  %v637_v6 = vmax.f32 %v3641_v25, %v3923_v54 }
 0x118   : > { %v4036_v4 = vsub.f32 %v3577_v17, %v1774_v47  ;;  %v638_v7 = vmax.f32 %v3641_v25, %v3917_v5  ;;  %v639_v22 = vmax.f32 %v3641_v25, %v3930_v2  ;;  %v640_v24 = vmax.f32 %v3641_v25, %v3925_v43  ;;  %1235 = vperm.xlu0 %3073, %v3547_v10  }
 0x119   : > { %v4049_v36 = vsub.f32 %v395_v40, %v634_v56  ;;  %v4051_v47 = vsub.f32 %v396_v48, %v635_v45  ;;  %v409_v21 = vmin.f32 %v3643_v26, %v3885_v46  ;;  %v410_v58 = vmin.f32 %v3643_v26, %v3891_v52 }
 0x11a   : > { %8016 = vst [vmem:[#allocation88_spill] sm:$0xff] %v4036_v4  ;;  %v411_v49 = vmin.f32 %v3643_v26, %v3894_v61  ;;  %v412_v53 = vmin.f32 %v3643_v26, %v3902_v32  ;;  %v648_v9 = vmax.f32 %v3646_v27, %v3913_v44  ;;  %v413_v40 = vmin.f32 %v3643_v26, %v3905_v1 }
 0x11b   : > { %8017 = vst [vmem:[#allocation89_spill] sm:$0xff] %v4049_v36  ;;  %8018 = vst [vmem:[#allocation90_spill] sm:$0xff] %v4051_v47  ;;  %1853 = vrot.lane.b32.xlu1 %v4036_v4, %s3406_s17  ;;  %v1778_v25 = vpop.permute.xlu1 %1777  ;;  %v414_v48 = vmin.f32 %v3643_v26, %v3908_v63  ;;  %v649_v56 = vmax.f32 %v3646_v27, %v3921_v31  ;;  %v650_v47 = vmax.f32 %v3646_v27, %v3915_v57 }
 0x11c   : > { %v4072_v45 = vsub.f32 %v3585_v18, %v1778_v25  ;;  %v651_v36 = vmax.f32 %v3646_v27, %v3923_v54  ;;  %v652_v4 = vmax.f32 %v3646_v27, %v3917_v5  ;;  %v653_v42 = vmax.f32 %v3646_v27, %v3930_v2 }
 0x11d   : > { %v4083_v30 = vsub.f32 %v397_v55, %v636_v0  ;;  %v4085_v23 = vsub.f32 %v398_v8, %v637_v6  ;;  %v415_v25 = vmin.f32 %v3643_v26, %v3911_v60  ;;  %v654_v62 = vmax.f32 %v3646_v27, %v3925_v43  ;;  %v8040_v6 = vld [vmem:[#allocation42_spill] sm:$0xff]  ;;  %v8041_v26 = vld [vmem:[#allocation43_spill] sm:$0xff] }
 0x11e   : > { %8019 = vst [vmem:[#allocation91_spill] sm:$0xff] %v4072_v45  ;;  %v4091_v51 = vsub.f32 %v399_v19, %v638_v7  ;;  %v4093_v11 = vsub.f32 %v400_v41, %v639_v22  ;;  %v4095_v18 = vsub.f32 %v401_v50, %v640_v24  ;;  %v4097_v17 = vsub.f32 %v409_v21, %v648_v9 }
 0x11f   : > { %8020 = vst [vmem:[#allocation92_spill] sm:$0xff] %v4083_v30  ;;  %8021 = vst [vmem:[#allocation93_spill] sm:$0xff] %v4085_v23  ;;  %1857 = vrot.lane.b32.xlu1 %v4072_v45, %s3406_s17  ;;  %v4101_v10 = vpop.permute.xlu1 %988  ;;  %v4103_v55 = vsub.f32 %v410_v58, %v649_v56  ;;  %v613_v27 = vmax.f32 %v3668_v38, %v3913_v44  ;;  %v614_v22 = vmax.f32 %v3668_v38, %v3921_v31  ;;  %v8032_v50 = vmov 2   ;;  %s3305_s17 = scalar_lea.vmem %s7546_s13, 14336 }
 0x120   : > { %8022 = vst [vmem:[#allocation94_spill] sm:$0xff] %v4091_v51  ;;  %8023 = vst [vmem:[#allocation95_spill] sm:$0xff] %v4093_v11  ;;  %v4111_v8 = vsub.f32 %v411_v49, %v650_v47  ;;  %v4113_v21 = vsub.f32 %v412_v53, %v651_v36  ;;  %v4115_v19 = vsub.f32 %v413_v40, %v652_v4  ;;  %3075 = vset.pattern.permute.xlu0 %v8032_v50  ;;  %v8039_v36 = vld [vmem:[#allocation5_spill] sm:$0xff]  ;;  %p3306_p0 = scmp.ne.s32.totalorder %s7546_s13, %s3305_s17  ;;  %p3313_p5 = scmp.lt.s32.totalorder %s3311_s24, %s3305_s17 }
 0x121   : > { %8024 = vst [vmem:[#allocation96_spill] sm:$0xff] %v4095_v18  ;;  %8025 = vst [vmem:[#allocation97_spill] sm:$0xff] %v4097_v17  ;;  %v4117_v41 = vsub.f32 %v414_v48, %v653_v42  ;;  %v4120_v58 = vsub.f32 %v415_v25, %v654_v62  ;;  %v615_v49 = vmax.f32 %v3668_v38, %v3915_v57  ;;  %215 = vperm.xlu0 %3075, %v3512_v3  }
 0x122   : > { %8026 = vst [vmem:[#allocation98_spill] sm:$0xff] %v4101_v10  ;;  %8027 = vst [vmem:[#allocation99_spill] sm:$0xff] %v4103_v55  ;;  %v616_v62 = vmax.f32 %v3668_v38, %v3923_v54  ;;  %v617_v53 = vmax.f32 %v3668_v38, %v3917_v5  ;;  %v618_v7 = vmax.f32 %v3668_v38, %v3930_v2  ;;  %v8048_v55 = vld [vmem:[#allocation48_spill] sm:$0xff]  ;;  %p3307_p1 = pnand %p3306_p0, %p3476_p3  ;;  %p3314_p6 = por %p3313_p5, %p3312_p4 }
 0x123   : > { %8028 = vst [vmem:[#allocation100_spill] sm:$0xff] %v4111_v8  ;;  %8029 = vst [vmem:[#allocation101_spill] sm:$0xff] %v4113_v21  ;;  %1191 = vperm.xlu1 %3074, %v3557_v13   ;;  %v4138_v4 = vpop.permute.xlu1 %996  ;;  %v619_v3 = vmax.f32 %v3668_v38, %v3925_v43  ;;  %v8035_v24 = vmin.f32 %v3629_v20, %v3885_v46  ;;  %v8036_v9 = vmin.f32 %v3629_v20, %v3891_v52 }
 0x124   : > { %8030 = vst [vmem:[#allocation102_spill] sm:$0xff] %v4115_v19  ;;  %8031 = vst [vmem:[#allocation103_spill] sm:$0xff] %v4117_v41  ;;  %v1069_v25 = vmin.f32 %v3666_v37, %v3773_v39  ;;  %v1070_v38 = vmin.f32 %v3666_v37, %v3775_v35  ;;  %v8038_v48 = vmin.f32 %v3629_v20, %v3894_v61  ;;  %v8046_v19 = vld [vmem:[#allocation45_spill] sm:$0xff]  ;;  %p3308_p2 = pneg %p3307_p1 }
 0x125   : > { %8033 = vst [vmem:[#allocation104_spill] sm:$0xff] %v4120_v58  ;;  %8034 = vst [vmem:[#allocation105_spill] sm:$0xff] %v4138_v4  ;;  %v4147_v47 = vsub.f32 %v8035_v24, %v613_v27  ;;  %v4152_v40 = vsub.f32 %v8036_v9, %v614_v22  ;;  %v1071_v27 = vmin.f32 %v3666_v37, %v3777_v34  ;;  %v8037_v22 = vld [vmem:[#allocation41_spill] sm:$0xff]  ;;  %220 = vperm.xlu0 %3075, %v8039_v36  }
 0x126   : > { %v1072_v24 = vmin.f32 %v3666_v37, %v3779_v33  ;;  %v1073_v9 = vmin.f32 %v3666_v37, %v8037_v22  ;;  %v4171_v42 = vsub.f32 %v8038_v48, %v615_v49  ;;  %v1074_v0 = vmin.f32 %v3666_v37, %v8040_v6  ;;  %p3315_p7 = pnand %p3314_p6, %p3308_p2 }
 0x127   : > { %v1075_v56 = vmin.f32 %v3666_v37, %v8041_v26  ;;  %v8042_v45 = vmin.f32 %v3629_v20, %v3902_v32  ;;  %v8043_v10 = vmin.f32 %v3629_v20, %v3905_v1  ;;  %1199 = vperm.xlu1 %3074, %v3562_v14   ;;  %v8044_v49 = vmin.f32 %v3629_v20, %v3908_v63 }
 0x128   : > { %v8045_v37 = vmin.f32 %v3629_v20, %v3911_v60  ;;  %v1180_v41 = vpop.permute.xlu1 %1179  ;;  %v8049_v20 = vld [vmem:[#allocation50_spill] sm:$0xff] }
 0x129   : > { %v4181_v4 = vsub.f32 %v8042_v45, %v616_v62  ;;  %v4186_v58 = vsub.f32 %v8043_v10, %v617_v53  ;;  %v4192_v36 = vsub.f32 %v8044_v49, %v618_v7  ;;  %v837_v45 = vmax.f32 %v4147_v47, 0.0  ;;  %v8047_v53 = vld [vmem:[#allocation46_spill] sm:$0xff]  ;;  %235 = vperm.xlu0 %3075, %v3557_v13   ;;  %v8050_v49 = vld [vmem:[#allocation51_spill] sm:$0xff] }
 0x12a   : > { %v4197_v48 = vsub.f32 %v8045_v37, %v619_v3  ;;  %v838_v62 = vmax.f32 %v4152_v40, 0.0  ;;  %v1308_v10 = vmax.f32 %v1180_v41, %v8046_v19  ;;  %v1309_v21 = vmax.f32 %v1180_v41, %v8047_v53 }
 0x12b   : > { %v1310_v8 = vmax.f32 %v1180_v41, %v3798_v59  ;;  %v1311_v17 = vmax.f32 %v1180_v41, %v8048_v55  ;;  %v839_v7 = vmax.f32 %v4171_v42, 0.0  ;;  %v1312_v3 = vmax.f32 %v1180_v41, %v8049_v20  ;;  %1207 = vperm.xlu1 %3074, %v3567_v15  }
 0x12c   : > { %v1313_v37 = vmax.f32 %v1180_v41, %v8050_v49  ;;  %v1314_v47 = vmax.f32 %v1180_v41, %v3811_v12  ;;  %v4210_v40 = vsub.f32 %v1069_v25, %v1308_v10  ;;  %v4212_v18 = vsub.f32 %v1070_v38, %v1309_v21  ;;  %v1184_v50 = vpop.permute.xlu1 %1183  ;;  %v8058_v21 = vld [vmem:[#allocation28_spill] sm:$0xff] }
 0x12d   : > { %v4214_v11 = vsub.f32 %v1071_v27, %v1310_v8  ;;  %v4216_v51 = vsub.f32 %v1072_v24, %v1311_v17  ;;  %v840_v42 = vmax.f32 %v4181_v4, 0.0  ;;  %v4220_v23 = vsub.f32 %v1073_v9, %v1312_v3  ;;  %245 = vperm.xlu0 %3075, %v3562_v14  }
 0x12e   : > { %8051 = vst [vmem:[#allocation41_spill] sm:$0xff] %v4210_v40  ;;  %8052 = vst [vmem:[#allocation5_spill] sm:$0xff] %v4212_v18  ;;  %v4222_v13 = vsub.f32 %v1074_v0, %v1313_v37  ;;  %v4224_v30 = vsub.f32 %v1075_v56, %v1314_v47  ;;  %v841_v41 = vmax.f32 %v4186_v58, 0.0  ;;  %v1076_v25 = vmin.f32 %v8058_v21, %v3773_v39 }
 0x12f   : > { %8053 = vst [vmem:[#allocation42_spill] sm:$0xff] %v4214_v11  ;;  %8054 = vst [vmem:[#allocation43_spill] sm:$0xff] %v4216_v51  ;;  %v1077_v17 = vmin.f32 %v8058_v21, %v3775_v35  ;;  %v1078_v8 = vmin.f32 %v8058_v21, %v3777_v34  ;;  %v1079_v4 = vmin.f32 %v8058_v21, %v3779_v33  ;;  %1215 = vperm.xlu1 %3074, %v3572_v16  }
 0x130   : > { %8055 = vst [vmem:[#allocation45_spill] sm:$0xff] %v4220_v23  ;;  %8056 = vst [vmem:[#allocation51_spill] sm:$0xff] %v4222_v13  ;;  %v1080_v0 = vmin.f32 %v8058_v21, %v8037_v22  ;;  %v1081_v56 = vmin.f32 %v8058_v21, %v8040_v6  ;;  %v1315_v58 = vmax.f32 %v1184_v50, %v8046_v19  ;;  %v842_v51 = vmax.f32 %v4192_v36, 0.0 }
 0x131   : > { %8057 = vst [vmem:[#allocation106_spill] sm:$0xff] %v4224_v30  ;;  %v1316_v38 = vmax.f32 %v1184_v50, %v8047_v53  ;;  %v1317_v27 = vmax.f32 %v1184_v50, %v3798_v59  ;;  %v1318_v24 = vmax.f32 %v1184_v50, %v8048_v55  ;;  %v1319_v9 = vmax.f32 %v1184_v50, %v8049_v20  ;;  %v8059_v53 = vld [vmem:[#allocation6_spill] sm:$0xff] }
 0x132   : > { %v1082_v10 = vmin.f32 %v8058_v21, %v8041_v26  ;;  %v1320_v3 = vmax.f32 %v1184_v50, %v8050_v49  ;;  %v1321_v37 = vmax.f32 %v1184_v50, %v3811_v12  ;;  %v1427_v14 = vsub.f32 %v1076_v25, %v1315_v58  ;;  %255 = vperm.xlu0 %3075, %v3567_v15   ;;  %v8072_v58 = vld [vmem:[#allocation10_spill] sm:$0xff] }
 0x133   : > { %v1428_v47 = vsub.f32 %v1077_v17, %v1316_v38  ;;  %v1429_v30 = vsub.f32 %v1078_v8, %v1317_v27  ;;  %v1430_v13 = vsub.f32 %v1079_v4, %v1318_v24  ;;  %v1431_v23 = vsub.f32 %v1080_v0, %v1319_v9  ;;  %1223 = vperm.xlu1 %3074, %v8059_v53  }
 0x134   : > { %v1432_v11 = vsub.f32 %v1081_v56, %v1320_v3  ;;  %v1433_v18 = vsub.f32 %v1082_v10, %v1321_v37  ;;  %v1539_v40 = vmax.f32 %v1427_v14, 0.0  ;;  %v843_v50 = vmax.f32 %v4197_v48, 0.0 }
 0x135   : > { %v1540_v20 = vmax.f32 %v1428_v47, 0.0  ;;  %v1541_v55 = vmax.f32 %v1429_v30, 0.0  ;;  %v1542_v59 = vmax.f32 %v1430_v13, 0.0  ;;  %v1543_v21 = vmax.f32 %v1431_v23, 0.0 }
 0x136   : > { %v1544_v25 = vmax.f32 %v1432_v11, 0.0  ;;  %v1545_v17 = vmax.f32 %v1433_v18, 0.0  ;;  %v4254_v8 = vmul.f32 %v1539_v40, %v837_v45  ;;  %v429_v30 = vmin.f32 %v3648_v28, %v3911_v60  ;;  %265 = vperm.xlu0 %3075, %v3572_v16   ;;  %v8071_v40 = vld [vmem:[#allocation9_spill] sm:$0xff] }
 0x137   : > { %v4256_v4 = vmul.f32 %v1540_v20, %v838_v62  ;;  %v4258_v36 = vmul.f32 %v1541_v55, %v839_v7  ;;  %v4260_v15 = vmul.f32 %v1542_v59, %v840_v42  ;;  %v4262_v0 = vmul.f32 %v1543_v21, %v841_v41  ;;  %v8067_v62 = vld [vmem:[#allocation7_spill] sm:$0xff] }
 0x138   : > { %8060 = vst [vmem:[#allocation28_spill] sm:$0xff] %v4254_v8  ;;  %v663_v23 = vmax.f32 %v3650_v29, %v3921_v31  ;;  %v4269_v11 = vmul.f32 %v1544_v25, %v842_v51  ;;  %v4271_v18 = vmul.f32 %v1545_v17, %v843_v50  ;;  %v664_v55 = vmax.f32 %v3650_v29, %v3915_v57  ;;  %v8129_v8 = vld [vmem:[#allocation84_spill] sm:$0xff] }
 0x139   : > { %8061 = vst [vmem:[#allocation6_spill] sm:$0xff] %v4256_v4  ;;  %8062 = vst [vmem:[#allocation107_spill] sm:$0xff] %v4258_v36  ;;  %v665_v59 = vmax.f32 %v3650_v29, %v3923_v54  ;;  %v666_v48 = vmax.f32 %v3650_v29, %v3917_v5  ;;  %v667_v45 = vmax.f32 %v3650_v29, %v3930_v2  ;;  %1231 = vperm.xlu1 %3074, %v8067_v62   ;;  %v8077_v25 = vmov 2  }
 0x13a   : > { %8063 = vst [vmem:[#allocation108_spill] sm:$0xff] %v4260_v15  ;;  %8064 = vst [vmem:[#allocation109_spill] sm:$0xff] %v4262_v0  ;;  %v668_v16 = vmax.f32 %v3650_v29, %v3925_v43  ;;  %v8068_v51 = vmax.f32 %v3650_v29, %v3913_v44  ;;  %v8069_v7 = vmin.f32 %v3648_v28, %v3885_v46  ;;  %275 = vperm.xlu0 %3075, %v8059_v53  }
 0x13b   : > { %8065 = vst [vmem:[#allocation110_spill] sm:$0xff] %v4269_v11  ;;  %8066 = vst [vmem:[#allocation111_spill] sm:$0xff] %v4271_v18  ;;  %v437_v42 = vmin.f32 %v8071_v40, %v3885_v46  ;;  %v438_v13 = vmin.f32 %v8071_v40, %v3891_v52  ;;  %v439_v41 = vmin.f32 %v8071_v40, %v3894_v61 }
 0x13c   : > { %v4290_v20 = vsub.f32 %v8069_v7, %v8068_v51  ;;  %v440_v56 = vmin.f32 %v8071_v40, %v3902_v32  ;;  %v441_v29 = vmin.f32 %v8071_v40, %v3905_v1  ;;  %v676_v38 = vmax.f32 %v8072_v58, %v3913_v44 }
 0x13d   : > { %v677_v27 = vmax.f32 %v8072_v58, %v3921_v31  ;;  %v678_v24 = vmax.f32 %v8072_v58, %v3915_v57  ;;  %v679_v9 = vmax.f32 %v8072_v58, %v3923_v54  ;;  %v680_v10 = vmax.f32 %v8072_v58, %v3917_v5  ;;  %3076 = vset.pattern.permute.xlu1 %v8077_v25 }
 0x13e   : > { %8070 = vst [vmem:[#allocation7_spill] sm:$0xff] %v4290_v20  ;;  %v8073_v3 = vmin.f32 %v3648_v28, %v3891_v52  ;;  %v8075_v14 = vmin.f32 %v3648_v28, %v3894_v61  ;;  %v442_v21 = vmin.f32 %v8071_v40, %v3908_v63  ;;  %v681_v50 = vmax.f32 %v8072_v58, %v3930_v2 }
 0x13f   : > { %v8078_v53 = vmin.f32 %v3648_v28, %v3902_v32  ;;  %v682_v25 = vmax.f32 %v8072_v58, %v3925_v43  ;;  %285 = vperm.xlu0 %3075, %v8067_v62  }
 0x140   : > { %v4316_v37 = vsub.f32 %v8073_v3, %v663_v23  ;;  %v4321_v47 = vsub.f32 %v8075_v14, %v664_v55  ;;  %v8080_v23 = vmin.f32 %v3648_v28, %v3905_v1  ;;  %v8082_v55 = vmin.f32 %v3648_v28, %v3908_v63 }
 0x141   : > { %v4331_v17 = vsub.f32 %v8078_v53, %v665_v59  ;;  %v4343_v3 = vsub.f32 %v429_v30, %v668_v16  ;;  %v443_v14 = vmin.f32 %v8071_v40, %v3911_v60  ;;  %v4349_v59 = vsub.f32 %v437_v42, %v676_v38  ;;  %v8086_v53 = vld [vmem:[#allocation11_spill] sm:$0xff] }
 0x142   : > { %8074 = vst [vmem:[#allocation9_spill] sm:$0xff] %v4316_v37  ;;  %8076 = vst [vmem:[#allocation10_spill] sm:$0xff] %v4321_v47  ;;  %v4336_v51 = vsub.f32 %v8080_v23, %v666_v48  ;;  %v4341_v7 = vsub.f32 %v8082_v55, %v667_v45  ;;  %v451_v18 = vmin.f32 %v8086_v53, %v3885_v46 }
 0x143   : > { %8079 = vst [vmem:[#allocation112_spill] sm:$0xff] %v4331_v17  ;;  %8084 = vst [vmem:[#allocation115_spill] sm:$0xff] %v4343_v3  ;;  %v4353_v48 = vsub.f32 %v438_v13, %v677_v27  ;;  %v4355_v23 = vsub.f32 %v439_v41, %v678_v24  ;;  %v4357_v28 = vsub.f32 %v440_v56, %v679_v9  ;;  %v8092_v56 = vld [vmem:[#allocation12_spill] sm:$0xff] }
 0x144   : > { %8081 = vst [vmem:[#allocation113_spill] sm:$0xff] %v4336_v51  ;;  %8083 = vst [vmem:[#allocation114_spill] sm:$0xff] %v4341_v7  ;;  %v4359_v45 = vsub.f32 %v441_v29, %v680_v10  ;;  %v4362_v30 = vsub.f32 %v442_v21, %v681_v50  ;;  %v452_v16 = vmin.f32 %v8086_v53, %v3891_v52  ;;  %v8096_v10 = vld [vmem:[#allocation13_spill] sm:$0xff] }
 0x145   : > { %8085 = vst [vmem:[#allocation116_spill] sm:$0xff] %v4349_v59  ;;  %8087 = vst [vmem:[#allocation11_spill] sm:$0xff] %v4353_v48  ;;  %v453_v40 = vmin.f32 %v8086_v53, %v3894_v61  ;;  %v454_v42 = vmin.f32 %v8086_v53, %v3902_v32  ;;  %v455_v13 = vmin.f32 %v8086_v53, %v3905_v1  ;;  %v8147_v48 = vld [vmem:[#allocation50_spill] sm:$0xff] }
 0x146   : > { %8088 = vst [vmem:[#allocation117_spill] sm:$0xff] %v4355_v23  ;;  %8089 = vst [vmem:[#allocation118_spill] sm:$0xff] %v4357_v28  ;;  %v456_v41 = vmin.f32 %v8086_v53, %v3908_v63  ;;  %v690_v62 = vmax.f32 %v8092_v56, %v3913_v44  ;;  %v691_v29 = vmax.f32 %v8092_v56, %v3921_v31  ;;  %v8145_v23 = vld [vmem:[#allocation47_spill] sm:$0xff] }
 0x147   : > { %8090 = vst [vmem:[#allocation119_spill] sm:$0xff] %v4359_v45  ;;  %8091 = vst [vmem:[#allocation120_spill] sm:$0xff] %v4362_v30  ;;  %v692_v58 = vmax.f32 %v8092_v56, %v3915_v57  ;;  %v693_v38 = vmax.f32 %v8092_v56, %v3923_v54  ;;  %v694_v27 = vmax.f32 %v8092_v56, %v3917_v5 }
 0x148   : > { %v695_v24 = vmax.f32 %v8092_v56, %v3930_v2  ;;  %v4386_v9 = vsub.f32 %v443_v14, %v682_v25  ;;  %v457_v21 = vmin.f32 %v8086_v53, %v3911_v60  ;;  %v696_v50 = vmax.f32 %v8092_v56, %v3925_v43 }
 0x149   : > { %v4398_v14 = vsub.f32 %v451_v18, %v690_v62  ;;  %v4400_v25 = vsub.f32 %v452_v16, %v691_v29  ;;  %v465_v53 = vmin.f32 %v8096_v10, %v3885_v46  ;;  %v4404_v59 = vsub.f32 %v453_v40, %v692_v58 }
 0x14a   : > { %8093 = vst [vmem:[#allocation12_spill] sm:$0xff] %v4386_v9  ;;  %v4406_v56 = vsub.f32 %v454_v42, %v693_v38  ;;  %v4408_v55 = vsub.f32 %v455_v13, %v694_v27  ;;  %v4410_v11 = vsub.f32 %v456_v41, %v695_v24  ;;  %v4412_v0 = vsub.f32 %v457_v21, %v696_v50  ;;  %v8102_v13 = vld [vmem:[#allocation14_spill] sm:$0xff] }
 0x14b   : > { %8094 = vst [vmem:[#allocation121_spill] sm:$0xff] %v4398_v14  ;;  %8095 = vst [vmem:[#allocation122_spill] sm:$0xff] %v4400_v25  ;;  %v466_v36 = vmin.f32 %v8096_v10, %v3891_v52  ;;  %v467_v18 = vmin.f32 %v8096_v10, %v3894_v61  ;;  %v468_v16 = vmin.f32 %v8096_v10, %v3902_v32 }
 0x14c   : > { %8097 = vst [vmem:[#allocation13_spill] sm:$0xff] %v4404_v59  ;;  %8098 = vst [vmem:[#allocation123_spill] sm:$0xff] %v4406_v56  ;;  %v469_v40 = vmin.f32 %v8096_v10, %v3905_v1  ;;  %v470_v42 = vmin.f32 %v8096_v10, %v3908_v63  ;;  %v704_v41 = vmax.f32 %v8102_v13, %v3913_v44  ;;  %v8127_v59 = vld [vmem:[#allocation82_spill] sm:$0xff] }
 0x14d   : > { %8099 = vst [vmem:[#allocation124_spill] sm:$0xff] %v4408_v55  ;;  %8100 = vst [vmem:[#allocation125_spill] sm:$0xff] %v4410_v11  ;;  %v705_v62 = vmax.f32 %v8102_v13, %v3921_v31  ;;  %v706_v29 = vmax.f32 %v8102_v13, %v3915_v57  ;;  %v707_v58 = vmax.f32 %v8102_v13, %v3923_v54  ;;  %v8122_v11 = vld [vmem:[#allocation30_spill] sm:$0xff] }
 0x14e   : > { %8101 = vst [vmem:[#allocation126_spill] sm:$0xff] %v4412_v0  ;;  %v708_v38 = vmax.f32 %v8102_v13, %v3917_v5  ;;  %v709_v27 = vmax.f32 %v8102_v13, %v3930_v2  ;;  %v471_v50 = vmin.f32 %v8096_v10, %v3911_v60  ;;  %v710_v15 = vmax.f32 %v8102_v13, %v3925_v43  ;;  %v8158_v54 = vld [vmem:[#allocation54_spill] sm:$0xff] }
 0x14f   : > { %v4448_v9 = vsub.f32 %v465_v53, %v704_v41  ;;  %v4450_v21 = vsub.f32 %v466_v36, %v705_v62  ;;  %v4452_v10 = vsub.f32 %v467_v18, %v706_v29  ;;  %v4454_v14 = vsub.f32 %v468_v16, %v707_v58  ;;  %v4548_v58 = vpop.permute.xlu0 %1187  ;;  %v8126_v53 = vld [vmem:[#allocation80_spill] sm:$0xff]  ;;  %v8128_v29 = vld [vmem:[#allocation83_spill] sm:$0xff] }
 0x150   : > { %v4456_v13 = vsub.f32 %v469_v40, %v708_v38  ;;  %v4458_v30 = vsub.f32 %v470_v42, %v709_v27  ;;  %v4460_v45 = vsub.f32 %v471_v50, %v710_v15  ;;  %v8119_v38 = vld [vmem:[#allocation27_spill] sm:$0xff]  ;;  %v8130_v27 = vld [vmem:[#allocation85_spill] sm:$0xff]  ;;  %v1322_v15 = vmax.f32 %v4548_v58, %v8046_v19  ;;  %v8146_v50 = vld [vmem:[#allocation48_spill] sm:$0xff] }
 0x151   : > { %8103 = vst [vmem:[#allocation14_spill] sm:$0xff] %v4448_v9  ;;  %8104 = vst [vmem:[#allocation127_spill] sm:$0xff] %v4450_v21  ;;  %v8132_v42 = vld [vmem:[#allocation87_spill] sm:$0xff]  ;;  %v1324_v2 = vmax.f32 %v4548_v58, %v8145_v23  ;;  %v1325_v5 = vmax.f32 %v4548_v58, %v8146_v50  ;;  %v1326_v40 = vmax.f32 %v4548_v58, %v8147_v48  ;;  %v8174_v20 = vmax.f32 %v8128_v29, 0.0  ;;  %v8185_v29 = vld [vmem:[#allocation29_spill] sm:$0xff] }
 0x152   : > { %8105 = vst [vmem:[#allocation128_spill] sm:$0xff] %v4452_v10  ;;  %8106 = vst [vmem:[#allocation129_spill] sm:$0xff] %v4454_v14  ;;  %v1327_v24 = vmax.f32 %v4548_v58, %v8050_v49  ;;  %v1328_v62 = vmax.f32 %v4548_v58, %v3811_v12  ;;  %v8149_v57 = vmin.f32 %v8122_v11, %v3773_v39  ;;  %v8219_v9 = vld [vmem:[#allocation49_spill] sm:$0xff] }
 0x153   : > { %8107 = vst [vmem:[#allocation130_spill] sm:$0xff] %v4456_v13  ;;  %8108 = vst [vmem:[#allocation131_spill] sm:$0xff] %v4458_v30  ;;  %v1832_v41 = vpop.permute.xlu0 %1831  ;;  %v8150_v44 = vmin.f32 %v8122_v11, %v3775_v35  ;;  %v8151_v28 = vmin.f32 %v8122_v11, %v3777_v34  ;;  %v8152_v18 = vmin.f32 %v8122_v11, %v3779_v33 }
 0x154   : > { %8109 = vst [vmem:[#allocation132_spill] sm:$0xff] %v4460_v45  ;;  %v1878_v0 = vmul.f32 %v1832_v41, %v8119_v38  ;;  %v8131_v41 = vld [vmem:[#allocation86_spill] sm:$0xff]  ;;  %v1434_v60 = vsub.f32 %v8149_v57, %v1322_v15  ;;  %v8154_v57 = vmin.f32 %v8122_v11, %v8040_v6  ;;  %v8155_v61 = vmin.f32 %v8122_v11, %v8041_v26 }
 0x155   : > { %v1436_v43 = vsub.f32 %v8151_v28, %v1324_v2  ;;  %v1437_v1 = vsub.f32 %v8152_v18, %v1325_v5  ;;  %v8172_v18 = vmax.f32 %v8127_v59, 0.0  ;;  %v8182_v59 = vmax.f32 %v8132_v42, 0.0  ;;  %v3304_v42 = vld [vmem:[%s3724_s25 + $0x18] sm:$0xf] }
 0x156   : > { %1932 = vperm.xlu0 %3075, %v1878_v0   ;;  %v8144_v0 = vld [vmem:[#allocation46_spill] sm:$0xff]  ;;  %v1439_v15 = vsub.f32 %v8154_v57, %v1327_v24  ;;  %v1546_v24 = vmax.f32 %v1434_v60, 0.0 }
 0x157   : > { %v4621_v55 = vpop.permute.xlu0 %1835  ;;  %v1323_v38 = vmax.f32 %v4548_v58, %v8144_v0  ;;  %v8153_v58 = vmin.f32 %v8122_v11, %v8037_v22  ;;  %v1549_v46 = vmax.f32 %v1437_v1, 0.0 }
 0x158   : > { %v1551_v5 = vmax.f32 %v1439_v15, 0.0 }
 0x159   : > { %v1435_v63 = vsub.f32 %v8150_v44, %v1323_v38  ;;  %v1438_v32 = vsub.f32 %v8153_v58, %v1326_v40  ;;  %v1440_v44 = vsub.f32 %v8155_v61, %v1328_v62  ;;  %v1548_v62 = vmax.f32 %v1436_v43, 0.0  ;;  %v8168_v43 = vld [vmem:[#allocation62_spill] sm:$0xff] }
 0x15b   : > { %v4665_v4 = vpop.permute.xlu0 %1839  ;;  %v1547_v11 = vmax.f32 %v1435_v63, 0.0  ;;  %v1550_v52 = vmax.f32 %v1438_v32, 0.0  ;;  %v1552_v45 = vmax.f32 %v1440_v44, 0.0  ;;  %v4806_v63 = vmul.f32 %v1548_v62, %v8174_v20 }
 0x15d   : > { %v4802_v40 = vmul.f32 %v1547_v11, %v8172_v18  ;;  %8175 = vst [vmem:[#allocation80_spill] sm:$0xff] %v4806_v63  ;;  %v4823_v18 = vmul.f32 %v1552_v45, %v8182_v59  ;;  %v3302_v11 = vld [vmem:[%s3724_s25 + $0x8] sm:$0xff]  ;;  %v8188_v45 = vld [vmem:[#allocation31_spill] sm:$0xff] }
 0x15e   : > { %v1894_v20 = vrot.slane %v3302_v11, 6 }
 0x15f   : > { %v4704_v16 = vpop.permute.xlu0 %1843  ;;  %8173 = vst [vmem:[#allocation30_spill] sm:$0xff] %v4802_v40  ;;  %8183 = vst [vmem:[#allocation85_spill] sm:$0xff] %v4823_v18 }
 0x163   : > { %v4756_v31 = vpop.permute.xlu0 %1847 }
 0x167   : > { %v4787_v58 = vpop.permute.xlu0 %1851 }
 0x16b   : > { %v4838_v62 = vpop.permute.xlu0 %1855 }
 0x174   : > { %v1830_v38 = vpop.permute.xlu1 %1829 }
 0x175   : > { %v1877_v25 = vmul.f32 %v1830_v38, %v8158_v54  ;;  %v8170_v54 = vmax.f32 %v8126_v53, 0.0  ;;  %v8178_v53 = vmax.f32 %v8130_v27, 0.0 }
 0x177   : > { %1927 = vperm.xlu1 %3076, %v1877_v25   ;;  %v4796_v37 = vmul.f32 %v1546_v24, %v8170_v54  ;;  %v4814_v24 = vmul.f32 %v1550_v52, %v8178_v53  ;;  %v3301_v54 = vld [vmem:[%s3724_s25] sm:$0xff]  ;;  %v1880_v52 = vmul.f32 %v4621_v55, %v8185_v29  ;;  %v3303_v25 = vld [vmem:[%s3724_s25 + $0x10] sm:$0xff] }
 0x178   : > { %v1834_v12 = vpop.permute.xlu1 %1833  ;;  %v1893_v15 = vrot.slane %v3301_v54, 6  ;;  %v8187_v29 = vld [vmem:[#allocation105_spill] sm:$0xff] }
 0x179   : > { %v1879_v1 = vmul.f32 %v1834_v12, %v8168_v43  ;;  %8171 = vst [vmem:[#allocation27_spill] sm:$0xff] %v4796_v37  ;;  %v8176_v12 = vmax.f32 %v8129_v8, 0.0  ;;  %8179 = vst [vmem:[#allocation83_spill] sm:$0xff] %v4814_v24  ;;  %v8184_v8 = vld [vmem:[#allocation98_spill] sm:$0xff]  ;;  %v8197_v24 = vld [vmem:[#allocation33_spill] sm:$0xff] }
 0x17a   : > { %v1884_v51 = vmul.f32 %v4704_v16, %v8197_v24  ;;  %v8220_v37 = vld [vmem:[#allocation36_spill] sm:$0xff]  ;;  %v8280_v47 = vmin.f32 %v8184_v8, %v3777_v34 }
 0x17b   : > { %1937 = vperm.xlu1 %3076, %v1879_v1   ;;  %v4810_v43 = vmul.f32 %v1549_v46, %v8176_v12  ;;  %v8180_v1 = vmax.f32 %v8131_v41, 0.0  ;;  %v8186_v12 = vld [vmem:[#allocation66_spill] sm:$0xff]  ;;  %v1902_v41 = vsub.f32 %v3302_v11, %v1894_v20  ;;  %v8199_v20 = vld [vmem:[#allocation35_spill] sm:$0xff] }
 0x17c   : > { %v1886_v11 = vmul.f32 %v4756_v31, %v8199_v20 }
 0x17d   : > { %8177 = vst [vmem:[#allocation82_spill] sm:$0xff] %v4810_v43  ;;  %v4819_v44 = vmul.f32 %v1551_v5, %v8180_v1  ;;  %v1838_v27 = vpop.permute.xlu1 %1837  ;;  %v1895_v5 = vrot.slane %v3303_v25, 6  ;;  %v8198_v43 = vld [vmem:[#allocation79_spill] sm:$0xff]  ;;  %v2976_v24 = vrot.slane %v1902_v41, 9  ;;  %v8201_v1 = vld [vmem:[#allocation81_spill] sm:$0xff] }
 0x17e   : > { %v1881_v55 = vmul.f32 %v1838_v27, %v8186_v12  ;;  %v1896_v27 = vrot.slane %v3304_v42, 6  ;;  %v1901_v12 = vsub.f32 %v3301_v54, %v1893_v15  ;;  %v8189_v54 = vld [vmem:[#allocation77_spill] sm:$0xff]  ;;  %v8202_v15 = vld [vmem:[#allocation32_spill] sm:$0xff] }
 0x17f   : > { %8181 = vst [vmem:[#allocation84_spill] sm:$0xff] %v4819_v44  ;;  %1942 = vperm.xlu1 %3076, %v1880_v52   ;;  %v1882_v52 = vmul.f32 %v4665_v4, %v8188_v45  ;;  %v4871_v45 = vpop.permute.xlu0 %1859  ;;  %v1903_v56 = vsub.f32 %v3303_v25, %v1895_v5  ;;  %v8205_v30 = vmin.f32 %v8202_v15, %v3775_v35 }
 0x180   : > { %1947 = vperm.xlu0 %3075, %v1881_v55   ;;  %v1904_v46 = vsub.f32 %v3304_v42, %v1896_v27  ;;  %v2975_v2 = vrot.slane %v1901_v12, 9  ;;  %v8200_v42 = vld [vmem:[#allocation52_spill] sm:$0xff]  ;;  %v8207_v14 = vmin.f32 %v8202_v15, %v3777_v34  ;;  %v1922_v63 = vmul.f32 %v2976_v24, %v1902_v41 }
 0x181   : > { %v1842_v55 = vpop.permute.xlu1 %1841 }
 0x182   : > { %v1883_v53 = vmul.f32 %v1842_v55, %v8189_v54 }
 0x183   : > { %1952 = vperm.xlu1 %3076, %v1882_v52   ;;  %v1196_v16 = vpop.permute.xlu0 %1195  ;;  %v4887_v52 = vmul.f32 %v2975_v2, %v1901_v12  ;;  %v8203_v2 = vmin.f32 %v8202_v15, %v3773_v39 }
 0x184   : > { %1957 = vperm.xlu0 %3075, %v1883_v53   ;;  %v1336_v53 = vmax.f32 %v1196_v16, %v8046_v19  ;;  %v1337_v25 = vmax.f32 %v1196_v16, %v8144_v0  ;;  %v1338_v31 = vmax.f32 %v1196_v16, %v8145_v23  ;;  %v1340_v5 = vmax.f32 %v1196_v16, %v8147_v48 }
 0x185   : > { %v1846_v17 = vpop.permute.xlu1 %1845  ;;  %v1341_v27 = vmax.f32 %v1196_v16, %v8050_v49 }
 0x186   : > { %v1885_v4 = vmul.f32 %v1846_v17, %v8198_v43  ;;  %v2977_v17 = vrot.slane %v1903_v56, 9  ;;  %v2978_v43 = vrot.slane %v1904_v46, 9  ;;  %v4900_v12 = vsub.f32 %v8203_v2, %v1336_v53 }
 0x187   : > { %1962 = vperm.xlu1 %3076, %v1884_v51   ;;  %v1339_v51 = vmax.f32 %v1196_v16, %v8146_v50  ;;  %v4905_v13 = vsub.f32 %v8205_v30, %v1337_v25  ;;  %v4910_v10 = vsub.f32 %v8207_v14, %v1338_v31  ;;  %v8213_v30 = vmin.f32 %v8202_v15, %v8040_v6 }
 0x188   : > { %1967 = vperm.xlu0 %3075, %v1885_v4   ;;  %v1342_v4 = vmax.f32 %v1196_v16, %v8200_v42  ;;  %8204 = vst [vmem:[#allocation86_spill] sm:$0xff] %v4900_v12  ;;  %v8209_v16 = vmin.f32 %v8202_v15, %v3779_v33  ;;  %v8215_v14 = vmin.f32 %v8202_v15, %v8041_v26 }
 0x189   : > { %v1850_v20 = vpop.permute.xlu1 %1849  ;;  %8206 = vst [vmem:[#allocation87_spill] sm:$0xff] %v4905_v13  ;;  %8208 = vst [vmem:[#allocation46_spill] sm:$0xff] %v4910_v10  ;;  %v4925_v25 = vsub.f32 %v8213_v30, %v1341_v27  ;;  %v1923_v40 = vmul.f32 %v2977_v17, %v1903_v56  ;;  %v1924_v30 = vmul.f32 %v2978_v43, %v1904_v46  ;;  %v8222_v46 = vld [vmem:[#allocation34_spill] sm:$0xff]  ;;  %v8343_v13 = vld [vmem:[#allocation17_spill] sm:$0xff] }
 0x18a   : > { %v1887_v55 = vmul.f32 %v1850_v20, %v8201_v1  ;;  %v4915_v21 = vsub.f32 %v8209_v16, %v1339_v51  ;;  %v8211_v1 = vmin.f32 %v8202_v15, %v8037_v22  ;;  %v4930_v31 = vsub.f32 %v8215_v14, %v1342_v4  ;;  %v1204_v20 = vpop.permute.xlu0 %1203  ;;  %v8221_v4 = vld [vmem:[#allocation40_spill] sm:$0xff] }
 0x18b   : > { %1972 = vperm.xlu1 %3076, %v1886_v11   ;;  %8214 = vst [vmem:[#allocation50_spill] sm:$0xff] %v4925_v25  ;;  %v8218_v11 = vld [vmem:[#allocation38_spill] sm:$0xff]  ;;  %v1350_v27 = vmax.f32 %v1204_v20, %v8046_v19  ;;  %v2012_v15 = vrot.slane %v4887_v52, %v8220_v37  ;;  %v1351_v14 = vmax.f32 %v1204_v20, %v8144_v0 }
 0x18c   : > { %8210 = vst [vmem:[#allocation47_spill] sm:$0xff] %v4915_v21  ;;  %v4920_v53 = vsub.f32 %v8211_v1, %v1340_v5  ;;  %8216 = vst [vmem:[#allocation54_spill] sm:$0xff] %v4930_v31  ;;  %1977 = vperm.xlu0 %3075, %v1887_v55   ;;  %v1888_v16 = vmul.f32 %v4787_v58, %v8218_v11  ;;  %v1890_v5 = vmul.f32 %v4838_v62, %v8219_v9 }
 0x18d   : > { %v1854_v1 = vpop.permute.xlu1 %1853  ;;  %v2016_v55 = vrot.slane %v4887_v52, %v8221_v4  ;;  %v1352_v2 = vmax.f32 %v1204_v20, %v8145_v23  ;;  %v1353_v58 = vmax.f32 %v1204_v20, %v8146_v50  ;;  %v1354_v9 = vmax.f32 %v1204_v20, %v8147_v48  ;;  %v8225_v52 = vld [vmem:[#allocation88_spill] sm:$0xff] }
 0x18e   : > { %8212 = vst [vmem:[#allocation48_spill] sm:$0xff] %v4920_v53  ;;  %v1355_v56 = vmax.f32 %v1204_v20, %v8050_v49  ;;  %v1356_v41 = vmax.f32 %v1204_v20, %v8200_v42  ;;  %v8223_v62 = vmin.f32 %v8222_v46, %v3773_v39  ;;  %v1212_v17 = vpop.permute.xlu0 %1211  ;;  %v1889_v43 = vmul.f32 %v1854_v1, %v8225_v52 }
 0x18f   : > { %1982 = vperm.xlu1 %3076, %v1888_v16   ;;  %v8226_v11 = vmin.f32 %v8222_v46, %v3775_v35  ;;  %v8228_v16 = vmin.f32 %v8222_v46, %v3777_v34  ;;  %v8230_v20 = vmin.f32 %v8222_v46, %v3779_v33  ;;  %v8234_v1 = vmin.f32 %v8222_v46, %v8040_v6 }
 0x190   : > { %v4951_v24 = vsub.f32 %v8223_v62, %v1350_v27  ;;  %v8232_v27 = vmin.f32 %v8222_v46, %v8037_v22  ;;  %v8236_v52 = vmin.f32 %v8222_v46, %v8041_v26  ;;  %1987 = vperm.xlu0 %3075, %v1889_v43   ;;  %v4995_v43 = vrot.slane %v2012_v15, %v8220_v37 }
 0x191   : > { %v4957_v51 = vsub.f32 %v8226_v11, %v1351_v14  ;;  %v4962_v32 = vsub.f32 %v8228_v16, %v1352_v2  ;;  %v4967_v61 = vsub.f32 %v8230_v20, %v1353_v58  ;;  %v4977_v14 = vsub.f32 %v8234_v1, %v1355_v56  ;;  %v8238_v16 = vld [vmem:[#allocation53_spill] sm:$0xff] }
 0x192   : > { %8224 = vst [vmem:[#allocation62_spill] sm:$0xff] %v4951_v24  ;;  %v4972_v62 = vsub.f32 %v8232_v27, %v1354_v9  ;;  %v4982_v2 = vsub.f32 %v8236_v52, %v1356_v41  ;;  %v1364_v11 = vmax.f32 %v1212_v17, %v8046_v19  ;;  %v2020_v58 = vrot.slane %v1922_v63, %v8220_v37  ;;  %v1220_v46 = vpop.permute.xlu0 %1219 }
 0x193   : > { %8227 = vst [vmem:[#allocation98_spill] sm:$0xff] %v4957_v51  ;;  %8229 = vst [vmem:[#allocation29_spill] sm:$0xff] %v4962_v32  ;;  %v1892_v20 = vmul.f32 %v4871_v45, %v8238_v16  ;;  %1992 = vperm.xlu1 %3076, %v1890_v5   ;;  %v2024_v9 = vrot.slane %v1922_v63, %v8221_v4  ;;  %v2028_v27 = vrot.slane %v1923_v40, %v8220_v37  ;;  %v8240_v16 = vld [vmem:[#allocation37_spill] sm:$0xff] }
 0x194   : > { %8231 = vst [vmem:[#allocation66_spill] sm:$0xff] %v4967_v61  ;;  %8233 = vst [vmem:[#allocation105_spill] sm:$0xff] %v4972_v62  ;;  %v2032_v56 = vrot.slane %v1923_v40, %v8221_v4  ;;  %v1365_v1 = vmax.f32 %v1212_v17, %v8144_v0  ;;  %v1366_v41 = vmax.f32 %v1212_v17, %v8145_v23 }
 0x195   : > { %8235 = vst [vmem:[#allocation31_spill] sm:$0xff] %v4977_v14  ;;  %8237 = vst [vmem:[#allocation77_spill] sm:$0xff] %v4982_v2  ;;  %v2036_v52 = vrot.slane %v1924_v30, %v8220_v37  ;;  %v1367_v57 = vmax.f32 %v1212_v17, %v8146_v50  ;;  %v1368_v45 = vmax.f32 %v1212_v17, %v8147_v48 }
 0x196   : > { %8239 = vst [vmem:[#allocation33_spill] sm:$0xff] %v4995_v43  ;;  %v1369_v63 = vmax.f32 %v1212_v17, %v8050_v49  ;;  %v1370_v5 = vmax.f32 %v1212_v17, %v8200_v42  ;;  %v8241_v40 = vmin.f32 %v8240_v16, %v3773_v39  ;;  %v8243_v60 = vmin.f32 %v8240_v16, %v3775_v35 }
 0x197   : > { %v8245_v15 = vmin.f32 %v8240_v16, %v3777_v34  ;;  %v1378_v28 = vmax.f32 %v1220_v46, %v8046_v19  ;;  %v8247_v17 = vmin.f32 %v8240_v16, %v3779_v33  ;;  %2002 = vperm.xlu1 %3076, %v1892_v20   ;;  %v1379_v54 = vmax.f32 %v1220_v46, %v8144_v0 }
 0x198   : > { %v5004_v4 = vsub.f32 %v8241_v40, %v1364_v11  ;;  %v5009_v30 = vsub.f32 %v8243_v60, %v1365_v1  ;;  %v8249_v11 = vmin.f32 %v8240_v16, %v8037_v22  ;;  %v8251_v60 = vmin.f32 %v8240_v16, %v8040_v6 }
 0x199   : > { %v5014_v38 = vsub.f32 %v8245_v15, %v1366_v41  ;;  %v5020_v36 = vsub.f32 %v8247_v17, %v1367_v57  ;;  %v8253_v41 = vmin.f32 %v8240_v16, %v8041_v26  ;;  %v1228_v57 = vpop.permute.xlu0 %1227  ;;  %v5039_v17 = vrot.slane %v2016_v55, %v8220_v37 }
 0x19a   : > { %8242 = vst [vmem:[#allocation79_spill] sm:$0xff] %v5004_v4  ;;  %8244 = vst [vmem:[#allocation35_spill] sm:$0xff] %v5009_v30  ;;  %v5025_v40 = vsub.f32 %v8249_v11, %v1368_v45  ;;  %v5030_v1 = vsub.f32 %v8251_v60, %v1369_v63  ;;  %v5042_v45 = vrot.slane %v2020_v58, %v8220_v37  ;;  %v8261_v63 = vld [vmem:[#allocation44_spill] sm:$0xff]  ;;  %v8334_v30 = vld [vmem:[#allocation15_spill] sm:$0xff] }
 0x19b   : > { %8246 = vst [vmem:[#allocation52_spill] sm:$0xff] %v5014_v38  ;;  %8248 = vst [vmem:[#allocation81_spill] sm:$0xff] %v5020_v36  ;;  %v5035_v15 = vsub.f32 %v8253_v41, %v1370_v5  ;;  %v5045_v11 = vrot.slane %v2024_v9, %v8220_v37  ;;  %v5049_v60 = vrot.slane %v2028_v27, %v8220_v37 }
 0x19c   : > { %8250 = vst [vmem:[#allocation32_spill] sm:$0xff] %v5025_v40  ;;  %8252 = vst [vmem:[#allocation38_spill] sm:$0xff] %v5030_v1  ;;  %v5052_v5 = vrot.slane %v2032_v56, %v8220_v37  ;;  %v5055_v20 = vrot.slane %v2036_v52, %v8220_v37  ;;  %v1380_v55 = vmax.f32 %v1220_v46, %v8145_v23 }
 0x19d   : > { %8254 = vst [vmem:[#allocation49_spill] sm:$0xff] %v5035_v15  ;;  %8255 = vst [vmem:[#allocation36_spill] sm:$0xff] %v5039_v17  ;;  %v1381_v16 = vmax.f32 %v1220_v46, %v8146_v50  ;;  %v1382_v58 = vmax.f32 %v1220_v46, %v8147_v48  ;;  %v1383_v9 = vmax.f32 %v1220_v46, %v8050_v49  ;;  %v8313_v15 = vld [vmem:[#allocation71_spill] sm:$0xff] }
 0x19e   : > { %8256 = vst [vmem:[#allocation40_spill] sm:$0xff] %v5042_v45  ;;  %8257 = vst [vmem:[#allocation34_spill] sm:$0xff] %v5045_v11  ;;  %v1384_v41 = vmax.f32 %v1220_v46, %v8200_v42  ;;  %v8262_v27 = vmin.f32 %v8261_v63, %v3773_v39  ;;  %v8264_v56 = vmin.f32 %v8261_v63, %v3775_v35 }
 0x19f   : > { %8258 = vst [vmem:[#allocation88_spill] sm:$0xff] %v5049_v60  ;;  %8259 = vst [vmem:[#allocation53_spill] sm:$0xff] %v5052_v5  ;;  %v1392_v52 = vmax.f32 %v1228_v57, %v8046_v19  ;;  %v8266_v44 = vmin.f32 %v8261_v63, %v3777_v34  ;;  %v8268_v46 = vmin.f32 %v8261_v63, %v3779_v33  ;;  %v1236_v5 = vpop.permute.xlu0 %1235 }
 0x1a0   : > { %8260 = vst [vmem:[#allocation37_spill] sm:$0xff] %v5055_v20  ;;  %v5065_v12 = vsub.f32 %v8262_v27, %v1378_v28  ;;  %v5070_v37 = vsub.f32 %v8264_v56, %v1379_v54  ;;  %v8270_v28 = vmin.f32 %v8261_v63, %v8037_v22  ;;  %v8272_v54 = vmin.f32 %v8261_v63, %v8040_v6 }
 0x1a1   : > { %v5076_v20 = vsub.f32 %v8266_v44, %v1380_v55  ;;  %v5081_v18 = vsub.f32 %v8268_v46, %v1381_v16  ;;  %v8274_v55 = vmin.f32 %v8261_v63, %v8041_v26  ;;  %v1393_v46 = vmax.f32 %v1228_v57, %v8144_v0 }
 0x1a2   : > { %8263 = vst [vmem:[#allocation44_spill] sm:$0xff] %v5065_v12  ;;  %8265 = vst [vmem:[#allocation133_spill] sm:$0xff] %v5070_v37  ;;  %v5086_v27 = vsub.f32 %v8270_v28, %v1382_v58  ;;  %v5091_v56 = vsub.f32 %v8272_v54, %v1383_v9  ;;  %v1858_v54 = vpop.permute.xlu1 %1857  ;;  %v1394_v44 = vmax.f32 %v1228_v57, %v8145_v23  ;;  %v8312_v12 = vld [vmem:[#allocation8_spill] sm:$0xff]  ;;  %v8322_v37 = vld [vmem:[#allocation75_spill] sm:$0xff] }
 0x1a3   : > { %8267 = vst [vmem:[#allocation134_spill] sm:$0xff] %v5076_v20  ;;  %8269 = vst [vmem:[#allocation135_spill] sm:$0xff] %v5081_v18  ;;  %v5098_v16 = vsub.f32 %v8274_v55, %v1384_v41  ;;  %v1395_v10 = vmax.f32 %v1228_v57, %v8146_v50  ;;  %v1396_v63 = vmax.f32 %v1228_v57, %v8147_v48  ;;  %v216_v21 = vpop.permute.xlu0 %215  ;;  %v8311_v18 = vld [vmem:[#allocation70_spill] sm:$0xff] }
 0x1a4   : > { %8271 = vst [vmem:[#allocation136_spill] sm:$0xff] %v5086_v27  ;;  %8273 = vst [vmem:[#allocation137_spill] sm:$0xff] %v5091_v56  ;;  %v1397_v41 = vmax.f32 %v1228_v57, %v8050_v49  ;;  %v1398_v55 = vmax.f32 %v1228_v57, %v8200_v42  ;;  %v8276_v28 = vmin.f32 %v8184_v8, %v3773_v39  ;;  %v8319_v27 = vld [vmem:[#allocation72_spill] sm:$0xff] }
 0x1a5   : > { %8275 = vst [vmem:[#allocation138_spill] sm:$0xff] %v5098_v16  ;;  %v8278_v9 = vmin.f32 %v8184_v8, %v3775_v35  ;;  %v5124_v24 = vsub.f32 %v8280_v47, %v1394_v44  ;;  %v8282_v31 = vmin.f32 %v8184_v8, %v3779_v33  ;;  %v8284_v57 = vmin.f32 %v8184_v8, %v8037_v22  ;;  %v8328_v16 = vld [vmem:[#allocation78_spill] sm:$0xff] }
 0x1a6   : > { %v5114_v58 = vsub.f32 %v8276_v28, %v1392_v52  ;;  %v8286_v28 = vld [vmem:[#allocation91_spill] sm:$0xff]  ;;  %v8287_v47 = vmin.f32 %v8184_v8, %v8040_v6  ;;  %v8295_v4 = vmin.f32 %v8187_v29, %v3777_v34  ;;  %v8314_v1 = vmax.f32 %v8312_v12, %v8313_v15  ;;  %v5337_v43 = vpop.permute.xlu1 %1191 }
 0x1a7   : > { %v5119_v60 = vsub.f32 %v8278_v9, %v1393_v46  ;;  %8281 = vst [vmem:[#allocation141_spill] sm:$0xff] %v5124_v24  ;;  %v5129_v25 = vsub.f32 %v8282_v31, %v1395_v10  ;;  %v5134_v52 = vsub.f32 %v8284_v57, %v1396_v63  ;;  %v1891_v53 = vmul.f32 %v1858_v54, %v8286_v28 }
 0x1a8   : > { %8277 = vst [vmem:[#allocation139_spill] sm:$0xff] %v5114_v58  ;;  %v5142_v44 = vsub.f32 %v8287_v47, %v1397_v41  ;;  %v8289_v10 = vmin.f32 %v8184_v8, %v8041_v26  ;;  %v1406_v28 = vmax.f32 %v1236_v5, %v8046_v19  ;;  %v1407_v47 = vmax.f32 %v1236_v5, %v8144_v0 }
 0x1a9   : > { %8279 = vst [vmem:[#allocation140_spill] sm:$0xff] %v5119_v60  ;;  %8283 = vst [vmem:[#allocation142_spill] sm:$0xff] %v5129_v25  ;;  %1997 = vperm.xlu0 %3075, %v1891_v53   ;;  %v1408_v8 = vmax.f32 %v1236_v5, %v8145_v23  ;;  %v1411_v63 = vmax.f32 %v1236_v5, %v8050_v49  ;;  %v1412_v57 = vmax.f32 %v1236_v5, %v8200_v42 }
 0x1aa   : > { %8285 = vst [vmem:[#allocation143_spill] sm:$0xff] %v5134_v52  ;;  %8288 = vst [vmem:[#allocation91_spill] sm:$0xff] %v5142_v44  ;;  %v5147_v31 = vsub.f32 %v8289_v10, %v1398_v55  ;;  %v1409_v55 = vmax.f32 %v1236_v5, %v8146_v50  ;;  %v1410_v10 = vmax.f32 %v1236_v5, %v8147_v48 }
 0x1ab   : > { %v8291_v53 = vmin.f32 %v8187_v29, %v3773_v39  ;;  %v8293_v41 = vmin.f32 %v8187_v29, %v3775_v35  ;;  %v5175_v2 = vsub.f32 %v8295_v4, %v1408_v8  ;;  %v8297_v5 = vmin.f32 %v8187_v29, %v3779_v33 }
 0x1ac   : > { %8290 = vst [vmem:[#allocation144_spill] sm:$0xff] %v5147_v31  ;;  %v8299_v54 = vmin.f32 %v8187_v29, %v8037_v22  ;;  %v8320_v20 = vmax.f32 %v8312_v12, %v8319_v27  ;;  %v8323_v44 = vmax.f32 %v8312_v12, %v8322_v37  ;;  %v8329_v40 = vmax.f32 %v8312_v12, %v8328_v16 }
 0x1ad   : > { %v5165_v9 = vsub.f32 %v8291_v53, %v1406_v28  ;;  %v5170_v46 = vsub.f32 %v8293_v41, %v1407_v47  ;;  %8296 = vst [vmem:[#allocation147_spill] sm:$0xff] %v5175_v2  ;;  %v5180_v14 = vsub.f32 %v8297_v5, %v1409_v55  ;;  %v8301_v53 = vmin.f32 %v8187_v29, %v8040_v6  ;;  %v8305_v55 = vld [vmem:[#allocation63_spill] sm:$0xff]  ;;  %v8306_v5 = vld [vmem:[#allocation64_spill] sm:$0xff] }
 0x1ae   : > { %v5185_v28 = vsub.f32 %v8299_v54, %v1410_v10  ;;  %v8303_v47 = vmin.f32 %v8187_v29, %v8041_v26  ;;  %v221_v54 = vpop.permute.xlu0 %220  ;;  %v360_v8 = vmin.f32 %v216_v21, %v8305_v55  ;;  %v8308_v2 = vld [vmem:[#allocation67_spill] sm:$0xff]  ;;  %v8346_v59 = vmax.f32 %v8343_v13, %v8319_v27 }
 0x1af   : > { %8292 = vst [vmem:[#allocation145_spill] sm:$0xff] %v5165_v9  ;;  %8294 = vst [vmem:[#allocation146_spill] sm:$0xff] %v5170_v46  ;;  %v5190_v41 = vsub.f32 %v8301_v53, %v1411_v63  ;;  %v363_v10 = vmin.f32 %v216_v21, %v8308_v2  ;;  %v8309_v46 = vld [vmem:[#allocation68_spill] sm:$0xff]  ;;  %v8310_v9 = vld [vmem:[#allocation69_spill] sm:$0xff]  ;;  %v367_v53 = vmin.f32 %v221_v54, %v8305_v55 }
 0x1b0   : > { %8298 = vst [vmem:[#allocation148_spill] sm:$0xff] %v5180_v14  ;;  %8300 = vst [vmem:[#allocation149_spill] sm:$0xff] %v5185_v28  ;;  %v5195_v4 = vsub.f32 %v8303_v47, %v1412_v57  ;;  %v8307_v14 = vld [vmem:[#allocation65_spill] sm:$0xff]  ;;  %v364_v28 = vmin.f32 %v216_v21, %v8309_v46  ;;  %v365_v29 = vmin.f32 %v216_v21, %v8310_v9  ;;  %v8316_v47 = vld [vmem:[#allocation74_spill] sm:$0xff] }
 0x1b1   : > { %8302 = vst [vmem:[#allocation150_spill] sm:$0xff] %v5190_v41  ;;  %v362_v41 = vmin.f32 %v216_v21, %v8307_v14  ;;  %v366_v57 = vmin.f32 %v216_v21, %v8311_v18  ;;  %v5225_v63 = vsub.f32 %v360_v8, %v8314_v1  ;;  %v368_v58 = vmin.f32 %v221_v54, %v8306_v5  ;;  %v8325_v8 = vld [vmem:[#allocation73_spill] sm:$0xff] }
 0x1b2   : > { %8304 = vst [vmem:[#allocation151_spill] sm:$0xff] %v5195_v4  ;;  %v361_v4 = vmin.f32 %v216_v21, %v8306_v5  ;;  %v236_v21 = vpop.permute.xlu0 %235  ;;  %v8317_v60 = vmax.f32 %v8312_v12, %v8316_v47  ;;  %v5242_v1 = vsub.f32 %v363_v10, %v8323_v44  ;;  %v8326_v25 = vmax.f32 %v8312_v12, %v8325_v8 }
 0x1b3   : > { %8315 = vst [vmem:[#allocation63_spill] sm:$0xff] %v5225_v63  ;;  %v5237_v52 = vsub.f32 %v362_v41, %v8320_v20  ;;  %v369_v41 = vmin.f32 %v221_v54, %v8307_v14  ;;  %v370_v44 = vmin.f32 %v221_v54, %v8308_v2  ;;  %v371_v10 = vmin.f32 %v221_v54, %v8309_v46 }
 0x1b4   : > { %v5232_v56 = vsub.f32 %v361_v4, %v8317_v60  ;;  %8324 = vst [vmem:[#allocation67_spill] sm:$0xff] %v5242_v1  ;;  %v5247_v24 = vsub.f32 %v364_v28, %v8326_v25  ;;  %v5252_v60 = vsub.f32 %v365_v29, %v8329_v40  ;;  %v8331_v4 = vld [vmem:[#allocation76_spill] sm:$0xff]  ;;  %v372_v38 = vmin.f32 %v221_v54, %v8310_v9 }
 0x1b5   : > { %8321 = vst [vmem:[#allocation65_spill] sm:$0xff] %v5237_v52  ;;  %v8332_v36 = vmax.f32 %v8312_v12, %v8331_v4  ;;  %v373_v25 = vmin.f32 %v221_v54, %v8311_v18  ;;  %v389_v28 = vmin.f32 %v236_v21, %v8306_v5  ;;  %v8335_v40 = vmax.f32 %v8334_v30, %v8313_v15 }
 0x1b6   : > { %8318 = vst [vmem:[#allocation64_spill] sm:$0xff] %v5232_v56  ;;  %8327 = vst [vmem:[#allocation68_spill] sm:$0xff] %v5247_v24  ;;  %v390_v62 = vmin.f32 %v236_v21, %v8307_v14  ;;  %v391_v61 = vmin.f32 %v236_v21, %v8308_v2  ;;  %v392_v54 = vmin.f32 %v236_v21, %v8309_v46 }
 0x1b7   : > { %8330 = vst [vmem:[#allocation69_spill] sm:$0xff] %v5252_v60  ;;  %v5257_v20 = vsub.f32 %v366_v57, %v8332_v36  ;;  %v5268_v29 = vsub.f32 %v367_v53, %v8335_v40  ;;  %v8337_v36 = vmax.f32 %v8334_v30, %v8316_v47  ;;  %v388_v57 = vmin.f32 %v236_v21, %v8305_v55 }
 0x1b8   : > { %v393_v32 = vmin.f32 %v236_v21, %v8310_v9  ;;  %v394_v51 = vmin.f32 %v236_v21, %v8311_v18  ;;  %v8339_v53 = vmax.f32 %v8334_v30, %v8319_v27  ;;  %v8344_v11 = vmax.f32 %v8343_v13, %v8316_v47 }
 0x1b9   : > { %8333 = vst [vmem:[#allocation70_spill] sm:$0xff] %v5257_v20  ;;  %8336 = vst [vmem:[#allocation8_spill] sm:$0xff] %v5268_v29  ;;  %v5273_v12 = vsub.f32 %v368_v58, %v8337_v36  ;;  %v8341_v58 = vmax.f32 %v8334_v30, %v8322_v37  ;;  %v5299_v17 = vsub.f32 %v390_v62, %v8346_v59 }
 0x1ba   : > { %v5284_v40 = vsub.f32 %v369_v41, %v8339_v53  ;;  %v5294_v45 = vsub.f32 %v389_v28, %v8344_v11  ;;  %v8348_v21 = vmax.f32 %v8343_v13, %v8322_v37  ;;  %v8350_v53 = vmax.f32 %v8343_v13, %v8325_v8 }
 0x1bb   : > { %8338 = vst [vmem:[#allocation71_spill] sm:$0xff] %v5273_v12  ;;  %v5289_v36 = vsub.f32 %v370_v44, %v8341_v58  ;;  %8347 = vst [vmem:[#allocation73_spill] sm:$0xff] %v5299_v17  ;;  %v8352_v58 = vmax.f32 %v8343_v13, %v8328_v16  ;;  %v8354_v28 = vmax.f32 %v8343_v13, %v8331_v4  ;;  %v8364_v17 = vld [vmem:[#allocation19_spill] sm:$0xff] }
 0x1bc   : > { %8340 = vst [vmem:[#allocation74_spill] sm:$0xff] %v5284_v40  ;;  %8345 = vst [vmem:[#allocation75_spill] sm:$0xff] %v5294_v45  ;;  %v5304_v41 = vsub.f32 %v391_v61, %v8348_v21  ;;  %v5309_v44 = vsub.f32 %v392_v54, %v8350_v53  ;;  %v8356_v61 = vmax.f32 %v8334_v30, %v8325_v8 }
 0x1bd   : > { %8342 = vst [vmem:[#allocation72_spill] sm:$0xff] %v5289_v36  ;;  %v5314_v11 = vsub.f32 %v393_v32, %v8352_v58  ;;  %v5319_v59 = vsub.f32 %v394_v51, %v8354_v28  ;;  %v8358_v54 = vmax.f32 %v8334_v30, %v8328_v16  ;;  %v8360_v32 = vmax.f32 %v8334_v30, %v8331_v4 }
 0x1be   : > { %8349 = vst [vmem:[#allocation78_spill] sm:$0xff] %v5304_v41  ;;  %8351 = vst [vmem:[#allocation76_spill] sm:$0xff] %v5309_v44  ;;  %v5325_v21 = vsub.f32 %v371_v10, %v8356_v61  ;;  %v8362_v10 = vmax.f32 %v8343_v13, %v8313_v15  ;;  %v8365_v31 = vmax.f32 %v8364_v17, %v8313_v15 }
 0x1bf   : > { %8353 = vst [vmem:[#allocation15_spill] sm:$0xff] %v5314_v11  ;;  %8355 = vst [vmem:[#allocation17_spill] sm:$0xff] %v5319_v59  ;;  %v5330_v53 = vsub.f32 %v372_v38, %v8358_v54  ;;  %v5335_v58 = vsub.f32 %v373_v25, %v8360_v32  ;;  %v246_v38 = vpop.permute.xlu0 %245  ;;  %v1329_v54 = vmax.f32 %v5337_v43, %v8046_v19 }
 0x1c0   : > { %8357 = vst [vmem:[#allocation152_spill] sm:$0xff] %v5325_v21  ;;  %v5345_v61 = vsub.f32 %v388_v57, %v8362_v10  ;;  %v402_v30 = vmin.f32 %v246_v38, %v8305_v55  ;;  %v403_v28 = vmin.f32 %v246_v38, %v8306_v5  ;;  %v1330_v10 = vmax.f32 %v5337_v43, %v8144_v0  ;;  %v1200_v57 = vpop.permute.xlu1 %1199 }
 0x1c1   : > { %8359 = vst [vmem:[#allocation153_spill] sm:$0xff] %v5330_v53  ;;  %8361 = vst [vmem:[#allocation154_spill] sm:$0xff] %v5335_v58  ;;  %v404_v25 = vmin.f32 %v246_v38, %v8307_v14  ;;  %v405_v32 = vmin.f32 %v246_v38, %v8308_v2  ;;  %v406_v45 = vmin.f32 %v246_v38, %v8309_v46  ;;  %v8382_v58 = vld [vmem:[#allocation18_spill] sm:$0xff] }
 0x1c2   : > { %8363 = vst [vmem:[#allocation155_spill] sm:$0xff] %v5345_v61  ;;  %v407_v61 = vmin.f32 %v246_v38, %v8310_v9  ;;  %v408_v62 = vmin.f32 %v246_v38, %v8311_v18  ;;  %v5378_v13 = vsub.f32 %v402_v30, %v8365_v31  ;;  %v8367_v44 = vmax.f32 %v8364_v17, %v8316_v47 }
 0x1c3   : > { %v8369_v51 = vmax.f32 %v8364_v17, %v8319_v27  ;;  %v8371_v20 = vmax.f32 %v8364_v17, %v8322_v37  ;;  %v8373_v38 = vmax.f32 %v8364_v17, %v8325_v8  ;;  %v1343_v30 = vmax.f32 %v1200_v57, %v8046_v19  ;;  %v256_v1 = vpop.permute.xlu0 %255 }
 0x1c4   : > { %8366 = vst [vmem:[#allocation19_spill] sm:$0xff] %v5378_v13  ;;  %v5383_v41 = vsub.f32 %v403_v28, %v8367_v44  ;;  %v1331_v28 = vmax.f32 %v5337_v43, %v8145_v23  ;;  %v1334_v44 = vmax.f32 %v5337_v43, %v8050_v49  ;;  %v1344_v59 = vmax.f32 %v1200_v57, %v8144_v0 }
 0x1c5   : > { %v5388_v11 = vsub.f32 %v404_v25, %v8369_v51  ;;  %v5393_v60 = vsub.f32 %v405_v32, %v8371_v20  ;;  %v5398_v31 = vsub.f32 %v406_v45, %v8373_v38  ;;  %v8375_v51 = vmax.f32 %v8364_v17, %v8328_v16 }
 0x1c6   : > { %8368 = vst [vmem:[#allocation156_spill] sm:$0xff] %v5383_v41  ;;  %v8377_v20 = vmax.f32 %v8364_v17, %v8331_v4  ;;  %v1332_v45 = vmax.f32 %v5337_v43, %v8146_v50  ;;  %v1333_v38 = vmax.f32 %v5337_v43, %v8147_v48  ;;  %v1347_v52 = vmax.f32 %v1200_v57, %v8147_v48 }
 0x1c7   : > { %8370 = vst [vmem:[#allocation157_spill] sm:$0xff] %v5388_v11  ;;  %8372 = vst [vmem:[#allocation158_spill] sm:$0xff] %v5393_v60  ;;  %v5407_v25 = vsub.f32 %v407_v61, %v8375_v51  ;;  %v1335_v61 = vmax.f32 %v5337_v43, %v8200_v42  ;;  %v8379_v51 = vld [vmem:[#allocation16_spill] sm:$0xff]  ;;  %v1348_v56 = vmax.f32 %v1200_v57, %v8050_v49 }
 0x1c8   : > { %8374 = vst [vmem:[#allocation159_spill] sm:$0xff] %v5398_v31  ;;  %v5412_v32 = vsub.f32 %v408_v62, %v8377_v20  ;;  %v8380_v24 = vmin.f32 %v8379_v51, %v3773_v39  ;;  %v1345_v62 = vmax.f32 %v1200_v57, %v8145_v23  ;;  %v1346_v20 = vmax.f32 %v1200_v57, %v8146_v50 }
 0x1c9   : > { %8376 = vst [vmem:[#allocation160_spill] sm:$0xff] %v5407_v25  ;;  %v1349_v63 = vmax.f32 %v1200_v57, %v8200_v42  ;;  %v8383_v53 = vmin.f32 %v8382_v58, %v3773_v39  ;;  %v8387_v21 = vmin.f32 %v8382_v58, %v3775_v35  ;;  %v8389_v40 = vmin.f32 %v8382_v58, %v3777_v34 }
 0x1ca   : > { %8378 = vst [vmem:[#allocation161_spill] sm:$0xff] %v5412_v32  ;;  %v5426_v17 = vsub.f32 %v8380_v24, %v1329_v54  ;;  %v8385_v24 = vmin.f32 %v8379_v51, %v3775_v35  ;;  %v8391_v57 = vmin.f32 %v8382_v58, %v3779_v33  ;;  %v421_v3 = vmin.f32 %v256_v1, %v8310_v9 }
 0x1cb   : > { %v5436_v43 = vsub.f32 %v8383_v53, %v1343_v30  ;;  %v5446_v36 = vsub.f32 %v8387_v21, %v1344_v59  ;;  %v5451_v7 = vsub.f32 %v8389_v40, %v1345_v62  ;;  %v8393_v30 = vmin.f32 %v8382_v58, %v8037_v22 }
 0x1cc   : > { %8381 = vst [vmem:[#allocation16_spill] sm:$0xff] %v5426_v17  ;;  %v5441_v54 = vsub.f32 %v8385_v24, %v1330_v10  ;;  %v5456_v53 = vsub.f32 %v8391_v57, %v1346_v20  ;;  %v8395_v24 = vmin.f32 %v8382_v58, %v8040_v6  ;;  %v8397_v21 = vmin.f32 %v8382_v58, %v8041_v26  ;;  %v1208_v58 = vpop.permute.xlu1 %1207 }
 0x1cd   : > { %8384 = vst [vmem:[#allocation18_spill] sm:$0xff] %v5436_v43  ;;  %8388 = vst [vmem:[#allocation163_spill] sm:$0xff] %v5446_v36  ;;  %v5461_v10 = vsub.f32 %v8393_v30, %v1347_v52  ;;  %v416_v62 = vmin.f32 %v256_v1, %v8305_v55  ;;  %v8399_v20 = vmin.f32 %v8379_v51, %v3777_v34 }
 0x1ce   : > { %8386 = vst [vmem:[#allocation162_spill] sm:$0xff] %v5441_v54  ;;  %8390 = vst [vmem:[#allocation164_spill] sm:$0xff] %v5451_v7  ;;  %v5466_v59 = vsub.f32 %v8395_v24, %v1348_v56  ;;  %v5471_v40 = vsub.f32 %v8397_v21, %v1349_v63  ;;  %v8401_v52 = vmin.f32 %v8379_v51, %v3779_v33 }
 0x1cf   : > { %8392 = vst [vmem:[#allocation165_spill] sm:$0xff] %v5456_v53  ;;  %8394 = vst [vmem:[#allocation166_spill] sm:$0xff] %v5461_v10  ;;  %v5477_v57 = vsub.f32 %v8399_v20, %v1331_v28  ;;  %v8403_v56 = vmin.f32 %v8379_v51, %v8037_v22  ;;  %v417_v63 = vmin.f32 %v256_v1, %v8306_v5 }
 0x1d0   : > { %8396 = vst [vmem:[#allocation167_spill] sm:$0xff] %v5466_v59  ;;  %8398 = vst [vmem:[#allocation168_spill] sm:$0xff] %v5471_v40  ;;  %v5482_v30 = vsub.f32 %v8401_v52, %v1332_v45  ;;  %v8405_v21 = vmin.f32 %v8379_v51, %v8040_v6  ;;  %v8407_v28 = vmin.f32 %v8379_v51, %v8041_v26  ;;  %v8409_v40 = vld [vmem:[#allocation21_spill] sm:$0xff] }
 0x1d1   : > { %8400 = vst [vmem:[#allocation169_spill] sm:$0xff] %v5477_v57  ;;  %v5487_v24 = vsub.f32 %v8403_v56, %v1333_v38  ;;  %v418_v52 = vmin.f32 %v256_v1, %v8307_v14  ;;  %v419_v38 = vmin.f32 %v256_v1, %v8308_v2  ;;  %v420_v56 = vmin.f32 %v256_v1, %v8309_v46 }
 0x1d2   : > { %8402 = vst [vmem:[#allocation170_spill] sm:$0xff] %v5482_v30  ;;  %v5493_v12 = vsub.f32 %v8405_v21, %v1334_v44  ;;  %v5498_v20 = vsub.f32 %v8407_v28, %v1335_v61  ;;  %v422_v29 = vmin.f32 %v256_v1, %v8311_v18  ;;  %v8410_v44 = vmax.f32 %v8409_v40, %v8313_v15 }
 0x1d3   : > { %8404 = vst [vmem:[#allocation171_spill] sm:$0xff] %v5487_v24  ;;  %v8412_v61 = vmax.f32 %v8409_v40, %v8316_v47  ;;  %v8414_v28 = vmax.f32 %v8409_v40, %v8319_v27  ;;  %v1357_v17 = vmax.f32 %v1208_v58, %v8046_v19  ;;  %v8416_v1 = vmax.f32 %v8409_v40, %v8322_v37 }
 0x1d4   : > { %8406 = vst [vmem:[#allocation172_spill] sm:$0xff] %v5493_v12  ;;  %8408 = vst [vmem:[#allocation173_spill] sm:$0xff] %v5498_v20  ;;  %v5509_v21 = vsub.f32 %v416_v62, %v8410_v44  ;;  %v8418_v62 = vmax.f32 %v8409_v40, %v8325_v8 }
 0x1d5   : > { %v5514_v51 = vsub.f32 %v417_v63, %v8412_v61  ;;  %v5519_v45 = vsub.f32 %v418_v52, %v8414_v28  ;;  %v5525_v59 = vsub.f32 %v419_v38, %v8416_v1  ;;  %v8420_v63 = vmax.f32 %v8409_v40, %v8328_v16 }
 0x1d6   : > { %8411 = vst [vmem:[#allocation21_spill] sm:$0xff] %v5509_v21  ;;  %v5530_v44 = vsub.f32 %v420_v56, %v8418_v62  ;;  %v8422_v52 = vmax.f32 %v8409_v40, %v8331_v4  ;;  %v266_v56 = vpop.permute.xlu0 %265  ;;  %v1360_v40 = vmax.f32 %v1208_v58, %v8146_v50  ;;  %v1362_v38 = vmax.f32 %v1208_v58, %v8050_v49 }
 0x1d7   : > { %8413 = vst [vmem:[#allocation174_spill] sm:$0xff] %v5514_v51  ;;  %8415 = vst [vmem:[#allocation175_spill] sm:$0xff] %v5519_v45  ;;  %v5535_v61 = vsub.f32 %v421_v3, %v8420_v63  ;;  %v1363_v1 = vmax.f32 %v1208_v58, %v8200_v42  ;;  %v8424_v45 = vld [vmem:[#allocation20_spill] sm:$0xff]  ;;  %v430_v63 = vmin.f32 %v266_v56, %v8305_v55 }
 0x1d8   : > { %8417 = vst [vmem:[#allocation176_spill] sm:$0xff] %v5525_v59  ;;  %8419 = vst [vmem:[#allocation177_spill] sm:$0xff] %v5530_v44  ;;  %v5540_v28 = vsub.f32 %v422_v29, %v8422_v52  ;;  %v1358_v59 = vmax.f32 %v1208_v58, %v8144_v0  ;;  %v1359_v29 = vmax.f32 %v1208_v58, %v8145_v23 }
 0x1d9   : > { %8421 = vst [vmem:[#allocation178_spill] sm:$0xff] %v5535_v61  ;;  %v1361_v52 = vmax.f32 %v1208_v58, %v8147_v48  ;;  %v8425_v30 = vmin.f32 %v8424_v45, %v3773_v39  ;;  %v8427_v3 = vmin.f32 %v8424_v45, %v3775_v35  ;;  %v8428_v13 = vmin.f32 %v8424_v45, %v3777_v34 }
 0x1da   : > { %8423 = vst [vmem:[#allocation179_spill] sm:$0xff] %v5540_v28  ;;  %v8429_v58 = vmin.f32 %v8424_v45, %v3779_v33  ;;  %v433_v11 = vmin.f32 %v266_v56, %v8308_v2  ;;  %v276_v54 = vpop.permute.xlu0 %275 }
 0x1db   : > { %v5558_v62 = vsub.f32 %v8425_v30, %v1357_v17  ;;  %v5563_v44 = vsub.f32 %v8427_v3, %v1358_v59  ;;  %v5569_v20 = vsub.f32 %v8428_v13, %v1359_v29  ;;  %v8431_v17 = vmin.f32 %v8424_v45, %v8037_v22 }
 0x1dc   : > { %v5574_v12 = vsub.f32 %v8429_v58, %v1360_v40  ;;  %v8433_v59 = vmin.f32 %v8424_v45, %v8040_v6  ;;  %v8435_v29 = vmin.f32 %v8424_v45, %v8041_v26  ;;  %v431_v40 = vmin.f32 %v266_v56, %v8306_v5  ;;  %v8437_v58 = vld [vmem:[#allocation23_spill] sm:$0xff] }
 0x1dd   : > { %8426 = vst [vmem:[#allocation20_spill] sm:$0xff] %v5558_v62  ;;  %v5579_v30 = vsub.f32 %v8431_v17, %v1361_v52  ;;  %v432_v13 = vmin.f32 %v266_v56, %v8307_v14  ;;  %v434_v45 = vmin.f32 %v266_v56, %v8309_v46  ;;  %v8438_v52 = vmax.f32 %v8437_v58, %v8313_v15  ;;  %v8484_v62 = vld [vmem:[#allocation24_spill] sm:$0xff] }
 0x1de   : > { %8430 = vst [vmem:[#allocation180_spill] sm:$0xff] %v5574_v12  ;;  %v5584_v3 = vsub.f32 %v8433_v59, %v1362_v38  ;;  %v5591_v57 = vsub.f32 %v8435_v29, %v1363_v1  ;;  %v1216_v59 = vpop.permute.xlu1 %1215  ;;  %v435_v1 = vmin.f32 %v266_v56, %v8310_v9  ;;  %v436_v29 = vmin.f32 %v266_v56, %v8311_v18 }
 0x1df   : > { %8432 = vst [vmem:[#allocation181_spill] sm:$0xff] %v5579_v30  ;;  %v5607_v31 = vsub.f32 %v430_v63, %v8438_v52  ;;  %v8440_v38 = vmax.f32 %v8437_v58, %v8316_v47  ;;  %v8441_v24 = vmax.f32 %v8437_v58, %v8319_v27  ;;  %v8443_v25 = vmax.f32 %v8437_v58, %v8322_v37 }
 0x1e0   : > { %8434 = vst [vmem:[#allocation182_spill] sm:$0xff] %v5584_v3  ;;  %8436 = vst [vmem:[#allocation183_spill] sm:$0xff] %v5591_v57  ;;  %v8445_v56 = vmax.f32 %v8437_v58, %v8325_v8  ;;  %v1371_v52 = vmax.f32 %v1216_v59, %v8046_v19  ;;  %v450_v53 = vmin.f32 %v276_v54, %v8311_v18 }
 0x1e1   : > { %8439 = vst [vmem:[#allocation23_spill] sm:$0xff] %v5607_v31  ;;  %v5612_v17 = vsub.f32 %v431_v40, %v8440_v38  ;;  %v5617_v32 = vsub.f32 %v432_v13, %v8441_v24  ;;  %v5622_v60 = vsub.f32 %v433_v11, %v8443_v25  ;;  %v8447_v24 = vmax.f32 %v8437_v58, %v8328_v16 }
 0x1e2   : > { %v5627_v63 = vsub.f32 %v434_v45, %v8445_v56  ;;  %v8449_v11 = vmax.f32 %v8437_v58, %v8331_v4  ;;  %v1372_v40 = vmax.f32 %v1216_v59, %v8144_v0  ;;  %v1375_v58 = vmax.f32 %v1216_v59, %v8147_v48  ;;  %v8453_v45 = vld [vmem:[#allocation22_spill] sm:$0xff] }
 0x1e3   : > { %8442 = vst [vmem:[#allocation184_spill] sm:$0xff] %v5617_v32  ;;  %8444 = vst [vmem:[#allocation185_spill] sm:$0xff] %v5622_v60  ;;  %v5635_v13 = vsub.f32 %v435_v1, %v8447_v24  ;;  %v1373_v1 = vmax.f32 %v1216_v59, %v8145_v23  ;;  %v1374_v24 = vmax.f32 %v1216_v59, %v8146_v50 }
 0x1e4   : > { %8446 = vst [vmem:[#allocation186_spill] sm:$0xff] %v5627_v63  ;;  %v5640_v25 = vsub.f32 %v436_v29, %v8449_v11  ;;  %v1376_v29 = vmax.f32 %v1216_v59, %v8050_v49  ;;  %v1377_v11 = vmax.f32 %v1216_v59, %v8200_v42  ;;  %v8454_v43 = vmin.f32 %v8453_v45, %v3773_v39 }
 0x1e5   : > { %8448 = vst [vmem:[#allocation187_spill] sm:$0xff] %v5635_v13  ;;  %v8455_v7 = vmin.f32 %v8453_v45, %v3775_v35  ;;  %v8456_v36 = vmin.f32 %v8453_v45, %v3777_v34  ;;  %v8458_v59 = vmin.f32 %v8453_v45, %v3779_v33  ;;  %v8462_v38 = vmin.f32 %v8453_v45, %v8040_v6 }
 0x1e6   : > { %8450 = vst [vmem:[#allocation188_spill] sm:$0xff] %v5640_v25  ;;  %v5656_v41 = vsub.f32 %v8454_v43, %v1371_v52  ;;  %v8460_v43 = vmin.f32 %v8453_v45, %v8037_v22  ;;  %v8485_v12 = vmin.f32 %v8484_v62, %v3773_v39  ;;  %v8489_v31 = vmin.f32 %v8484_v62, %v3777_v34 }
 0x1e7   : > { %v5662_v21 = vsub.f32 %v8455_v7, %v1372_v40  ;;  %v5667_v56 = vsub.f32 %v8456_v36, %v1373_v1  ;;  %v5672_v10 = vsub.f32 %v8458_v59, %v1374_v24  ;;  %v5682_v7 = vsub.f32 %v8462_v38, %v1376_v29 }
 0x1e8   : > { %v5677_v52 = vsub.f32 %v8460_v43, %v1375_v58  ;;  %v8464_v40 = vmin.f32 %v8453_v45, %v8041_v26  ;;  %v444_v1 = vmin.f32 %v276_v54, %v8305_v55  ;;  %v445_v58 = vmin.f32 %v276_v54, %v8306_v5  ;;  %v1224_v43 = vpop.permute.xlu1 %1223 }
 0x1e9   : > { %8457 = vst [vmem:[#allocation22_spill] sm:$0xff] %v5667_v56  ;;  %8459 = vst [vmem:[#allocation189_spill] sm:$0xff] %v5672_v10  ;;  %v446_v45 = vmin.f32 %v276_v54, %v8307_v14  ;;  %v449_v24 = vmin.f32 %v276_v54, %v8310_v9  ;;  %v8469_v56 = vld [vmem:[#allocation25_spill] sm:$0xff]  ;;  %v1385_v61 = vmax.f32 %v1224_v43, %v8046_v19 }
 0x1ea   : > { %8461 = vst [vmem:[#allocation190_spill] sm:$0xff] %v5677_v52  ;;  %8463 = vst [vmem:[#allocation191_spill] sm:$0xff] %v5682_v7  ;;  %v5687_v36 = vsub.f32 %v8464_v40, %v1377_v11  ;;  %v447_v11 = vmin.f32 %v276_v54, %v8308_v2  ;;  %v448_v40 = vmin.f32 %v276_v54, %v8309_v46 }
 0x1eb   : > { %v8470_v10 = vmax.f32 %v8469_v56, %v8313_v15  ;;  %v8472_v38 = vmax.f32 %v8469_v56, %v8316_v47  ;;  %v8474_v29 = vmax.f32 %v8469_v56, %v8319_v27  ;;  %v8476_v54 = vmax.f32 %v8469_v56, %v8322_v37 }
 0x1ec   : > { %8465 = vst [vmem:[#allocation192_spill] sm:$0xff] %v5687_v36  ;;  %v8586_v36 = vld [vmem:[#allocation60_spill] sm:$0xff] }
 0x1ed   : > { %v5705_v59 = vsub.f32 %v444_v1, %v8470_v10  ;;  %v5710_v52 = vsub.f32 %v445_v58, %v8472_v38  ;;  %v5715_v28 = vsub.f32 %v446_v45, %v8474_v29  ;;  %v5721_v51 = vsub.f32 %v447_v11, %v8476_v54 }
 0x1ee   : > { %v8478_v10 = vmax.f32 %v8469_v56, %v8325_v8  ;;  %v8480_v58 = vmax.f32 %v8469_v56, %v8328_v16  ;;  %v8482_v29 = vmax.f32 %v8469_v56, %v8331_v4  ;;  %v1388_v56 = vmax.f32 %v1224_v43, %v8146_v50 }
 0x1ef   : > { %8471 = vst [vmem:[#allocation25_spill] sm:$0xff] %v5705_v59  ;;  %8473 = vst [vmem:[#allocation193_spill] sm:$0xff] %v5710_v52  ;;  %v1390_v11 = vmax.f32 %v1224_v43, %v8050_v49  ;;  %v1391_v54 = vmax.f32 %v1224_v43, %v8200_v42  ;;  %v8584_v59 = vld [vmem:[#allocation69_spill] sm:$0xff]  ;;  %v8587_v25 = vmax.f32 %v8586_v36, 0.0 }
 0x1f0   : > { %8475 = vst [vmem:[#allocation194_spill] sm:$0xff] %v5715_v28  ;;  %8477 = vst [vmem:[#allocation195_spill] sm:$0xff] %v5721_v51  ;;  %v5726_v1 = vsub.f32 %v448_v40, %v8478_v10  ;;  %v5731_v38 = vsub.f32 %v449_v24, %v8480_v58  ;;  %v5736_v45 = vsub.f32 %v450_v53, %v8482_v29  ;;  %v286_v40 = vpop.permute.xlu0 %285 }
 0x1f1   : > { %v1386_v51 = vmax.f32 %v1224_v43, %v8144_v0  ;;  %v1387_v53 = vmax.f32 %v1224_v43, %v8145_v23  ;;  %v1389_v29 = vmax.f32 %v1224_v43, %v8147_v48  ;;  %v5754_v10 = vsub.f32 %v8485_v12, %v1385_v61 }
 0x1f2   : > { %8479 = vst [vmem:[#allocation196_spill] sm:$0xff] %v5726_v1  ;;  %8481 = vst [vmem:[#allocation197_spill] sm:$0xff] %v5731_v38  ;;  %v8487_v24 = vmin.f32 %v8484_v62, %v3775_v35  ;;  %v458_v58 = vmin.f32 %v286_v40, %v8305_v55  ;;  %v8490_v43 = vmin.f32 %v8484_v62, %v3779_v33  ;;  %v8548_v55 = vld [vmem:[#allocation53_spill] sm:$0xff] }
 0x1f3   : > { %8483 = vst [vmem:[#allocation198_spill] sm:$0xff] %v5736_v45  ;;  %8486 = vst [vmem:[#allocation24_spill] sm:$0xff] %v5754_v10  ;;  %v5765_v57 = vsub.f32 %v8489_v31, %v1387_v53  ;;  %v8491_v12 = vmin.f32 %v8484_v62, %v8037_v22  ;;  %v8493_v53 = vmin.f32 %v8484_v62, %v8041_v26  ;;  %v8616_v10 = vld [vmem:[#allocation169_spill] sm:$0xff] }
 0x1f4   : > { %v5759_v1 = vsub.f32 %v8487_v24, %v1386_v51  ;;  %v5770_v3 = vsub.f32 %v8490_v43, %v1388_v56  ;;  %v8492_v51 = vmin.f32 %v8484_v62, %v8040_v6  ;;  %v459_v56 = vmin.f32 %v286_v40, %v8306_v5 }
 0x1f5   : > { %v5775_v61 = vsub.f32 %v8491_v12, %v1389_v29  ;;  %v5787_v30 = vsub.f32 %v8493_v53, %v1391_v54  ;;  %v460_v31 = vmin.f32 %v286_v40, %v8307_v14  ;;  %v461_v32 = vmin.f32 %v286_v40, %v8308_v2  ;;  %v8494_v53 = vld [vmem:[#allocation26_spill] sm:$0xff] }
 0x1f6   : > { %8488 = vst [vmem:[#allocation199_spill] sm:$0xff] %v5759_v1  ;;  %v5780_v24 = vsub.f32 %v8492_v51, %v1390_v11  ;;  %v1232_v51 = vpop.permute.xlu1 %1231  ;;  %v462_v62 = vmin.f32 %v286_v40, %v8309_v46  ;;  %v463_v54 = vmin.f32 %v286_v40, %v8310_v9  ;;  %v464_v5 = vmin.f32 %v286_v40, %v8311_v18 }
 0x1f7   : > { %v8495_v29 = vmax.f32 %v8494_v53, %v8313_v15  ;;  %v8497_v11 = vmax.f32 %v8494_v53, %v8316_v47  ;;  %v8499_v14 = vmax.f32 %v8494_v53, %v8319_v27  ;;  %v8501_v46 = vmax.f32 %v8494_v53, %v8322_v37 }
 0x1f8   : > { %v8503_v18 = vmax.f32 %v8494_v53, %v8325_v8  ;;  %v1399_v40 = vmax.f32 %v1232_v51, %v8046_v19  ;;  %v8505_v47 = vmax.f32 %v8494_v53, %v8328_v16  ;;  %v8507_v27 = vmax.f32 %v8494_v53, %v8331_v4 }
 0x1f9   : > { %v5803_v43 = vsub.f32 %v458_v58, %v8495_v29  ;;  %v5808_v12 = vsub.f32 %v459_v56, %v8497_v11  ;;  %v5813_v2 = vsub.f32 %v460_v31, %v8499_v14  ;;  %v5818_v9 = vsub.f32 %v461_v32, %v8501_v46  ;;  %v8509_v11 = vld [vmem:[#allocation39_spill] sm:$0xff]  ;;  %v8524_v14 = vld [vmem:[#allocation22_spill] sm:$0xff]  ;;  %v8544_v46 = vld [vmem:[#allocation72_spill] sm:$0xff] }
 0x1fa   : > { %v5823_v15 = vsub.f32 %v462_v62, %v8503_v18  ;;  %v5829_v58 = vsub.f32 %v463_v54, %v8505_v47  ;;  %v5834_v31 = vsub.f32 %v464_v5, %v8507_v27  ;;  %v1400_v37 = vmax.f32 %v1232_v51, %v8144_v0  ;;  %v8527_v27 = vld [vmem:[#allocation8_spill] sm:$0xff] }
 0x1fb   : > { %8496 = vst [vmem:[#allocation26_spill] sm:$0xff] %v5803_v43  ;;  %8498 = vst [vmem:[#allocation200_spill] sm:$0xff] %v5808_v12  ;;  %v1401_v32 = vmax.f32 %v1232_v51, %v8145_v23  ;;  %v1402_v8 = vmax.f32 %v1232_v51, %v8146_v50  ;;  %v1403_v56 = vmax.f32 %v1232_v51, %v8147_v48  ;;  %v8543_v18 = vld [vmem:[#allocation88_spill] sm:$0xff] }
 0x1fc   : > { %8500 = vst [vmem:[#allocation201_spill] sm:$0xff] %v5813_v2  ;;  %8502 = vst [vmem:[#allocation202_spill] sm:$0xff] %v5818_v9  ;;  %v1404_v19 = vmax.f32 %v1232_v51, %v8050_v49  ;;  %v1405_v29 = vmax.f32 %v1232_v51, %v8200_v42  ;;  %v8510_v62 = vmin.f32 %v8509_v11, %v3773_v39  ;;  %v1933_v49 = vpop.permute.xlu0 %1932  ;;  %v8571_v9 = vld [vmem:[#allocation65_spill] sm:$0xff] }
 0x1fd   : > { %8504 = vst [vmem:[#allocation203_spill] sm:$0xff] %v5823_v15  ;;  %8506 = vst [vmem:[#allocation204_spill] sm:$0xff] %v5829_v58  ;;  %v8512_v0 = vmin.f32 %v8509_v11, %v3775_v35  ;;  %v8514_v23 = vmin.f32 %v8509_v11, %v3777_v34  ;;  %v8516_v50 = vmin.f32 %v8509_v11, %v3779_v33  ;;  %v8565_v58 = vld [vmem:[#allocation55_spill] sm:$0xff]  ;;  %v8572_v2 = vmax.f32 %v8571_v9, 0.0 }
 0x1fe   : > { %8508 = vst [vmem:[#allocation205_spill] sm:$0xff] %v5834_v31  ;;  %v5846_v4 = vsub.f32 %v8510_v62, %v1399_v40  ;;  %v8518_v39 = vmin.f32 %v8509_v11, %v8037_v22  ;;  %v8520_v35 = vmin.f32 %v8509_v11, %v8040_v6  ;;  %v8522_v34 = vmin.f32 %v8509_v11, %v8041_v26  ;;  %v8533_v62 = vld [vmem:[#allocation5_spill] sm:$0xff] }
 0x1ff   : > { %v5851_v54 = vsub.f32 %v8512_v0, %v1400_v37  ;;  %v5856_v48 = vsub.f32 %v8514_v23, %v1401_v32  ;;  %v5861_v42 = vsub.f32 %v8516_v50, %v1402_v8  ;;  %v8528_v37 = vmax.f32 %v8527_v27, 0.0  ;;  %v8529_v32 = vld [vmem:[#allocation41_spill] sm:$0xff]  ;;  %v8536_v23 = vld [vmem:[#allocation36_spill] sm:$0xff] }
 0x200   : > { %8511 = vst [vmem:[#allocation39_spill] sm:$0xff] %v5846_v4  ;;  %v5866_v51 = vsub.f32 %v8518_v39, %v1403_v56  ;;  %v5871_v5 = vsub.f32 %v8520_v35, %v1404_v19  ;;  %v5876_v53 = vsub.f32 %v8522_v34, %v1405_v29  ;;  %v8530_v8 = vmax.f32 %v8529_v32, 0.0  ;;  %v8531_v56 = vld [vmem:[#allocation71_spill] sm:$0xff]  ;;  %v8535_v11 = vld [vmem:[#allocation33_spill] sm:$0xff]  ;;  %v8537_v39 = vld [vmem:[#allocation74_spill] sm:$0xff] }
 0x201   : > { %8513 = vst [vmem:[#allocation206_spill] sm:$0xff] %v5851_v54  ;;  %8515 = vst [vmem:[#allocation207_spill] sm:$0xff] %v5856_v48  ;;  %v8532_v19 = vmax.f32 %v8531_v56, 0.0  ;;  %v8534_v26 = vmax.f32 %v8533_v62, 0.0  ;;  %v2079_v0 = vadd.f32 %v8535_v11, %v1933_v49  ;;  %v2080_v50 = vadd.f32 %v8536_v23, %v1933_v49  ;;  %v8539_v34 = vld [vmem:[#allocation42_spill] sm:$0xff]  ;;  %v8541_v27 = vld [vmem:[#allocation40_spill] sm:$0xff] }
 0x202   : > { %8517 = vst [vmem:[#allocation208_spill] sm:$0xff] %v5861_v42  ;;  %8519 = vst [vmem:[#allocation209_spill] sm:$0xff] %v5866_v51  ;;  %v5886_v6 = vmul.f32 %v8530_v8, %v8528_v37  ;;  %v8538_v35 = vmax.f32 %v8537_v39, 0.0  ;;  %v8540_v22 = vmax.f32 %v8539_v34, 0.0  ;;  %v2081_v32 = vadd.f32 %v8541_v27, %v1933_v49  ;;  %v8542_v37 = vld [vmem:[#allocation34_spill] sm:$0xff]  ;;  %v8549_v34 = vld [vmem:[#allocation152_spill] sm:$0xff] }
 0x203   : > { %8521 = vst [vmem:[#allocation210_spill] sm:$0xff] %v5871_v5  ;;  %8523 = vst [vmem:[#allocation211_spill] sm:$0xff] %v5876_v53  ;;  %v5892_v29 = vmul.f32 %v8534_v26, %v8532_v19  ;;  %v2082_v8 = vadd.f32 %v8542_v37, %v1933_v49  ;;  %v2083_v56 = vadd.f32 %v8543_v18, %v1933_v49  ;;  %v8545_v62 = vmax.f32 %v8544_v46, 0.0  ;;  %v8546_v19 = vld [vmem:[#allocation43_spill] sm:$0xff]  ;;  %v8551_v51 = vld [vmem:[#allocation45_spill] sm:$0xff] }
 0x204   : > { %v5900_v47 = vmul.f32 %v8540_v22, %v8538_v35  ;;  %v8547_v26 = vmax.f32 %v8546_v19, 0.0  ;;  %v2084_v53 = vadd.f32 %v8548_v55, %v1933_v49  ;;  %v5913_v39 = vsub.f32 %v2079_v0, %v5886_v6  ;;  %v8553_v46 = vld [vmem:[#allocation37_spill] sm:$0xff]  ;;  %v8556_v4 = vld [vmem:[#allocation51_spill] sm:$0xff] }
 0x205   : > { %v5916_v22 = vsub.f32 %v2080_v50, %v5892_v29  ;;  %v8550_v5 = vmax.f32 %v8549_v34, 0.0  ;;  %v8552_v42 = vmax.f32 %v8551_v51, 0.0  ;;  %v2085_v19 = vadd.f32 %v8553_v46, %v1933_v49  ;;  %v8554_v0 = vld [vmem:[#allocation153_spill] sm:$0xff]  ;;  %v8558_v51 = vld [vmem:[#allocation154_spill] sm:$0xff] }
 0x206   : > { %v5909_v16 = vmul.f32 %v8547_v26, %v8545_v62  ;;  %v5927_v62 = vsub.f32 %v2081_v32, %v5900_v47  ;;  %v8555_v54 = vmax.f32 %v8554_v0, 0.0  ;;  %v8557_v50 = vmax.f32 %v8556_v4, 0.0  ;;  %v8560_v32 = vld [vmem:[#allocation106_spill] sm:$0xff]  ;;  %v8590_v40 = vld [vmem:[#allocation61_spill] sm:$0xff] }
 0x207   : > { %v5923_v48 = vmul.f32 %v8552_v42, %v8550_v5  ;;  %3077 = vrcp.f32 %v5913_v39  ;;  %v8559_v5 = vmax.f32 %v8558_v51, 0.0  ;;  %v8561_v26 = vmax.f32 %v8560_v32, 0.0  ;;  %v8569_v32 = vld [vmem:[#allocation56_spill] sm:$0xff] }
 0x208   : > { %v5934_v31 = vmul.f32 %v8557_v50, %v8555_v54  ;;  %v5937_v34 = vsub.f32 %v2082_v8, %v5909_v16  ;;  %3079 = vrcp.f32 %v5916_v22  ;;  %v8563_v50 = vld [vmem:[#allocation63_spill] sm:$0xff]  ;;  %v8566_v49 = vmax.f32 %v8565_v58, 0.0 }
 0x209   : > { %v5946_v35 = vmul.f32 %v8561_v26, %v8559_v5  ;;  %v5949_v4 = vsub.f32 %v2083_v56, %v5923_v48  ;;  %v8564_v42 = vmax.f32 %v8563_v50, 0.0  ;;  %3081 = vrcp.f32 %v5927_v62  ;;  %v1928_v56 = vpop.permute.xlu1 %1927  ;;  %v8567_v26 = vld [vmem:[#allocation64_spill] sm:$0xff]  ;;  %v8573_v50 = vld [vmem:[#allocation57_spill] sm:$0xff] }
 0x20a   : > { %v5953_v8 = vsub.f32 %v2084_v53, %v5934_v31  ;;  %v8568_v5 = vmax.f32 %v8567_v26, 0.0  ;;  %v8570_v0 = vmax.f32 %v8569_v32, 0.0  ;;  %v8574_v12 = vmax.f32 %v8573_v50, 0.0  ;;  %v8581_v50 = vld [vmem:[#allocation59_spill] sm:$0xff] }
 0x20b   : > { %v5960_v15 = vmul.f32 %v8566_v49, %v8564_v42  ;;  %v5963_v51 = vsub.f32 %v2085_v19, %v5946_v35  ;;  %3083 = vrcp.f32 %v5937_v34  ;;  %v8575_v19 = vld [vmem:[#allocation67_spill] sm:$0xff]  ;;  %v8577_v49 = vld [vmem:[#allocation58_spill] sm:$0xff]  ;;  %v2072_v26 = vadd.f32 %v8535_v11, %v1928_v56 }
 0x20c   : > { %v5970_v53 = vmul.f32 %v8570_v0, %v8568_v5  ;;  %v5976_v58 = vmul.f32 %v8574_v12, %v8572_v2  ;;  %v8576_v42 = vmax.f32 %v8575_v19, 0.0  ;;  %v8578_v43 = vmax.f32 %v8577_v49, 0.0  ;;  %v8579_v5 = vld [vmem:[#allocation68_spill] sm:$0xff] }
 0x20d   : > { %v2073_v0 = vadd.f32 %v8536_v23, %v1928_v56  ;;  %3085 = vrcp.f32 %v5949_v4  ;;  %v2074_v9 = vadd.f32 %v8541_v27, %v1928_v56  ;;  %v2075_v12 = vadd.f32 %v8542_v37, %v1928_v56  ;;  %v1938_v36 = vpop.permute.xlu1 %1937 }
 0x20e   : > { %v5984_v54 = vmul.f32 %v8578_v43, %v8576_v42  ;;  %v2076_v2 = vadd.f32 %v8543_v18, %v1928_v56  ;;  %3087 = vrcp.f32 %v5953_v8  ;;  %v8580_v32 = vmax.f32 %v8579_v5, 0.0 }
 0x20f   : > { %v8582_v19 = vmax.f32 %v8581_v50, 0.0  ;;  %v2077_v42 = vadd.f32 %v8548_v55, %v1928_v56  ;;  %v6001_v49 = vsub.f32 %v2072_v26, %v5960_v15  ;;  %3089 = vrcp.f32 %v5963_v51 }
 0x210   : > { %v2078_v28 = vadd.f32 %v8553_v46, %v1928_v56  ;;  %v6010_v52 = vsub.f32 %v2073_v0, %v5970_v53  ;;  %v6013_v5 = vsub.f32 %v2074_v9, %v5976_v58  ;;  %v8585_v26 = vmax.f32 %v8584_v59, 0.0  ;;  %v8588_v56 = vld [vmem:[#allocation70_spill] sm:$0xff] }
 0x211   : > { %v5997_v43 = vmul.f32 %v8582_v19, %v8580_v32  ;;  %v6024_v13 = vsub.f32 %v2075_v12, %v5984_v54  ;;  %vm2303_vm0 = vcmp.gt.f32.partialorder %v5913_v39, 0.0  ;;  %v8589_v0 = vmax.f32 %v8588_v56, 0.0  ;;  %v3078_v59 = vpop.eup %3077 }
 0x212   : > { %v6021_v7 = vmul.f32 %v8587_v25, %v8585_v26  ;;  %v8591_v9 = vmax.f32 %v8590_v40, 0.0  ;;  %3091 = vrcp.f32 %v6001_v49  ;;  %vm2304_vm1 = vcmp.gt.f32.partialorder %v5916_v22, 0.0 }
 0x213   : > { %v6034_v50 = vsub.f32 %v2076_v2, %v5997_v43  ;;  %vm2305_vm2 = vcmp.gt.f32.partialorder %v5927_v62, 0.0  ;;  %3093 = vrcp.f32 %v6010_v52  ;;  %vm2306_vm3 = vcmp.gt.f32.partialorder %v5937_v34, 0.0  ;;  %v3080_v2 = vpop.eup %3079  ;;  %v8592_v62 = vld [vmem:[#allocation28_spill] sm:$0xff] }
 0x214   : > { %v6031_v63 = vmul.f32 %v8591_v9, %v8589_v0  ;;  %v6040_v25 = vsub.f32 %v2077_v42, %v6021_v7  ;;  %v2423_v40 = vmul.f32 %v3078_v59, %v5886_v6  ;;  %3095 = vrcp.f32 %v6013_v5  ;;  %v3082_v42 = vpop.eup %3081 }
 0x215   : > { %vm2307_vm4 = vcmp.gt.f32.partialorder %v5949_v4, 0.0  ;;  %vm2308_vm5 = vcmp.gt.f32.partialorder %v5953_v8, 0.0  ;;  %vm2309_vm6 = vcmp.gt.f32.partialorder %v5963_v51, 0.0  ;;  %3097 = vrcp.f32 %v6024_v13  ;;  %v3084_v56 = vpop.eup %3083  ;;  %v8595_v4 = vld [vmem:[#allocation108_spill] sm:$0xff]  ;;  %v8597_v8 = vld [vmem:[#allocation110_spill] sm:$0xff] }
 0x216   : > { %v6046_v12 = vsub.f32 %v2078_v28, %v6031_v63  ;;  %v2425_v26 = vmul.f32 %v3080_v2, %v5892_v29  ;;  %v2639_v6 = vsel %vm2303_vm0, %v2423_v40, 0.0  ;;  %vm2296_vm7 = vcmp.gt.f32.partialorder %v6001_v49, 0.0 }
 0x217   : > { %3099 = vrcp.f32 %v6034_v50  ;;  %v2086_v28 = vadd.f32 %v8535_v11, %v1938_v36  ;;  %v2427_v0 = vmul.f32 %v3082_v42, %v5900_v47  ;;  %2751 = vst [vmem:[%s6061_s29 + $0x38] sm:$0xff] %v2639_v6  ;;  %vm2297_vm8 = vcmp.gt.f32.partialorder %v6010_v52, 0.0  ;;  %v3086_v9 = vpop.eup %3085 }
 0x218   : > { %3101 = vrcp.f32 %v6040_v25  ;;  %v2087_v29 = vadd.f32 %v8536_v23, %v1938_v36  ;;  %v2088_v39 = vadd.f32 %v8541_v27, %v1938_v36  ;;  %v2429_v59 = vmul.f32 %v3084_v56, %v5909_v16  ;;  %v3088_v2 = vpop.eup %3087 }
 0x219   : > { %v2640_v47 = vsel %vm2304_vm1, %v2425_v26, 0.0  ;;  %vm2298_vm9 = vcmp.gt.f32.partialorder %v6013_v5, 0.0  ;;  %3103 = vrcp.f32 %v6046_v12  ;;  %v2089_v40 = vadd.f32 %v8542_v37, %v1938_v36  ;;  %v3090_v26 = vpop.eup %3089 }
 0x21a   : > { %v2431_v42 = vmul.f32 %v3086_v9, %v5923_v48  ;;  %v2641_v6 = vsel %vm2305_vm2, %v2427_v0, 0.0  ;;  %2752 = vst [vmem:[%s6061_s29 + $0x40] sm:$0xff] %v2640_v47  ;;  %vm2299_vm10 = vcmp.gt.f32.partialorder %v6024_v13, 0.0  ;;  %v2090_v16 = vadd.f32 %v8543_v18, %v1938_v36 }
 0x21b   : > { %v2091_v22 = vadd.f32 %v8548_v55, %v1938_v36  ;;  %v2433_v56 = vmul.f32 %v3088_v2, %v5934_v31  ;;  %v2642_v19 = vsel %vm2306_vm3, %v2429_v59, 0.0  ;;  %2753 = vst [vmem:[%s6061_s29 + $0x48] sm:$0xff] %v2641_v6  ;;  %vm2300_vm11 = vcmp.gt.f32.partialorder %v6034_v50, 0.0  ;;  %v8593_v31 = vld [vmem:[#allocation6_spill] sm:$0xff]  ;;  %v1943_v59 = vpop.permute.xlu1 %1942 }
 0x21c   : > { %v2092_v48 = vadd.f32 %v8553_v46, %v1938_v36  ;;  %v6088_v0 = vsub.f32 %v2086_v28, %v8592_v62  ;;  %v2435_v9 = vmul.f32 %v3090_v26, %v5946_v35  ;;  %v2643_v47 = vsel %vm2307_vm4, %v2431_v42, 0.0  ;;  %2754 = vst [vmem:[%s6061_s29 + $0x50] sm:$0xff] %v2642_v19  ;;  %v3092_v2 = vpop.eup %3091  ;;  %v8594_v28 = vld [vmem:[#allocation107_spill] sm:$0xff]  ;;  %v8596_v26 = vld [vmem:[#allocation109_spill] sm:$0xff] }
 0x21d   : > { %vm2301_vm12 = vcmp.gt.f32.partialorder %v6040_v25, 0.0  ;;  %v6096_v34 = vsub.f32 %v2087_v29, %v8593_v31  ;;  %v2644_v36 = vsel %vm2308_vm5, %v2433_v56, 0.0  ;;  %2755 = vst [vmem:[%s6061_s29 + $0x58] sm:$0xff] %v2643_v47  ;;  %vm2302_vm13 = vcmp.gt.f32.partialorder %v6046_v12, 0.0  ;;  %v3094_v19 = vpop.eup %3093  ;;  %v8603_v12 = vld [vmem:[#allocation83_spill] sm:$0xff] }
 0x21e   : > { %v6103_v35 = vsub.f32 %v2088_v39, %v8594_v28  ;;  %v6106_v42 = vsub.f32 %v2089_v40, %v8595_v4  ;;  %v2645_v6 = vsel %vm2309_vm6, %v2435_v9, 0.0  ;;  %2756 = vst [vmem:[%s6061_s29 + $0x60] sm:$0xff] %v2644_v36  ;;  %v2409_v29 = vmul.f32 %v3092_v2, %v5960_v15  ;;  %v3096_v47 = vpop.eup %3095  ;;  %v8598_v40 = vld [vmem:[#allocation111_spill] sm:$0xff] }
 0x21f   : > { %v6113_v38 = vsub.f32 %v2090_v16, %v8596_v26  ;;  %v6116_v56 = vsub.f32 %v2091_v22, %v8597_v8  ;;  %2757 = vst [vmem:[%s6061_s29 + $0x68] sm:$0xff] %v2645_v6  ;;  %v2411_v39 = vmul.f32 %v3094_v19, %v5970_v53  ;;  %v6121_v32 = vsub.f32 %v2092_v48, %v8598_v40  ;;  %v3098_v15 = vpop.eup %3097 }
 0x220   : > { %3105 = vrcp.f32 %v6088_v0  ;;  %v2093_v51 = vadd.f32 %v8535_v11, %v1943_v59  ;;  %v2413_v16 = vmul.f32 %v3096_v47, %v5976_v58  ;;  %v2632_v9 = vsel %vm2296_vm7, %v2409_v29, 0.0 }
 0x221   : > { %3107 = vrcp.f32 %v6096_v34  ;;  %v2094_v22 = vadd.f32 %v8536_v23, %v1943_v59  ;;  %v3100_v53 = vpop.eup %3099  ;;  %v2415_v48 = vmul.f32 %v3098_v15, %v5984_v54  ;;  %v2633_v2 = vsel %vm2297_vm8, %v2411_v39, 0.0  ;;  %2744 = vst [vmem:[%s6061_s29] sm:$0xff] %v2632_v9  ;;  %v8599_v15 = vld [vmem:[#allocation27_spill] sm:$0xff]  ;;  %v8600_v9 = vld [vmem:[#allocation30_spill] sm:$0xff] }
 0x222   : > { %3109 = vrcp.f32 %v6103_v35  ;;  %v2095_v58 = vadd.f32 %v8541_v27, %v1943_v59  ;;  %v3102_v36 = vpop.eup %3101  ;;  %v2417_v49 = vmul.f32 %v3100_v53, %v5997_v43  ;;  %v2634_v19 = vsel %vm2298_vm9, %v2413_v16, 0.0  ;;  %2745 = vst [vmem:[%s6061_s29 + $0x8] sm:$0xff] %v2633_v2 }
 0x223   : > { %3111 = vrcp.f32 %v6106_v42  ;;  %v2096_v54 = vadd.f32 %v8542_v37, %v1943_v59  ;;  %v3104_v52 = vpop.eup %3103  ;;  %v2419_v6 = vmul.f32 %v3102_v36, %v6021_v7  ;;  %v2635_v29 = vsel %vm2299_vm10, %v2415_v48, 0.0  ;;  %2746 = vst [vmem:[%s6061_s29 + $0x10] sm:$0xff] %v2634_v19  ;;  %v8601_v48 = vld [vmem:[#allocation80_spill] sm:$0xff] }
 0x224   : > { %3113 = vrcp.f32 %v6113_v38  ;;  %v2097_v43 = vadd.f32 %v8543_v18, %v1943_v59  ;;  %v2421_v5 = vmul.f32 %v3104_v52, %v6031_v63  ;;  %v2636_v47 = vsel %vm2300_vm11, %v2417_v49, 0.0  ;;  %2747 = vst [vmem:[%s6061_s29 + $0x18] sm:$0xff] %v2635_v29  ;;  %v8604_v49 = vld [vmem:[#allocation84_spill] sm:$0xff]  ;;  %v8605_v52 = vld [vmem:[#allocation85_spill] sm:$0xff]  ;;  %v8610_v63 = vld [vmem:[#allocation75_spill] sm:$0xff] }
 0x225   : > { %3115 = vrcp.f32 %v6116_v56  ;;  %v2098_v7 = vadd.f32 %v8548_v55, %v1943_v59  ;;  %v2637_v13 = vsel %vm2301_vm12, %v2419_v6, 0.0  ;;  %2748 = vst [vmem:[%s6061_s29 + $0x20] sm:$0xff] %v2636_v47  ;;  %v2099_v39 = vadd.f32 %v8553_v46, %v1943_v59  ;;  %v8602_v59 = vld [vmem:[#allocation82_spill] sm:$0xff]  ;;  %v8608_v47 = vld [vmem:[#allocation16_spill] sm:$0xff] }
 0x226   : > { %3117 = vrcp.f32 %v6121_v32  ;;  %v6160_v16 = vsub.f32 %v2093_v51, %v8599_v15  ;;  %v2638_v50 = vsel %vm2302_vm13, %v2421_v5, 0.0  ;;  %2749 = vst [vmem:[%s6061_s29 + $0x28] sm:$0xff] %v2637_v13  ;;  %v6167_v53 = vsub.f32 %v2094_v22, %v8600_v9 }
 0x227   : > { %v6170_v25 = vsub.f32 %v2095_v58, %v8601_v48  ;;  %2750 = vst [vmem:[%s6061_s29 + $0x30] sm:$0xff] %v2638_v50  ;;  %vm2310_vm14 = vcmp.gt.f32.partialorder %v6088_v0, 0.0  ;;  %v6177_v51 = vsub.f32 %v2096_v54, %v8602_v59  ;;  %vm2311_vm15 = vcmp.gt.f32.partialorder %v6096_v34, 0.0 }
 0x228   : > { %vm2312_vm0 = vcmp.gt.f32.partialorder %v6103_v35, 0.0  ;;  %v6182_v22 = vsub.f32 %v2097_v43, %v8603_v12  ;;  %3119 = vrcp.f32 %v6160_v16  ;;  %vm2313_vm1 = vcmp.gt.f32.partialorder %v6106_v42, 0.0  ;;  %v8606_v43 = vld [vmem:[#allocation155_spill] sm:$0xff] }
 0x229   : > { %v6187_v19 = vsub.f32 %v2098_v7, %v8604_v49  ;;  %v6190_v6 = vsub.f32 %v2099_v39, %v8605_v52  ;;  %3121 = vrcp.f32 %v6167_v53  ;;  %v8607_v5 = vmax.f32 %v8606_v43, 0.0  ;;  %v8612_v7 = vld [vmem:[#allocation162_spill] sm:$0xff] }
 0x22a   : > { %v3106_v58 = vpop.eup %3105  ;;  %3123 = vrcp.f32 %v6170_v25  ;;  %v8609_v13 = vmax.f32 %v8608_v47, 0.0  ;;  %v8611_v36 = vmax.f32 %v8610_v63, 0.0  ;;  %v8613_v2 = vmax.f32 %v8612_v7, 0.0 }
 0x22b   : > { %v3108_v54 = vpop.eup %3107  ;;  %v2437_v29 = vmul.f32 %v3106_v58, %v8592_v62  ;;  %3125 = vrcp.f32 %v6177_v51  ;;  %v8614_v62 = vld [vmem:[#allocation73_spill] sm:$0xff]  ;;  %v8617_v43 = vmax.f32 %v8616_v10, 0.0  ;;  %v8624_v10 = vld [vmem:[#allocation171_spill] sm:$0xff]  ;;  %vm2314_vm2 = vcmp.gt.f32.partialorder %v6113_v38, 0.0 }
 0x22c   : > { %v6199_v50 = vmul.f32 %v8609_v13, %v8607_v5  ;;  %v6205_v39 = vmul.f32 %v8613_v2, %v8611_v36  ;;  %v3110_v45 = vpop.eup %3109  ;;  %v2439_v1 = vmul.f32 %v3108_v54, %v8593_v31  ;;  %v8615_v58 = vmax.f32 %v8614_v62, 0.0  ;;  %v8618_v5 = vld [vmem:[#allocation78_spill] sm:$0xff]  ;;  %v8622_v54 = vld [vmem:[#allocation76_spill] sm:$0xff] }
 0x22d   : > { %v8619_v47 = vmax.f32 %v8618_v5, 0.0  ;;  %v8620_v13 = vld [vmem:[#allocation170_spill] sm:$0xff]  ;;  %v3112_v2 = vpop.eup %3111  ;;  %v2441_v36 = vmul.f32 %v3110_v45, %v8594_v28  ;;  %v2646_v31 = vsel %vm2310_vm14, %v2437_v29, 0.0  ;;  %3127 = vrcp.f32 %v6182_v22  ;;  %v8626_v45 = vld [vmem:[#allocation15_spill] sm:$0xff]  ;;  %v8628_v28 = vld [vmem:[#allocation172_spill] sm:$0xff] }
 0x22e   : > { %v6213_v33 = vmul.f32 %v8617_v43, %v8615_v58  ;;  %v8621_v63 = vmax.f32 %v8620_v13, 0.0  ;;  %v8623_v7 = vmax.f32 %v8622_v54, 0.0  ;;  %v8625_v62 = vmax.f32 %v8624_v10, 0.0  ;;  %v1948_v43 = vpop.permute.xlu0 %1947  ;;  %v3114_v5 = vpop.eup %3113  ;;  %2758 = vst [vmem:[%s6061_s29 + $0x70] sm:$0xff] %v2646_v31 }
 0x22f   : > { %v2647_v13 = vsel %vm2311_vm15, %v2439_v1, 0.0  ;;  %3129 = vrcp.f32 %v6187_v19  ;;  %v8627_v0 = vmax.f32 %v8626_v45, 0.0  ;;  %v8629_v29 = vmax.f32 %v8628_v28, 0.0  ;;  %v3116_v54 = vpop.eup %3115  ;;  %v8630_v1 = vld [vmem:[#allocation17_spill] sm:$0xff] }
 0x230   : > { %v6219_v60 = vmul.f32 %v8621_v63, %v8619_v47  ;;  %v6229_v58 = vmul.f32 %v8625_v62, %v8623_v7  ;;  %v2443_v47 = vmul.f32 %v3112_v2, %v8595_v4  ;;  %v2445_v7 = vmul.f32 %v3114_v5, %v8596_v26  ;;  %2759 = vst [vmem:[%s6061_s29 + $0x78] sm:$0xff] %v2647_v13  ;;  %v8632_v4 = vld [vmem:[#allocation173_spill] sm:$0xff]  ;;  %v3118_v62 = vpop.eup %3117 }
 0x231   : > { %v6240_v63 = vmul.f32 %v8629_v29, %v8627_v0  ;;  %v2648_v10 = vsel %vm2312_vm0, %v2441_v36, 0.0  ;;  %3131 = vrcp.f32 %v6190_v6  ;;  %v8631_v34 = vmax.f32 %v8630_v1, 0.0 }
 0x232   : > { %v8633_v2 = vmax.f32 %v8632_v4, 0.0  ;;  %v2447_v45 = vmul.f32 %v3116_v54, %v8597_v8  ;;  %v2649_v35 = vsel %vm2313_vm1, %v2443_v47, 0.0  ;;  %2760 = vst [vmem:[%s6061_s29 + $0x80] sm:$0xff] %v2648_v10  ;;  %v2100_v26 = vadd.f32 %v8535_v11, %v1948_v43  ;;  %v3120_v8 = vpop.eup %3119 }
 0x233   : > { %vm2315_vm3 = vcmp.gt.f32.partialorder %v6116_v56, 0.0  ;;  %v2449_v36 = vmul.f32 %v3118_v62, %v8598_v40  ;;  %v2650_v5 = vsel %vm2314_vm2, %v2445_v7, 0.0  ;;  %2761 = vst [vmem:[%s6061_s29 + $0x88] sm:$0xff] %v2649_v35  ;;  %v2101_v13 = vadd.f32 %v8536_v23, %v1948_v43  ;;  %v3122_v40 = vpop.eup %3121 }
 0x234   : > { %v6251_v31 = vmul.f32 %v8633_v2, %v8631_v34  ;;  %vm2316_vm4 = vcmp.gt.f32.partialorder %v6121_v32, 0.0  ;;  %v2651_v38 = vsel %vm2315_vm3, %v2447_v45, 0.0  ;;  %2762 = vst [vmem:[%s6061_s29 + $0x90] sm:$0xff] %v2650_v5  ;;  %vm2317_vm5 = vcmp.gt.f32.partialorder %v6160_v16, 0.0  ;;  %v3124_v29 = vpop.eup %3123 }
 0x235   : > { %v2102_v42 = vadd.f32 %v8541_v27, %v1948_v43  ;;  %v2652_v47 = vsel %vm2316_vm4, %v2449_v36, 0.0  ;;  %2763 = vst [vmem:[%s6061_s29 + $0x98] sm:$0xff] %v2651_v38  ;;  %vm2318_vm6 = vcmp.gt.f32.partialorder %v6167_v53, 0.0  ;;  %vm2319_vm7 = vcmp.gt.f32.partialorder %v6170_v25, 0.0  ;;  %v3126_v1 = vpop.eup %3125 }
 0x236   : > { %v2103_v56 = vadd.f32 %v8542_v37, %v1948_v43  ;;  %2764 = vst [vmem:[%s6061_s29 + $0xa0] sm:$0xff] %v2652_v47  ;;  %vm2320_vm8 = vcmp.gt.f32.partialorder %v6177_v51, 0.0  ;;  %v2451_v32 = vmul.f32 %v3120_v8, %v8599_v15  ;;  %v2104_v0 = vadd.f32 %v8543_v18, %v1948_v43  ;;  %v1953_v51 = vpop.permute.xlu1 %1952 }
 0x237   : > { %v6276_v28 = vsub.f32 %v2100_v26, %v6199_v50  ;;  %vm2321_vm9 = vcmp.gt.f32.partialorder %v6182_v22, 0.0  ;;  %v2453_v54 = vmul.f32 %v3122_v40, %v8600_v9  ;;  %v2105_v7 = vadd.f32 %v8548_v55, %v1948_v43  ;;  %v3128_v62 = vpop.eup %3127  ;;  %v8636_v22 = vld [vmem:[#allocation86_spill] sm:$0xff]  ;;  %v8640_v40 = vld [vmem:[#allocation87_spill] sm:$0xff] }
 0x238   : > { %v6282_v10 = vsub.f32 %v2101_v13, %v6205_v39  ;;  %v2455_v15 = vmul.f32 %v3124_v29, %v8601_v48  ;;  %v2653_v34 = vsel %vm2317_vm5, %v2451_v32, 0.0  ;;  %v2106_v4 = vadd.f32 %v8553_v46, %v1948_v43 }
 0x239   : > { %v6289_v2 = vsub.f32 %v2102_v42, %v6213_v33  ;;  %vm2322_vm10 = vcmp.gt.f32.partialorder %v6187_v19, 0.0  ;;  %v2457_v9 = vmul.f32 %v3126_v1, %v8602_v59  ;;  %v2654_v45 = vsel %vm2318_vm6, %v2453_v54, 0.0  ;;  %2765 = vst [vmem:[%s6061_s29 + $0xa8] sm:$0xff] %v2653_v34  ;;  %v3130_v16 = vpop.eup %3129  ;;  %v8644_v54 = vld [vmem:[#allocation46_spill] sm:$0xff] }
 0x23a   : > { %v6297_v48 = vsub.f32 %v2103_v56, %v6219_v60  ;;  %v2459_v43 = vmul.f32 %v3128_v62, %v8603_v12  ;;  %v2655_v35 = vsel %vm2319_vm7, %v2455_v15, 0.0  ;;  %2766 = vst [vmem:[%s6061_s29 + $0xb0] sm:$0xff] %v2654_v45  ;;  %v6304_v26 = vsub.f32 %v2104_v0, %v6229_v58  ;;  %v8638_v56 = vld [vmem:[#allocation90_spill] sm:$0xff]  ;;  %v8642_v0 = vld [vmem:[#allocation92_spill] sm:$0xff]  ;;  %v8646_v15 = vld [vmem:[#allocation93_spill] sm:$0xff] }
 0x23b   : > { %3133 = vrcp.f32 %v6276_v28  ;;  %v3132_v53 = vpop.eup %3131  ;;  %v2461_v59 = vmul.f32 %v3130_v16, %v8604_v49  ;;  %v2656_v36 = vsel %vm2320_vm8, %v2457_v9, 0.0  ;;  %2767 = vst [vmem:[%s6061_s29 + $0xb8] sm:$0xff] %v2655_v35  ;;  %v6312_v12 = vsub.f32 %v2105_v7, %v6240_v63 }
 0x23c   : > { %3135 = vrcp.f32 %v6282_v10  ;;  %v2463_v25 = vmul.f32 %v3132_v53, %v8605_v52  ;;  %v2657_v5 = vsel %vm2321_vm9, %v2459_v43, 0.0  ;;  %2768 = vst [vmem:[%s6061_s29 + $0xc0] sm:$0xff] %v2656_v36  ;;  %v6320_v13 = vsub.f32 %v2106_v4, %v6251_v31  ;;  %v8634_v52 = vld [vmem:[#allocation89_spill] sm:$0xff]  ;;  %v8648_v4 = vld [vmem:[#allocation47_spill] sm:$0xff] }
 0x23d   : > { %3137 = vrcp.f32 %v6289_v2  ;;  %vm2323_vm11 = vcmp.gt.f32.partialorder %v6190_v6, 0.0  ;;  %v2658_v49 = vsel %vm2322_vm10, %v2461_v59, 0.0  ;;  %2769 = vst [vmem:[%s6061_s29 + $0xc8] sm:$0xff] %v2657_v5  ;;  %v8635_v38 = vmax.f32 %v8634_v52, 0.0 }
 0x23e   : > { %3139 = vrcp.f32 %v6297_v48  ;;  %v8637_v42 = vmax.f32 %v8636_v22, 0.0  ;;  %v2659_v47 = vsel %vm2323_vm11, %v2463_v25, 0.0  ;;  %2770 = vst [vmem:[%s6061_s29 + $0xd0] sm:$0xff] %v2658_v49  ;;  %vm2324_vm12 = vcmp.gt.f32.partialorder %v6276_v28, 0.0  ;;  %v8650_v49 = vld [vmem:[#allocation94_spill] sm:$0xff] }
 0x23f   : > { %3141 = vrcp.f32 %v6304_v26  ;;  %v8639_v6 = vmax.f32 %v8638_v56, 0.0  ;;  %v8641_v19 = vmax.f32 %v8640_v40, 0.0  ;;  %v8643_v29 = vmax.f32 %v8642_v0, 0.0  ;;  %2771 = vst [vmem:[%s6061_s29 + $0xd8] sm:$0xff] %v2659_v47  ;;  %v8654_v56 = vld [vmem:[#allocation19_spill] sm:$0xff] }
 0x240   : > { %v6332_v8 = vmul.f32 %v8637_v42, %v8635_v38  ;;  %v8645_v7 = vmax.f32 %v8644_v54, 0.0  ;;  %vm2325_vm13 = vcmp.gt.f32.partialorder %v6282_v10, 0.0  ;;  %3143 = vrcp.f32 %v6312_v12  ;;  %v8652_v38 = vld [vmem:[#allocation48_spill] sm:$0xff]  ;;  %v8658_v0 = vld [vmem:[#allocation95_spill] sm:$0xff]  ;;  %v8660_v54 = vld [vmem:[#allocation50_spill] sm:$0xff] }
 0x241   : > { %v6341_v32 = vmul.f32 %v8641_v19, %v8639_v6  ;;  %v8647_v34 = vmax.f32 %v8646_v15, 0.0  ;;  %v8649_v62 = vmax.f32 %v8648_v4, 0.0  ;;  %v2107_v45 = vadd.f32 %v8535_v11, %v1953_v51  ;;  %v8682_v10 = vld [vmem:[#allocation160_spill] sm:$0xff] }
 0x242   : > { %v6347_v1 = vmul.f32 %v8645_v7, %v8643_v29  ;;  %v2108_v16 = vadd.f32 %v8536_v23, %v1953_v51  ;;  %3145 = vrcp.f32 %v6320_v13  ;;  %v2109_v43 = vadd.f32 %v8541_v27, %v1953_v51 }
 0x243   : > { %v6356_v9 = vmul.f32 %v8649_v62, %v8647_v34  ;;  %v2110_v35 = vadd.f32 %v8542_v37, %v1953_v51  ;;  %v2111_v53 = vadd.f32 %v8543_v18, %v1953_v51  ;;  %v2112_v59 = vadd.f32 %v8548_v55, %v1953_v51  ;;  %v8662_v34 = vld [vmem:[#allocation96_spill] sm:$0xff]  ;;  %v8664_v62 = vld [vmem:[#allocation54_spill] sm:$0xff] }
 0x244   : > { %v2113_v36 = vadd.f32 %v8553_v46, %v1953_v51  ;;  %v6367_v25 = vsub.f32 %v2107_v45, %v6332_v8  ;;  %v6370_v5 = vsub.f32 %v2108_v16, %v6341_v32  ;;  %vm2326_vm14 = vcmp.gt.f32.partialorder %v6289_v2, 0.0  ;;  %v8656_v51 = vld [vmem:[#allocation18_spill] sm:$0xff] }
 0x245   : > { %v8651_v52 = vmax.f32 %v8650_v49, 0.0  ;;  %v8653_v22 = vmax.f32 %v8652_v38, 0.0  ;;  %v6380_v47 = vsub.f32 %v2109_v43, %v6347_v1  ;;  %v8655_v6 = vmax.f32 %v8654_v56, 0.0  ;;  %v3134_v49 = vpop.eup %3133 }
 0x246   : > { %v8657_v40 = vmax.f32 %v8656_v51, 0.0  ;;  %vm2327_vm15 = vcmp.gt.f32.partialorder %v6297_v48, 0.0  ;;  %v8659_v29 = vmax.f32 %v8658_v0, 0.0  ;;  %v8661_v7 = vmax.f32 %v8660_v54, 0.0  ;;  %v3136_v38 = vpop.eup %3135  ;;  %v8668_v0 = vld [vmem:[#allocation163_spill] sm:$0xff] }
 0x247   : > { %v6377_v42 = vmul.f32 %v8653_v22, %v8651_v52  ;;  %v8663_v4 = vmax.f32 %v8662_v34, 0.0  ;;  %v8665_v45 = vmax.f32 %v8664_v62, 0.0  ;;  %v6402_v43 = vsub.f32 %v2110_v35, %v6356_v9 }
 0x248   : > { %v6386_v19 = vmul.f32 %v8657_v40, %v8655_v6  ;;  %v6393_v15 = vmul.f32 %v8661_v7, %v8659_v29  ;;  %vm2328_vm0 = vcmp.gt.f32.partialorder %v6304_v26, 0.0  ;;  %vm2329_vm1 = vcmp.gt.f32.partialorder %v6312_v12, 0.0  ;;  %v3138_v6 = vpop.eup %3137  ;;  %v8672_v7 = vld [vmem:[#allocation164_spill] sm:$0xff] }
 0x249   : > { %v6399_v16 = vmul.f32 %v8665_v45, %v8663_v4  ;;  %v6407_v52 = vsub.f32 %v2111_v53, %v6377_v42  ;;  %3147 = vrcp.f32 %v6367_v25  ;;  %v2465_v22 = vmul.f32 %v3134_v49, %v6199_v50  ;;  %v8666_v53 = vld [vmem:[#allocation156_spill] sm:$0xff]  ;;  %v8670_v50 = vld [vmem:[#allocation157_spill] sm:$0xff]  ;;  %v8674_v45 = vld [vmem:[#allocation158_spill] sm:$0xff] }
 0x24a   : > { %v6412_v56 = vsub.f32 %v2112_v59, %v6393_v15  ;;  %3149 = vrcp.f32 %v6370_v5  ;;  %v2467_v51 = vmul.f32 %v3136_v38, %v6205_v39  ;;  %v8667_v40 = vmax.f32 %v8666_v53, 0.0  ;;  %v8676_v38 = vld [vmem:[#allocation165_spill] sm:$0xff] }
 0x24b   : > { %v6415_v35 = vsub.f32 %v2113_v36, %v6399_v16  ;;  %3151 = vrcp.f32 %v6380_v47  ;;  %v8669_v29 = vmax.f32 %v8668_v0, 0.0  ;;  %v8671_v59 = vmax.f32 %v8670_v50, 0.0  ;;  %v3140_v36 = vpop.eup %3139 }
 0x24c   : > { %v8673_v34 = vmax.f32 %v8672_v7, 0.0  ;;  %v2469_v62 = vmul.f32 %v3138_v6, %v6213_v33  ;;  %v2660_v39 = vsel %vm2324_vm12, %v2465_v22, 0.0  ;;  %3153 = vrcp.f32 %v6402_v43  ;;  %v3142_v0 = vpop.eup %3141  ;;  %v8678_v33 = vld [vmem:[#allocation159_spill] sm:$0xff]  ;;  %v8680_v22 = vld [vmem:[#allocation166_spill] sm:$0xff]  ;;  %v1958_v7 = vpop.permute.xlu0 %1957 }
 0x24d   : > { %v6424_v54 = vmul.f32 %v8669_v29, %v8667_v40  ;;  %v8675_v49 = vmax.f32 %v8674_v45, 0.0  ;;  %v8677_v53 = vmax.f32 %v8676_v38, 0.0  ;;  %v2471_v29 = vmul.f32 %v3140_v36, %v6219_v60  ;;  %2772 = vst [vmem:[%s6061_s29 + $0xe0] sm:$0xff] %v2660_v39  ;;  %v8684_v36 = vld [vmem:[#allocation167_spill] sm:$0xff] }
 0x24e   : > { %v6430_v4 = vmul.f32 %v8673_v34, %v8671_v59  ;;  %v2661_v50 = vsel %vm2325_vm13, %v2467_v51, 0.0  ;;  %3155 = vrcp.f32 %v6407_v52  ;;  %v8679_v28 = vmax.f32 %v8678_v33, 0.0  ;;  %v3144_v34 = vpop.eup %3143 }
 0x24f   : > { %v6440_v40 = vmul.f32 %v8677_v53, %v8675_v49  ;;  %v8681_v6 = vmax.f32 %v8680_v22, 0.0  ;;  %v2473_v45 = vmul.f32 %v3142_v0, %v6229_v58  ;;  %v2662_v60 = vsel %vm2326_vm14, %v2469_v62, 0.0  ;;  %2773 = vst [vmem:[%s6061_s29 + $0xe8] sm:$0xff] %v2661_v50  ;;  %v3146_v38 = vpop.eup %3145  ;;  %v8686_v58 = vld [vmem:[#allocation161_spill] sm:$0xff]  ;;  %v8688_v62 = vld [vmem:[#allocation168_spill] sm:$0xff] }
 0x250   : > { %3157 = vrcp.f32 %v6412_v56  ;;  %v8683_v51 = vmax.f32 %v8682_v10, 0.0  ;;  %v8685_v39 = vmax.f32 %v8684_v36, 0.0  ;;  %v2475_v53 = vmul.f32 %v3144_v34, %v6240_v63  ;;  %2774 = vst [vmem:[%s6061_s29 + $0xf0] sm:$0xff] %v2662_v60 }
 0x251   : > { %v6451_v59 = vmul.f32 %v8681_v6, %v8679_v28  ;;  %v2663_v33 = vsel %vm2327_vm15, %v2471_v29, 0.0  ;;  %3159 = vrcp.f32 %v6415_v35  ;;  %v8687_v2 = vmax.f32 %v8686_v58, 0.0 }
 0x252   : > { %v6462_v49 = vmul.f32 %v8685_v39, %v8683_v51  ;;  %v8689_v0 = vmax.f32 %v8688_v62, 0.0  ;;  %v2477_v28 = vmul.f32 %v3146_v38, %v6251_v31  ;;  %v2664_v22 = vsel %vm2328_vm0, %v2473_v45, 0.0  ;;  %2775 = vst [vmem:[%s6061_s29 + $0xf8] sm:$0xff] %v2663_v33 }
 0x253   : > { %v2114_v63 = vadd.f32 %v8535_v11, %v1958_v7  ;;  %v2115_v48 = vadd.f32 %v8536_v23, %v1958_v7  ;;  %v1611_v29 = vmax.f32 %v5765_v57, 0.0  ;;  %vm2330_vm2 = vcmp.gt.f32.partialorder %v6320_v13, 0.0  ;;  %2776 = vst [vmem:[%s6061_s29 + $0x100] sm:$0xff] %v2664_v22  ;;  %v3148_v60 = vpop.eup %3147 }
 0x254   : > { %v6473_v50 = vmul.f32 %v8689_v0, %v8687_v2  ;;  %v2665_v6 = vsel %vm2329_vm1, %v2475_v53, 0.0  ;;  %v2116_v34 = vadd.f32 %v8541_v27, %v1958_v7  ;;  %v1612_v31 = vmax.f32 %v5770_v3, 0.0  ;;  %v3150_v10 = vpop.eup %3149 }
 0x255   : > { %v2666_v26 = vsel %vm2330_vm2, %v2477_v28, 0.0  ;;  %2777 = vst [vmem:[%s6061_s29 + $0x108] sm:$0xff] %v2665_v6  ;;  %vm2331_vm3 = vcmp.gt.f32.partialorder %v6367_v25, 0.0  ;;  %v2117_v45 = vadd.f32 %v8542_v37, %v1958_v7  ;;  %vm2332_vm4 = vcmp.gt.f32.partialorder %v6370_v5, 0.0  ;;  %v3152_v38 = vpop.eup %3151 }
 0x256   : > { %2778 = vst [vmem:[%s6061_s29 + $0x110] sm:$0xff] %v2666_v26  ;;  %vm2333_vm5 = vcmp.gt.f32.partialorder %v6380_v47, 0.0  ;;  %v2118_v12 = vadd.f32 %v8543_v18, %v1958_v7  ;;  %v6496_v13 = vsub.f32 %v2114_v63, %v6386_v19  ;;  %vm2334_vm6 = vcmp.gt.f32.partialorder %v6402_v43, 0.0  ;;  %v3154_v2 = vpop.eup %3153  ;;  %v8690_v26 = vld [vmem:[#allocation97_spill] sm:$0xff] }
 0x257   : > { %v2479_v51 = vmul.f32 %v3148_v60, %v6332_v8  ;;  %v2119_v36 = vadd.f32 %v8548_v55, %v1958_v7  ;;  %v6502_v39 = vsub.f32 %v2115_v48, %v6424_v54  ;;  %vm2335_vm7 = vcmp.gt.f32.partialorder %v6407_v52, 0.0 }
 0x258   : > { %v2481_v53 = vmul.f32 %v3150_v10, %v6341_v32  ;;  %v2120_v33 = vadd.f32 %v8553_v46, %v1958_v7  ;;  %v6508_v58 = vsub.f32 %v2116_v34, %v6430_v4  ;;  %vm2336_vm8 = vcmp.gt.f32.partialorder %v6412_v56, 0.0  ;;  %v3156_v28 = vpop.eup %3155  ;;  %v8696_v10 = vld [vmem:[#allocation98_spill] sm:$0xff] }
 0x259   : > { %v2483_v8 = vmul.f32 %v3152_v38, %v6347_v1  ;;  %v2667_v62 = vsel %vm2331_vm3, %v2479_v51, 0.0  ;;  %v6515_v0 = vsub.f32 %v2117_v45, %v6440_v40  ;;  %v2485_v32 = vmul.f32 %v3154_v2, %v6356_v9  ;;  %v8692_v45 = vld [vmem:[#allocation62_spill] sm:$0xff]  ;;  %v8698_v38 = vld [vmem:[#allocation100_spill] sm:$0xff] }
 0x25a   : > { %v2668_v7 = vsel %vm2332_vm4, %v2481_v53, 0.0  ;;  %2779 = vst [vmem:[%s6061_s29 + $0x118] sm:$0xff] %v2667_v62  ;;  %v6522_v22 = vsub.f32 %v2118_v12, %v6451_v59  ;;  %3161 = vrcp.f32 %v6496_v13  ;;  %v3158_v1 = vpop.eup %3157  ;;  %v2487_v25 = vmul.f32 %v3156_v28, %v6377_v42  ;;  %v8694_v12 = vld [vmem:[#allocation99_spill] sm:$0xff] }
 0x25b   : > { %v2669_v63 = vsel %vm2333_vm5, %v2483_v8, 0.0  ;;  %2780 = vst [vmem:[%s6061_s29 + $0x120] sm:$0xff] %v2668_v7  ;;  %v6530_v9 = vsub.f32 %v2119_v36, %v6462_v49  ;;  %3163 = vrcp.f32 %v6502_v39  ;;  %v3160_v5 = vpop.eup %3159  ;;  %v2489_v48 = vmul.f32 %v3158_v1, %v6393_v15  ;;  %v1963_v15 = vpop.permute.xlu1 %1962  ;;  %v8702_v7 = vld [vmem:[#allocation101_spill] sm:$0xff] }
 0x25c   : > { %v2670_v6 = vsel %vm2334_vm6, %v2485_v32, 0.0  ;;  %2781 = vst [vmem:[%s6061_s29 + $0x128] sm:$0xff] %v2669_v63  ;;  %v6538_v42 = vsub.f32 %v2120_v33, %v6473_v50  ;;  %3165 = vrcp.f32 %v6508_v58  ;;  %vm2337_vm9 = vcmp.gt.f32.partialorder %v6415_v35, 0.0  ;;  %v8700_v33 = vld [vmem:[#allocation29_spill] sm:$0xff] }
 0x25d   : > { %v2491_v47 = vmul.f32 %v3160_v5, %v6399_v16  ;;  %v2671_v34 = vsel %vm2335_vm7, %v2487_v25, 0.0  ;;  %2782 = vst [vmem:[%s6061_s29 + $0x130] sm:$0xff] %v2670_v6  ;;  %3167 = vrcp.f32 %v6515_v0  ;;  %v2672_v43 = vsel %vm2336_vm8, %v2489_v48, 0.0  ;;  %v8704_v25 = vld [vmem:[#allocation66_spill] sm:$0xff] }
 0x25e   : > { %2783 = vst [vmem:[%s6061_s29 + $0x138] sm:$0xff] %v2671_v34  ;;  %vm2338_vm10 = vcmp.gt.f32.partialorder %v6496_v13, 0.0  ;;  %3169 = vrcp.f32 %v6522_v22  ;;  %v8691_v35 = vmax.f32 %v8690_v26, 0.0  ;;  %v8693_v16 = vmax.f32 %v8692_v45, 0.0  ;;  %2784 = vst [vmem:[%s6061_s29 + $0x140] sm:$0xff] %v2672_v43 }
 0x25f   : > { %v2673_v52 = vsel %vm2337_vm9, %v2491_v47, 0.0  ;;  %vm2339_vm11 = vcmp.gt.f32.partialorder %v6502_v39, 0.0  ;;  %3171 = vrcp.f32 %v6530_v9  ;;  %v8695_v56 = vmax.f32 %v8694_v12, 0.0 }
 0x260   : > { %v6556_v60 = vmul.f32 %v8693_v16, %v8691_v35  ;;  %v8697_v51 = vmax.f32 %v8696_v10, 0.0  ;;  %v8699_v53 = vmax.f32 %v8698_v38, 0.0  ;;  %v8701_v2 = vmax.f32 %v8700_v33, 0.0  ;;  %2785 = vst [vmem:[%s6061_s29 + $0x148] sm:$0xff] %v2673_v52  ;;  %v8706_v35 = vld [vmem:[#allocation21_spill] sm:$0xff]  ;;  %v8708_v16 = vld [vmem:[#allocation20_spill] sm:$0xff] }
 0x261   : > { %vm2340_vm12 = vcmp.gt.f32.partialorder %v6508_v58, 0.0  ;;  %3173 = vrcp.f32 %v6538_v42  ;;  %v2121_v62 = vadd.f32 %v8535_v11, %v1963_v15  ;;  %v2122_v28 = vadd.f32 %v8536_v23, %v1963_v15  ;;  %v8736_v58 = vld [vmem:[#allocation178_spill] sm:$0xff] }
 0x262   : > { %v6565_v36 = vmul.f32 %v8697_v51, %v8695_v56  ;;  %v6571_v8 = vmul.f32 %v8701_v2, %v8699_v53  ;;  %v2123_v32 = vadd.f32 %v8541_v27, %v1963_v15  ;;  %vm2341_vm13 = vcmp.gt.f32.partialorder %v6515_v0, 0.0  ;;  %v8710_v56 = vld [vmem:[#allocation102_spill] sm:$0xff]  ;;  %v8712_v51 = vld [vmem:[#allocation105_spill] sm:$0xff]  ;;  %v8716_v2 = vld [vmem:[#allocation31_spill] sm:$0xff] }
 0x263   : > { %v8703_v1 = vmax.f32 %v8702_v7, 0.0  ;;  %v8705_v63 = vmax.f32 %v8704_v25, 0.0  ;;  %v2124_v48 = vadd.f32 %v8542_v37, %v1963_v15  ;;  %v2125_v6 = vadd.f32 %v8543_v18, %v1963_v15  ;;  %v8718_v25 = vld [vmem:[#allocation104_spill] sm:$0xff] }
 0x264   : > { %v2126_v47 = vadd.f32 %v8548_v55, %v1963_v15  ;;  %v2127_v34 = vadd.f32 %v8553_v46, %v1963_v15  ;;  %v6591_v43 = vsub.f32 %v2121_v62, %v6556_v60  ;;  %v6594_v26 = vsub.f32 %v2122_v28, %v6565_v36  ;;  %v8714_v15 = vld [vmem:[#allocation103_spill] sm:$0xff] }
 0x265   : > { %v6584_v5 = vmul.f32 %v8705_v63, %v8703_v1  ;;  %v8707_v45 = vmax.f32 %v8706_v35, 0.0  ;;  %v8709_v52 = vmax.f32 %v8708_v16, 0.0  ;;  %vm2342_vm14 = vcmp.gt.f32.partialorder %v6522_v22, 0.0  ;;  %v3162_v1 = vpop.eup %3161  ;;  %v8720_v35 = vld [vmem:[#allocation77_spill] sm:$0xff] }
 0x266   : > { %v8711_v10 = vmax.f32 %v8710_v56, 0.0  ;;  %v8713_v38 = vmax.f32 %v8712_v51, 0.0  ;;  %v8715_v33 = vmax.f32 %v8714_v15, 0.0  ;;  %v8717_v62 = vmax.f32 %v8716_v2, 0.0  ;;  %v3164_v56 = vpop.eup %3163 }
 0x267   : > { %v6600_v12 = vmul.f32 %v8709_v52, %v8707_v45  ;;  %v6616_v7 = vsub.f32 %v2123_v32, %v6571_v8  ;;  %vm2343_vm15 = vcmp.gt.f32.partialorder %v6530_v9, 0.0  ;;  %v8719_v63 = vmax.f32 %v8718_v25, 0.0 }
 0x268   : > { %v6607_v53 = vmul.f32 %v8713_v38, %v8711_v10  ;;  %v6613_v28 = vmul.f32 %v8717_v62, %v8715_v33  ;;  %v8721_v45 = vmax.f32 %v8720_v35, 0.0  ;;  %v6626_v52 = vsub.f32 %v2124_v48, %v6584_v5  ;;  %v3166_v38 = vpop.eup %3165  ;;  %v8722_v33 = vld [vmem:[#allocation174_spill] sm:$0xff] }
 0x269   : > { %3175 = vrcp.f32 %v6591_v43  ;;  %vm2344_vm0 = vcmp.gt.f32.partialorder %v6538_v42, 0.0  ;;  %v2493_v32 = vmul.f32 %v3162_v1, %v6386_v19  ;;  %v2495_v15 = vmul.f32 %v3164_v56, %v6424_v54  ;;  %v8725_v54 = vld [vmem:[#allocation175_spill] sm:$0xff]  ;;  %v8730_v56 = vld [vmem:[#allocation180_spill] sm:$0xff] }
 0x26a   : > { %v6623_v16 = vmul.f32 %v8721_v45, %v8719_v63  ;;  %v6632_v10 = vsub.f32 %v2125_v6, %v6607_v53  ;;  %v6635_v51 = vsub.f32 %v2126_v47, %v6613_v28  ;;  %3177 = vrcp.f32 %v6594_v26  ;;  %v3168_v6 = vpop.eup %3167 }
 0x26b   : > { %v8723_v2 = vmax.f32 %v8722_v33, 0.0  ;;  %v8724_v62 = vmax.f32 %v5563_v44, 0.0  ;;  %v2497_v1 = vmul.f32 %v3166_v38, %v6430_v4  ;;  %v2674_v47 = vsel %vm2338_vm10, %v2493_v32, 0.0  ;;  %v3170_v35 = vpop.eup %3169  ;;  %v8728_v4 = vld [vmem:[#allocation176_spill] sm:$0xff] }
 0x26c   : > { %v6639_v48 = vsub.f32 %v2127_v34, %v6623_v16  ;;  %3179 = vrcp.f32 %v6616_v7  ;;  %v8726_v34 = vmax.f32 %v8725_v54, 0.0  ;;  %v8727_v25 = vmax.f32 %v5569_v20, 0.0  ;;  %2786 = vst [vmem:[%s6061_s29 + $0x150] sm:$0xff] %v2674_v47  ;;  %v3172_v20 = vpop.eup %3171  ;;  %v1968_v47 = vpop.permute.xlu0 %1967 }
 0x26d   : > { %v6646_v19 = vmul.f32 %v8724_v62, %v8723_v2  ;;  %v2499_v44 = vmul.f32 %v3168_v6, %v6440_v40  ;;  %v2675_v45 = vsel %vm2339_vm11, %v2495_v15, 0.0  ;;  %3181 = vrcp.f32 %v6626_v52  ;;  %v8732_v40 = vld [vmem:[#allocation177_spill] sm:$0xff]  ;;  %v3174_v54 = vpop.eup %3173 }
 0x26e   : > { %v6656_v63 = vmul.f32 %v8727_v25, %v8726_v34  ;;  %v8729_v13 = vmax.f32 %v8728_v4, 0.0  ;;  %v8731_v32 = vmax.f32 %v8730_v56, 0.0  ;;  %v2501_v33 = vmul.f32 %v3170_v35, %v6451_v59  ;;  %2787 = vst [vmem:[%s6061_s29 + $0x158] sm:$0xff] %v2675_v45  ;;  %v8734_v15 = vld [vmem:[#allocation181_spill] sm:$0xff]  ;;  %v8738_v25 = vld [vmem:[#allocation182_spill] sm:$0xff] }
 0x26f   : > { %v2676_v2 = vsel %vm2340_vm12, %v2497_v1, 0.0  ;;  %3183 = vrcp.f32 %v6632_v10  ;;  %v8733_v39 = vmax.f32 %v8732_v40, 0.0  ;;  %v8735_v62 = vmax.f32 %v8734_v15, 0.0 }
 0x270   : > { %v6667_v38 = vmul.f32 %v8731_v32, %v8729_v13  ;;  %v2503_v34 = vmul.f32 %v3172_v20, %v6462_v49  ;;  %v2677_v59 = vsel %vm2341_vm13, %v2499_v44, 0.0  ;;  %2788 = vst [vmem:[%s6061_s29 + $0x160] sm:$0xff] %v2676_v2  ;;  %3185 = vrcp.f32 %v6635_v51  ;;  %v8740_v49 = vld [vmem:[#allocation179_spill] sm:$0xff] }
 0x271   : > { %v6678_v6 = vmul.f32 %v8735_v62, %v8733_v39  ;;  %v8737_v1 = vmax.f32 %v8736_v58, 0.0  ;;  %v8739_v35 = vmax.f32 %v8738_v25, 0.0  ;;  %v2505_v4 = vmul.f32 %v3174_v54, %v6473_v50  ;;  %2789 = vst [vmem:[%s6061_s29 + $0x168] sm:$0xff] %v2677_v59  ;;  %v8742_v44 = vld [vmem:[#allocation183_spill] sm:$0xff] }
 0x272   : > { %v2678_v13 = vsel %vm2342_vm14, %v2501_v33, 0.0  ;;  %3187 = vrcp.f32 %v6639_v48  ;;  %v8741_v0 = vmax.f32 %v8740_v49, 0.0  ;;  %v8743_v56 = vmax.f32 %v8742_v44, 0.0 }
 0x273   : > { %v6689_v45 = vmul.f32 %v8739_v35, %v8737_v1  ;;  %v2679_v20 = vsel %vm2343_vm15, %v2503_v34, 0.0  ;;  %2790 = vst [vmem:[%s6061_s29 + $0x170] sm:$0xff] %v2678_v13  ;;  %v2128_v2 = vadd.f32 %v8535_v11, %v1968_v47  ;;  %v2129_v50 = vadd.f32 %v8536_v23, %v1968_v47  ;;  %v3176_v62 = vpop.eup %3175 }
 0x274   : > { %v6700_v32 = vmul.f32 %v8743_v56, %v8741_v0  ;;  %v2130_v22 = vadd.f32 %v8541_v27, %v1968_v47  ;;  %v1613_v33 = vmax.f32 %v5775_v61, 0.0  ;;  %v1614_v40 = vmax.f32 %v5780_v24, 0.0  ;;  %2791 = vst [vmem:[%s6061_s29 + $0x178] sm:$0xff] %v2679_v20  ;;  %v3178_v1 = vpop.eup %3177 }
 0x275   : > { %v2680_v39 = vsel %vm2344_vm0, %v2505_v4, 0.0  ;;  %v2131_v15 = vadd.f32 %v8542_v37, %v1968_v47  ;;  %v1615_v9 = vmax.f32 %v5787_v30, 0.0  ;;  %vm2345_vm1 = vcmp.gt.f32.partialorder %v6591_v43, 0.0 }
 0x276   : > { %2792 = vst [vmem:[%s6061_s29 + $0x180] sm:$0xff] %v2680_v39  ;;  %v2132_v54 = vadd.f32 %v8543_v18, %v1968_v47  ;;  %v6719_v34 = vsub.f32 %v2128_v2, %v6600_v12  ;;  %vm2346_vm2 = vcmp.gt.f32.partialorder %v6594_v26, 0.0  ;;  %v2507_v59 = vmul.f32 %v3176_v62, %v6556_v60  ;;  %v3180_v35 = vpop.eup %3179 }
 0x277   : > { %v2133_v42 = vadd.f32 %v8548_v55, %v1968_v47  ;;  %v6725_v58 = vsub.f32 %v2129_v50, %v6646_v19  ;;  %vm2347_vm3 = vcmp.gt.f32.partialorder %v6616_v7, 0.0  ;;  %vm2348_vm4 = vcmp.gt.f32.partialorder %v6626_v52, 0.0  ;;  %v3182_v49 = vpop.eup %3181  ;;  %v8744_v52 = vld [vmem:[#allocation7_spill] sm:$0xff] }
 0x278   : > { %v2134_v43 = vadd.f32 %v8553_v46, %v1968_v47  ;;  %v6731_v25 = vsub.f32 %v2130_v22, %v6656_v63  ;;  %vm2349_vm5 = vcmp.gt.f32.partialorder %v6632_v10, 0.0  ;;  %v2509_v60 = vmul.f32 %v3178_v1, %v6565_v36  ;;  %v8750_v1 = vld [vmem:[#allocation35_spill] sm:$0xff] }
 0x279   : > { %v2681_v4 = vsel %vm2345_vm1, %v2507_v59, 0.0  ;;  %v6736_v13 = vsub.f32 %v2131_v15, %v6667_v38  ;;  %vm2350_vm6 = vcmp.gt.f32.partialorder %v6635_v51, 0.0  ;;  %v2511_v0 = vmul.f32 %v3180_v35, %v6571_v8  ;;  %v3184_v44 = vpop.eup %3183  ;;  %v8748_v59 = vld [vmem:[#allocation9_spill] sm:$0xff] }
 0x27a   : > { %2793 = vst [vmem:[%s6061_s29 + $0x188] sm:$0xff] %v2681_v4  ;;  %v6742_v47 = vsub.f32 %v2132_v54, %v6678_v6  ;;  %3189 = vrcp.f32 %v6719_v34  ;;  %v2513_v36 = vmul.f32 %v3182_v49, %v6584_v5  ;;  %v2682_v56 = vsel %vm2346_vm2, %v2509_v60, 0.0  ;;  %v3186_v8 = vpop.eup %3185  ;;  %v8752_v60 = vld [vmem:[#allocation10_spill] sm:$0xff]  ;;  %v8754_v49 = vld [vmem:[#allocation52_spill] sm:$0xff] }
 0x27b   : > { %v6749_v20 = vsub.f32 %v2133_v42, %v6689_v45  ;;  %3191 = vrcp.f32 %v6725_v58  ;;  %v2515_v2 = vmul.f32 %v3184_v44, %v6607_v53  ;;  %v2683_v50 = vsel %vm2347_vm3, %v2511_v0, 0.0  ;;  %2794 = vst [vmem:[%s6061_s29 + $0x190] sm:$0xff] %v2682_v56  ;;  %v1973_v53 = vpop.permute.xlu1 %1972 }
 0x27c   : > { %v6757_v22 = vsub.f32 %v2134_v43, %v6700_v32  ;;  %3193 = vrcp.f32 %v6731_v25  ;;  %v3188_v5 = vpop.eup %3187  ;;  %vm2351_vm7 = vcmp.gt.f32.partialorder %v6639_v48, 0.0  ;;  %v2517_v26 = vmul.f32 %v3186_v8, %v6613_v28  ;;  %2795 = vst [vmem:[%s6061_s29 + $0x198] sm:$0xff] %v2683_v50 }
 0x27d   : > { %v2684_v39 = vsel %vm2348_vm4, %v2513_v36, 0.0  ;;  %3195 = vrcp.f32 %v6736_v13  ;;  %v2519_v7 = vmul.f32 %v3188_v5, %v6623_v16  ;;  %v2685_v15 = vsel %vm2349_vm5, %v2515_v2, 0.0  ;;  %v8746_v16 = vld [vmem:[#allocation79_spill] sm:$0xff] }
 0x27e   : > { %2796 = vst [vmem:[%s6061_s29 + $0x1a0] sm:$0xff] %v2684_v39  ;;  %vm2352_vm8 = vcmp.gt.f32.partialorder %v6719_v34, 0.0  ;;  %3197 = vrcp.f32 %v6742_v47  ;;  %v2686_v28 = vsel %vm2350_vm6, %v2517_v26, 0.0  ;;  %2797 = vst [vmem:[%s6061_s29 + $0x1a8] sm:$0xff] %v2685_v15  ;;  %vm2353_vm9 = vcmp.gt.f32.partialorder %v6725_v58, 0.0  ;;  %v8756_v39 = vld [vmem:[#allocation23_spill] sm:$0xff] }
 0x27f   : > { %3199 = vrcp.f32 %v6749_v20  ;;  %v8745_v62 = vmax.f32 %v8744_v52, 0.0  ;;  %v8747_v54 = vmax.f32 %v8746_v16, 0.0  ;;  %v8749_v42 = vmax.f32 %v8748_v59, 0.0  ;;  %2798 = vst [vmem:[%s6061_s29 + $0x1b0] sm:$0xff] %v2686_v28  ;;  %v8759_v52 = vld [vmem:[#allocation112_spill] sm:$0xff]  ;;  %v8761_v16 = vld [vmem:[#allocation81_spill] sm:$0xff] }
 0x280   : > { %v8751_v43 = vmax.f32 %v8750_v1, 0.0  ;;  %v2687_v51 = vsel %vm2351_vm7, %v2519_v7, 0.0  ;;  %vm2354_vm10 = vcmp.gt.f32.partialorder %v6731_v25, 0.0  ;;  %3201 = vrcp.f32 %v6757_v22  ;;  %v8784_v25 = vld [vmem:[#allocation186_spill] sm:$0xff] }
 0x281   : > { %v6781_v10 = vmul.f32 %v8747_v54, %v8745_v62  ;;  %v8753_v4 = vmax.f32 %v8752_v60, 0.0  ;;  %v8755_v0 = vmax.f32 %v8754_v49, 0.0  ;;  %v2135_v36 = vadd.f32 %v8535_v11, %v1973_v53  ;;  %2799 = vst [vmem:[%s6061_s29 + $0x1b8] sm:$0xff] %v2687_v51 }
 0x282   : > { %v6787_v35 = vmul.f32 %v8751_v43, %v8749_v42  ;;  %vm2355_vm11 = vcmp.gt.f32.partialorder %v6736_v13, 0.0  ;;  %v2136_v56 = vadd.f32 %v8536_v23, %v1973_v53  ;;  %v2137_v48 = vadd.f32 %v8541_v27, %v1973_v53  ;;  %v8763_v42 = vld [vmem:[#allocation113_spill] sm:$0xff] }
 0x283   : > { %v6798_v44 = vmul.f32 %v8755_v0, %v8753_v4  ;;  %v2138_v8 = vadd.f32 %v8542_v37, %v1973_v53  ;;  %v2139_v2 = vadd.f32 %v8543_v18, %v1973_v53  ;;  %v2140_v50 = vadd.f32 %v8548_v55, %v1973_v53  ;;  %v8767_v4 = vld [vmem:[#allocation114_spill] sm:$0xff] }
 0x284   : > { %v2141_v5 = vadd.f32 %v8553_v46, %v1973_v53  ;;  %v6810_v26 = vsub.f32 %v2135_v36, %v6781_v10  ;;  %v8757_v7 = vmax.f32 %v8756_v39, 0.0  ;;  %v8758_v15 = vmax.f32 %v5656_v41, 0.0  ;;  %v8765_v53 = vld [vmem:[#allocation32_spill] sm:$0xff]  ;;  %v3190_v41 = vpop.eup %3189  ;;  %v8769_v0 = vld [vmem:[#allocation38_spill] sm:$0xff] }
 0x285   : > { %vm2356_vm12 = vcmp.gt.f32.partialorder %v6742_v47, 0.0  ;;  %v8760_v62 = vmax.f32 %v8759_v52, 0.0  ;;  %v8762_v54 = vmax.f32 %v8761_v16, 0.0  ;;  %v8764_v1 = vmax.f32 %v8763_v42, 0.0  ;;  %v8773_v52 = vld [vmem:[#allocation49_spill] sm:$0xff]  ;;  %v8794_v47 = vld [vmem:[#allocation192_spill] sm:$0xff] }
 0x286   : > { %v6816_v28 = vmul.f32 %v8758_v15, %v8757_v7  ;;  %v8766_v43 = vmax.f32 %v8765_v53, 0.0  ;;  %v6832_v60 = vsub.f32 %v2136_v56, %v6787_v35  ;;  %v8768_v49 = vmax.f32 %v8767_v4, 0.0  ;;  %v8771_v7 = vld [vmem:[#allocation115_spill] sm:$0xff]  ;;  %v3192_v56 = vpop.eup %3191 }
 0x287   : > { %v6823_v59 = vmul.f32 %v8762_v54, %v8760_v62  ;;  %v8770_v36 = vmax.f32 %v8769_v0, 0.0  ;;  %v8772_v15 = vmax.f32 %v8771_v7, 0.0  ;;  %v8774_v62 = vmax.f32 %v8773_v52, 0.0  ;;  %v3194_v53 = vpop.eup %3193 }
 0x288   : > { %v6829_v51 = vmul.f32 %v8766_v43, %v8764_v1  ;;  %v6847_v54 = vsub.f32 %v2137_v48, %v6798_v44  ;;  %3203 = vrcp.f32 %v6810_v26  ;;  %vm2357_vm13 = vcmp.gt.f32.partialorder %v6749_v20, 0.0  ;;  %v3196_v0 = vpop.eup %3195 }
 0x289   : > { %v6838_v39 = vmul.f32 %v8770_v36, %v8768_v49  ;;  %v6844_v16 = vmul.f32 %v8774_v62, %v8772_v15  ;;  %vm2358_vm14 = vcmp.gt.f32.partialorder %v6757_v22, 0.0  ;;  %v2521_v42 = vmul.f32 %v3190_v41, %v6600_v12  ;;  %v8782_v62 = vld [vmem:[#allocation189_spill] sm:$0xff] }
 0x28a   : > { %v6854_v1 = vsub.f32 %v2138_v8, %v6823_v59  ;;  %v2523_v43 = vmul.f32 %v3192_v56, %v6646_v19  ;;  %v6858_v4 = vsub.f32 %v2139_v2, %v6829_v51  ;;  %v2525_v36 = vmul.f32 %v3194_v53, %v6656_v63  ;;  %v8777_v63 = vld [vmem:[#allocation184_spill] sm:$0xff] }
 0x28b   : > { %v6861_v48 = vsub.f32 %v2140_v50, %v6838_v39  ;;  %v6864_v49 = vsub.f32 %v2141_v5, %v6844_v16  ;;  %v2688_v12 = vsel %vm2352_vm8, %v2521_v42, 0.0  ;;  %3205 = vrcp.f32 %v6832_v60  ;;  %v3198_v50 = vpop.eup %3197 }
 0x28c   : > { %v8775_v19 = vmax.f32 %v5612_v17, 0.0  ;;  %v8776_v8 = vmax.f32 %v5662_v21, 0.0  ;;  %v2527_v41 = vmul.f32 %v3196_v0, %v6667_v38  ;;  %v2689_v5 = vsel %vm2353_vm9, %v2523_v43, 0.0  ;;  %2800 = vst [vmem:[%s6061_s29 + $0x1c0] sm:$0xff] %v2688_v12  ;;  %v3200_v21 = vpop.eup %3199  ;;  %v8780_v38 = vld [vmem:[#allocation185_spill] sm:$0xff] }
 0x28d   : > { %3207 = vrcp.f32 %v6847_v54  ;;  %v8778_v34 = vmax.f32 %v8777_v63, 0.0  ;;  %v8779_v7 = vmax.f32 %v8524_v14, 0.0  ;;  %v2529_v17 = vmul.f32 %v3198_v50, %v6678_v6  ;;  %2801 = vst [vmem:[%s6061_s29 + $0x1c8] sm:$0xff] %v2689_v5  ;;  %v1978_v14 = vpop.permute.xlu0 %1977  ;;  %v3202_v53 = vpop.eup %3201 }
 0x28e   : > { %v6874_v2 = vmul.f32 %v8776_v8, %v8775_v19  ;;  %v2690_v52 = vsel %vm2354_vm10, %v2525_v36, 0.0  ;;  %3209 = vrcp.f32 %v6854_v1  ;;  %v8781_v58 = vmax.f32 %v8780_v38, 0.0  ;;  %v8786_v36 = vld [vmem:[#allocation190_spill] sm:$0xff] }
 0x28f   : > { %v6885_v15 = vmul.f32 %v8779_v7, %v8778_v34  ;;  %v8783_v56 = vmax.f32 %v8782_v62, 0.0  ;;  %v2531_v43 = vmul.f32 %v3200_v21, %v6689_v45  ;;  %v2691_v6 = vsel %vm2355_vm11, %v2527_v41, 0.0  ;;  %2802 = vst [vmem:[%s6061_s29 + $0x1d0] sm:$0xff] %v2690_v52  ;;  %v8788_v45 = vld [vmem:[#allocation187_spill] sm:$0xff] }
 0x290   : > { %3211 = vrcp.f32 %v6858_v4  ;;  %v8785_v0 = vmax.f32 %v8784_v25, 0.0  ;;  %v8787_v12 = vmax.f32 %v8786_v36, 0.0  ;;  %v2533_v8 = vmul.f32 %v3202_v53, %v6700_v32  ;;  %2803 = vst [vmem:[%s6061_s29 + $0x1d8] sm:$0xff] %v2691_v6  ;;  %v8790_v41 = vld [vmem:[#allocation191_spill] sm:$0xff]  ;;  %v8792_v32 = vld [vmem:[#allocation188_spill] sm:$0xff] }
 0x291   : > { %v6896_v42 = vmul.f32 %v8783_v56, %v8781_v58  ;;  %v2692_v50 = vsel %vm2356_vm12, %v2529_v17, 0.0  ;;  %3213 = vrcp.f32 %v6861_v48  ;;  %v8789_v13 = vmax.f32 %v8788_v45, 0.0  ;;  %v1988_v3 = vpop.permute.xlu0 %1987 }
 0x292   : > { %v6907_v19 = vmul.f32 %v8787_v12, %v8785_v0  ;;  %v8791_v5 = vmax.f32 %v8790_v41, 0.0  ;;  %v2693_v34 = vsel %vm2357_vm13, %v2531_v43, 0.0  ;;  %2804 = vst [vmem:[%s6061_s29 + $0x1e0] sm:$0xff] %v2692_v50  ;;  %3215 = vrcp.f32 %v6864_v49  ;;  %v3204_v56 = vpop.eup %3203 }
 0x293   : > { %v8793_v7 = vmax.f32 %v8792_v32, 0.0  ;;  %v8795_v21 = vmax.f32 %v8794_v47, 0.0  ;;  %v2142_v52 = vadd.f32 %v8535_v11, %v1978_v14  ;;  %v2694_v38 = vsel %vm2358_vm14, %v2533_v8, 0.0  ;;  %2805 = vst [vmem:[%s6061_s29 + $0x1e8] sm:$0xff] %v2693_v34  ;;  %v8796_v34 = vld [vmem:[#allocation116_spill] sm:$0xff] }
 0x294   : > { %v6918_v63 = vmul.f32 %v8791_v5, %v8789_v13  ;;  %v2143_v58 = vadd.f32 %v8536_v23, %v1978_v14  ;;  %v2144_v20 = vadd.f32 %v8541_v27, %v1978_v14  ;;  %v2145_v62 = vadd.f32 %v8542_v37, %v1978_v14  ;;  %2806 = vst [vmem:[%s6061_s29 + $0x1f0] sm:$0xff] %v2694_v38  ;;  %v8802_v38 = vld [vmem:[#allocation133_spill] sm:$0xff] }
 0x295   : > { %v6928_v17 = vmul.f32 %v8795_v21, %v8793_v7  ;;  %vm2359_vm15 = vcmp.gt.f32.partialorder %v6810_v26, 0.0  ;;  %v2146_v53 = vadd.f32 %v8543_v18, %v1978_v14  ;;  %v2147_v43 = vadd.f32 %v8548_v55, %v1978_v14  ;;  %v8798_v7 = vld [vmem:[#allocation44_spill] sm:$0xff]  ;;  %v8800_v21 = vld [vmem:[#allocation11_spill] sm:$0xff] }
 0x296   : > { %v2148_v6 = vadd.f32 %v8553_v46, %v1978_v14  ;;  %vm2360_vm0 = vcmp.gt.f32.partialorder %v6832_v60, 0.0  ;;  %vm2361_vm1 = vcmp.gt.f32.partialorder %v6847_v54, 0.0  ;;  %v2535_v22 = vmul.f32 %v3204_v56, %v6781_v10  ;;  %v3206_v14 = vpop.eup %3205  ;;  %v8808_v60 = vld [vmem:[#allocation118_spill] sm:$0xff]  ;;  %v8812_v54 = vld [vmem:[#allocation119_spill] sm:$0xff] }
 0x297   : > { %v6946_v25 = vsub.f32 %v2142_v52, %v6816_v28  ;;  %vm2362_vm2 = vcmp.gt.f32.partialorder %v6854_v1, 0.0  ;;  %vm2363_vm3 = vcmp.gt.f32.partialorder %v6858_v4, 0.0  ;;  %vm2364_vm4 = vcmp.gt.f32.partialorder %v6861_v48, 0.0  ;;  %v3208_v12 = vpop.eup %3207 }
 0x298   : > { %v6952_v26 = vsub.f32 %v2143_v58, %v6874_v2  ;;  %vm2365_vm5 = vcmp.gt.f32.partialorder %v6864_v49, 0.0  ;;  %v2695_v0 = vsel %vm2359_vm15, %v2535_v22, 0.0  ;;  %v6956_v36 = vsub.f32 %v2144_v20, %v6885_v15  ;;  %v3210_v41 = vpop.eup %3209 }
 0x299   : > { %v6959_v10 = vsub.f32 %v2145_v62, %v6896_v42  ;;  %v2537_v8 = vmul.f32 %v3206_v14, %v6787_v35  ;;  %2807 = vst [vmem:[%s6061_s29 + $0x1f8] sm:$0xff] %v2695_v0  ;;  %v6964_v50 = vsub.f32 %v2146_v53, %v6907_v19  ;;  %v6967_v45 = vsub.f32 %v2147_v43, %v6918_v63  ;;  %v8804_v53 = vld [vmem:[#allocation117_spill] sm:$0xff] }
 0x29a   : > { %v6970_v13 = vsub.f32 %v2148_v6, %v6928_v17  ;;  %v2539_v5 = vmul.f32 %v3208_v12, %v6798_v44  ;;  %3217 = vrcp.f32 %v6946_v25  ;;  %v8797_v32 = vmax.f32 %v8796_v34, 0.0  ;;  %v3212_v62 = vpop.eup %3211  ;;  %v8806_v6 = vld [vmem:[#allocation134_spill] sm:$0xff] }
 0x29b   : > { %v8799_v35 = vmax.f32 %v8798_v7, 0.0  ;;  %v8801_v52 = vmax.f32 %v8800_v21, 0.0  ;;  %v8803_v58 = vmax.f32 %v8802_v38, 0.0  ;;  %v2541_v56 = vmul.f32 %v3210_v41, %v6823_v59  ;;  %v3214_v0 = vpop.eup %3213  ;;  %v1983_v59 = vpop.permute.xlu1 %1982  ;;  %v8810_v41 = vld [vmem:[#allocation135_spill] sm:$0xff] }
 0x29c   : > { %v2696_v44 = vsel %vm2360_vm0, %v2537_v8, 0.0  ;;  %3219 = vrcp.f32 %v6952_v26  ;;  %v8805_v43 = vmax.f32 %v8804_v53, 0.0  ;;  %v8807_v22 = vmax.f32 %v8806_v6, 0.0 }
 0x29d   : > { %v6978_v47 = vmul.f32 %v8799_v35, %v8797_v32  ;;  %v6984_v20 = vmul.f32 %v8803_v58, %v8801_v52  ;;  %v2543_v12 = vmul.f32 %v3212_v62, %v6829_v51  ;;  %v2697_v34 = vsel %vm2361_vm1, %v2539_v5, 0.0  ;;  %2808 = vst [vmem:[%s6061_s29 + $0x200] sm:$0xff] %v2696_v44  ;;  %v3216_v35 = vpop.eup %3215  ;;  %v8814_v52 = vld [vmem:[#allocation136_spill] sm:$0xff] }
 0x29e   : > { %v6994_v14 = vmul.f32 %v8807_v22, %v8805_v43  ;;  %3221 = vrcp.f32 %v6956_v36  ;;  %v8809_v8 = vmax.f32 %v8808_v60, 0.0  ;;  %v8811_v32 = vmax.f32 %v8810_v41, 0.0  ;;  %2809 = vst [vmem:[%s6061_s29 + $0x208] sm:$0xff] %v2697_v34  ;;  %v8820_v22 = vld [vmem:[#allocation12_spill] sm:$0xff] }
 0x29f   : > { %v2545_v21 = vmul.f32 %v3214_v0, %v6838_v39  ;;  %v2698_v51 = vsel %vm2362_vm2, %v2541_v56, 0.0  ;;  %3223 = vrcp.f32 %v6959_v10  ;;  %v8813_v5 = vmax.f32 %v8812_v54, 0.0  ;;  %v8816_v39 = vld [vmem:[#allocation120_spill] sm:$0xff]  ;;  %v8818_v56 = vld [vmem:[#allocation137_spill] sm:$0xff]  ;;  %v8822_v0 = vld [vmem:[#allocation138_spill] sm:$0xff] }
 0x2a0   : > { %v7005_v7 = vmul.f32 %v8811_v32, %v8809_v8  ;;  %v8815_v38 = vmax.f32 %v8814_v52, 0.0  ;;  %v2547_v62 = vmul.f32 %v3216_v35, %v6844_v16  ;;  %v2699_v44 = vsel %vm2363_vm3, %v2543_v12, 0.0  ;;  %2810 = vst [vmem:[%s6061_s29 + $0x210] sm:$0xff] %v2698_v51  ;;  %v8824_v54 = vld [vmem:[#allocation25_spill] sm:$0xff]  ;;  %v8826_v52 = vld [vmem:[#allocation24_spill] sm:$0xff] }
 0x2a1   : > { %3225 = vrcp.f32 %v6964_v50  ;;  %v8817_v1 = vmax.f32 %v8816_v39, 0.0  ;;  %v8819_v53 = vmax.f32 %v8818_v56, 0.0  ;;  %v2700_v6 = vsel %vm2364_vm4, %v2545_v21, 0.0  ;;  %2811 = vst [vmem:[%s6061_s29 + $0x218] sm:$0xff] %v2699_v44 }
 0x2a2   : > { %v7016_v58 = vmul.f32 %v8815_v38, %v8813_v5  ;;  %3227 = vrcp.f32 %v6967_v45  ;;  %v8821_v16 = vmax.f32 %v8820_v22, 0.0  ;;  %v8823_v4 = vmax.f32 %v8822_v0, 0.0  ;;  %2812 = vst [vmem:[%s6061_s29 + $0x220] sm:$0xff] %v2700_v6 }
 0x2a3   : > { %v7027_v43 = vmul.f32 %v8819_v53, %v8817_v1  ;;  %v2149_v34 = vadd.f32 %v8535_v11, %v1983_v59  ;;  %v2701_v60 = vsel %vm2365_vm5, %v2547_v62, 0.0  ;;  %3229 = vrcp.f32 %v6970_v13 }
 0x2a4   : > { %v7037_v12 = vmul.f32 %v8823_v4, %v8821_v16  ;;  %v2150_v48 = vadd.f32 %v8536_v23, %v1983_v59  ;;  %v2151_v8 = vadd.f32 %v8541_v27, %v1983_v59  ;;  %2813 = vst [vmem:[%s6061_s29 + $0x228] sm:$0xff] %v2701_v60  ;;  %vm2366_vm6 = vcmp.gt.f32.partialorder %v6946_v25, 0.0  ;;  %v3218_v44 = vpop.eup %3217  ;;  %v8828_v4 = vld [vmem:[#allocation193_spill] sm:$0xff]  ;;  %v8830_v60 = vld [vmem:[#allocation199_spill] sm:$0xff] }
 0x2a5   : > { %v2152_v41 = vadd.f32 %v8542_v37, %v1983_v59  ;;  %v2153_v32 = vadd.f32 %v8543_v18, %v1983_v59  ;;  %v2154_v35 = vadd.f32 %v8548_v55, %v1983_v59  ;;  %v2155_v21 = vadd.f32 %v8553_v46, %v1983_v59 }
 0x2a6   : > { %v7053_v49 = vsub.f32 %v2149_v34, %v6978_v47  ;;  %v7056_v51 = vsub.f32 %v2150_v48, %v6984_v20  ;;  %v8825_v5 = vmax.f32 %v8824_v54, 0.0  ;;  %v8827_v38 = vmax.f32 %v8826_v52, 0.0  ;;  %v3220_v1 = vpop.eup %3219 }
 0x2a7   : > { %vm2367_vm7 = vcmp.gt.f32.partialorder %v6952_v26, 0.0  ;;  %vm2368_vm8 = vcmp.gt.f32.partialorder %v6956_v36, 0.0  ;;  %vm2369_vm9 = vcmp.gt.f32.partialorder %v6959_v10, 0.0  ;;  %v7068_v59 = vsub.f32 %v2151_v8, %v6994_v14  ;;  %v8838_v36 = vld [vmem:[#allocation197_spill] sm:$0xff] }
 0x2a8   : > { %v7062_v62 = vmul.f32 %v8827_v38, %v8825_v5  ;;  %vm2370_vm10 = vcmp.gt.f32.partialorder %v6964_v50, 0.0  ;;  %vm2371_vm11 = vcmp.gt.f32.partialorder %v6967_v45, 0.0  ;;  %v7073_v39 = vsub.f32 %v2152_v41, %v7005_v7  ;;  %v3222_v22 = vpop.eup %3221 }
 0x2a9   : > { %3231 = vrcp.f32 %v7053_v49  ;;  %vm2372_vm12 = vcmp.gt.f32.partialorder %v6970_v13, 0.0  ;;  %v2549_v56 = vmul.f32 %v3218_v44, %v6816_v28  ;;  %v7079_v53 = vsub.f32 %v2153_v32, %v7016_v58  ;;  %v3224_v8 = vpop.eup %3223 }
 0x2aa   : > { %v7082_v6 = vsub.f32 %v2154_v35, %v7027_v43  ;;  %v2551_v16 = vmul.f32 %v3220_v1, %v6874_v2  ;;  %v7086_v0 = vsub.f32 %v2155_v21, %v7037_v12  ;;  %3233 = vrcp.f32 %v7056_v51  ;;  %v8832_v2 = vld [vmem:[#allocation194_spill] sm:$0xff] }
 0x2ab   : > { %v8829_v34 = vmax.f32 %v8828_v4, 0.0  ;;  %v8831_v48 = vmax.f32 %v8830_v60, 0.0  ;;  %v2553_v41 = vmul.f32 %v3222_v22, %v6885_v15  ;;  %v2702_v32 = vsel %vm2366_vm6, %v2549_v56, 0.0  ;;  %v3226_v54 = vpop.eup %3225  ;;  %v8834_v15 = vld [vmem:[#allocation195_spill] sm:$0xff] }
 0x2ac   : > { %3235 = vrcp.f32 %v7068_v59  ;;  %v8833_v35 = vmax.f32 %v8832_v2, 0.0  ;;  %v2555_v5 = vmul.f32 %v3224_v8, %v6896_v42  ;;  %v2703_v52 = vsel %vm2367_vm7, %v2551_v16, 0.0  ;;  %2814 = vst [vmem:[%s6061_s29 + $0x230] sm:$0xff] %v2702_v32  ;;  %v3228_v57 = vpop.eup %3227  ;;  %v8836_v42 = vld [vmem:[#allocation196_spill] sm:$0xff] }
 0x2ad   : > { %v7093_v28 = vmul.f32 %v8831_v48, %v8829_v34  ;;  %3237 = vrcp.f32 %v7073_v39  ;;  %v8835_v25 = vmax.f32 %v8834_v15, 0.0  ;;  %v2704_v44 = vsel %vm2368_vm8, %v2553_v41, 0.0  ;;  %2815 = vst [vmem:[%s6061_s29 + $0x238] sm:$0xff] %v2703_v52 }
 0x2ae   : > { %v7103_v21 = vmul.f32 %v1611_v29, %v8833_v35  ;;  %v2557_v29 = vmul.f32 %v3226_v54, %v6907_v19  ;;  %3239 = vrcp.f32 %v7079_v53  ;;  %v8837_v26 = vmax.f32 %v8836_v42, 0.0  ;;  %2816 = vst [vmem:[%s6061_s29 + $0x240] sm:$0xff] %v2704_v44  ;;  %v8842_v42 = vld [vmem:[#allocation121_spill] sm:$0xff] }
 0x2af   : > { %v7114_v38 = vmul.f32 %v1612_v31, %v8835_v25  ;;  %v3230_v31 = vpop.eup %3229  ;;  %v2559_v56 = vmul.f32 %v3228_v57, %v6918_v63  ;;  %v2705_v19 = vsel %vm2369_vm9, %v2555_v5, 0.0  ;;  %3241 = vrcp.f32 %v7082_v6  ;;  %v8840_v63 = vld [vmem:[#allocation198_spill] sm:$0xff] }
 0x2b0   : > { %v7125_v1 = vmul.f32 %v1613_v33, %v8837_v26  ;;  %v8839_v22 = vmax.f32 %v8838_v36, 0.0  ;;  %v2561_v61 = vmul.f32 %v3230_v31, %v6928_v17  ;;  %v2706_v33 = vsel %vm2370_vm10, %v2557_v29, 0.0  ;;  %2817 = vst [vmem:[%s6061_s29 + $0x248] sm:$0xff] %v2705_v19  ;;  %v8844_v26 = vld [vmem:[#allocation139_spill] sm:$0xff] }
 0x2b1   : > { %3243 = vrcp.f32 %v7086_v0  ;;  %v8841_v10 = vmax.f32 %v8840_v63, 0.0  ;;  %v2707_v24 = vsel %vm2371_vm11, %v2559_v56, 0.0  ;;  %2818 = vst [vmem:[%s6061_s29 + $0x250] sm:$0xff] %v2706_v33  ;;  %v2157_v17 = vadd.f32 %v8536_v23, %v1988_v3 }
 0x2b2   : > { %v7136_v16 = vmul.f32 %v1614_v40, %v8839_v22  ;;  %v2156_v40 = vadd.f32 %v8535_v11, %v1988_v3  ;;  %v2158_v50 = vadd.f32 %v8541_v27, %v1988_v3  ;;  %v2708_v34 = vsel %vm2372_vm12, %v2561_v61, 0.0  ;;  %2819 = vst [vmem:[%s6061_s29 + $0x258] sm:$0xff] %v2707_v24  ;;  %v8848_v22 = vld [vmem:[#allocation140_spill] sm:$0xff] }
 0x2b3   : > { %v7147_v4 = vmul.f32 %v1615_v9, %v8841_v10  ;;  %vm2373_vm13 = vcmp.gt.f32.partialorder %v7053_v49, 0.0  ;;  %v2159_v30 = vadd.f32 %v8542_v37, %v1988_v3  ;;  %v2160_v9 = vadd.f32 %v8543_v18, %v1988_v3  ;;  %v3232_v60 = vpop.eup %3231  ;;  %2820 = vst [vmem:[%s6061_s29 + $0x260] sm:$0xff] %v2708_v34 }
 0x2b4   : > { %vm2374_vm14 = vcmp.gt.f32.partialorder %v7056_v51, 0.0  ;;  %v2161_v45 = vadd.f32 %v8548_v55, %v1988_v3  ;;  %v2162_v48 = vadd.f32 %v8553_v46, %v1988_v3  ;;  %v7166_v8 = vsub.f32 %v2156_v40, %v7062_v62  ;;  %v3234_v32 = vpop.eup %3233 }
 0x2b5   : > { %vm2375_vm15 = vcmp.gt.f32.partialorder %v7068_v59, 0.0  ;;  %vm2376_vm0 = vcmp.gt.f32.partialorder %v7073_v39, 0.0  ;;  %v2563_v13 = vmul.f32 %v3232_v60, %v6978_v47  ;;  %v7172_v41 = vsub.f32 %v2157_v17, %v7093_v28  ;;  %v8850_v59 = vld [vmem:[#allocation13_spill] sm:$0xff]  ;;  %v8854_v39 = vld [vmem:[#allocation123_spill] sm:$0xff]  ;;  %v8856_v60 = vld [vmem:[#allocation142_spill] sm:$0xff] }
 0x2b6   : > { %vm2377_vm1 = vcmp.gt.f32.partialorder %v7079_v53, 0.0  ;;  %vm2378_vm2 = vcmp.gt.f32.partialorder %v7082_v6, 0.0  ;;  %vm2379_vm3 = vcmp.gt.f32.partialorder %v7086_v0, 0.0  ;;  %v7178_v2 = vsub.f32 %v2158_v50, %v7103_v21  ;;  %v3236_v35 = vpop.eup %3235  ;;  %v8852_v17 = vld [vmem:[#allocation141_spill] sm:$0xff]  ;;  %v8866_v6 = vld [vmem:[#allocation126_spill] sm:$0xff] }
 0x2b7   : > { %v2565_v54 = vmul.f32 %v3234_v32, %v6984_v20  ;;  %v2709_v5 = vsel %vm2373_vm13, %v2563_v13, 0.0  ;;  %v7184_v47 = vsub.f32 %v2159_v30, %v7114_v38  ;;  %v7187_v52 = vsub.f32 %v2160_v9, %v7125_v1  ;;  %v3238_v15 = vpop.eup %3237  ;;  %v8858_v32 = vld [vmem:[#allocation124_spill] sm:$0xff] }
 0x2b8   : > { %v2567_v25 = vmul.f32 %v3236_v35, %v6994_v14  ;;  %2821 = vst [vmem:[%s6061_s29 + $0x268] sm:$0xff] %v2709_v5  ;;  %v7192_v57 = vsub.f32 %v2161_v45, %v7136_v16  ;;  %v7195_v29 = vsub.f32 %v2162_v48, %v7147_v4  ;;  %3245 = vrcp.f32 %v7166_v8  ;;  %v3240_v20 = vpop.eup %3239  ;;  %v8860_v35 = vld [vmem:[#allocation143_spill] sm:$0xff]  ;;  %v8862_v5 = vld [vmem:[#allocation125_spill] sm:$0xff] }
 0x2b9   : > { %v2569_v49 = vmul.f32 %v3238_v15, %v7005_v7  ;;  %v2710_v44 = vsel %vm2374_vm14, %v2565_v54, 0.0  ;;  %3247 = vrcp.f32 %v7172_v41  ;;  %v8843_v14 = vmax.f32 %v8842_v42, 0.0  ;;  %v3242_v56 = vpop.eup %3241  ;;  %v8846_v7 = vld [vmem:[#allocation122_spill] sm:$0xff] }
 0x2ba   : > { %v8845_v3 = vmax.f32 %v8844_v26, 0.0  ;;  %v2571_v19 = vmul.f32 %v3240_v20, %v7016_v58  ;;  %v2711_v36 = vsel %vm2375_vm15, %v2567_v25, 0.0  ;;  %2822 = vst [vmem:[%s6061_s29 + $0x270] sm:$0xff] %v2710_v44  ;;  %3249 = vrcp.f32 %v7178_v2  ;;  %v1993_v58 = vpop.permute.xlu1 %1992  ;;  %v8864_v25 = vld [vmem:[#allocation91_spill] sm:$0xff] }
 0x2bb   : > { %v8847_v51 = vmax.f32 %v8846_v7, 0.0  ;;  %v8849_v61 = vmax.f32 %v8848_v22, 0.0  ;;  %v3244_v63 = vpop.eup %3243  ;;  %v2573_v10 = vmul.f32 %v3242_v56, %v7027_v43  ;;  %v2712_v24 = vsel %vm2376_vm0, %v2569_v49, 0.0  ;;  %2823 = vst [vmem:[%s6061_s29 + $0x278] sm:$0xff] %v2711_v36 }
 0x2bc   : > { %v7206_v31 = vmul.f32 %v8845_v3, %v8843_v14  ;;  %3251 = vrcp.f32 %v7184_v47  ;;  %v8851_v40 = vmax.f32 %v8850_v59, 0.0  ;;  %v8853_v50 = vmax.f32 %v8852_v17, 0.0  ;;  %2824 = vst [vmem:[%s6061_s29 + $0x280] sm:$0xff] %v2712_v24  ;;  %v8868_v14 = vld [vmem:[#allocation144_spill] sm:$0xff]  ;;  %v8870_v17 = vld [vmem:[#allocation26_spill] sm:$0xff] }
 0x2bd   : > { %v7217_v33 = vmul.f32 %v8849_v61, %v8847_v51  ;;  %v2575_v30 = vmul.f32 %v3244_v63, %v7037_v12  ;;  %v2713_v43 = vsel %vm2377_vm1, %v2571_v19, 0.0  ;;  %3253 = vrcp.f32 %v7187_v52 }
 0x2be   : > { %v7228_v34 = vmul.f32 %v8853_v50, %v8851_v40  ;;  %v8855_v9 = vmax.f32 %v8854_v39, 0.0  ;;  %v8857_v45 = vmax.f32 %v8856_v60, 0.0  ;;  %v2714_v13 = vsel %vm2378_vm2, %v2573_v10, 0.0  ;;  %2825 = vst [vmem:[%s6061_s29 + $0x288] sm:$0xff] %v2713_v43 }
 0x2bf   : > { %3255 = vrcp.f32 %v7192_v57  ;;  %v8859_v12 = vmax.f32 %v8858_v32, 0.0  ;;  %v8861_v53 = vmax.f32 %v8860_v35, 0.0  ;;  %v8863_v15 = vmax.f32 %v8862_v5, 0.0  ;;  %2826 = vst [vmem:[%s6061_s29 + $0x290] sm:$0xff] %v2714_v13  ;;  %v8871_v32 = vld [vmem:[#allocation200_spill] sm:$0xff]  ;;  %v8872_v5 = vld [vmem:[#allocation201_spill] sm:$0xff] }
 0x2c0   : > { %v7239_v48 = vmul.f32 %v8857_v45, %v8855_v9  ;;  %v8865_v20 = vmax.f32 %v8864_v25, 0.0  ;;  %v2715_v44 = vsel %vm2379_vm3, %v2575_v30, 0.0  ;;  %3257 = vrcp.f32 %v7195_v29 }
 0x2c1   : > { %v7249_v54 = vmul.f32 %v8861_v53, %v8859_v12  ;;  %v8867_v42 = vmax.f32 %v8866_v6, 0.0  ;;  %v8869_v26 = vmax.f32 %v8868_v14, 0.0  ;;  %v2163_v56 = vadd.f32 %v8535_v11, %v1993_v58  ;;  %2827 = vst [vmem:[%s6061_s29 + $0x298] sm:$0xff] %v2715_v44 }
 0x2c2   : > { %v7255_v49 = vmul.f32 %v8865_v20, %v8863_v15  ;;  %vm2380_vm4 = vcmp.gt.f32.partialorder %v7166_v8, 0.0  ;;  %v2164_v19 = vadd.f32 %v8536_v23, %v1993_v58  ;;  %v2165_v36 = vadd.f32 %v8541_v27, %v1993_v58  ;;  %v3246_v10 = vpop.eup %3245 }
 0x2c3   : > { %v7265_v3 = vmul.f32 %v8869_v26, %v8867_v42  ;;  %v2166_v0 = vadd.f32 %v8542_v37, %v1993_v58  ;;  %v2167_v7 = vadd.f32 %v8543_v18, %v1993_v58  ;;  %v2168_v51 = vadd.f32 %v8548_v55, %v1993_v58  ;;  %v8875_v26 = vld [vmem:[#allocation204_spill] sm:$0xff] }
 0x2c4   : > { %v2169_v22 = vadd.f32 %v8553_v46, %v1993_v58  ;;  %v7277_v61 = vsub.f32 %v2163_v56, %v7206_v31  ;;  %vm2381_vm5 = vcmp.gt.f32.partialorder %v7172_v41, 0.0  ;;  %vm2382_vm6 = vcmp.gt.f32.partialorder %v7178_v2, 0.0  ;;  %v3248_v58 = vpop.eup %3247  ;;  %v8876_v56 = vld [vmem:[#allocation205_spill] sm:$0xff] }
 0x2c5   : > { %vm2383_vm7 = vcmp.gt.f32.partialorder %v7184_v47, 0.0  ;;  %v7283_v63 = vsub.f32 %v2164_v19, %v7217_v33  ;;  %vm2384_vm8 = vcmp.gt.f32.partialorder %v7187_v52, 0.0  ;;  %vm2385_vm9 = vcmp.gt.f32.partialorder %v7192_v57, 0.0  ;;  %v3250_v30 = vpop.eup %3249  ;;  %v8878_v52 = vld [vmem:[#allocation206_spill] sm:$0xff]  ;;  %v8881_v57 = vld [vmem:[#allocation209_spill] sm:$0xff] }
 0x2c6   : > { %v7288_v24 = vsub.f32 %v2165_v36, %v7228_v34  ;;  %3259 = vrcp.f32 %v7277_v61  ;;  %vm2386_vm10 = vcmp.gt.f32.partialorder %v7195_v29, 0.0  ;;  %v2577_v59 = vmul.f32 %v3246_v10, %v7062_v62  ;;  %v3252_v62 = vpop.eup %3251  ;;  %v8877_v36 = vld [vmem:[#allocation39_spill] sm:$0xff]  ;;  %v8880_v10 = vld [vmem:[#allocation208_spill] sm:$0xff] }
 0x2c7   : > { %v7294_v40 = vsub.f32 %v2166_v0, %v7239_v48  ;;  %v921_v50 = vmax.f32 %v8870_v17, 0.0  ;;  %v2579_v43 = vmul.f32 %v3248_v58, %v7093_v28  ;;  %v7299_v39 = vsub.f32 %v2167_v7, %v7249_v54  ;;  %v3254_v12 = vpop.eup %3253 }
 0x2c8   : > { %v7302_v9 = vsub.f32 %v2168_v51, %v7255_v49  ;;  %v7305_v60 = vsub.f32 %v2169_v22, %v7265_v3  ;;  %v2581_v45 = vmul.f32 %v3250_v30, %v7103_v21  ;;  %v2716_v13 = vsel %vm2380_vm4, %v2577_v59, 0.0  ;;  %v8879_v51 = vld [vmem:[#allocation207_spill] sm:$0xff]  ;;  %v8882_v30 = vld [vmem:[#allocation210_spill] sm:$0xff] }
 0x2c9   : > { %3261 = vrcp.f32 %v7283_v63  ;;  %v922_v28 = vmax.f32 %v8871_v32, 0.0  ;;  %v2583_v35 = vmul.f32 %v3252_v62, %v7114_v38  ;;  %v2717_v53 = vsel %vm2381_vm5, %v2579_v43, 0.0  ;;  %2828 = vst [vmem:[%s6061_s29 + $0x2a0] sm:$0xff] %v2716_v13  ;;  %v3256_v15 = vpop.eup %3255  ;;  %v8873_v38 = vld [vmem:[#allocation202_spill] sm:$0xff]  ;;  %v8883_v62 = vld [vmem:[#allocation211_spill] sm:$0xff]  ;;  %v1998_v32 = vpop.permute.xlu0 %1997 }
 0x2ca   : > { %3263 = vrcp.f32 %v7288_v24  ;;  %v923_v21 = vmax.f32 %v8872_v5, 0.0  ;;  %v2585_v8 = vmul.f32 %v3254_v12, %v7125_v1  ;;  %v2718_v25 = vsel %vm2382_vm6, %v2581_v45, 0.0  ;;  %2829 = vst [vmem:[%s6061_s29 + $0x2a8] sm:$0xff] %v2717_v53  ;;  %v3258_v41 = vpop.eup %3257  ;;  %v8874_v1 = vld [vmem:[#allocation203_spill] sm:$0xff] }
 0x2cb   : > { %3265 = vrcp.f32 %v7294_v40  ;;  %v924_v20 = vmax.f32 %v8873_v38, 0.0  ;;  %v2587_v44 = vmul.f32 %v3256_v15, %v7136_v16  ;;  %v2719_v6 = vsel %vm2383_vm7, %v2583_v35, 0.0  ;;  %2830 = vst [vmem:[%s6061_s29 + $0x2b0] sm:$0xff] %v2718_v25 }
 0x2cc   : > { %3267 = vrcp.f32 %v7299_v39  ;;  %v925_v42 = vmax.f32 %v8874_v1, 0.0  ;;  %v2589_v2 = vmul.f32 %v3258_v41, %v7147_v4  ;;  %v2720_v14 = vsel %vm2384_vm8, %v2585_v8, 0.0  ;;  %2831 = vst [vmem:[%s6061_s29 + $0x2b8] sm:$0xff] %v2719_v6 }
 0x2cd   : > { %3269 = vrcp.f32 %v7302_v9  ;;  %v926_v16 = vmax.f32 %v8875_v26, 0.0  ;;  %v2721_v47 = vsel %vm2385_vm9, %v2587_v44, 0.0  ;;  %2832 = vst [vmem:[%s6061_s29 + $0x2c0] sm:$0xff] %v2720_v14  ;;  %v927_v19 = vmax.f32 %v8876_v56, 0.0 }
 0x2ce   : > { %3271 = vrcp.f32 %v7305_v60  ;;  %v1623_v0 = vmax.f32 %v8877_v36, 0.0  ;;  %v2722_v4 = vsel %vm2386_vm10, %v2589_v2, 0.0  ;;  %2833 = vst [vmem:[%s6061_s29 + $0x2c8] sm:$0xff] %v2721_v47  ;;  %v1624_v7 = vmax.f32 %v8878_v52, 0.0 }
 0x2cf   : > { %v1625_v22 = vmax.f32 %v8879_v51, 0.0  ;;  %v1626_v58 = vmax.f32 %v8880_v10, 0.0  ;;  %2834 = vst [vmem:[%s6061_s29 + $0x2d0] sm:$0xff] %v2722_v4  ;;  %v1627_v17 = vmax.f32 %v8881_v57, 0.0  ;;  %v1628_v43 = vmax.f32 %v8882_v30, 0.0  ;;  %v8884_v4 = vld [vmem:[#allocation145_spill] sm:$0xff] }
 0x2d0   : > { %v3260_v59 = vpop.eup %3259  ;;  %v1629_v45 = vmax.f32 %v8883_v62, 0.0  ;;  %v7352_v13 = vmul.f32 %v1623_v0, %v921_v50  ;;  %v7355_v12 = vmul.f32 %v1624_v7, %v922_v28  ;;  %vm2387_vm11 = vcmp.gt.f32.partialorder %v7277_v61, 0.0  ;;  %v8885_v7 = vld [vmem:[#allocation146_spill] sm:$0xff]  ;;  %v8887_v10 = vld [vmem:[#allocation148_spill] sm:$0xff]  ;;  %v8890_v62 = vld [vmem:[#allocation151_spill] sm:$0xff] }
 0x2d1   : > { %v2591_v29 = vmul.f32 %v3260_v59, %v7206_v31  ;;  %v7357_v35 = vmul.f32 %v1625_v22, %v923_v21  ;;  %v7359_v53 = vmul.f32 %v1626_v58, %v924_v20  ;;  %v7362_v5 = vmul.f32 %v1627_v17, %v925_v42  ;;  %v8888_v59 = vld [vmem:[#allocation149_spill] sm:$0xff]  ;;  %v2003_v17 = vpop.permute.xlu1 %2002  ;;  %v8889_v30 = vld [vmem:[#allocation150_spill] sm:$0xff] }
 0x2d2   : > { %v7364_v15 = vmul.f32 %v1628_v43, %v926_v16  ;;  %v7366_v8 = vmul.f32 %v1629_v45, %v927_v19  ;;  %vm2388_vm12 = vcmp.gt.f32.partialorder %v7283_v63, 0.0  ;;  %vm2389_vm13 = vcmp.gt.f32.partialorder %v7288_v24, 0.0 }
 0x2d3   : > { %v3262_v50 = vpop.eup %3261  ;;  %v2723_v31 = vsel %vm2387_vm11, %v2591_v29, 0.0  ;;  %v2170_v28 = vadd.f32 %v8535_v11, %v1998_v32  ;;  %vm2390_vm14 = vcmp.gt.f32.partialorder %v7294_v40, 0.0  ;;  %vm2391_vm15 = vcmp.gt.f32.partialorder %v7299_v39, 0.0 }
 0x2d4   : > { %v3264_v21 = vpop.eup %3263  ;;  %v2593_v61 = vmul.f32 %v3262_v50, %v7217_v33  ;;  %2835 = vst [vmem:[%s6061_s29 + $0x2d8] sm:$0xff] %v2723_v31  ;;  %v2171_v25 = vadd.f32 %v8536_v23, %v1998_v32  ;;  %v2172_v41 = vadd.f32 %v8541_v27, %v1998_v32  ;;  %v2173_v44 = vadd.f32 %v8542_v37, %v1998_v32  ;;  %v8893_v31 = vld [vmem:[#allocation127_spill] sm:$0xff] }
 0x2d5   : > { %v3266_v38 = vpop.eup %3265  ;;  %v2595_v20 = vmul.f32 %v3264_v21, %v7228_v34  ;;  %v2174_v6 = vadd.f32 %v8543_v18, %v1998_v32  ;;  %v2175_v2 = vadd.f32 %v8548_v55, %v1998_v32  ;;  %v2176_v14 = vadd.f32 %v8553_v46, %v1998_v32  ;;  %v8891_v32 = vld [vmem:[#allocation14_spill] sm:$0xff] }
 0x2d6   : > { %v3268_v1 = vpop.eup %3267  ;;  %v2597_v42 = vmul.f32 %v3266_v38, %v7239_v48  ;;  %v2724_v33 = vsel %vm2388_vm12, %v2593_v61, 0.0  ;;  %vm2392_vm0 = vcmp.gt.f32.partialorder %v7302_v9, 0.0  ;;  %v7391_v48 = vsub.f32 %v2170_v28, %v7352_v13  ;;  %v8886_v9 = vld [vmem:[#allocation147_spill] sm:$0xff]  ;;  %v8895_v61 = vld [vmem:[#allocation128_spill] sm:$0xff] }
 0x2d7   : > { %v3270_v26 = vpop.eup %3269  ;;  %v2599_v34 = vmul.f32 %v3268_v1, %v7249_v54  ;;  %v2725_v16 = vsel %vm2389_vm13, %v2595_v20, 0.0  ;;  %2836 = vst [vmem:[%s6061_s29 + $0x2e0] sm:$0xff] %v2724_v33  ;;  %vm2393_vm1 = vcmp.gt.f32.partialorder %v7305_v60, 0.0  ;;  %v7399_v54 = vsub.f32 %v2171_v25, %v7355_v12  ;;  %v8897_v20 = vld [vmem:[#allocation129_spill] sm:$0xff]  ;;  %v8901_v33 = vld [vmem:[#allocation131_spill] sm:$0xff] }
 0x2d8   : > { %v3272_v63 = vpop.eup %3271  ;;  %v2601_v47 = vmul.f32 %v3270_v26, %v7255_v49  ;;  %v2726_v56 = vsel %vm2390_vm14, %v2597_v42, 0.0  ;;  %2837 = vst [vmem:[%s6061_s29 + $0x2e8] sm:$0xff] %v2725_v16  ;;  %v7406_v36 = vsub.f32 %v2172_v41, %v7357_v35  ;;  %v7409_v60 = vsub.f32 %v2173_v44, %v7359_v53  ;;  %v8903_v26 = vld [vmem:[#allocation132_spill] sm:$0xff] }
 0x2d9   : > { %v2603_v24 = vmul.f32 %v3272_v63, %v7265_v3  ;;  %v2727_v19 = vsel %vm2391_vm15, %v2599_v34, 0.0  ;;  %2838 = vst [vmem:[%s6061_s29 + $0x2f0] sm:$0xff] %v2726_v56  ;;  %v7415_v40 = vsub.f32 %v2174_v6, %v7362_v5  ;;  %v7418_v0 = vsub.f32 %v2175_v2, %v7364_v15  ;;  %v8899_v6 = vld [vmem:[#allocation130_spill] sm:$0xff] }
 0x2da   : > { %v2728_v49 = vsel %vm2392_vm0, %v2601_v47, 0.0  ;;  %2839 = vst [vmem:[%s6061_s29 + $0x2f8] sm:$0xff] %v2727_v19  ;;  %v7421_v3 = vsub.f32 %v2176_v14, %v7366_v8  ;;  %3273 = vrcp.f32 %v7391_v48  ;;  %v1630_v52 = vmax.f32 %v8884_v4, 0.0 }
 0x2db   : > { %v2729_v39 = vsel %vm2393_vm1, %v2603_v24, 0.0  ;;  %2840 = vst [vmem:[%s6061_s29 + $0x300] sm:$0xff] %v2728_v49  ;;  %v1631_v51 = vmax.f32 %v8885_v7, 0.0  ;;  %3275 = vrcp.f32 %v7399_v54  ;;  %v1632_v22 = vmax.f32 %v8886_v9, 0.0 }
 0x2dc   : > { %2841 = vst [vmem:[%s6061_s29 + $0x308] sm:$0xff] %v2729_v39  ;;  %v1633_v58 = vmax.f32 %v8887_v10, 0.0  ;;  %v1634_v57 = vmax.f32 %v8888_v59, 0.0  ;;  %3277 = vrcp.f32 %v7406_v36  ;;  %v1635_v43 = vmax.f32 %v8889_v30, 0.0 }
 0x2dd   : > { %v1636_v45 = vmax.f32 %v8890_v62, 0.0  ;;  %v8892_v29 = vmax.f32 %v8891_v32, 0.0  ;;  %3279 = vrcp.f32 %v7409_v60  ;;  %v8894_v28 = vmax.f32 %v8893_v31, 0.0 }
 0x2de   : > { %v8896_v25 = vmax.f32 %v8895_v61, 0.0  ;;  %v8898_v41 = vmax.f32 %v8897_v20, 0.0  ;;  %3281 = vrcp.f32 %v7415_v40  ;;  %v8900_v1 = vmax.f32 %v8899_v6, 0.0 }
 0x2df   : > { %v7437_v50 = vmul.f32 %v1630_v52, %v8892_v29  ;;  %v7442_v21 = vmul.f32 %v1631_v51, %v8894_v28  ;;  %v8902_v2 = vmax.f32 %v8901_v33, 0.0  ;;  %v8904_v34 = vmax.f32 %v8903_v26, 0.0 }
 0x2e0   : > { %v7446_v38 = vmul.f32 %v1632_v22, %v8896_v25  ;;  %v7450_v44 = vmul.f32 %v1633_v58, %v8898_v41  ;;  %v7455_v42 = vmul.f32 %v1634_v57, %v8900_v1  ;;  %3283 = vrcp.f32 %v7418_v0 }
 0x2e1   : > { %v7459_v14 = vmul.f32 %v1635_v43, %v8902_v2  ;;  %v7463_v16 = vmul.f32 %v1636_v45, %v8904_v34  ;;  %v2177_v63 = vadd.f32 %v8535_v11, %v2003_v17  ;;  %v2178_v47 = vadd.f32 %v8536_v23, %v2003_v17 }
 0x2e2   : > { %v2179_v56 = vadd.f32 %v8541_v27, %v2003_v17  ;;  %3285 = vrcp.f32 %v7421_v3  ;;  %v2180_v24 = vadd.f32 %v8542_v37, %v2003_v17  ;;  %v2181_v19 = vadd.f32 %v8543_v18, %v2003_v17 }
 0x2e3   : > { %v2182_v49 = vadd.f32 %v8548_v55, %v2003_v17  ;;  %v7474_v39 = vsub.f32 %v2177_v63, %v7437_v50  ;;  %v7477_v4 = vsub.f32 %v2178_v47, %v7442_v21  ;;  %v2183_v11 = vadd.f32 %v8553_v46, %v2003_v17 }
 0x2e4   : > { %v7481_v23 = vsub.f32 %v2179_v56, %v7446_v38  ;;  %v7484_v27 = vsub.f32 %v2180_v24, %v7450_v44  ;;  %v3274_v52 = vpop.eup %3273  ;;  %v7487_v37 = vsub.f32 %v2181_v19, %v7455_v42  ;;  %vm2394_vm2 = vcmp.gt.f32.partialorder %v7391_v48, 0.0 }
 0x2e5   : > { %3287 = vrcp.f32 %v7474_v39  ;;  %v3276_v55 = vpop.eup %3275  ;;  %v2605_v18 = vmul.f32 %v3274_v52, %v7352_v13  ;;  %v7492_v7 = vsub.f32 %v2182_v49, %v7459_v14  ;;  %v7498_v9 = vsub.f32 %v2183_v11, %v7463_v16 }
 0x2e6   : > { %3289 = vrcp.f32 %v7477_v4  ;;  %v3278_v46 = vpop.eup %3277  ;;  %v2607_v51 = vmul.f32 %v3276_v55, %v7355_v12  ;;  %vm2395_vm3 = vcmp.gt.f32.partialorder %v7399_v54, 0.0  ;;  %vm2396_vm4 = vcmp.gt.f32.partialorder %v7406_v36, 0.0 }
 0x2e7   : > { %3291 = vrcp.f32 %v7481_v23  ;;  %v3280_v22 = vpop.eup %3279  ;;  %v2609_v13 = vmul.f32 %v3278_v46, %v7357_v35  ;;  %v2730_v10 = vsel %vm2394_vm2, %v2605_v18, 0.0  ;;  %vm2397_vm5 = vcmp.gt.f32.partialorder %v7409_v60, 0.0 }
 0x2e8   : > { %3293 = vrcp.f32 %v7484_v27  ;;  %v3282_v58 = vpop.eup %3281  ;;  %v2611_v12 = vmul.f32 %v3280_v22, %v7359_v53  ;;  %v2731_v48 = vsel %vm2395_vm3, %v2607_v51, 0.0  ;;  %2842 = vst [vmem:[%s6061_s29 + $0x310] sm:$0xff] %v2730_v10  ;;  %vm2398_vm6 = vcmp.gt.f32.partialorder %v7415_v40, 0.0 }
 0x2e9   : > { %3295 = vrcp.f32 %v7487_v37  ;;  %v2613_v35 = vmul.f32 %v3282_v58, %v7362_v5  ;;  %v2732_v54 = vsel %vm2396_vm4, %v2609_v13, 0.0  ;;  %2843 = vst [vmem:[%s6061_s29 + $0x318] sm:$0xff] %v2731_v48  ;;  %vm2399_vm7 = vcmp.gt.f32.partialorder %v7418_v0, 0.0 }
 0x2ea   : > { %v3284_v59 = vpop.eup %3283  ;;  %3297 = vrcp.f32 %v7492_v7  ;;  %v2733_v57 = vsel %vm2397_vm5, %v2611_v12, 0.0  ;;  %2844 = vst [vmem:[%s6061_s29 + $0x320] sm:$0xff] %v2732_v54  ;;  %vm2400_vm8 = vcmp.gt.f32.partialorder %v7421_v3, 0.0  ;;  %vm2401_vm9 = vcmp.gt.f32.partialorder %v7474_v39, 0.0 }
 0x2eb   : > { %v2615_v53 = vmul.f32 %v3284_v59, %v7364_v15  ;;  %3299 = vrcp.f32 %v7498_v9  ;;  %v2734_v60 = vsel %vm2398_vm6, %v2613_v35, 0.0  ;;  %2845 = vst [vmem:[%s6061_s29 + $0x328] sm:$0xff] %v2733_v57  ;;  %vm2402_vm10 = vcmp.gt.f32.partialorder %v7477_v4, 0.0 }
 0x2ec   : > { %v3286_v36 = vpop.eup %3285  ;;  %2846 = vst [vmem:[%s6061_s29 + $0x330] sm:$0xff] %v2734_v60  ;;  %vm2403_vm11 = vcmp.gt.f32.partialorder %v7481_v23, 0.0  ;;  %vm2404_vm12 = vcmp.gt.f32.partialorder %v7484_v27, 0.0  ;;  %vm2405_vm13 = vcmp.gt.f32.partialorder %v7487_v37, 0.0  ;;  %vm2406_vm14 = vcmp.gt.f32.partialorder %v7492_v7, 0.0 }
 0x2ed   : > { %v2617_v5 = vmul.f32 %v3286_v36, %v7366_v8  ;;  %v2735_v17 = vsel %vm2399_vm7, %v2615_v53, 0.0  ;;  %vm2407_vm15 = vcmp.gt.f32.partialorder %v7498_v9, 0.0 }
 0x2ee   : > { %2847 = vst [vmem:[%s6061_s29 + $0x338] sm:$0xff] %v2735_v17 }
 0x2ef   : > { %v2736_v40 = vsel %vm2400_vm8, %v2617_v5, 0.0  ;;  %v3288_v15 = vpop.eup %3287 }
 0x2f0   : > { %2848 = vst [vmem:[%s6061_s29 + $0x340] sm:$0xff] %v2736_v40  ;;  %v3290_v30 = vpop.eup %3289  ;;  %v2619_v43 = vmul.f32 %v3288_v15, %v7437_v50 }
 0x2f1   : > { %v3292_v0 = vpop.eup %3291  ;;  %v2621_v8 = vmul.f32 %v3290_v30, %v7442_v21 }
 0x2f2   : > { %v3294_v3 = vpop.eup %3293  ;;  %v2623_v62 = vmul.f32 %v3292_v0, %v7446_v38  ;;  %v2737_v45 = vsel %vm2401_vm9, %v2619_v43, 0.0 }
 0x2f3   : > { %v3296_v32 = vpop.eup %3295  ;;  %v2625_v29 = vmul.f32 %v3294_v3, %v7450_v44  ;;  %v2738_v50 = vsel %vm2402_vm10, %v2621_v8, 0.0  ;;  %2849 = vst [vmem:[%s6061_s29 + $0x348] sm:$0xff] %v2737_v45 }
 0x2f4   : > { %v3298_v31 = vpop.eup %3297  ;;  %v2627_v28 = vmul.f32 %v3296_v32, %v7455_v42  ;;  %v2739_v21 = vsel %vm2403_vm11, %v2623_v62, 0.0  ;;  %2850 = vst [vmem:[%s6061_s29 + $0x350] sm:$0xff] %v2738_v50 }
 0x2f5   : > { %v3300_v61 = vpop.eup %3299  ;;  %v2629_v25 = vmul.f32 %v3298_v31, %v7459_v14  ;;  %v2740_v38 = vsel %vm2404_vm12, %v2625_v29, 0.0  ;;  %2851 = vst [vmem:[%s6061_s29 + $0x358] sm:$0xff] %v2739_v21 }
 0x2f6   : > { %v2631_v20 = vmul.f32 %v3300_v61, %v7463_v16  ;;  %v2741_v41 = vsel %vm2405_vm13, %v2627_v28, 0.0  ;;  %2852 = vst [vmem:[%s6061_s29 + $0x360] sm:$0xff] %v2740_v38 }
 0x2f7   : > { %v2742_v44 = vsel %vm2406_vm14, %v2629_v25, 0.0  ;;  %2853 = vst [vmem:[%s6061_s29 + $0x368] sm:$0xff] %v2741_v41 }
 0x2f8   : > { %v2743_v6 = vsel %vm2407_vm15, %v2631_v20, 0.0  ;;  %2854 = vst [vmem:[%s6061_s29 + $0x370] sm:$0xff] %v2742_v44 }
 0x2f9   : > { %2855 = vst [vmem:[%s6061_s29 + $0x378] sm:$0xff] %v2743_v6 }
 0x2fa   : > { %3318 = shalt.err (!%p3315_p7)
}
 0x2fb   : > { %s3319_s25 = scalar_lea.hbm %s7553_s7, 14336  ;;  %s3323_s29 = scalar_lea.hbm %s7613_s2, 200704 }
 0x2fc   : > { %p3320_p9 = scmp.ne.s32.totalorder %s7553_s7, %s3319_s25  ;;  %p3324_p12 = scmp.lt.u32.totalorder %s7553_s7, %s7613_s2 }
 0x2fd   : > { %p3325_p13 = scmp.lt.u32.totalorder %s3323_s29, %s3319_s25  ;;  %p3327_p1 = scmp.lt.u32.totalorder %s3319_s25, %s7553_s7 }
 0x2fe   : > { %p3321_p10 = pnand %p3320_p9, %p3476_p3 }
 0x2ff   : > { %p3326_p0 = por %p3325_p13, %p3324_p12 }
 0x300   : > { %p3322_p11 = pneg %p3321_p10 }
 0x301   : > { %p3328_p2 = por %p3327_p1, %p3326_p0 }
 0x303   : > { %p3329_p4 = pnand %p3328_p2, %p3322_p11 }
 0x305   : > { %3332 = shalt.err (!%p3329_p4)
}
 0x306   : > { %s3408_s12 = smov 896   ;;  %s3409_s4 = smov 56  }
 0x307   : > { %2989 = dma.vmem_to_hbm [thread:$0]  (%p3476_p3), %s7546_s13, 14336, %s7553_s7, %s7559_s8, %s3408_s12, %s3408_s12, %s3409_s4  }
 0x308 PF: > { %p2995_p5 = scmp.ge.s32.totalorder %s3399_s16, 2  ;;  %s2888_s5 = sand.u32 1, %s3371_s9  }
 0x309   : > { %s2889_s6 = scalar_lea.sflag [#allocation3], %s2888_s5 }
 0x30a   : > { %p2992_p6 = pnand %p2995_p5, %p3485_p8 }
 0x30c   : > { %3366 = dma.done.wait (!%p2992_p6), %s2889_s6, 14336  }
 0x30d   : > { %3368 = vsyncadd (!%p2992_p6), %s2889_s6, 4294952960  ;;  %s15_s16 = sadd.s32 1, %s3399_s16   ;;  %s8905_s9 = smov %s3375_s10 }
 0x30e   : > { %p12_p7 = scmp.ge.s32.totalorder %s15_s16, 16   ;;  %s8906_s10 = smov %s3379_s11 }
 0x30f   : > { %s8907_s11 = smov %s3494_s27  ;;  %s8908_s12 = smov %s3391_s14 }
 0x310   : > { %s8909_s13 = smov %s3395_s15  ;;  %s8910_s14 = smov %s8913_s19 }
 0x311   : > { %s8911_s15 = smov %s8917_s20  ;;  %14 = sbr.rel (!%p12_p7) target bundleno = 5 (0x5), region = 66 }
 0x318   :  { %2894 = vsyncpa [#allocation3], 1 }
 0x319   :  { %2896 = vsyncpa [#allocation3 + $0x1], 1 }

</bundles_post_ra>
